<compile_context>
chip_gen: v6e
topology: v6e:2x2x1
jax: 0.10.0
libtpu: 0.0.40
codegen_flags: <defaults>
</compile_context>

<pallas_src>
import math
import jax
import jax.numpy as jnp
from jax.experimental import pallas as pl
from jax.experimental.pallas import tpu as pltpu  # noqa: F401  (TPU backend)

# ----------------------------- configuration -------------------------------
EMBED = 32            # embedding_size
NUM_HEADS = 2         # num_heads
HEAD_DIM = EMBED // NUM_HEADS
NUM_ENC_LAYERS = 2    # num_encoder_layers
NUM_DEC_LAYERS = 2    # num_decoder_layers
FFN = 64              # forward_expansion (dim_feedforward)
SRC_VOCAB = 50
TGT_VOCAB = 60
MAX_SEQ_LEN = 16
SRC_PAD_IDX = 0
LN_EPS = 1e-5
NEG_BIG = -1e30       # finite "masked" value (avoids NaN on fully-masked rows)
FC_PAD = 128          # lane-dense padded width for fc_out logits


# ------------------------------ parameter init -------------------------------
def init_params(key):
    """Raw parameters in PyTorch layout (Linear weight is [out, in])."""
    keys = iter(jax.random.split(key, 512))

    def nxt():
        return next(keys)

    def nrm(shape, scale=0.02):
        return scale * jax.random.normal(nxt(), shape, jnp.float32)

    def mha_params():
        return dict(
            in_proj_w=nrm((3 * EMBED, EMBED)),
            in_proj_b=jnp.zeros((3 * EMBED,), jnp.float32),
            out_w=nrm((EMBED, EMBED)),
            out_b=jnp.zeros((EMBED,), jnp.float32),
        )

    def enc_layer_params():
        return dict(
            self_attn=mha_params(),
            lin1_w=nrm((FFN, EMBED)), lin1_b=jnp.zeros((FFN,), jnp.float32),
            lin2_w=nrm((EMBED, FFN)), lin2_b=jnp.zeros((EMBED,), jnp.float32),
            norm1_g=jnp.ones((EMBED,), jnp.float32), norm1_b=jnp.zeros((EMBED,), jnp.float32),
            norm2_g=jnp.ones((EMBED,), jnp.float32), norm2_b=jnp.zeros((EMBED,), jnp.float32),
        )

    def dec_layer_params():
        p = enc_layer_params()
        p.update(
            cross_attn=mha_params(),
            norm3_g=jnp.ones((EMBED,), jnp.float32),
            norm3_b=jnp.zeros((EMBED,), jnp.float32),
        )
        return p

    return dict(
        src_word_emb=nrm((SRC_VOCAB, EMBED), 1.0),
        src_pos_emb=nrm((MAX_SEQ_LEN, EMBED), 1.0),
        tgt_word_emb=nrm((TGT_VOCAB, EMBED), 1.0),
        tgt_pos_emb=nrm((MAX_SEQ_LEN, EMBED), 1.0),
        encoder_layers=[enc_layer_params() for _ in range(NUM_ENC_LAYERS)],
        decoder_layers=[dec_layer_params() for _ in range(NUM_DEC_LAYERS)],
        enc_norm_g=jnp.ones((EMBED,), jnp.float32),
        enc_norm_b=jnp.zeros((EMBED,), jnp.float32),
        dec_norm_g=jnp.ones((EMBED,), jnp.float32),
        dec_norm_b=jnp.zeros((EMBED,), jnp.float32),
        fc_out_w=nrm((TGT_VOCAB, EMBED)),
        fc_out_b=jnp.zeros((TGT_VOCAB,), jnp.float32),
    )


# ----------------------- one-time parameter preprocessing --------------------
def preprocess_params(raw):
    """Transpose / per-head split / reshape / cast / pad — done once, offline."""
    E, H, d = EMBED, NUM_HEADS, HEAD_DIM
    f32 = lambda a: jnp.asarray(a, jnp.float32)

    def prep_mha(p):
        wq, wk, wv = jnp.split(f32(p["in_proj_w"]), 3, axis=0)   # each [E, E] (torch layout)
        bq, bk, bv = jnp.split(f32(p["in_proj_b"]), 3)
        per_w = lambda w: w.T.reshape(E, H, d).transpose(1, 0, 2)  # [H, E, d]
        per_b = lambda b: b.reshape(H, 1, d)                       # [H, 1, d]
        return dict(
            wq=per_w(wq), bq=per_b(bq),
            wk=per_w(wk), bk=per_b(bk),
            wv=per_w(wv), bv=per_b(bv),
            wo=f32(p["out_w"]).T.reshape(H, d, E),                 # [H, d, E]
            bo=f32(p["out_b"]).reshape(1, E),
        )

    def prep_enc_layer(p):
        return dict(
            sa=prep_mha(p["self_attn"]),
            lin1_w=f32(p["lin1_w"]).T, lin1_b=f32(p["lin1_b"]).reshape(1, FFN),
            lin2_w=f32(p["lin2_w"]).T, lin2_b=f32(p["lin2_b"]).reshape(1, E),
            n1_g=f32(p["norm1_g"]).reshape(1, E), n1_b=f32(p["norm1_b"]).reshape(1, E),
            n2_g=f32(p["norm2_g"]).reshape(1, E), n2_b=f32(p["norm2_b"]).reshape(1, E),
        )

    def prep_dec_layer(p):
        dd = prep_enc_layer(p)
        dd["ca"] = prep_mha(p["cross_attn"])
        dd["n3_g"] = f32(p["norm3_g"]).reshape(1, E)
        dd["n3_b"] = f32(p["norm3_b"]).reshape(1, E)
        return dd

    enc_layers = [prep_enc_layer(p) for p in raw["encoder_layers"]]
    dec_layers = [prep_dec_layer(p) for p in raw["decoder_layers"]]
    stack = lambda *xs: jnp.stack(xs, axis=0)            # stack layers -> fewer kernel operands
    enc_stack = jax.tree_util.tree_map(stack, *enc_layers)
    dec_stack = jax.tree_util.tree_map(stack, *dec_layers)

    fc_w = jnp.pad(f32(raw["fc_out_w"]).T, ((0, 0), (0, FC_PAD - TGT_VOCAB)))   # [E, 128]
    fc_b = jnp.pad(f32(raw["fc_out_b"]).reshape(1, TGT_VOCAB),
                   ((0, 0), (0, FC_PAD - TGT_VOCAB)))                           # [1, 128]

    kernel_params = dict(
        enc=enc_stack, dec=dec_stack,
        enc_n_g=f32(raw["enc_norm_g"]).reshape(1, E),
        enc_n_b=f32(raw["enc_norm_b"]).reshape(1, E),
        dec_n_g=f32(raw["dec_norm_g"]).reshape(1, E),
        dec_n_b=f32(raw["dec_norm_b"]).reshape(1, E),
        fc_w=fc_w, fc_b=fc_b,
    )
    embed = dict(
        src_word=f32(raw["src_word_emb"]), src_pos=f32(raw["src_pos_emb"]),
        tgt_word=f32(raw["tgt_word_emb"]), tgt_pos=f32(raw["tgt_pos_emb"]),
    )
    return dict(kernel=kernel_params, embed=embed)


# ------------------------------ fused forward --------------------------------
def envi_transformer_forward(prep, src, tgt):
    """Mirrors EnViTransformer.forward in eval mode (dropout = identity)."""
    B, Ts = src.shape
    _, Tt = tgt.shape
    E, H, d = EMBED, NUM_HEADS, HEAD_DIM

    # TODO(synk): embedding gathers (arbitrary row lookups) stay in plain JAX.
    emb = prep["embed"]
    embed_src = emb["src_word"][src] + emb["src_pos"][:Ts][None, :, :]   # [B, Ts, E]
    embed_tgt = emb["tgt_word"][tgt] + emb["tgt_pos"][:Tt][None, :, :]   # [B, Tt, E]
    pad_bias = jnp.where(src == SRC_PAD_IDX, NEG_BIG, 0.0).astype(jnp.float32)  # [B, Ts]

    leaves, treedef = jax.tree_util.tree_flatten(prep["kernel"])
    n_leaves = len(leaves)
    scale = 1.0 / math.sqrt(d)

    def fused_kernel(*refs):
        es_ref, et_ref, pb_ref = refs[0], refs[1], refs[2]
        out_ref = refs[-1]
        p = jax.tree_util.tree_unflatten(
            treedef, [r[...] for r in refs[3:3 + n_leaves]])

        es = es_ref[...]            # [B, Ts, E]
        et = et_ref[...]            # [B, Tt, E]
        pad_b = pb_ref[...]         # [B, Ts]

        def layer_norm(h, g, b):    # h: [M, E]; PyTorch LN (biased var, eps=1e-5)
            mean = jnp.mean(h, axis=-1, keepdims=True)
            cen = h - mean
            var = jnp.mean(cen * cen, axis=-1, keepdims=True)
            return cen * jax.lax.rsqrt(var + LN_EPS) * g + b

        def mha(xq, xkv, mp, bias):
            # xq: [B, Tq, E], xkv: [B, Tk, E]; bias broadcastable to [B, Tq, Tk] or None
            Tq, Tk = xq.shape[1], xkv.shape[1]
            xq2 = xq.reshape(B * Tq, E)
            xkv2 = xkv.reshape(B * Tk, E)
            acc = jnp.zeros((B * Tq, E), jnp.float32)
            for h in range(H):      # static unroll over heads (H = 2)
                qh = (jnp.dot(xq2, mp["wq"][h], preferred_element_type=jnp.float32)
                      + mp["bq"][h]).reshape(B, Tq, d)
                kh = (jnp.dot(xkv2, mp["wk"][h], preferred_element_type=jnp.float32)
                      + mp["bk"][h]).reshape(B, Tk, d)
                vh = (jnp.dot(xkv2, mp["wv"][h], preferred_element_type=jnp.float32)
                      + mp["bv"][h]).reshape(B, Tk, d)
                s = jnp.einsum("bqd,bkd->bqk", qh, kh,
                               preferred_element_type=jnp.float32) * scale
                if bias is not None:
                    s = s + bias
                s = s - jnp.max(s, axis=-1, keepdims=True)
                e = jnp.exp(s)
                pm = e / jnp.sum(e, axis=-1, keepdims=True)
                oh = jnp.einsum("bqk,bkd->bqd", pm, vh,
                                preferred_element_type=jnp.float32).reshape(B * Tq, d)
                acc = acc + jnp.dot(oh, mp["wo"][h], preferred_element_type=jnp.float32)
            return acc + mp["bo"]

        def ffn(h2, lp):
            t = jnp.maximum(
                jnp.dot(h2, lp["lin1_w"], preferred_element_type=jnp.float32)
                + lp["lin1_b"], 0.0)
            return (jnp.dot(t, lp["lin2_w"], preferred_element_type=jnp.float32)
                    + lp["lin2_b"])

        def layer_slice(tree, l):
            return jax.tree_util.tree_map(lambda t: t[l], tree)

        # masks, built in-kernel
        src_bias = pad_b.reshape(B, 1, Ts)                       # key-padding bias
        rows = jax.lax.broadcasted_iota(jnp.int32, (Tt, Tt), 0)
        cols = jax.lax.broadcasted_iota(jnp.int32, (Tt, Tt), 1)
        causal_bias = jnp.where(cols > rows, NEG_BIG, 0.0).astype(jnp.float32)[None, :, :]

        # ---------------- encoder (post-LN, relu, + final norm) ----------------
        x2 = es.reshape(B * Ts, E)
        for l in range(NUM_ENC_LAYERS):
            lp = layer_slice(p["enc"], l)
            a = mha(x2.reshape(B, Ts, E), x2.reshape(B, Ts, E), lp["sa"], src_bias)
            x2 = layer_norm(x2 + a, lp["n1_g"], lp["n1_b"])
            x2 = layer_norm(x2 + ffn(x2, lp), lp["n2_g"], lp["n2_b"])
        mem2 = layer_norm(x2, p["enc_n_g"], p["enc_n_b"])
        memory = mem2.reshape(B, Ts, E)

        # ---------------- decoder (+ final norm) ----------------
        y2 = et.reshape(B * Tt, E)
        for l in range(NUM_DEC_LAYERS):
            lp = layer_slice(p["dec"], l)
            a = mha(y2.reshape(B, Tt, E), y2.reshape(B, Tt, E), lp["sa"], causal_bias)
            y2 = layer_norm(y2 + a, lp["n1_g"], lp["n1_b"])
            c = mha(y2.reshape(B, Tt, E), memory, lp["ca"], None)  # no memory mask
            y2 = layer_norm(y2 + c, lp["n2_g"], lp["n2_b"])
            y2 = layer_norm(y2 + ffn(y2, lp), lp["n3_g"], lp["n3_b"])
        y2 = layer_norm(y2, p["dec_n_g"], p["dec_n_b"])

        # fc_out, lane-dense (padded to 128)
        out_ref[...] = (jnp.dot(y2, p["fc_w"], preferred_element_type=jnp.float32)
                        + p["fc_b"])

    out = pl.pallas_call(
        fused_kernel,
        out_shape=jax.ShapeDtypeStruct((B * Tt, FC_PAD), jnp.float32),
    )(embed_src.astype(jnp.float32), embed_tgt.astype(jnp.float32), pad_bias, *leaves)

    return out[:, :TGT_VOCAB].reshape(B, Tt, TGT_VOCAB)


# ----------------------------------- main ------------------------------------
if __name__ == "__main__":
    key = jax.random.PRNGKey(0)
    pkey, skey, tkey = jax.random.split(key, 3)
    raw_params = init_params(pkey)
    prep = preprocess_params(raw_params)

    B, Ts, Tt = 2, 8, 8
    src = jax.random.randint(skey, (B, Ts), 1, SRC_VOCAB).astype(jnp.int32)
    src = src.at[:, -2:].set(SRC_PAD_IDX)   # a couple of <PAD> tokens per sequence
    tgt = jax.random.randint(tkey, (B, Tt), 1, TGT_VOCAB).astype(jnp.int32)

    fwd = jax.jit(envi_transformer_forward)
    out = jax.block_until_ready(fwd(prep, src, tgt))

    assert out.shape == (B, Tt, TGT_VOCAB), out.shape
    assert out.dtype == jnp.float32
    assert bool(jnp.all(jnp.isfinite(out)))
    print("KERNEL_OK")
</pallas_src>

<mosaic_0001>
module attributes {stable_mosaic.version = 11 : i64} {
  func.func @fused_kernel(%arg0: memref<2x8x32xf32, #tpu.memory_space<vmem>>, %arg1: memref<2x8x32xf32, #tpu.memory_space<vmem>>, %arg2: memref<2x8xf32, #tpu.memory_space<vmem>>, %arg3: memref<2x2x1x16xf32, #tpu.memory_space<vmem>>, %arg4: memref<2x1x32xf32, #tpu.memory_space<vmem>>, %arg5: memref<2x2x1x16xf32, #tpu.memory_space<vmem>>, %arg6: memref<2x2x1x16xf32, #tpu.memory_space<vmem>>, %arg7: memref<2x2x32x16xf32, #tpu.memory_space<vmem>>, %arg8: memref<2x2x16x32xf32, #tpu.memory_space<vmem>>, %arg9: memref<2x2x32x16xf32, #tpu.memory_space<vmem>>, %arg10: memref<2x2x32x16xf32, #tpu.memory_space<vmem>>, %arg11: memref<2x1x64xf32, #tpu.memory_space<vmem>>, %arg12: memref<2x32x64xf32, #tpu.memory_space<vmem>>, %arg13: memref<2x1x32xf32, #tpu.memory_space<vmem>>, %arg14: memref<2x64x32xf32, #tpu.memory_space<vmem>>, %arg15: memref<2x1x32xf32, #tpu.memory_space<vmem>>, %arg16: memref<2x1x32xf32, #tpu.memory_space<vmem>>, %arg17: memref<2x1x32xf32, #tpu.memory_space<vmem>>, %arg18: memref<2x1x32xf32, #tpu.memory_space<vmem>>, %arg19: memref<2x1x32xf32, #tpu.memory_space<vmem>>, %arg20: memref<2x1x32xf32, #tpu.memory_space<vmem>>, %arg21: memref<2x2x1x16xf32, #tpu.memory_space<vmem>>, %arg22: memref<2x1x32xf32, #tpu.memory_space<vmem>>, %arg23: memref<2x2x1x16xf32, #tpu.memory_space<vmem>>, %arg24: memref<2x2x1x16xf32, #tpu.memory_space<vmem>>, %arg25: memref<2x2x32x16xf32, #tpu.memory_space<vmem>>, %arg26: memref<2x2x16x32xf32, #tpu.memory_space<vmem>>, %arg27: memref<2x2x32x16xf32, #tpu.memory_space<vmem>>, %arg28: memref<2x2x32x16xf32, #tpu.memory_space<vmem>>, %arg29: memref<1x32xf32, #tpu.memory_space<vmem>>, %arg30: memref<1x32xf32, #tpu.memory_space<vmem>>, %arg31: memref<2x1x64xf32, #tpu.memory_space<vmem>>, %arg32: memref<2x32x64xf32, #tpu.memory_space<vmem>>, %arg33: memref<2x1x32xf32, #tpu.memory_space<vmem>>, %arg34: memref<2x64x32xf32, #tpu.memory_space<vmem>>, %arg35: memref<2x1x32xf32, #tpu.memory_space<vmem>>, %arg36: memref<2x1x32xf32, #tpu.memory_space<vmem>>, %arg37: memref<2x1x32xf32, #tpu.memory_space<vmem>>, %arg38: memref<2x1x32xf32, #tpu.memory_space<vmem>>, %arg39: memref<2x2x1x16xf32, #tpu.memory_space<vmem>>, %arg40: memref<2x1x32xf32, #tpu.memory_space<vmem>>, %arg41: memref<2x2x1x16xf32, #tpu.memory_space<vmem>>, %arg42: memref<2x2x1x16xf32, #tpu.memory_space<vmem>>, %arg43: memref<2x2x32x16xf32, #tpu.memory_space<vmem>>, %arg44: memref<2x2x16x32xf32, #tpu.memory_space<vmem>>, %arg45: memref<2x2x32x16xf32, #tpu.memory_space<vmem>>, %arg46: memref<2x2x32x16xf32, #tpu.memory_space<vmem>>, %arg47: memref<1x32xf32, #tpu.memory_space<vmem>>, %arg48: memref<1x32xf32, #tpu.memory_space<vmem>>, %arg49: memref<1x128xf32, #tpu.memory_space<vmem>>, %arg50: memref<32x128xf32, #tpu.memory_space<vmem>>, %arg51: memref<16x128xf32, #tpu.memory_space<vmem>>) attributes {dimension_semantics = [], scalar_prefetch = 0 : i64, scratch_operands = 0 : i64, tpu.core_type = #tpu.core_type<tc>} {
    %c0 = arith.constant 0 : index
    %c0_0 = arith.constant 0 : index
    %c0_1 = arith.constant 0 : index
    %c0_2 = arith.constant 0 : index
    %0 = vector.load %arg3[%c0, %c0_0, %c0_1, %c0_2] : memref<2x2x1x16xf32, #tpu.memory_space<vmem>>, vector<2x2x1x16xf32>
    %c0_3 = arith.constant 0 : index
    %c0_4 = arith.constant 0 : index
    %c0_5 = arith.constant 0 : index
    %1 = vector.load %arg4[%c0_3, %c0_4, %c0_5] : memref<2x1x32xf32, #tpu.memory_space<vmem>>, vector<2x1x32xf32>
    %c0_6 = arith.constant 0 : index
    %c0_7 = arith.constant 0 : index
    %c0_8 = arith.constant 0 : index
    %c0_9 = arith.constant 0 : index
    %2 = vector.load %arg5[%c0_6, %c0_7, %c0_8, %c0_9] : memref<2x2x1x16xf32, #tpu.memory_space<vmem>>, vector<2x2x1x16xf32>
    %c0_10 = arith.constant 0 : index
    %c0_11 = arith.constant 0 : index
    %c0_12 = arith.constant 0 : index
    %c0_13 = arith.constant 0 : index
    %3 = vector.load %arg6[%c0_10, %c0_11, %c0_12, %c0_13] : memref<2x2x1x16xf32, #tpu.memory_space<vmem>>, vector<2x2x1x16xf32>
    %c0_14 = arith.constant 0 : index
    %c0_15 = arith.constant 0 : index
    %c0_16 = arith.constant 0 : index
    %c0_17 = arith.constant 0 : index
    %4 = vector.load %arg7[%c0_14, %c0_15, %c0_16, %c0_17] : memref<2x2x32x16xf32, #tpu.memory_space<vmem>>, vector<2x2x32x16xf32>
    %c0_18 = arith.constant 0 : index
    %c0_19 = arith.constant 0 : index
    %c0_20 = arith.constant 0 : index
    %c0_21 = arith.constant 0 : index
    %5 = vector.load %arg8[%c0_18, %c0_19, %c0_20, %c0_21] : memref<2x2x16x32xf32, #tpu.memory_space<vmem>>, vector<2x2x16x32xf32>
    %c0_22 = arith.constant 0 : index
    %c0_23 = arith.constant 0 : index
    %c0_24 = arith.constant 0 : index
    %c0_25 = arith.constant 0 : index
    %6 = vector.load %arg9[%c0_22, %c0_23, %c0_24, %c0_25] : memref<2x2x32x16xf32, #tpu.memory_space<vmem>>, vector<2x2x32x16xf32>
    %c0_26 = arith.constant 0 : index
    %c0_27 = arith.constant 0 : index
    %c0_28 = arith.constant 0 : index
    %c0_29 = arith.constant 0 : index
    %7 = vector.load %arg10[%c0_26, %c0_27, %c0_28, %c0_29] : memref<2x2x32x16xf32, #tpu.memory_space<vmem>>, vector<2x2x32x16xf32>
    %c0_30 = arith.constant 0 : index
    %c0_31 = arith.constant 0 : index
    %c0_32 = arith.constant 0 : index
    %8 = vector.load %arg11[%c0_30, %c0_31, %c0_32] : memref<2x1x64xf32, #tpu.memory_space<vmem>>, vector<2x1x64xf32>
    %c0_33 = arith.constant 0 : index
    %c0_34 = arith.constant 0 : index
    %c0_35 = arith.constant 0 : index
    %9 = vector.load %arg12[%c0_33, %c0_34, %c0_35] : memref<2x32x64xf32, #tpu.memory_space<vmem>>, vector<2x32x64xf32>
    %c0_36 = arith.constant 0 : index
    %c0_37 = arith.constant 0 : index
    %c0_38 = arith.constant 0 : index
    %10 = vector.load %arg13[%c0_36, %c0_37, %c0_38] : memref<2x1x32xf32, #tpu.memory_space<vmem>>, vector<2x1x32xf32>
    %c0_39 = arith.constant 0 : index
    %c0_40 = arith.constant 0 : index
    %c0_41 = arith.constant 0 : index
    %11 = vector.load %arg14[%c0_39, %c0_40, %c0_41] : memref<2x64x32xf32, #tpu.memory_space<vmem>>, vector<2x64x32xf32>
    %c0_42 = arith.constant 0 : index
    %c0_43 = arith.constant 0 : index
    %c0_44 = arith.constant 0 : index
    %12 = vector.load %arg15[%c0_42, %c0_43, %c0_44] : memref<2x1x32xf32, #tpu.memory_space<vmem>>, vector<2x1x32xf32>
    %c0_45 = arith.constant 0 : index
    %c0_46 = arith.constant 0 : index
    %c0_47 = arith.constant 0 : index
    %13 = vector.load %arg16[%c0_45, %c0_46, %c0_47] : memref<2x1x32xf32, #tpu.memory_space<vmem>>, vector<2x1x32xf32>
    %c0_48 = arith.constant 0 : index
    %c0_49 = arith.constant 0 : index
    %c0_50 = arith.constant 0 : index
    %14 = vector.load %arg17[%c0_48, %c0_49, %c0_50] : memref<2x1x32xf32, #tpu.memory_space<vmem>>, vector<2x1x32xf32>
    %c0_51 = arith.constant 0 : index
    %c0_52 = arith.constant 0 : index
    %c0_53 = arith.constant 0 : index
    %15 = vector.load %arg18[%c0_51, %c0_52, %c0_53] : memref<2x1x32xf32, #tpu.memory_space<vmem>>, vector<2x1x32xf32>
    %c0_54 = arith.constant 0 : index
    %c0_55 = arith.constant 0 : index
    %c0_56 = arith.constant 0 : index
    %16 = vector.load %arg19[%c0_54, %c0_55, %c0_56] : memref<2x1x32xf32, #tpu.memory_space<vmem>>, vector<2x1x32xf32>
    %c0_57 = arith.constant 0 : index
    %c0_58 = arith.constant 0 : index
    %c0_59 = arith.constant 0 : index
    %17 = vector.load %arg20[%c0_57, %c0_58, %c0_59] : memref<2x1x32xf32, #tpu.memory_space<vmem>>, vector<2x1x32xf32>
    %c0_60 = arith.constant 0 : index
    %c0_61 = arith.constant 0 : index
    %c0_62 = arith.constant 0 : index
    %c0_63 = arith.constant 0 : index
    %18 = vector.load %arg21[%c0_60, %c0_61, %c0_62, %c0_63] : memref<2x2x1x16xf32, #tpu.memory_space<vmem>>, vector<2x2x1x16xf32>
    %c0_64 = arith.constant 0 : index
    %c0_65 = arith.constant 0 : index
    %c0_66 = arith.constant 0 : index
    %19 = vector.load %arg22[%c0_64, %c0_65, %c0_66] : memref<2x1x32xf32, #tpu.memory_space<vmem>>, vector<2x1x32xf32>
    %c0_67 = arith.constant 0 : index
    %c0_68 = arith.constant 0 : index
    %c0_69 = arith.constant 0 : index
    %c0_70 = arith.constant 0 : index
    %20 = vector.load %arg23[%c0_67, %c0_68, %c0_69, %c0_70] : memref<2x2x1x16xf32, #tpu.memory_space<vmem>>, vector<2x2x1x16xf32>
    %c0_71 = arith.constant 0 : index
    %c0_72 = arith.constant 0 : index
    %c0_73 = arith.constant 0 : index
    %c0_74 = arith.constant 0 : index
    %21 = vector.load %arg24[%c0_71, %c0_72, %c0_73, %c0_74] : memref<2x2x1x16xf32, #tpu.memory_space<vmem>>, vector<2x2x1x16xf32>
    %c0_75 = arith.constant 0 : index
    %c0_76 = arith.constant 0 : index
    %c0_77 = arith.constant 0 : index
    %c0_78 = arith.constant 0 : index
    %22 = vector.load %arg25[%c0_75, %c0_76, %c0_77, %c0_78] : memref<2x2x32x16xf32, #tpu.memory_space<vmem>>, vector<2x2x32x16xf32>
    %c0_79 = arith.constant 0 : index
    %c0_80 = arith.constant 0 : index
    %c0_81 = arith.constant 0 : index
    %c0_82 = arith.constant 0 : index
    %23 = vector.load %arg26[%c0_79, %c0_80, %c0_81, %c0_82] : memref<2x2x16x32xf32, #tpu.memory_space<vmem>>, vector<2x2x16x32xf32>
    %c0_83 = arith.constant 0 : index
    %c0_84 = arith.constant 0 : index
    %c0_85 = arith.constant 0 : index
    %c0_86 = arith.constant 0 : index
    %24 = vector.load %arg27[%c0_83, %c0_84, %c0_85, %c0_86] : memref<2x2x32x16xf32, #tpu.memory_space<vmem>>, vector<2x2x32x16xf32>
    %c0_87 = arith.constant 0 : index
    %c0_88 = arith.constant 0 : index
    %c0_89 = arith.constant 0 : index
    %c0_90 = arith.constant 0 : index
    %25 = vector.load %arg28[%c0_87, %c0_88, %c0_89, %c0_90] : memref<2x2x32x16xf32, #tpu.memory_space<vmem>>, vector<2x2x32x16xf32>
    %c0_91 = arith.constant 0 : index
    %c0_92 = arith.constant 0 : index
    %26 = vector.load %arg29[%c0_91, %c0_92] : memref<1x32xf32, #tpu.memory_space<vmem>>, vector<1x32xf32>
    %c0_93 = arith.constant 0 : index
    %c0_94 = arith.constant 0 : index
    %27 = vector.load %arg30[%c0_93, %c0_94] : memref<1x32xf32, #tpu.memory_space<vmem>>, vector<1x32xf32>
    %c0_95 = arith.constant 0 : index
    %c0_96 = arith.constant 0 : index
    %c0_97 = arith.constant 0 : index
    %28 = vector.load %arg31[%c0_95, %c0_96, %c0_97] : memref<2x1x64xf32, #tpu.memory_space<vmem>>, vector<2x1x64xf32>
    %c0_98 = arith.constant 0 : index
    %c0_99 = arith.constant 0 : index
    %c0_100 = arith.constant 0 : index
    %29 = vector.load %arg32[%c0_98, %c0_99, %c0_100] : memref<2x32x64xf32, #tpu.memory_space<vmem>>, vector<2x32x64xf32>
    %c0_101 = arith.constant 0 : index
    %c0_102 = arith.constant 0 : index
    %c0_103 = arith.constant 0 : index
    %30 = vector.load %arg33[%c0_101, %c0_102, %c0_103] : memref<2x1x32xf32, #tpu.memory_space<vmem>>, vector<2x1x32xf32>
    %c0_104 = arith.constant 0 : index
    %c0_105 = arith.constant 0 : index
    %c0_106 = arith.constant 0 : index
    %31 = vector.load %arg34[%c0_104, %c0_105, %c0_106] : memref<2x64x32xf32, #tpu.memory_space<vmem>>, vector<2x64x32xf32>
    %c0_107 = arith.constant 0 : index
    %c0_108 = arith.constant 0 : index
    %c0_109 = arith.constant 0 : index
    %32 = vector.load %arg35[%c0_107, %c0_108, %c0_109] : memref<2x1x32xf32, #tpu.memory_space<vmem>>, vector<2x1x32xf32>
    %c0_110 = arith.constant 0 : index
    %c0_111 = arith.constant 0 : index
    %c0_112 = arith.constant 0 : index
    %33 = vector.load %arg36[%c0_110, %c0_111, %c0_112] : memref<2x1x32xf32, #tpu.memory_space<vmem>>, vector<2x1x32xf32>
    %c0_113 = arith.constant 0 : index
    %c0_114 = arith.constant 0 : index
    %c0_115 = arith.constant 0 : index
    %34 = vector.load %arg37[%c0_113, %c0_114, %c0_115] : memref<2x1x32xf32, #tpu.memory_space<vmem>>, vector<2x1x32xf32>
    %c0_116 = arith.constant 0 : index
    %c0_117 = arith.constant 0 : index
    %c0_118 = arith.constant 0 : index
    %35 = vector.load %arg38[%c0_116, %c0_117, %c0_118] : memref<2x1x32xf32, #tpu.memory_space<vmem>>, vector<2x1x32xf32>
    %c0_119 = arith.constant 0 : index
    %c0_120 = arith.constant 0 : index
    %c0_121 = arith.constant 0 : index
    %c0_122 = arith.constant 0 : index
    %36 = vector.load %arg39[%c0_119, %c0_120, %c0_121, %c0_122] : memref<2x2x1x16xf32, #tpu.memory_space<vmem>>, vector<2x2x1x16xf32>
    %c0_123 = arith.constant 0 : index
    %c0_124 = arith.constant 0 : index
    %c0_125 = arith.constant 0 : index
    %37 = vector.load %arg40[%c0_123, %c0_124, %c0_125] : memref<2x1x32xf32, #tpu.memory_space<vmem>>, vector<2x1x32xf32>
    %c0_126 = arith.constant 0 : index
    %c0_127 = arith.constant 0 : index
    %c0_128 = arith.constant 0 : index
    %c0_129 = arith.constant 0 : index
    %38 = vector.load %arg41[%c0_126, %c0_127, %c0_128, %c0_129] : memref<2x2x1x16xf32, #tpu.memory_space<vmem>>, vector<2x2x1x16xf32>
    %c0_130 = arith.constant 0 : index
    %c0_131 = arith.constant 0 : index
    %c0_132 = arith.constant 0 : index
    %c0_133 = arith.constant 0 : index
    %39 = vector.load %arg42[%c0_130, %c0_131, %c0_132, %c0_133] : memref<2x2x1x16xf32, #tpu.memory_space<vmem>>, vector<2x2x1x16xf32>
    %c0_134 = arith.constant 0 : index
    %c0_135 = arith.constant 0 : index
    %c0_136 = arith.constant 0 : index
    %c0_137 = arith.constant 0 : index
    %40 = vector.load %arg43[%c0_134, %c0_135, %c0_136, %c0_137] : memref<2x2x32x16xf32, #tpu.memory_space<vmem>>, vector<2x2x32x16xf32>
    %c0_138 = arith.constant 0 : index
    %c0_139 = arith.constant 0 : index
    %c0_140 = arith.constant 0 : index
    %c0_141 = arith.constant 0 : index
    %41 = vector.load %arg44[%c0_138, %c0_139, %c0_140, %c0_141] : memref<2x2x16x32xf32, #tpu.memory_space<vmem>>, vector<2x2x16x32xf32>
    %c0_142 = arith.constant 0 : index
    %c0_143 = arith.constant 0 : index
    %c0_144 = arith.constant 0 : index
    %c0_145 = arith.constant 0 : index
    %42 = vector.load %arg45[%c0_142, %c0_143, %c0_144, %c0_145] : memref<2x2x32x16xf32, #tpu.memory_space<vmem>>, vector<2x2x32x16xf32>
    %c0_146 = arith.constant 0 : index
    %c0_147 = arith.constant 0 : index
    %c0_148 = arith.constant 0 : index
    %c0_149 = arith.constant 0 : index
    %43 = vector.load %arg46[%c0_146, %c0_147, %c0_148, %c0_149] : memref<2x2x32x16xf32, #tpu.memory_space<vmem>>, vector<2x2x32x16xf32>
    %c0_150 = arith.constant 0 : index
    %c0_151 = arith.constant 0 : index
    %44 = vector.load %arg47[%c0_150, %c0_151] : memref<1x32xf32, #tpu.memory_space<vmem>>, vector<1x32xf32>
    %c0_152 = arith.constant 0 : index
    %c0_153 = arith.constant 0 : index
    %45 = vector.load %arg48[%c0_152, %c0_153] : memref<1x32xf32, #tpu.memory_space<vmem>>, vector<1x32xf32>
    %c0_154 = arith.constant 0 : index
    %c0_155 = arith.constant 0 : index
    %46 = vector.load %arg49[%c0_154, %c0_155] : memref<1x128xf32, #tpu.memory_space<vmem>>, vector<1x128xf32>
    %c0_156 = arith.constant 0 : index
    %c0_157 = arith.constant 0 : index
    %47 = vector.load %arg50[%c0_156, %c0_157] : memref<32x128xf32, #tpu.memory_space<vmem>>, vector<32x128xf32>
    %c0_158 = arith.constant 0 : index
    %c0_159 = arith.constant 0 : index
    %c0_160 = arith.constant 0 : index
    %48 = vector.load %arg0[%c0_158, %c0_159, %c0_160] : memref<2x8x32xf32, #tpu.memory_space<vmem>>, vector<2x8x32xf32>
    %c0_161 = arith.constant 0 : index
    %c0_162 = arith.constant 0 : index
    %c0_163 = arith.constant 0 : index
    %49 = vector.load %arg1[%c0_161, %c0_162, %c0_163] : memref<2x8x32xf32, #tpu.memory_space<vmem>>, vector<2x8x32xf32>
    %c0_164 = arith.constant 0 : index
    %c0_165 = arith.constant 0 : index
    %50 = vector.load %arg2[%c0_164, %c0_165] : memref<2x8xf32, #tpu.memory_space<vmem>>, vector<2x8xf32>
    %51 = vector.shape_cast %50 : vector<2x8xf32> to vector<2x1x8xf32>
    %52 = tpu.iota {dimensions = array<i32: 0>} : vector<8x8xi32>
    %53 = tpu.iota {dimensions = array<i32: 1>} : vector<8x8xi32>
    %54 = arith.cmpi sgt, %53, %52 : vector<8x8xi32>
    %cst = arith.constant -1.000000e+30 : f32
    %cst_166 = arith.constant 0.000000e+00 : f32
    %55 = vector.broadcast %cst : f32 to vector<8x8xf32>
    %56 = vector.broadcast %cst_166 : f32 to vector<8x8xf32>
    %57 = arith.select %54, %55, %56 : vector<8x8xi1>, vector<8x8xf32>
    %58 = vector.shape_cast %57 : vector<8x8xf32> to vector<1x8x8xf32>
    %59 = vector.shape_cast %48 : vector<2x8x32xf32> to vector<16x32xf32>
    %60 = vector.extract_strided_slice %28 {offsets = [0, 0, 0], sizes = [1, 1, 64], strides = [1, 1, 1]} : vector<2x1x64xf32> to vector<1x1x64xf32>
    %61 = vector.shape_cast %60 : vector<1x1x64xf32> to vector<1x64xf32>
    %62 = vector.extract_strided_slice %29 {offsets = [0, 0, 0], sizes = [1, 32, 64], strides = [1, 1, 1]} : vector<2x32x64xf32> to vector<1x32x64xf32>
    %63 = vector.shape_cast %62 : vector<1x32x64xf32> to vector<32x64xf32>
    %64 = vector.extract_strided_slice %30 {offsets = [0, 0, 0], sizes = [1, 1, 32], strides = [1, 1, 1]} : vector<2x1x32xf32> to vector<1x1x32xf32>
    %65 = vector.shape_cast %64 : vector<1x1x32xf32> to vector<1x32xf32>
    %66 = vector.extract_strided_slice %31 {offsets = [0, 0, 0], sizes = [1, 64, 32], strides = [1, 1, 1]} : vector<2x64x32xf32> to vector<1x64x32xf32>
    %67 = vector.shape_cast %66 : vector<1x64x32xf32> to vector<64x32xf32>
    %68 = vector.extract_strided_slice %32 {offsets = [0, 0, 0], sizes = [1, 1, 32], strides = [1, 1, 1]} : vector<2x1x32xf32> to vector<1x1x32xf32>
    %69 = vector.shape_cast %68 : vector<1x1x32xf32> to vector<1x32xf32>
    %70 = vector.extract_strided_slice %33 {offsets = [0, 0, 0], sizes = [1, 1, 32], strides = [1, 1, 1]} : vector<2x1x32xf32> to vector<1x1x32xf32>
    %71 = vector.shape_cast %70 : vector<1x1x32xf32> to vector<1x32xf32>
    %72 = vector.extract_strided_slice %34 {offsets = [0, 0, 0], sizes = [1, 1, 32], strides = [1, 1, 1]} : vector<2x1x32xf32> to vector<1x1x32xf32>
    %73 = vector.shape_cast %72 : vector<1x1x32xf32> to vector<1x32xf32>
    %74 = vector.extract_strided_slice %35 {offsets = [0, 0, 0], sizes = [1, 1, 32], strides = [1, 1, 1]} : vector<2x1x32xf32> to vector<1x1x32xf32>
    %75 = vector.shape_cast %74 : vector<1x1x32xf32> to vector<1x32xf32>
    %76 = vector.extract_strided_slice %36 {offsets = [0, 0, 0, 0], sizes = [1, 2, 1, 16], strides = [1, 1, 1, 1]} : vector<2x2x1x16xf32> to vector<1x2x1x16xf32>
    %77 = vector.shape_cast %76 : vector<1x2x1x16xf32> to vector<2x1x16xf32>
    %78 = vector.extract_strided_slice %37 {offsets = [0, 0, 0], sizes = [1, 1, 32], strides = [1, 1, 1]} : vector<2x1x32xf32> to vector<1x1x32xf32>
    %79 = vector.shape_cast %78 : vector<1x1x32xf32> to vector<1x32xf32>
    %80 = vector.extract_strided_slice %38 {offsets = [0, 0, 0, 0], sizes = [1, 2, 1, 16], strides = [1, 1, 1, 1]} : vector<2x2x1x16xf32> to vector<1x2x1x16xf32>
    %81 = vector.shape_cast %80 : vector<1x2x1x16xf32> to vector<2x1x16xf32>
    %82 = vector.extract_strided_slice %39 {offsets = [0, 0, 0, 0], sizes = [1, 2, 1, 16], strides = [1, 1, 1, 1]} : vector<2x2x1x16xf32> to vector<1x2x1x16xf32>
    %83 = vector.shape_cast %82 : vector<1x2x1x16xf32> to vector<2x1x16xf32>
    %84 = vector.extract_strided_slice %40 {offsets = [0, 0, 0, 0], sizes = [1, 2, 32, 16], strides = [1, 1, 1, 1]} : vector<2x2x32x16xf32> to vector<1x2x32x16xf32>
    %85 = vector.shape_cast %84 : vector<1x2x32x16xf32> to vector<2x32x16xf32>
    %86 = vector.extract_strided_slice %41 {offsets = [0, 0, 0, 0], sizes = [1, 2, 16, 32], strides = [1, 1, 1, 1]} : vector<2x2x16x32xf32> to vector<1x2x16x32xf32>
    %87 = vector.shape_cast %86 : vector<1x2x16x32xf32> to vector<2x16x32xf32>
    %88 = vector.extract_strided_slice %42 {offsets = [0, 0, 0, 0], sizes = [1, 2, 32, 16], strides = [1, 1, 1, 1]} : vector<2x2x32x16xf32> to vector<1x2x32x16xf32>
    %89 = vector.shape_cast %88 : vector<1x2x32x16xf32> to vector<2x32x16xf32>
    %90 = vector.extract_strided_slice %43 {offsets = [0, 0, 0, 0], sizes = [1, 2, 32, 16], strides = [1, 1, 1, 1]} : vector<2x2x32x16xf32> to vector<1x2x32x16xf32>
    %91 = vector.shape_cast %90 : vector<1x2x32x16xf32> to vector<2x32x16xf32>
    %92 = vector.shape_cast %59 : vector<16x32xf32> to vector<2x8x32xf32>
    %93 = vector.shape_cast %59 : vector<16x32xf32> to vector<2x8x32xf32>
    %94 = vector.shape_cast %92 : vector<2x8x32xf32> to vector<16x32xf32>
    %95 = vector.shape_cast %93 : vector<2x8x32xf32> to vector<16x32xf32>
    %cst_167 = arith.constant 0.000000e+00 : f32
    %96 = vector.broadcast %cst_167 : f32 to vector<16x32xf32>
    %97 = vector.extract_strided_slice %89 {offsets = [0, 0, 0], sizes = [1, 32, 16], strides = [1, 1, 1]} : vector<2x32x16xf32> to vector<1x32x16xf32>
    %98 = vector.shape_cast %97 : vector<1x32x16xf32> to vector<32x16xf32>
    %cst_168 = arith.constant dense<0.000000e+00> : vector<16x16xf32>
    %99 = tpu.matmul %94, %98, %cst_168 {dimension_numbers = #tpu.dot_dimension_numbers<[1], [0], [0], [1], [0, 0, 1, 1], [], []>} : vector<16x32xf32>, vector<32x16xf32>, vector<16x16xf32> -> vector<16x16xf32>
    %100 = vector.extract_strided_slice %81 {offsets = [0, 0, 0], sizes = [1, 1, 16], strides = [1, 1, 1]} : vector<2x1x16xf32> to vector<1x1x16xf32>
    %101 = vector.shape_cast %100 : vector<1x1x16xf32> to vector<1x16xf32>
    %102 = vector.broadcast %101 : vector<1x16xf32> to vector<16x16xf32>
    %103 = arith.addf %99, %102 : vector<16x16xf32>
    %104 = vector.shape_cast %103 : vector<16x16xf32> to vector<2x8x16xf32>
    %105 = vector.extract_strided_slice %85 {offsets = [0, 0, 0], sizes = [1, 32, 16], strides = [1, 1, 1]} : vector<2x32x16xf32> to vector<1x32x16xf32>
    %106 = vector.shape_cast %105 : vector<1x32x16xf32> to vector<32x16xf32>
    %cst_169 = arith.constant dense<0.000000e+00> : vector<16x16xf32>
    %107 = tpu.matmul %95, %106, %cst_169 {dimension_numbers = #tpu.dot_dimension_numbers<[1], [0], [0], [1], [0, 0, 1, 1], [], []>} : vector<16x32xf32>, vector<32x16xf32>, vector<16x16xf32> -> vector<16x16xf32>
    %108 = vector.extract_strided_slice %77 {offsets = [0, 0, 0], sizes = [1, 1, 16], strides = [1, 1, 1]} : vector<2x1x16xf32> to vector<1x1x16xf32>
    %109 = vector.shape_cast %108 : vector<1x1x16xf32> to vector<1x16xf32>
    %110 = vector.broadcast %109 : vector<1x16xf32> to vector<16x16xf32>
    %111 = arith.addf %107, %110 : vector<16x16xf32>
    %112 = vector.shape_cast %111 : vector<16x16xf32> to vector<2x8x16xf32>
    %113 = vector.extract_strided_slice %91 {offsets = [0, 0, 0], sizes = [1, 32, 16], strides = [1, 1, 1]} : vector<2x32x16xf32> to vector<1x32x16xf32>
    %114 = vector.shape_cast %113 : vector<1x32x16xf32> to vector<32x16xf32>
    %cst_170 = arith.constant dense<0.000000e+00> : vector<16x16xf32>
    %115 = tpu.matmul %95, %114, %cst_170 {dimension_numbers = #tpu.dot_dimension_numbers<[1], [0], [0], [1], [0, 0, 1, 1], [], []>} : vector<16x32xf32>, vector<32x16xf32>, vector<16x16xf32> -> vector<16x16xf32>
    %116 = vector.extract_strided_slice %83 {offsets = [0, 0, 0], sizes = [1, 1, 16], strides = [1, 1, 1]} : vector<2x1x16xf32> to vector<1x1x16xf32>
    %117 = vector.shape_cast %116 : vector<1x1x16xf32> to vector<1x16xf32>
    %118 = vector.broadcast %117 : vector<1x16xf32> to vector<16x16xf32>
    %119 = arith.addf %115, %118 : vector<16x16xf32>
    %120 = vector.shape_cast %119 : vector<16x16xf32> to vector<2x8x16xf32>
    "tpu.trace_start"() <{level = 10 : i32, message = "bqd,bkd->bqk"}> : () -> ()
    %cst_171 = arith.constant dense<0.000000e+00> : vector<2x8x8xf32>
    %121 = tpu.matmul %104, %112, %cst_171 {dimension_numbers = #tpu.dot_dimension_numbers<[2], [2], [1], [1], [0, 0, 0, 1, 1, 1], [0], [0]>} : vector<2x8x16xf32>, vector<2x8x16xf32>, vector<2x8x8xf32> -> vector<2x8x8xf32>
    "tpu.trace_stop"() : () -> ()
    %cst_172 = arith.constant 2.500000e-01 : f32
    %122 = vector.broadcast %cst_172 : f32 to vector<2x8x8xf32>
    %123 = arith.mulf %121, %122 : vector<2x8x8xf32>
    %124 = vector.broadcast %51 : vector<2x1x8xf32> to vector<2x8x8xf32>
    %125 = arith.addf %123, %124 : vector<2x8x8xf32>
    %cst_173 = arith.constant dense<0xFF800000> : vector<2x8xf32>
    %126 = vector.multi_reduction <maximumf>, %125, %cst_173 [2] : vector<2x8x8xf32> to vector<2x8xf32>
    %127 = vector.shape_cast %126 : vector<2x8xf32> to vector<2x8x1xf32>
    %128 = vector.broadcast %127 : vector<2x8x1xf32> to vector<2x8x8xf32>
    %129 = arith.subf %125, %128 : vector<2x8x8xf32>
    %130 = math.exp %129 : vector<2x8x8xf32>
    %cst_174 = arith.constant dense<0.000000e+00> : vector<2x8xf32>
    %131 = vector.multi_reduction <add>, %130, %cst_174 [2] : vector<2x8x8xf32> to vector<2x8xf32>
    %132 = vector.shape_cast %131 : vector<2x8xf32> to vector<2x8x1xf32>
    %133 = vector.broadcast %132 : vector<2x8x1xf32> to vector<2x8x8xf32>
    %134 = arith.divf %130, %133 : vector<2x8x8xf32>
    "tpu.trace_start"() <{level = 10 : i32, message = "bqk,bkd->bqd"}> : () -> ()
    %cst_175 = arith.constant dense<0.000000e+00> : vector<2x8x16xf32>
    %135 = tpu.matmul %134, %120, %cst_175 {dimension_numbers = #tpu.dot_dimension_numbers<[2], [1], [1], [2], [0, 0, 0, 1, 1, 2], [0], [0]>} : vector<2x8x8xf32>, vector<2x8x16xf32>, vector<2x8x16xf32> -> vector<2x8x16xf32>
    "tpu.trace_stop"() : () -> ()
    %136 = vector.shape_cast %135 : vector<2x8x16xf32> to vector<16x16xf32>
    %137 = vector.extract_strided_slice %87 {offsets = [0, 0, 0], sizes = [1, 16, 32], strides = [1, 1, 1]} : vector<2x16x32xf32> to vector<1x16x32xf32>
    %138 = vector.shape_cast %137 : vector<1x16x32xf32> to vector<16x32xf32>
    %cst_176 = arith.constant dense<0.000000e+00> : vector<16x32xf32>
    %139 = tpu.matmul %136, %138, %cst_176 {dimension_numbers = #tpu.dot_dimension_numbers<[1], [0], [0], [1], [0, 0, 1, 1], [], []>} : vector<16x16xf32>, vector<16x32xf32>, vector<16x32xf32> -> vector<16x32xf32>
    %140 = arith.addf %96, %139 : vector<16x32xf32>
    %141 = vector.extract_strided_slice %89 {offsets = [1, 0, 0], sizes = [1, 32, 16], strides = [1, 1, 1]} : vector<2x32x16xf32> to vector<1x32x16xf32>
    %142 = vector.shape_cast %141 : vector<1x32x16xf32> to vector<32x16xf32>
    %cst_177 = arith.constant dense<0.000000e+00> : vector<16x16xf32>
    %143 = tpu.matmul %94, %142, %cst_177 {dimension_numbers = #tpu.dot_dimension_numbers<[1], [0], [0], [1], [0, 0, 1, 1], [], []>} : vector<16x32xf32>, vector<32x16xf32>, vector<16x16xf32> -> vector<16x16xf32>
    %144 = vector.extract_strided_slice %81 {offsets = [1, 0, 0], sizes = [1, 1, 16], strides = [1, 1, 1]} : vector<2x1x16xf32> to vector<1x1x16xf32>
    %145 = vector.shape_cast %144 : vector<1x1x16xf32> to vector<1x16xf32>
    %146 = vector.broadcast %145 : vector<1x16xf32> to vector<16x16xf32>
    %147 = arith.addf %143, %146 : vector<16x16xf32>
    %148 = vector.shape_cast %147 : vector<16x16xf32> to vector<2x8x16xf32>
    %149 = vector.extract_strided_slice %85 {offsets = [1, 0, 0], sizes = [1, 32, 16], strides = [1, 1, 1]} : vector<2x32x16xf32> to vector<1x32x16xf32>
    %150 = vector.shape_cast %149 : vector<1x32x16xf32> to vector<32x16xf32>
    %cst_178 = arith.constant dense<0.000000e+00> : vector<16x16xf32>
    %151 = tpu.matmul %95, %150, %cst_178 {dimension_numbers = #tpu.dot_dimension_numbers<[1], [0], [0], [1], [0, 0, 1, 1], [], []>} : vector<16x32xf32>, vector<32x16xf32>, vector<16x16xf32> -> vector<16x16xf32>
    %152 = vector.extract_strided_slice %77 {offsets = [1, 0, 0], sizes = [1, 1, 16], strides = [1, 1, 1]} : vector<2x1x16xf32> to vector<1x1x16xf32>
    %153 = vector.shape_cast %152 : vector<1x1x16xf32> to vector<1x16xf32>
    %154 = vector.broadcast %153 : vector<1x16xf32> to vector<16x16xf32>
    %155 = arith.addf %151, %154 : vector<16x16xf32>
    %156 = vector.shape_cast %155 : vector<16x16xf32> to vector<2x8x16xf32>
    %157 = vector.extract_strided_slice %91 {offsets = [1, 0, 0], sizes = [1, 32, 16], strides = [1, 1, 1]} : vector<2x32x16xf32> to vector<1x32x16xf32>
    %158 = vector.shape_cast %157 : vector<1x32x16xf32> to vector<32x16xf32>
    %cst_179 = arith.constant dense<0.000000e+00> : vector<16x16xf32>
    %159 = tpu.matmul %95, %158, %cst_179 {dimension_numbers = #tpu.dot_dimension_numbers<[1], [0], [0], [1], [0, 0, 1, 1], [], []>} : vector<16x32xf32>, vector<32x16xf32>, vector<16x16xf32> -> vector<16x16xf32>
    %160 = vector.extract_strided_slice %83 {offsets = [1, 0, 0], sizes = [1, 1, 16], strides = [1, 1, 1]} : vector<2x1x16xf32> to vector<1x1x16xf32>
    %161 = vector.shape_cast %160 : vector<1x1x16xf32> to vector<1x16xf32>
    %162 = vector.broadcast %161 : vector<1x16xf32> to vector<16x16xf32>
    %163 = arith.addf %159, %162 : vector<16x16xf32>
    %164 = vector.shape_cast %163 : vector<16x16xf32> to vector<2x8x16xf32>
    "tpu.trace_start"() <{level = 10 : i32, message = "bqd,bkd->bqk"}> : () -> ()
    %cst_180 = arith.constant dense<0.000000e+00> : vector<2x8x8xf32>
    %165 = tpu.matmul %148, %156, %cst_180 {dimension_numbers = #tpu.dot_dimension_numbers<[2], [2], [1], [1], [0, 0, 0, 1, 1, 1], [0], [0]>} : vector<2x8x16xf32>, vector<2x8x16xf32>, vector<2x8x8xf32> -> vector<2x8x8xf32>
    "tpu.trace_stop"() : () -> ()
    %cst_181 = arith.constant 2.500000e-01 : f32
    %166 = vector.broadcast %cst_181 : f32 to vector<2x8x8xf32>
    %167 = arith.mulf %165, %166 : vector<2x8x8xf32>
    %168 = vector.broadcast %51 : vector<2x1x8xf32> to vector<2x8x8xf32>
    %169 = arith.addf %167, %168 : vector<2x8x8xf32>
    %cst_182 = arith.constant dense<0xFF800000> : vector<2x8xf32>
    %170 = vector.multi_reduction <maximumf>, %169, %cst_182 [2] : vector<2x8x8xf32> to vector<2x8xf32>
    %171 = vector.shape_cast %170 : vector<2x8xf32> to vector<2x8x1xf32>
    %172 = vector.broadcast %171 : vector<2x8x1xf32> to vector<2x8x8xf32>
    %173 = arith.subf %169, %172 : vector<2x8x8xf32>
    %174 = math.exp %173 : vector<2x8x8xf32>
    %cst_183 = arith.constant dense<0.000000e+00> : vector<2x8xf32>
    %175 = vector.multi_reduction <add>, %174, %cst_183 [2] : vector<2x8x8xf32> to vector<2x8xf32>
    %176 = vector.shape_cast %175 : vector<2x8xf32> to vector<2x8x1xf32>
    %177 = vector.broadcast %176 : vector<2x8x1xf32> to vector<2x8x8xf32>
    %178 = arith.divf %174, %177 : vector<2x8x8xf32>
    "tpu.trace_start"() <{level = 10 : i32, message = "bqk,bkd->bqd"}> : () -> ()
    %cst_184 = arith.constant dense<0.000000e+00> : vector<2x8x16xf32>
    %179 = tpu.matmul %178, %164, %cst_184 {dimension_numbers = #tpu.dot_dimension_numbers<[2], [1], [1], [2], [0, 0, 0, 1, 1, 2], [0], [0]>} : vector<2x8x8xf32>, vector<2x8x16xf32>, vector<2x8x16xf32> -> vector<2x8x16xf32>
    "tpu.trace_stop"() : () -> ()
    %180 = vector.shape_cast %179 : vector<2x8x16xf32> to vector<16x16xf32>
    %181 = vector.extract_strided_slice %87 {offsets = [1, 0, 0], sizes = [1, 16, 32], strides = [1, 1, 1]} : vector<2x16x32xf32> to vector<1x16x32xf32>
    %182 = vector.shape_cast %181 : vector<1x16x32xf32> to vector<16x32xf32>
    %cst_185 = arith.constant dense<0.000000e+00> : vector<16x32xf32>
    %183 = tpu.matmul %180, %182, %cst_185 {dimension_numbers = #tpu.dot_dimension_numbers<[1], [0], [0], [1], [0, 0, 1, 1], [], []>} : vector<16x16xf32>, vector<16x32xf32>, vector<16x32xf32> -> vector<16x32xf32>
    %184 = arith.addf %140, %183 : vector<16x32xf32>
    %185 = vector.broadcast %79 : vector<1x32xf32> to vector<16x32xf32>
    %186 = arith.addf %184, %185 : vector<16x32xf32>
    %187 = arith.addf %59, %186 : vector<16x32xf32>
    %cst_186 = arith.constant dense<0.000000e+00> : vector<16xf32>
    %188 = vector.multi_reduction <add>, %187, %cst_186 [1] : vector<16x32xf32> to vector<16xf32>
    %189 = vector.shape_cast %188 : vector<16xf32> to vector<16x1xf32>
    %cst_187 = arith.constant 3.200000e+01 : f32
    %190 = vector.broadcast %cst_187 : f32 to vector<16x1xf32>
    %191 = arith.divf %189, %190 : vector<16x1xf32>
    %192 = vector.broadcast %191 : vector<16x1xf32> to vector<16x32xf32>
    %193 = arith.subf %187, %192 : vector<16x32xf32>
    %194 = arith.mulf %193, %193 : vector<16x32xf32>
    %cst_188 = arith.constant dense<0.000000e+00> : vector<16xf32>
    %195 = vector.multi_reduction <add>, %194, %cst_188 [1] : vector<16x32xf32> to vector<16xf32>
    %196 = vector.shape_cast %195 : vector<16xf32> to vector<16x1xf32>
    %cst_189 = arith.constant 3.200000e+01 : f32
    %197 = vector.broadcast %cst_189 : f32 to vector<16x1xf32>
    %198 = arith.divf %196, %197 : vector<16x1xf32>
    %cst_190 = arith.constant 9.99999974E-6 : f32
    %199 = vector.broadcast %cst_190 : f32 to vector<16x1xf32>
    %200 = arith.addf %198, %199 : vector<16x1xf32>
    %201 = math.rsqrt %200 : vector<16x1xf32>
    %202 = vector.broadcast %201 : vector<16x1xf32> to vector<16x32xf32>
    %203 = arith.mulf %193, %202 : vector<16x32xf32>
    %204 = vector.broadcast %71 : vector<1x32xf32> to vector<16x32xf32>
    %205 = arith.mulf %203, %204 : vector<16x32xf32>
    %206 = vector.broadcast %69 : vector<1x32xf32> to vector<16x32xf32>
    %207 = arith.addf %205, %206 : vector<16x32xf32>
    %cst_191 = arith.constant dense<0.000000e+00> : vector<16x64xf32>
    %208 = tpu.matmul %207, %63, %cst_191 {dimension_numbers = #tpu.dot_dimension_numbers<[1], [0], [0], [1], [0, 0, 1, 1], [], []>} : vector<16x32xf32>, vector<32x64xf32>, vector<16x64xf32> -> vector<16x64xf32>
    %209 = vector.broadcast %61 : vector<1x64xf32> to vector<16x64xf32>
    %210 = arith.addf %208, %209 : vector<16x64xf32>
    %cst_192 = arith.constant 0.000000e+00 : f32
    %211 = vector.broadcast %cst_192 : f32 to vector<16x64xf32>
    %212 = arith.maximumf %210, %211 : vector<16x64xf32>
    %cst_193 = arith.constant dense<0.000000e+00> : vector<16x32xf32>
    %213 = tpu.matmul %212, %67, %cst_193 {dimension_numbers = #tpu.dot_dimension_numbers<[1], [0], [0], [1], [0, 0, 1, 1], [], []>} : vector<16x64xf32>, vector<64x32xf32>, vector<16x32xf32> -> vector<16x32xf32>
    %214 = vector.broadcast %65 : vector<1x32xf32> to vector<16x32xf32>
    %215 = arith.addf %213, %214 : vector<16x32xf32>
    %216 = arith.addf %207, %215 : vector<16x32xf32>
    %cst_194 = arith.constant dense<0.000000e+00> : vector<16xf32>
    %217 = vector.multi_reduction <add>, %216, %cst_194 [1] : vector<16x32xf32> to vector<16xf32>
    %218 = vector.shape_cast %217 : vector<16xf32> to vector<16x1xf32>
    %cst_195 = arith.constant 3.200000e+01 : f32
    %219 = vector.broadcast %cst_195 : f32 to vector<16x1xf32>
    %220 = arith.divf %218, %219 : vector<16x1xf32>
    %221 = vector.broadcast %220 : vector<16x1xf32> to vector<16x32xf32>
    %222 = arith.subf %216, %221 : vector<16x32xf32>
    %223 = arith.mulf %222, %222 : vector<16x32xf32>
    %cst_196 = arith.constant dense<0.000000e+00> : vector<16xf32>
    %224 = vector.multi_reduction <add>, %223, %cst_196 [1] : vector<16x32xf32> to vector<16xf32>
    %225 = vector.shape_cast %224 : vector<16xf32> to vector<16x1xf32>
    %cst_197 = arith.constant 3.200000e+01 : f32
    %226 = vector.broadcast %cst_197 : f32 to vector<16x1xf32>
    %227 = arith.divf %225, %226 : vector<16x1xf32>
    %cst_198 = arith.constant 9.99999974E-6 : f32
    %228 = vector.broadcast %cst_198 : f32 to vector<16x1xf32>
    %229 = arith.addf %227, %228 : vector<16x1xf32>
    %230 = math.rsqrt %229 : vector<16x1xf32>
    %231 = vector.broadcast %230 : vector<16x1xf32> to vector<16x32xf32>
    %232 = arith.mulf %222, %231 : vector<16x32xf32>
    %233 = vector.broadcast %75 : vector<1x32xf32> to vector<16x32xf32>
    %234 = arith.mulf %232, %233 : vector<16x32xf32>
    %235 = vector.broadcast %73 : vector<1x32xf32> to vector<16x32xf32>
    %236 = arith.addf %234, %235 : vector<16x32xf32>
    %237 = vector.extract_strided_slice %28 {offsets = [1, 0, 0], sizes = [1, 1, 64], strides = [1, 1, 1]} : vector<2x1x64xf32> to vector<1x1x64xf32>
    %238 = vector.shape_cast %237 : vector<1x1x64xf32> to vector<1x64xf32>
    %239 = vector.extract_strided_slice %29 {offsets = [1, 0, 0], sizes = [1, 32, 64], strides = [1, 1, 1]} : vector<2x32x64xf32> to vector<1x32x64xf32>
    %240 = vector.shape_cast %239 : vector<1x32x64xf32> to vector<32x64xf32>
    %241 = vector.extract_strided_slice %30 {offsets = [1, 0, 0], sizes = [1, 1, 32], strides = [1, 1, 1]} : vector<2x1x32xf32> to vector<1x1x32xf32>
    %242 = vector.shape_cast %241 : vector<1x1x32xf32> to vector<1x32xf32>
    %243 = vector.extract_strided_slice %31 {offsets = [1, 0, 0], sizes = [1, 64, 32], strides = [1, 1, 1]} : vector<2x64x32xf32> to vector<1x64x32xf32>
    %244 = vector.shape_cast %243 : vector<1x64x32xf32> to vector<64x32xf32>
    %245 = vector.extract_strided_slice %32 {offsets = [1, 0, 0], sizes = [1, 1, 32], strides = [1, 1, 1]} : vector<2x1x32xf32> to vector<1x1x32xf32>
    %246 = vector.shape_cast %245 : vector<1x1x32xf32> to vector<1x32xf32>
    %247 = vector.extract_strided_slice %33 {offsets = [1, 0, 0], sizes = [1, 1, 32], strides = [1, 1, 1]} : vector<2x1x32xf32> to vector<1x1x32xf32>
    %248 = vector.shape_cast %247 : vector<1x1x32xf32> to vector<1x32xf32>
    %249 = vector.extract_strided_slice %34 {offsets = [1, 0, 0], sizes = [1, 1, 32], strides = [1, 1, 1]} : vector<2x1x32xf32> to vector<1x1x32xf32>
    %250 = vector.shape_cast %249 : vector<1x1x32xf32> to vector<1x32xf32>
    %251 = vector.extract_strided_slice %35 {offsets = [1, 0, 0], sizes = [1, 1, 32], strides = [1, 1, 1]} : vector<2x1x32xf32> to vector<1x1x32xf32>
    %252 = vector.shape_cast %251 : vector<1x1x32xf32> to vector<1x32xf32>
    %253 = vector.extract_strided_slice %36 {offsets = [1, 0, 0, 0], sizes = [1, 2, 1, 16], strides = [1, 1, 1, 1]} : vector<2x2x1x16xf32> to vector<1x2x1x16xf32>
    %254 = vector.shape_cast %253 : vector<1x2x1x16xf32> to vector<2x1x16xf32>
    %255 = vector.extract_strided_slice %37 {offsets = [1, 0, 0], sizes = [1, 1, 32], strides = [1, 1, 1]} : vector<2x1x32xf32> to vector<1x1x32xf32>
    %256 = vector.shape_cast %255 : vector<1x1x32xf32> to vector<1x32xf32>
    %257 = vector.extract_strided_slice %38 {offsets = [1, 0, 0, 0], sizes = [1, 2, 1, 16], strides = [1, 1, 1, 1]} : vector<2x2x1x16xf32> to vector<1x2x1x16xf32>
    %258 = vector.shape_cast %257 : vector<1x2x1x16xf32> to vector<2x1x16xf32>
    %259 = vector.extract_strided_slice %39 {offsets = [1, 0, 0, 0], sizes = [1, 2, 1, 16], strides = [1, 1, 1, 1]} : vector<2x2x1x16xf32> to vector<1x2x1x16xf32>
    %260 = vector.shape_cast %259 : vector<1x2x1x16xf32> to vector<2x1x16xf32>
    %261 = vector.extract_strided_slice %40 {offsets = [1, 0, 0, 0], sizes = [1, 2, 32, 16], strides = [1, 1, 1, 1]} : vector<2x2x32x16xf32> to vector<1x2x32x16xf32>
    %262 = vector.shape_cast %261 : vector<1x2x32x16xf32> to vector<2x32x16xf32>
    %263 = vector.extract_strided_slice %41 {offsets = [1, 0, 0, 0], sizes = [1, 2, 16, 32], strides = [1, 1, 1, 1]} : vector<2x2x16x32xf32> to vector<1x2x16x32xf32>
    %264 = vector.shape_cast %263 : vector<1x2x16x32xf32> to vector<2x16x32xf32>
    %265 = vector.extract_strided_slice %42 {offsets = [1, 0, 0, 0], sizes = [1, 2, 32, 16], strides = [1, 1, 1, 1]} : vector<2x2x32x16xf32> to vector<1x2x32x16xf32>
    %266 = vector.shape_cast %265 : vector<1x2x32x16xf32> to vector<2x32x16xf32>
    %267 = vector.extract_strided_slice %43 {offsets = [1, 0, 0, 0], sizes = [1, 2, 32, 16], strides = [1, 1, 1, 1]} : vector<2x2x32x16xf32> to vector<1x2x32x16xf32>
    %268 = vector.shape_cast %267 : vector<1x2x32x16xf32> to vector<2x32x16xf32>
    %269 = vector.shape_cast %236 : vector<16x32xf32> to vector<2x8x32xf32>
    %270 = vector.shape_cast %236 : vector<16x32xf32> to vector<2x8x32xf32>
    %271 = vector.shape_cast %269 : vector<2x8x32xf32> to vector<16x32xf32>
    %272 = vector.shape_cast %270 : vector<2x8x32xf32> to vector<16x32xf32>
    %cst_199 = arith.constant 0.000000e+00 : f32
    %273 = vector.broadcast %cst_199 : f32 to vector<16x32xf32>
    %274 = vector.extract_strided_slice %266 {offsets = [0, 0, 0], sizes = [1, 32, 16], strides = [1, 1, 1]} : vector<2x32x16xf32> to vector<1x32x16xf32>
    %275 = vector.shape_cast %274 : vector<1x32x16xf32> to vector<32x16xf32>
    %cst_200 = arith.constant dense<0.000000e+00> : vector<16x16xf32>
    %276 = tpu.matmul %271, %275, %cst_200 {dimension_numbers = #tpu.dot_dimension_numbers<[1], [0], [0], [1], [0, 0, 1, 1], [], []>} : vector<16x32xf32>, vector<32x16xf32>, vector<16x16xf32> -> vector<16x16xf32>
    %277 = vector.extract_strided_slice %258 {offsets = [0, 0, 0], sizes = [1, 1, 16], strides = [1, 1, 1]} : vector<2x1x16xf32> to vector<1x1x16xf32>
    %278 = vector.shape_cast %277 : vector<1x1x16xf32> to vector<1x16xf32>
    %279 = vector.broadcast %278 : vector<1x16xf32> to vector<16x16xf32>
    %280 = arith.addf %276, %279 : vector<16x16xf32>
    %281 = vector.shape_cast %280 : vector<16x16xf32> to vector<2x8x16xf32>
    %282 = vector.extract_strided_slice %262 {offsets = [0, 0, 0], sizes = [1, 32, 16], strides = [1, 1, 1]} : vector<2x32x16xf32> to vector<1x32x16xf32>
    %283 = vector.shape_cast %282 : vector<1x32x16xf32> to vector<32x16xf32>
    %cst_201 = arith.constant dense<0.000000e+00> : vector<16x16xf32>
    %284 = tpu.matmul %272, %283, %cst_201 {dimension_numbers = #tpu.dot_dimension_numbers<[1], [0], [0], [1], [0, 0, 1, 1], [], []>} : vector<16x32xf32>, vector<32x16xf32>, vector<16x16xf32> -> vector<16x16xf32>
    %285 = vector.extract_strided_slice %254 {offsets = [0, 0, 0], sizes = [1, 1, 16], strides = [1, 1, 1]} : vector<2x1x16xf32> to vector<1x1x16xf32>
    %286 = vector.shape_cast %285 : vector<1x1x16xf32> to vector<1x16xf32>
    %287 = vector.broadcast %286 : vector<1x16xf32> to vector<16x16xf32>
    %288 = arith.addf %284, %287 : vector<16x16xf32>
    %289 = vector.shape_cast %288 : vector<16x16xf32> to vector<2x8x16xf32>
    %290 = vector.extract_strided_slice %268 {offsets = [0, 0, 0], sizes = [1, 32, 16], strides = [1, 1, 1]} : vector<2x32x16xf32> to vector<1x32x16xf32>
    %291 = vector.shape_cast %290 : vector<1x32x16xf32> to vector<32x16xf32>
    %cst_202 = arith.constant dense<0.000000e+00> : vector<16x16xf32>
    %292 = tpu.matmul %272, %291, %cst_202 {dimension_numbers = #tpu.dot_dimension_numbers<[1], [0], [0], [1], [0, 0, 1, 1], [], []>} : vector<16x32xf32>, vector<32x16xf32>, vector<16x16xf32> -> vector<16x16xf32>
    %293 = vector.extract_strided_slice %260 {offsets = [0, 0, 0], sizes = [1, 1, 16], strides = [1, 1, 1]} : vector<2x1x16xf32> to vector<1x1x16xf32>
    %294 = vector.shape_cast %293 : vector<1x1x16xf32> to vector<1x16xf32>
    %295 = vector.broadcast %294 : vector<1x16xf32> to vector<16x16xf32>
    %296 = arith.addf %292, %295 : vector<16x16xf32>
    %297 = vector.shape_cast %296 : vector<16x16xf32> to vector<2x8x16xf32>
    "tpu.trace_start"() <{level = 10 : i32, message = "bqd,bkd->bqk"}> : () -> ()
    %cst_203 = arith.constant dense<0.000000e+00> : vector<2x8x8xf32>
    %298 = tpu.matmul %281, %289, %cst_203 {dimension_numbers = #tpu.dot_dimension_numbers<[2], [2], [1], [1], [0, 0, 0, 1, 1, 1], [0], [0]>} : vector<2x8x16xf32>, vector<2x8x16xf32>, vector<2x8x8xf32> -> vector<2x8x8xf32>
    "tpu.trace_stop"() : () -> ()
    %cst_204 = arith.constant 2.500000e-01 : f32
    %299 = vector.broadcast %cst_204 : f32 to vector<2x8x8xf32>
    %300 = arith.mulf %298, %299 : vector<2x8x8xf32>
    %301 = vector.broadcast %51 : vector<2x1x8xf32> to vector<2x8x8xf32>
    %302 = arith.addf %300, %301 : vector<2x8x8xf32>
    %cst_205 = arith.constant dense<0xFF800000> : vector<2x8xf32>
    %303 = vector.multi_reduction <maximumf>, %302, %cst_205 [2] : vector<2x8x8xf32> to vector<2x8xf32>
    %304 = vector.shape_cast %303 : vector<2x8xf32> to vector<2x8x1xf32>
    %305 = vector.broadcast %304 : vector<2x8x1xf32> to vector<2x8x8xf32>
    %306 = arith.subf %302, %305 : vector<2x8x8xf32>
    %307 = math.exp %306 : vector<2x8x8xf32>
    %cst_206 = arith.constant dense<0.000000e+00> : vector<2x8xf32>
    %308 = vector.multi_reduction <add>, %307, %cst_206 [2] : vector<2x8x8xf32> to vector<2x8xf32>
    %309 = vector.shape_cast %308 : vector<2x8xf32> to vector<2x8x1xf32>
    %310 = vector.broadcast %309 : vector<2x8x1xf32> to vector<2x8x8xf32>
    %311 = arith.divf %307, %310 : vector<2x8x8xf32>
    "tpu.trace_start"() <{level = 10 : i32, message = "bqk,bkd->bqd"}> : () -> ()
    %cst_207 = arith.constant dense<0.000000e+00> : vector<2x8x16xf32>
    %312 = tpu.matmul %311, %297, %cst_207 {dimension_numbers = #tpu.dot_dimension_numbers<[2], [1], [1], [2], [0, 0, 0, 1, 1, 2], [0], [0]>} : vector<2x8x8xf32>, vector<2x8x16xf32>, vector<2x8x16xf32> -> vector<2x8x16xf32>
    "tpu.trace_stop"() : () -> ()
    %313 = vector.shape_cast %312 : vector<2x8x16xf32> to vector<16x16xf32>
    %314 = vector.extract_strided_slice %264 {offsets = [0, 0, 0], sizes = [1, 16, 32], strides = [1, 1, 1]} : vector<2x16x32xf32> to vector<1x16x32xf32>
    %315 = vector.shape_cast %314 : vector<1x16x32xf32> to vector<16x32xf32>
    %cst_208 = arith.constant dense<0.000000e+00> : vector<16x32xf32>
    %316 = tpu.matmul %313, %315, %cst_208 {dimension_numbers = #tpu.dot_dimension_numbers<[1], [0], [0], [1], [0, 0, 1, 1], [], []>} : vector<16x16xf32>, vector<16x32xf32>, vector<16x32xf32> -> vector<16x32xf32>
    %317 = arith.addf %273, %316 : vector<16x32xf32>
    %318 = vector.extract_strided_slice %266 {offsets = [1, 0, 0], sizes = [1, 32, 16], strides = [1, 1, 1]} : vector<2x32x16xf32> to vector<1x32x16xf32>
    %319 = vector.shape_cast %318 : vector<1x32x16xf32> to vector<32x16xf32>
    %cst_209 = arith.constant dense<0.000000e+00> : vector<16x16xf32>
    %320 = tpu.matmul %271, %319, %cst_209 {dimension_numbers = #tpu.dot_dimension_numbers<[1], [0], [0], [1], [0, 0, 1, 1], [], []>} : vector<16x32xf32>, vector<32x16xf32>, vector<16x16xf32> -> vector<16x16xf32>
    %321 = vector.extract_strided_slice %258 {offsets = [1, 0, 0], sizes = [1, 1, 16], strides = [1, 1, 1]} : vector<2x1x16xf32> to vector<1x1x16xf32>
    %322 = vector.shape_cast %321 : vector<1x1x16xf32> to vector<1x16xf32>
    %323 = vector.broadcast %322 : vector<1x16xf32> to vector<16x16xf32>
    %324 = arith.addf %320, %323 : vector<16x16xf32>
    %325 = vector.shape_cast %324 : vector<16x16xf32> to vector<2x8x16xf32>
    %326 = vector.extract_strided_slice %262 {offsets = [1, 0, 0], sizes = [1, 32, 16], strides = [1, 1, 1]} : vector<2x32x16xf32> to vector<1x32x16xf32>
    %327 = vector.shape_cast %326 : vector<1x32x16xf32> to vector<32x16xf32>
    %cst_210 = arith.constant dense<0.000000e+00> : vector<16x16xf32>
    %328 = tpu.matmul %272, %327, %cst_210 {dimension_numbers = #tpu.dot_dimension_numbers<[1], [0], [0], [1], [0, 0, 1, 1], [], []>} : vector<16x32xf32>, vector<32x16xf32>, vector<16x16xf32> -> vector<16x16xf32>
    %329 = vector.extract_strided_slice %254 {offsets = [1, 0, 0], sizes = [1, 1, 16], strides = [1, 1, 1]} : vector<2x1x16xf32> to vector<1x1x16xf32>
    %330 = vector.shape_cast %329 : vector<1x1x16xf32> to vector<1x16xf32>
    %331 = vector.broadcast %330 : vector<1x16xf32> to vector<16x16xf32>
    %332 = arith.addf %328, %331 : vector<16x16xf32>
    %333 = vector.shape_cast %332 : vector<16x16xf32> to vector<2x8x16xf32>
    %334 = vector.extract_strided_slice %268 {offsets = [1, 0, 0], sizes = [1, 32, 16], strides = [1, 1, 1]} : vector<2x32x16xf32> to vector<1x32x16xf32>
    %335 = vector.shape_cast %334 : vector<1x32x16xf32> to vector<32x16xf32>
    %cst_211 = arith.constant dense<0.000000e+00> : vector<16x16xf32>
    %336 = tpu.matmul %272, %335, %cst_211 {dimension_numbers = #tpu.dot_dimension_numbers<[1], [0], [0], [1], [0, 0, 1, 1], [], []>} : vector<16x32xf32>, vector<32x16xf32>, vector<16x16xf32> -> vector<16x16xf32>
    %337 = vector.extract_strided_slice %260 {offsets = [1, 0, 0], sizes = [1, 1, 16], strides = [1, 1, 1]} : vector<2x1x16xf32> to vector<1x1x16xf32>
    %338 = vector.shape_cast %337 : vector<1x1x16xf32> to vector<1x16xf32>
    %339 = vector.broadcast %338 : vector<1x16xf32> to vector<16x16xf32>
    %340 = arith.addf %336, %339 : vector<16x16xf32>
    %341 = vector.shape_cast %340 : vector<16x16xf32> to vector<2x8x16xf32>
    "tpu.trace_start"() <{level = 10 : i32, message = "bqd,bkd->bqk"}> : () -> ()
    %cst_212 = arith.constant dense<0.000000e+00> : vector<2x8x8xf32>
    %342 = tpu.matmul %325, %333, %cst_212 {dimension_numbers = #tpu.dot_dimension_numbers<[2], [2], [1], [1], [0, 0, 0, 1, 1, 1], [0], [0]>} : vector<2x8x16xf32>, vector<2x8x16xf32>, vector<2x8x8xf32> -> vector<2x8x8xf32>
    "tpu.trace_stop"() : () -> ()
    %cst_213 = arith.constant 2.500000e-01 : f32
    %343 = vector.broadcast %cst_213 : f32 to vector<2x8x8xf32>
    %344 = arith.mulf %342, %343 : vector<2x8x8xf32>
    %345 = vector.broadcast %51 : vector<2x1x8xf32> to vector<2x8x8xf32>
    %346 = arith.addf %344, %345 : vector<2x8x8xf32>
    %cst_214 = arith.constant dense<0xFF800000> : vector<2x8xf32>
    %347 = vector.multi_reduction <maximumf>, %346, %cst_214 [2] : vector<2x8x8xf32> to vector<2x8xf32>
    %348 = vector.shape_cast %347 : vector<2x8xf32> to vector<2x8x1xf32>
    %349 = vector.broadcast %348 : vector<2x8x1xf32> to vector<2x8x8xf32>
    %350 = arith.subf %346, %349 : vector<2x8x8xf32>
    %351 = math.exp %350 : vector<2x8x8xf32>
    %cst_215 = arith.constant dense<0.000000e+00> : vector<2x8xf32>
    %352 = vector.multi_reduction <add>, %351, %cst_215 [2] : vector<2x8x8xf32> to vector<2x8xf32>
    %353 = vector.shape_cast %352 : vector<2x8xf32> to vector<2x8x1xf32>
    %354 = vector.broadcast %353 : vector<2x8x1xf32> to vector<2x8x8xf32>
    %355 = arith.divf %351, %354 : vector<2x8x8xf32>
    "tpu.trace_start"() <{level = 10 : i32, message = "bqk,bkd->bqd"}> : () -> ()
    %cst_216 = arith.constant dense<0.000000e+00> : vector<2x8x16xf32>
    %356 = tpu.matmul %355, %341, %cst_216 {dimension_numbers = #tpu.dot_dimension_numbers<[2], [1], [1], [2], [0, 0, 0, 1, 1, 2], [0], [0]>} : vector<2x8x8xf32>, vector<2x8x16xf32>, vector<2x8x16xf32> -> vector<2x8x16xf32>
    "tpu.trace_stop"() : () -> ()
    %357 = vector.shape_cast %356 : vector<2x8x16xf32> to vector<16x16xf32>
    %358 = vector.extract_strided_slice %264 {offsets = [1, 0, 0], sizes = [1, 16, 32], strides = [1, 1, 1]} : vector<2x16x32xf32> to vector<1x16x32xf32>
    %359 = vector.shape_cast %358 : vector<1x16x32xf32> to vector<16x32xf32>
    %cst_217 = arith.constant dense<0.000000e+00> : vector<16x32xf32>
    %360 = tpu.matmul %357, %359, %cst_217 {dimension_numbers = #tpu.dot_dimension_numbers<[1], [0], [0], [1], [0, 0, 1, 1], [], []>} : vector<16x16xf32>, vector<16x32xf32>, vector<16x32xf32> -> vector<16x32xf32>
    %361 = arith.addf %317, %360 : vector<16x32xf32>
    %362 = vector.broadcast %256 : vector<1x32xf32> to vector<16x32xf32>
    %363 = arith.addf %361, %362 : vector<16x32xf32>
    %364 = arith.addf %236, %363 : vector<16x32xf32>
    %cst_218 = arith.constant dense<0.000000e+00> : vector<16xf32>
    %365 = vector.multi_reduction <add>, %364, %cst_218 [1] : vector<16x32xf32> to vector<16xf32>
    %366 = vector.shape_cast %365 : vector<16xf32> to vector<16x1xf32>
    %cst_219 = arith.constant 3.200000e+01 : f32
    %367 = vector.broadcast %cst_219 : f32 to vector<16x1xf32>
    %368 = arith.divf %366, %367 : vector<16x1xf32>
    %369 = vector.broadcast %368 : vector<16x1xf32> to vector<16x32xf32>
    %370 = arith.subf %364, %369 : vector<16x32xf32>
    %371 = arith.mulf %370, %370 : vector<16x32xf32>
    %cst_220 = arith.constant dense<0.000000e+00> : vector<16xf32>
    %372 = vector.multi_reduction <add>, %371, %cst_220 [1] : vector<16x32xf32> to vector<16xf32>
    %373 = vector.shape_cast %372 : vector<16xf32> to vector<16x1xf32>
    %cst_221 = arith.constant 3.200000e+01 : f32
    %374 = vector.broadcast %cst_221 : f32 to vector<16x1xf32>
    %375 = arith.divf %373, %374 : vector<16x1xf32>
    %cst_222 = arith.constant 9.99999974E-6 : f32
    %376 = vector.broadcast %cst_222 : f32 to vector<16x1xf32>
    %377 = arith.addf %375, %376 : vector<16x1xf32>
    %378 = math.rsqrt %377 : vector<16x1xf32>
    %379 = vector.broadcast %378 : vector<16x1xf32> to vector<16x32xf32>
    %380 = arith.mulf %370, %379 : vector<16x32xf32>
    %381 = vector.broadcast %248 : vector<1x32xf32> to vector<16x32xf32>
    %382 = arith.mulf %380, %381 : vector<16x32xf32>
    %383 = vector.broadcast %246 : vector<1x32xf32> to vector<16x32xf32>
    %384 = arith.addf %382, %383 : vector<16x32xf32>
    %cst_223 = arith.constant dense<0.000000e+00> : vector<16x64xf32>
    %385 = tpu.matmul %384, %240, %cst_223 {dimension_numbers = #tpu.dot_dimension_numbers<[1], [0], [0], [1], [0, 0, 1, 1], [], []>} : vector<16x32xf32>, vector<32x64xf32>, vector<16x64xf32> -> vector<16x64xf32>
    %386 = vector.broadcast %238 : vector<1x64xf32> to vector<16x64xf32>
    %387 = arith.addf %385, %386 : vector<16x64xf32>
    %cst_224 = arith.constant 0.000000e+00 : f32
    %388 = vector.broadcast %cst_224 : f32 to vector<16x64xf32>
    %389 = arith.maximumf %387, %388 : vector<16x64xf32>
    %cst_225 = arith.constant dense<0.000000e+00> : vector<16x32xf32>
    %390 = tpu.matmul %389, %244, %cst_225 {dimension_numbers = #tpu.dot_dimension_numbers<[1], [0], [0], [1], [0, 0, 1, 1], [], []>} : vector<16x64xf32>, vector<64x32xf32>, vector<16x32xf32> -> vector<16x32xf32>
    %391 = vector.broadcast %242 : vector<1x32xf32> to vector<16x32xf32>
    %392 = arith.addf %390, %391 : vector<16x32xf32>
    %393 = arith.addf %384, %392 : vector<16x32xf32>
    %cst_226 = arith.constant dense<0.000000e+00> : vector<16xf32>
    %394 = vector.multi_reduction <add>, %393, %cst_226 [1] : vector<16x32xf32> to vector<16xf32>
    %395 = vector.shape_cast %394 : vector<16xf32> to vector<16x1xf32>
    %cst_227 = arith.constant 3.200000e+01 : f32
    %396 = vector.broadcast %cst_227 : f32 to vector<16x1xf32>
    %397 = arith.divf %395, %396 : vector<16x1xf32>
    %398 = vector.broadcast %397 : vector<16x1xf32> to vector<16x32xf32>
    %399 = arith.subf %393, %398 : vector<16x32xf32>
    %400 = arith.mulf %399, %399 : vector<16x32xf32>
    %cst_228 = arith.constant dense<0.000000e+00> : vector<16xf32>
    %401 = vector.multi_reduction <add>, %400, %cst_228 [1] : vector<16x32xf32> to vector<16xf32>
    %402 = vector.shape_cast %401 : vector<16xf32> to vector<16x1xf32>
    %cst_229 = arith.constant 3.200000e+01 : f32
    %403 = vector.broadcast %cst_229 : f32 to vector<16x1xf32>
    %404 = arith.divf %402, %403 : vector<16x1xf32>
    %cst_230 = arith.constant 9.99999974E-6 : f32
    %405 = vector.broadcast %cst_230 : f32 to vector<16x1xf32>
    %406 = arith.addf %404, %405 : vector<16x1xf32>
    %407 = math.rsqrt %406 : vector<16x1xf32>
    %408 = vector.broadcast %407 : vector<16x1xf32> to vector<16x32xf32>
    %409 = arith.mulf %399, %408 : vector<16x32xf32>
    %410 = vector.broadcast %252 : vector<1x32xf32> to vector<16x32xf32>
    %411 = arith.mulf %409, %410 : vector<16x32xf32>
    %412 = vector.broadcast %250 : vector<1x32xf32> to vector<16x32xf32>
    %413 = arith.addf %411, %412 : vector<16x32xf32>
    %cst_231 = arith.constant dense<0.000000e+00> : vector<16xf32>
    %414 = vector.multi_reduction <add>, %413, %cst_231 [1] : vector<16x32xf32> to vector<16xf32>
    %415 = vector.shape_cast %414 : vector<16xf32> to vector<16x1xf32>
    %cst_232 = arith.constant 3.200000e+01 : f32
    %416 = vector.broadcast %cst_232 : f32 to vector<16x1xf32>
    %417 = arith.divf %415, %416 : vector<16x1xf32>
    %418 = vector.broadcast %417 : vector<16x1xf32> to vector<16x32xf32>
    %419 = arith.subf %413, %418 : vector<16x32xf32>
    %420 = arith.mulf %419, %419 : vector<16x32xf32>
    %cst_233 = arith.constant dense<0.000000e+00> : vector<16xf32>
    %421 = vector.multi_reduction <add>, %420, %cst_233 [1] : vector<16x32xf32> to vector<16xf32>
    %422 = vector.shape_cast %421 : vector<16xf32> to vector<16x1xf32>
    %cst_234 = arith.constant 3.200000e+01 : f32
    %423 = vector.broadcast %cst_234 : f32 to vector<16x1xf32>
    %424 = arith.divf %422, %423 : vector<16x1xf32>
    %cst_235 = arith.constant 9.99999974E-6 : f32
    %425 = vector.broadcast %cst_235 : f32 to vector<16x1xf32>
    %426 = arith.addf %424, %425 : vector<16x1xf32>
    %427 = math.rsqrt %426 : vector<16x1xf32>
    %428 = vector.broadcast %427 : vector<16x1xf32> to vector<16x32xf32>
    %429 = arith.mulf %419, %428 : vector<16x32xf32>
    %430 = vector.broadcast %45 : vector<1x32xf32> to vector<16x32xf32>
    %431 = arith.mulf %429, %430 : vector<16x32xf32>
    %432 = vector.broadcast %44 : vector<1x32xf32> to vector<16x32xf32>
    %433 = arith.addf %431, %432 : vector<16x32xf32>
    %434 = vector.shape_cast %433 : vector<16x32xf32> to vector<2x8x32xf32>
    %435 = vector.shape_cast %49 : vector<2x8x32xf32> to vector<16x32xf32>
    %436 = vector.extract_strided_slice %0 {offsets = [0, 0, 0, 0], sizes = [1, 2, 1, 16], strides = [1, 1, 1, 1]} : vector<2x2x1x16xf32> to vector<1x2x1x16xf32>
    %437 = vector.shape_cast %436 : vector<1x2x1x16xf32> to vector<2x1x16xf32>
    %438 = vector.extract_strided_slice %1 {offsets = [0, 0, 0], sizes = [1, 1, 32], strides = [1, 1, 1]} : vector<2x1x32xf32> to vector<1x1x32xf32>
    %439 = vector.shape_cast %438 : vector<1x1x32xf32> to vector<1x32xf32>
    %440 = vector.extract_strided_slice %2 {offsets = [0, 0, 0, 0], sizes = [1, 2, 1, 16], strides = [1, 1, 1, 1]} : vector<2x2x1x16xf32> to vector<1x2x1x16xf32>
    %441 = vector.shape_cast %440 : vector<1x2x1x16xf32> to vector<2x1x16xf32>
    %442 = vector.extract_strided_slice %3 {offsets = [0, 0, 0, 0], sizes = [1, 2, 1, 16], strides = [1, 1, 1, 1]} : vector<2x2x1x16xf32> to vector<1x2x1x16xf32>
    %443 = vector.shape_cast %442 : vector<1x2x1x16xf32> to vector<2x1x16xf32>
    %444 = vector.extract_strided_slice %4 {offsets = [0, 0, 0, 0], sizes = [1, 2, 32, 16], strides = [1, 1, 1, 1]} : vector<2x2x32x16xf32> to vector<1x2x32x16xf32>
    %445 = vector.shape_cast %444 : vector<1x2x32x16xf32> to vector<2x32x16xf32>
    %446 = vector.extract_strided_slice %5 {offsets = [0, 0, 0, 0], sizes = [1, 2, 16, 32], strides = [1, 1, 1, 1]} : vector<2x2x16x32xf32> to vector<1x2x16x32xf32>
    %447 = vector.shape_cast %446 : vector<1x2x16x32xf32> to vector<2x16x32xf32>
    %448 = vector.extract_strided_slice %6 {offsets = [0, 0, 0, 0], sizes = [1, 2, 32, 16], strides = [1, 1, 1, 1]} : vector<2x2x32x16xf32> to vector<1x2x32x16xf32>
    %449 = vector.shape_cast %448 : vector<1x2x32x16xf32> to vector<2x32x16xf32>
    %450 = vector.extract_strided_slice %7 {offsets = [0, 0, 0, 0], sizes = [1, 2, 32, 16], strides = [1, 1, 1, 1]} : vector<2x2x32x16xf32> to vector<1x2x32x16xf32>
    %451 = vector.shape_cast %450 : vector<1x2x32x16xf32> to vector<2x32x16xf32>
    %452 = vector.extract_strided_slice %8 {offsets = [0, 0, 0], sizes = [1, 1, 64], strides = [1, 1, 1]} : vector<2x1x64xf32> to vector<1x1x64xf32>
    %453 = vector.shape_cast %452 : vector<1x1x64xf32> to vector<1x64xf32>
    %454 = vector.extract_strided_slice %9 {offsets = [0, 0, 0], sizes = [1, 32, 64], strides = [1, 1, 1]} : vector<2x32x64xf32> to vector<1x32x64xf32>
    %455 = vector.shape_cast %454 : vector<1x32x64xf32> to vector<32x64xf32>
    %456 = vector.extract_strided_slice %10 {offsets = [0, 0, 0], sizes = [1, 1, 32], strides = [1, 1, 1]} : vector<2x1x32xf32> to vector<1x1x32xf32>
    %457 = vector.shape_cast %456 : vector<1x1x32xf32> to vector<1x32xf32>
    %458 = vector.extract_strided_slice %11 {offsets = [0, 0, 0], sizes = [1, 64, 32], strides = [1, 1, 1]} : vector<2x64x32xf32> to vector<1x64x32xf32>
    %459 = vector.shape_cast %458 : vector<1x64x32xf32> to vector<64x32xf32>
    %460 = vector.extract_strided_slice %12 {offsets = [0, 0, 0], sizes = [1, 1, 32], strides = [1, 1, 1]} : vector<2x1x32xf32> to vector<1x1x32xf32>
    %461 = vector.shape_cast %460 : vector<1x1x32xf32> to vector<1x32xf32>
    %462 = vector.extract_strided_slice %13 {offsets = [0, 0, 0], sizes = [1, 1, 32], strides = [1, 1, 1]} : vector<2x1x32xf32> to vector<1x1x32xf32>
    %463 = vector.shape_cast %462 : vector<1x1x32xf32> to vector<1x32xf32>
    %464 = vector.extract_strided_slice %14 {offsets = [0, 0, 0], sizes = [1, 1, 32], strides = [1, 1, 1]} : vector<2x1x32xf32> to vector<1x1x32xf32>
    %465 = vector.shape_cast %464 : vector<1x1x32xf32> to vector<1x32xf32>
    %466 = vector.extract_strided_slice %15 {offsets = [0, 0, 0], sizes = [1, 1, 32], strides = [1, 1, 1]} : vector<2x1x32xf32> to vector<1x1x32xf32>
    %467 = vector.shape_cast %466 : vector<1x1x32xf32> to vector<1x32xf32>
    %468 = vector.extract_strided_slice %16 {offsets = [0, 0, 0], sizes = [1, 1, 32], strides = [1, 1, 1]} : vector<2x1x32xf32> to vector<1x1x32xf32>
    %469 = vector.shape_cast %468 : vector<1x1x32xf32> to vector<1x32xf32>
    %470 = vector.extract_strided_slice %17 {offsets = [0, 0, 0], sizes = [1, 1, 32], strides = [1, 1, 1]} : vector<2x1x32xf32> to vector<1x1x32xf32>
    %471 = vector.shape_cast %470 : vector<1x1x32xf32> to vector<1x32xf32>
    %472 = vector.extract_strided_slice %18 {offsets = [0, 0, 0, 0], sizes = [1, 2, 1, 16], strides = [1, 1, 1, 1]} : vector<2x2x1x16xf32> to vector<1x2x1x16xf32>
    %473 = vector.shape_cast %472 : vector<1x2x1x16xf32> to vector<2x1x16xf32>
    %474 = vector.extract_strided_slice %19 {offsets = [0, 0, 0], sizes = [1, 1, 32], strides = [1, 1, 1]} : vector<2x1x32xf32> to vector<1x1x32xf32>
    %475 = vector.shape_cast %474 : vector<1x1x32xf32> to vector<1x32xf32>
    %476 = vector.extract_strided_slice %20 {offsets = [0, 0, 0, 0], sizes = [1, 2, 1, 16], strides = [1, 1, 1, 1]} : vector<2x2x1x16xf32> to vector<1x2x1x16xf32>
    %477 = vector.shape_cast %476 : vector<1x2x1x16xf32> to vector<2x1x16xf32>
    %478 = vector.extract_strided_slice %21 {offsets = [0, 0, 0, 0], sizes = [1, 2, 1, 16], strides = [1, 1, 1, 1]} : vector<2x2x1x16xf32> to vector<1x2x1x16xf32>
    %479 = vector.shape_cast %478 : vector<1x2x1x16xf32> to vector<2x1x16xf32>
    %480 = vector.extract_strided_slice %22 {offsets = [0, 0, 0, 0], sizes = [1, 2, 32, 16], strides = [1, 1, 1, 1]} : vector<2x2x32x16xf32> to vector<1x2x32x16xf32>
    %481 = vector.shape_cast %480 : vector<1x2x32x16xf32> to vector<2x32x16xf32>
    %482 = vector.extract_strided_slice %23 {offsets = [0, 0, 0, 0], sizes = [1, 2, 16, 32], strides = [1, 1, 1, 1]} : vector<2x2x16x32xf32> to vector<1x2x16x32xf32>
    %483 = vector.shape_cast %482 : vector<1x2x16x32xf32> to vector<2x16x32xf32>
    %484 = vector.extract_strided_slice %24 {offsets = [0, 0, 0, 0], sizes = [1, 2, 32, 16], strides = [1, 1, 1, 1]} : vector<2x2x32x16xf32> to vector<1x2x32x16xf32>
    %485 = vector.shape_cast %484 : vector<1x2x32x16xf32> to vector<2x32x16xf32>
    %486 = vector.extract_strided_slice %25 {offsets = [0, 0, 0, 0], sizes = [1, 2, 32, 16], strides = [1, 1, 1, 1]} : vector<2x2x32x16xf32> to vector<1x2x32x16xf32>
    %487 = vector.shape_cast %486 : vector<1x2x32x16xf32> to vector<2x32x16xf32>
    %488 = vector.shape_cast %435 : vector<16x32xf32> to vector<2x8x32xf32>
    %489 = vector.shape_cast %435 : vector<16x32xf32> to vector<2x8x32xf32>
    %490 = vector.shape_cast %488 : vector<2x8x32xf32> to vector<16x32xf32>
    %491 = vector.shape_cast %489 : vector<2x8x32xf32> to vector<16x32xf32>
    %cst_236 = arith.constant 0.000000e+00 : f32
    %492 = vector.broadcast %cst_236 : f32 to vector<16x32xf32>
    %493 = vector.extract_strided_slice %485 {offsets = [0, 0, 0], sizes = [1, 32, 16], strides = [1, 1, 1]} : vector<2x32x16xf32> to vector<1x32x16xf32>
    %494 = vector.shape_cast %493 : vector<1x32x16xf32> to vector<32x16xf32>
    %cst_237 = arith.constant dense<0.000000e+00> : vector<16x16xf32>
    %495 = tpu.matmul %490, %494, %cst_237 {dimension_numbers = #tpu.dot_dimension_numbers<[1], [0], [0], [1], [0, 0, 1, 1], [], []>} : vector<16x32xf32>, vector<32x16xf32>, vector<16x16xf32> -> vector<16x16xf32>
    %496 = vector.extract_strided_slice %477 {offsets = [0, 0, 0], sizes = [1, 1, 16], strides = [1, 1, 1]} : vector<2x1x16xf32> to vector<1x1x16xf32>
    %497 = vector.shape_cast %496 : vector<1x1x16xf32> to vector<1x16xf32>
    %498 = vector.broadcast %497 : vector<1x16xf32> to vector<16x16xf32>
    %499 = arith.addf %495, %498 : vector<16x16xf32>
    %500 = vector.shape_cast %499 : vector<16x16xf32> to vector<2x8x16xf32>
    %501 = vector.extract_strided_slice %481 {offsets = [0, 0, 0], sizes = [1, 32, 16], strides = [1, 1, 1]} : vector<2x32x16xf32> to vector<1x32x16xf32>
    %502 = vector.shape_cast %501 : vector<1x32x16xf32> to vector<32x16xf32>
    %cst_238 = arith.constant dense<0.000000e+00> : vector<16x16xf32>
    %503 = tpu.matmul %491, %502, %cst_238 {dimension_numbers = #tpu.dot_dimension_numbers<[1], [0], [0], [1], [0, 0, 1, 1], [], []>} : vector<16x32xf32>, vector<32x16xf32>, vector<16x16xf32> -> vector<16x16xf32>
    %504 = vector.extract_strided_slice %473 {offsets = [0, 0, 0], sizes = [1, 1, 16], strides = [1, 1, 1]} : vector<2x1x16xf32> to vector<1x1x16xf32>
    %505 = vector.shape_cast %504 : vector<1x1x16xf32> to vector<1x16xf32>
    %506 = vector.broadcast %505 : vector<1x16xf32> to vector<16x16xf32>
    %507 = arith.addf %503, %506 : vector<16x16xf32>
    %508 = vector.shape_cast %507 : vector<16x16xf32> to vector<2x8x16xf32>
    %509 = vector.extract_strided_slice %487 {offsets = [0, 0, 0], sizes = [1, 32, 16], strides = [1, 1, 1]} : vector<2x32x16xf32> to vector<1x32x16xf32>
    %510 = vector.shape_cast %509 : vector<1x32x16xf32> to vector<32x16xf32>
    %cst_239 = arith.constant dense<0.000000e+00> : vector<16x16xf32>
    %511 = tpu.matmul %491, %510, %cst_239 {dimension_numbers = #tpu.dot_dimension_numbers<[1], [0], [0], [1], [0, 0, 1, 1], [], []>} : vector<16x32xf32>, vector<32x16xf32>, vector<16x16xf32> -> vector<16x16xf32>
    %512 = vector.extract_strided_slice %479 {offsets = [0, 0, 0], sizes = [1, 1, 16], strides = [1, 1, 1]} : vector<2x1x16xf32> to vector<1x1x16xf32>
    %513 = vector.shape_cast %512 : vector<1x1x16xf32> to vector<1x16xf32>
    %514 = vector.broadcast %513 : vector<1x16xf32> to vector<16x16xf32>
    %515 = arith.addf %511, %514 : vector<16x16xf32>
    %516 = vector.shape_cast %515 : vector<16x16xf32> to vector<2x8x16xf32>
    "tpu.trace_start"() <{level = 10 : i32, message = "bqd,bkd->bqk"}> : () -> ()
    %cst_240 = arith.constant dense<0.000000e+00> : vector<2x8x8xf32>
    %517 = tpu.matmul %500, %508, %cst_240 {dimension_numbers = #tpu.dot_dimension_numbers<[2], [2], [1], [1], [0, 0, 0, 1, 1, 1], [0], [0]>} : vector<2x8x16xf32>, vector<2x8x16xf32>, vector<2x8x8xf32> -> vector<2x8x8xf32>
    "tpu.trace_stop"() : () -> ()
    %cst_241 = arith.constant 2.500000e-01 : f32
    %518 = vector.broadcast %cst_241 : f32 to vector<2x8x8xf32>
    %519 = arith.mulf %517, %518 : vector<2x8x8xf32>
    %520 = vector.broadcast %58 : vector<1x8x8xf32> to vector<2x8x8xf32>
    %521 = arith.addf %519, %520 : vector<2x8x8xf32>
    %cst_242 = arith.constant dense<0xFF800000> : vector<2x8xf32>
    %522 = vector.multi_reduction <maximumf>, %521, %cst_242 [2] : vector<2x8x8xf32> to vector<2x8xf32>
    %523 = vector.shape_cast %522 : vector<2x8xf32> to vector<2x8x1xf32>
    %524 = vector.broadcast %523 : vector<2x8x1xf32> to vector<2x8x8xf32>
    %525 = arith.subf %521, %524 : vector<2x8x8xf32>
    %526 = math.exp %525 : vector<2x8x8xf32>
    %cst_243 = arith.constant dense<0.000000e+00> : vector<2x8xf32>
    %527 = vector.multi_reduction <add>, %526, %cst_243 [2] : vector<2x8x8xf32> to vector<2x8xf32>
    %528 = vector.shape_cast %527 : vector<2x8xf32> to vector<2x8x1xf32>
    %529 = vector.broadcast %528 : vector<2x8x1xf32> to vector<2x8x8xf32>
    %530 = arith.divf %526, %529 : vector<2x8x8xf32>
    "tpu.trace_start"() <{level = 10 : i32, message = "bqk,bkd->bqd"}> : () -> ()
    %cst_244 = arith.constant dense<0.000000e+00> : vector<2x8x16xf32>
    %531 = tpu.matmul %530, %516, %cst_244 {dimension_numbers = #tpu.dot_dimension_numbers<[2], [1], [1], [2], [0, 0, 0, 1, 1, 2], [0], [0]>} : vector<2x8x8xf32>, vector<2x8x16xf32>, vector<2x8x16xf32> -> vector<2x8x16xf32>
    "tpu.trace_stop"() : () -> ()
    %532 = vector.shape_cast %531 : vector<2x8x16xf32> to vector<16x16xf32>
    %533 = vector.extract_strided_slice %483 {offsets = [0, 0, 0], sizes = [1, 16, 32], strides = [1, 1, 1]} : vector<2x16x32xf32> to vector<1x16x32xf32>
    %534 = vector.shape_cast %533 : vector<1x16x32xf32> to vector<16x32xf32>
    %cst_245 = arith.constant dense<0.000000e+00> : vector<16x32xf32>
    %535 = tpu.matmul %532, %534, %cst_245 {dimension_numbers = #tpu.dot_dimension_numbers<[1], [0], [0], [1], [0, 0, 1, 1], [], []>} : vector<16x16xf32>, vector<16x32xf32>, vector<16x32xf32> -> vector<16x32xf32>
    %536 = arith.addf %492, %535 : vector<16x32xf32>
    %537 = vector.extract_strided_slice %485 {offsets = [1, 0, 0], sizes = [1, 32, 16], strides = [1, 1, 1]} : vector<2x32x16xf32> to vector<1x32x16xf32>
    %538 = vector.shape_cast %537 : vector<1x32x16xf32> to vector<32x16xf32>
    %cst_246 = arith.constant dense<0.000000e+00> : vector<16x16xf32>
    %539 = tpu.matmul %490, %538, %cst_246 {dimension_numbers = #tpu.dot_dimension_numbers<[1], [0], [0], [1], [0, 0, 1, 1], [], []>} : vector<16x32xf32>, vector<32x16xf32>, vector<16x16xf32> -> vector<16x16xf32>
    %540 = vector.extract_strided_slice %477 {offsets = [1, 0, 0], sizes = [1, 1, 16], strides = [1, 1, 1]} : vector<2x1x16xf32> to vector<1x1x16xf32>
    %541 = vector.shape_cast %540 : vector<1x1x16xf32> to vector<1x16xf32>
    %542 = vector.broadcast %541 : vector<1x16xf32> to vector<16x16xf32>
    %543 = arith.addf %539, %542 : vector<16x16xf32>
    %544 = vector.shape_cast %543 : vector<16x16xf32> to vector<2x8x16xf32>
    %545 = vector.extract_strided_slice %481 {offsets = [1, 0, 0], sizes = [1, 32, 16], strides = [1, 1, 1]} : vector<2x32x16xf32> to vector<1x32x16xf32>
    %546 = vector.shape_cast %545 : vector<1x32x16xf32> to vector<32x16xf32>
    %cst_247 = arith.constant dense<0.000000e+00> : vector<16x16xf32>
    %547 = tpu.matmul %491, %546, %cst_247 {dimension_numbers = #tpu.dot_dimension_numbers<[1], [0], [0], [1], [0, 0, 1, 1], [], []>} : vector<16x32xf32>, vector<32x16xf32>, vector<16x16xf32> -> vector<16x16xf32>
    %548 = vector.extract_strided_slice %473 {offsets = [1, 0, 0], sizes = [1, 1, 16], strides = [1, 1, 1]} : vector<2x1x16xf32> to vector<1x1x16xf32>
    %549 = vector.shape_cast %548 : vector<1x1x16xf32> to vector<1x16xf32>
    %550 = vector.broadcast %549 : vector<1x16xf32> to vector<16x16xf32>
    %551 = arith.addf %547, %550 : vector<16x16xf32>
    %552 = vector.shape_cast %551 : vector<16x16xf32> to vector<2x8x16xf32>
    %553 = vector.extract_strided_slice %487 {offsets = [1, 0, 0], sizes = [1, 32, 16], strides = [1, 1, 1]} : vector<2x32x16xf32> to vector<1x32x16xf32>
    %554 = vector.shape_cast %553 : vector<1x32x16xf32> to vector<32x16xf32>
    %cst_248 = arith.constant dense<0.000000e+00> : vector<16x16xf32>
    %555 = tpu.matmul %491, %554, %cst_248 {dimension_numbers = #tpu.dot_dimension_numbers<[1], [0], [0], [1], [0, 0, 1, 1], [], []>} : vector<16x32xf32>, vector<32x16xf32>, vector<16x16xf32> -> vector<16x16xf32>
    %556 = vector.extract_strided_slice %479 {offsets = [1, 0, 0], sizes = [1, 1, 16], strides = [1, 1, 1]} : vector<2x1x16xf32> to vector<1x1x16xf32>
    %557 = vector.shape_cast %556 : vector<1x1x16xf32> to vector<1x16xf32>
    %558 = vector.broadcast %557 : vector<1x16xf32> to vector<16x16xf32>
    %559 = arith.addf %555, %558 : vector<16x16xf32>
    %560 = vector.shape_cast %559 : vector<16x16xf32> to vector<2x8x16xf32>
    "tpu.trace_start"() <{level = 10 : i32, message = "bqd,bkd->bqk"}> : () -> ()
    %cst_249 = arith.constant dense<0.000000e+00> : vector<2x8x8xf32>
    %561 = tpu.matmul %544, %552, %cst_249 {dimension_numbers = #tpu.dot_dimension_numbers<[2], [2], [1], [1], [0, 0, 0, 1, 1, 1], [0], [0]>} : vector<2x8x16xf32>, vector<2x8x16xf32>, vector<2x8x8xf32> -> vector<2x8x8xf32>
    "tpu.trace_stop"() : () -> ()
    %cst_250 = arith.constant 2.500000e-01 : f32
    %562 = vector.broadcast %cst_250 : f32 to vector<2x8x8xf32>
    %563 = arith.mulf %561, %562 : vector<2x8x8xf32>
    %564 = vector.broadcast %58 : vector<1x8x8xf32> to vector<2x8x8xf32>
    %565 = arith.addf %563, %564 : vector<2x8x8xf32>
    %cst_251 = arith.constant dense<0xFF800000> : vector<2x8xf32>
    %566 = vector.multi_reduction <maximumf>, %565, %cst_251 [2] : vector<2x8x8xf32> to vector<2x8xf32>
    %567 = vector.shape_cast %566 : vector<2x8xf32> to vector<2x8x1xf32>
    %568 = vector.broadcast %567 : vector<2x8x1xf32> to vector<2x8x8xf32>
    %569 = arith.subf %565, %568 : vector<2x8x8xf32>
    %570 = math.exp %569 : vector<2x8x8xf32>
    %cst_252 = arith.constant dense<0.000000e+00> : vector<2x8xf32>
    %571 = vector.multi_reduction <add>, %570, %cst_252 [2] : vector<2x8x8xf32> to vector<2x8xf32>
    %572 = vector.shape_cast %571 : vector<2x8xf32> to vector<2x8x1xf32>
    %573 = vector.broadcast %572 : vector<2x8x1xf32> to vector<2x8x8xf32>
    %574 = arith.divf %570, %573 : vector<2x8x8xf32>
    "tpu.trace_start"() <{level = 10 : i32, message = "bqk,bkd->bqd"}> : () -> ()
    %cst_253 = arith.constant dense<0.000000e+00> : vector<2x8x16xf32>
    %575 = tpu.matmul %574, %560, %cst_253 {dimension_numbers = #tpu.dot_dimension_numbers<[2], [1], [1], [2], [0, 0, 0, 1, 1, 2], [0], [0]>} : vector<2x8x8xf32>, vector<2x8x16xf32>, vector<2x8x16xf32> -> vector<2x8x16xf32>
    "tpu.trace_stop"() : () -> ()
    %576 = vector.shape_cast %575 : vector<2x8x16xf32> to vector<16x16xf32>
    %577 = vector.extract_strided_slice %483 {offsets = [1, 0, 0], sizes = [1, 16, 32], strides = [1, 1, 1]} : vector<2x16x32xf32> to vector<1x16x32xf32>
    %578 = vector.shape_cast %577 : vector<1x16x32xf32> to vector<16x32xf32>
    %cst_254 = arith.constant dense<0.000000e+00> : vector<16x32xf32>
    %579 = tpu.matmul %576, %578, %cst_254 {dimension_numbers = #tpu.dot_dimension_numbers<[1], [0], [0], [1], [0, 0, 1, 1], [], []>} : vector<16x16xf32>, vector<16x32xf32>, vector<16x32xf32> -> vector<16x32xf32>
    %580 = arith.addf %536, %579 : vector<16x32xf32>
    %581 = vector.broadcast %475 : vector<1x32xf32> to vector<16x32xf32>
    %582 = arith.addf %580, %581 : vector<16x32xf32>
    %583 = arith.addf %435, %582 : vector<16x32xf32>
    %cst_255 = arith.constant dense<0.000000e+00> : vector<16xf32>
    %584 = vector.multi_reduction <add>, %583, %cst_255 [1] : vector<16x32xf32> to vector<16xf32>
    %585 = vector.shape_cast %584 : vector<16xf32> to vector<16x1xf32>
    %cst_256 = arith.constant 3.200000e+01 : f32
    %586 = vector.broadcast %cst_256 : f32 to vector<16x1xf32>
    %587 = arith.divf %585, %586 : vector<16x1xf32>
    %588 = vector.broadcast %587 : vector<16x1xf32> to vector<16x32xf32>
    %589 = arith.subf %583, %588 : vector<16x32xf32>
    %590 = arith.mulf %589, %589 : vector<16x32xf32>
    %cst_257 = arith.constant dense<0.000000e+00> : vector<16xf32>
    %591 = vector.multi_reduction <add>, %590, %cst_257 [1] : vector<16x32xf32> to vector<16xf32>
    %592 = vector.shape_cast %591 : vector<16xf32> to vector<16x1xf32>
    %cst_258 = arith.constant 3.200000e+01 : f32
    %593 = vector.broadcast %cst_258 : f32 to vector<16x1xf32>
    %594 = arith.divf %592, %593 : vector<16x1xf32>
    %cst_259 = arith.constant 9.99999974E-6 : f32
    %595 = vector.broadcast %cst_259 : f32 to vector<16x1xf32>
    %596 = arith.addf %594, %595 : vector<16x1xf32>
    %597 = math.rsqrt %596 : vector<16x1xf32>
    %598 = vector.broadcast %597 : vector<16x1xf32> to vector<16x32xf32>
    %599 = arith.mulf %589, %598 : vector<16x32xf32>
    %600 = vector.broadcast %463 : vector<1x32xf32> to vector<16x32xf32>
    %601 = arith.mulf %599, %600 : vector<16x32xf32>
    %602 = vector.broadcast %461 : vector<1x32xf32> to vector<16x32xf32>
    %603 = arith.addf %601, %602 : vector<16x32xf32>
    %604 = vector.shape_cast %603 : vector<16x32xf32> to vector<2x8x32xf32>
    %605 = vector.shape_cast %604 : vector<2x8x32xf32> to vector<16x32xf32>
    %606 = vector.shape_cast %434 : vector<2x8x32xf32> to vector<16x32xf32>
    %cst_260 = arith.constant 0.000000e+00 : f32
    %607 = vector.broadcast %cst_260 : f32 to vector<16x32xf32>
    %608 = vector.extract_strided_slice %449 {offsets = [0, 0, 0], sizes = [1, 32, 16], strides = [1, 1, 1]} : vector<2x32x16xf32> to vector<1x32x16xf32>
    %609 = vector.shape_cast %608 : vector<1x32x16xf32> to vector<32x16xf32>
    %cst_261 = arith.constant dense<0.000000e+00> : vector<16x16xf32>
    %610 = tpu.matmul %605, %609, %cst_261 {dimension_numbers = #tpu.dot_dimension_numbers<[1], [0], [0], [1], [0, 0, 1, 1], [], []>} : vector<16x32xf32>, vector<32x16xf32>, vector<16x16xf32> -> vector<16x16xf32>
    %611 = vector.extract_strided_slice %441 {offsets = [0, 0, 0], sizes = [1, 1, 16], strides = [1, 1, 1]} : vector<2x1x16xf32> to vector<1x1x16xf32>
    %612 = vector.shape_cast %611 : vector<1x1x16xf32> to vector<1x16xf32>
    %613 = vector.broadcast %612 : vector<1x16xf32> to vector<16x16xf32>
    %614 = arith.addf %610, %613 : vector<16x16xf32>
    %615 = vector.shape_cast %614 : vector<16x16xf32> to vector<2x8x16xf32>
    %616 = vector.extract_strided_slice %445 {offsets = [0, 0, 0], sizes = [1, 32, 16], strides = [1, 1, 1]} : vector<2x32x16xf32> to vector<1x32x16xf32>
    %617 = vector.shape_cast %616 : vector<1x32x16xf32> to vector<32x16xf32>
    %cst_262 = arith.constant dense<0.000000e+00> : vector<16x16xf32>
    %618 = tpu.matmul %606, %617, %cst_262 {dimension_numbers = #tpu.dot_dimension_numbers<[1], [0], [0], [1], [0, 0, 1, 1], [], []>} : vector<16x32xf32>, vector<32x16xf32>, vector<16x16xf32> -> vector<16x16xf32>
    %619 = vector.extract_strided_slice %437 {offsets = [0, 0, 0], sizes = [1, 1, 16], strides = [1, 1, 1]} : vector<2x1x16xf32> to vector<1x1x16xf32>
    %620 = vector.shape_cast %619 : vector<1x1x16xf32> to vector<1x16xf32>
    %621 = vector.broadcast %620 : vector<1x16xf32> to vector<16x16xf32>
    %622 = arith.addf %618, %621 : vector<16x16xf32>
    %623 = vector.shape_cast %622 : vector<16x16xf32> to vector<2x8x16xf32>
    %624 = vector.extract_strided_slice %451 {offsets = [0, 0, 0], sizes = [1, 32, 16], strides = [1, 1, 1]} : vector<2x32x16xf32> to vector<1x32x16xf32>
    %625 = vector.shape_cast %624 : vector<1x32x16xf32> to vector<32x16xf32>
    %cst_263 = arith.constant dense<0.000000e+00> : vector<16x16xf32>
    %626 = tpu.matmul %606, %625, %cst_263 {dimension_numbers = #tpu.dot_dimension_numbers<[1], [0], [0], [1], [0, 0, 1, 1], [], []>} : vector<16x32xf32>, vector<32x16xf32>, vector<16x16xf32> -> vector<16x16xf32>
    %627 = vector.extract_strided_slice %443 {offsets = [0, 0, 0], sizes = [1, 1, 16], strides = [1, 1, 1]} : vector<2x1x16xf32> to vector<1x1x16xf32>
    %628 = vector.shape_cast %627 : vector<1x1x16xf32> to vector<1x16xf32>
    %629 = vector.broadcast %628 : vector<1x16xf32> to vector<16x16xf32>
    %630 = arith.addf %626, %629 : vector<16x16xf32>
    %631 = vector.shape_cast %630 : vector<16x16xf32> to vector<2x8x16xf32>
    "tpu.trace_start"() <{level = 10 : i32, message = "bqd,bkd->bqk"}> : () -> ()
    %cst_264 = arith.constant dense<0.000000e+00> : vector<2x8x8xf32>
    %632 = tpu.matmul %615, %623, %cst_264 {dimension_numbers = #tpu.dot_dimension_numbers<[2], [2], [1], [1], [0, 0, 0, 1, 1, 1], [0], [0]>} : vector<2x8x16xf32>, vector<2x8x16xf32>, vector<2x8x8xf32> -> vector<2x8x8xf32>
    "tpu.trace_stop"() : () -> ()
    %cst_265 = arith.constant 2.500000e-01 : f32
    %633 = vector.broadcast %cst_265 : f32 to vector<2x8x8xf32>
    %634 = arith.mulf %632, %633 : vector<2x8x8xf32>
    %cst_266 = arith.constant dense<0xFF800000> : vector<2x8xf32>
    %635 = vector.multi_reduction <maximumf>, %634, %cst_266 [2] : vector<2x8x8xf32> to vector<2x8xf32>
    %636 = vector.shape_cast %635 : vector<2x8xf32> to vector<2x8x1xf32>
    %637 = vector.broadcast %636 : vector<2x8x1xf32> to vector<2x8x8xf32>
    %638 = arith.subf %634, %637 : vector<2x8x8xf32>
    %639 = math.exp %638 : vector<2x8x8xf32>
    %cst_267 = arith.constant dense<0.000000e+00> : vector<2x8xf32>
    %640 = vector.multi_reduction <add>, %639, %cst_267 [2] : vector<2x8x8xf32> to vector<2x8xf32>
    %641 = vector.shape_cast %640 : vector<2x8xf32> to vector<2x8x1xf32>
    %642 = vector.broadcast %641 : vector<2x8x1xf32> to vector<2x8x8xf32>
    %643 = arith.divf %639, %642 : vector<2x8x8xf32>
    "tpu.trace_start"() <{level = 10 : i32, message = "bqk,bkd->bqd"}> : () -> ()
    %cst_268 = arith.constant dense<0.000000e+00> : vector<2x8x16xf32>
    %644 = tpu.matmul %643, %631, %cst_268 {dimension_numbers = #tpu.dot_dimension_numbers<[2], [1], [1], [2], [0, 0, 0, 1, 1, 2], [0], [0]>} : vector<2x8x8xf32>, vector<2x8x16xf32>, vector<2x8x16xf32> -> vector<2x8x16xf32>
    "tpu.trace_stop"() : () -> ()
    %645 = vector.shape_cast %644 : vector<2x8x16xf32> to vector<16x16xf32>
    %646 = vector.extract_strided_slice %447 {offsets = [0, 0, 0], sizes = [1, 16, 32], strides = [1, 1, 1]} : vector<2x16x32xf32> to vector<1x16x32xf32>
    %647 = vector.shape_cast %646 : vector<1x16x32xf32> to vector<16x32xf32>
    %cst_269 = arith.constant dense<0.000000e+00> : vector<16x32xf32>
    %648 = tpu.matmul %645, %647, %cst_269 {dimension_numbers = #tpu.dot_dimension_numbers<[1], [0], [0], [1], [0, 0, 1, 1], [], []>} : vector<16x16xf32>, vector<16x32xf32>, vector<16x32xf32> -> vector<16x32xf32>
    %649 = arith.addf %607, %648 : vector<16x32xf32>
    %650 = vector.extract_strided_slice %449 {offsets = [1, 0, 0], sizes = [1, 32, 16], strides = [1, 1, 1]} : vector<2x32x16xf32> to vector<1x32x16xf32>
    %651 = vector.shape_cast %650 : vector<1x32x16xf32> to vector<32x16xf32>
    %cst_270 = arith.constant dense<0.000000e+00> : vector<16x16xf32>
    %652 = tpu.matmul %605, %651, %cst_270 {dimension_numbers = #tpu.dot_dimension_numbers<[1], [0], [0], [1], [0, 0, 1, 1], [], []>} : vector<16x32xf32>, vector<32x16xf32>, vector<16x16xf32> -> vector<16x16xf32>
    %653 = vector.extract_strided_slice %441 {offsets = [1, 0, 0], sizes = [1, 1, 16], strides = [1, 1, 1]} : vector<2x1x16xf32> to vector<1x1x16xf32>
    %654 = vector.shape_cast %653 : vector<1x1x16xf32> to vector<1x16xf32>
    %655 = vector.broadcast %654 : vector<1x16xf32> to vector<16x16xf32>
    %656 = arith.addf %652, %655 : vector<16x16xf32>
    %657 = vector.shape_cast %656 : vector<16x16xf32> to vector<2x8x16xf32>
    %658 = vector.extract_strided_slice %445 {offsets = [1, 0, 0], sizes = [1, 32, 16], strides = [1, 1, 1]} : vector<2x32x16xf32> to vector<1x32x16xf32>
    %659 = vector.shape_cast %658 : vector<1x32x16xf32> to vector<32x16xf32>
    %cst_271 = arith.constant dense<0.000000e+00> : vector<16x16xf32>
    %660 = tpu.matmul %606, %659, %cst_271 {dimension_numbers = #tpu.dot_dimension_numbers<[1], [0], [0], [1], [0, 0, 1, 1], [], []>} : vector<16x32xf32>, vector<32x16xf32>, vector<16x16xf32> -> vector<16x16xf32>
    %661 = vector.extract_strided_slice %437 {offsets = [1, 0, 0], sizes = [1, 1, 16], strides = [1, 1, 1]} : vector<2x1x16xf32> to vector<1x1x16xf32>
    %662 = vector.shape_cast %661 : vector<1x1x16xf32> to vector<1x16xf32>
    %663 = vector.broadcast %662 : vector<1x16xf32> to vector<16x16xf32>
    %664 = arith.addf %660, %663 : vector<16x16xf32>
    %665 = vector.shape_cast %664 : vector<16x16xf32> to vector<2x8x16xf32>
    %666 = vector.extract_strided_slice %451 {offsets = [1, 0, 0], sizes = [1, 32, 16], strides = [1, 1, 1]} : vector<2x32x16xf32> to vector<1x32x16xf32>
    %667 = vector.shape_cast %666 : vector<1x32x16xf32> to vector<32x16xf32>
    %cst_272 = arith.constant dense<0.000000e+00> : vector<16x16xf32>
    %668 = tpu.matmul %606, %667, %cst_272 {dimension_numbers = #tpu.dot_dimension_numbers<[1], [0], [0], [1], [0, 0, 1, 1], [], []>} : vector<16x32xf32>, vector<32x16xf32>, vector<16x16xf32> -> vector<16x16xf32>
    %669 = vector.extract_strided_slice %443 {offsets = [1, 0, 0], sizes = [1, 1, 16], strides = [1, 1, 1]} : vector<2x1x16xf32> to vector<1x1x16xf32>
    %670 = vector.shape_cast %669 : vector<1x1x16xf32> to vector<1x16xf32>
    %671 = vector.broadcast %670 : vector<1x16xf32> to vector<16x16xf32>
    %672 = arith.addf %668, %671 : vector<16x16xf32>
    %673 = vector.shape_cast %672 : vector<16x16xf32> to vector<2x8x16xf32>
    "tpu.trace_start"() <{level = 10 : i32, message = "bqd,bkd->bqk"}> : () -> ()
    %cst_273 = arith.constant dense<0.000000e+00> : vector<2x8x8xf32>
    %674 = tpu.matmul %657, %665, %cst_273 {dimension_numbers = #tpu.dot_dimension_numbers<[2], [2], [1], [1], [0, 0, 0, 1, 1, 1], [0], [0]>} : vector<2x8x16xf32>, vector<2x8x16xf32>, vector<2x8x8xf32> -> vector<2x8x8xf32>
    "tpu.trace_stop"() : () -> ()
    %cst_274 = arith.constant 2.500000e-01 : f32
    %675 = vector.broadcast %cst_274 : f32 to vector<2x8x8xf32>
    %676 = arith.mulf %674, %675 : vector<2x8x8xf32>
    %cst_275 = arith.constant dense<0xFF800000> : vector<2x8xf32>
    %677 = vector.multi_reduction <maximumf>, %676, %cst_275 [2] : vector<2x8x8xf32> to vector<2x8xf32>
    %678 = vector.shape_cast %677 : vector<2x8xf32> to vector<2x8x1xf32>
    %679 = vector.broadcast %678 : vector<2x8x1xf32> to vector<2x8x8xf32>
    %680 = arith.subf %676, %679 : vector<2x8x8xf32>
    %681 = math.exp %680 : vector<2x8x8xf32>
    %cst_276 = arith.constant dense<0.000000e+00> : vector<2x8xf32>
    %682 = vector.multi_reduction <add>, %681, %cst_276 [2] : vector<2x8x8xf32> to vector<2x8xf32>
    %683 = vector.shape_cast %682 : vector<2x8xf32> to vector<2x8x1xf32>
    %684 = vector.broadcast %683 : vector<2x8x1xf32> to vector<2x8x8xf32>
    %685 = arith.divf %681, %684 : vector<2x8x8xf32>
    "tpu.trace_start"() <{level = 10 : i32, message = "bqk,bkd->bqd"}> : () -> ()
    %cst_277 = arith.constant dense<0.000000e+00> : vector<2x8x16xf32>
    %686 = tpu.matmul %685, %673, %cst_277 {dimension_numbers = #tpu.dot_dimension_numbers<[2], [1], [1], [2], [0, 0, 0, 1, 1, 2], [0], [0]>} : vector<2x8x8xf32>, vector<2x8x16xf32>, vector<2x8x16xf32> -> vector<2x8x16xf32>
    "tpu.trace_stop"() : () -> ()
    %687 = vector.shape_cast %686 : vector<2x8x16xf32> to vector<16x16xf32>
    %688 = vector.extract_strided_slice %447 {offsets = [1, 0, 0], sizes = [1, 16, 32], strides = [1, 1, 1]} : vector<2x16x32xf32> to vector<1x16x32xf32>
    %689 = vector.shape_cast %688 : vector<1x16x32xf32> to vector<16x32xf32>
    %cst_278 = arith.constant dense<0.000000e+00> : vector<16x32xf32>
    %690 = tpu.matmul %687, %689, %cst_278 {dimension_numbers = #tpu.dot_dimension_numbers<[1], [0], [0], [1], [0, 0, 1, 1], [], []>} : vector<16x16xf32>, vector<16x32xf32>, vector<16x32xf32> -> vector<16x32xf32>
    %691 = arith.addf %649, %690 : vector<16x32xf32>
    %692 = vector.broadcast %439 : vector<1x32xf32> to vector<16x32xf32>
    %693 = arith.addf %691, %692 : vector<16x32xf32>
    %694 = arith.addf %603, %693 : vector<16x32xf32>
    %cst_279 = arith.constant dense<0.000000e+00> : vector<16xf32>
    %695 = vector.multi_reduction <add>, %694, %cst_279 [1] : vector<16x32xf32> to vector<16xf32>
    %696 = vector.shape_cast %695 : vector<16xf32> to vector<16x1xf32>
    %cst_280 = arith.constant 3.200000e+01 : f32
    %697 = vector.broadcast %cst_280 : f32 to vector<16x1xf32>
    %698 = arith.divf %696, %697 : vector<16x1xf32>
    %699 = vector.broadcast %698 : vector<16x1xf32> to vector<16x32xf32>
    %700 = arith.subf %694, %699 : vector<16x32xf32>
    %701 = arith.mulf %700, %700 : vector<16x32xf32>
    %cst_281 = arith.constant dense<0.000000e+00> : vector<16xf32>
    %702 = vector.multi_reduction <add>, %701, %cst_281 [1] : vector<16x32xf32> to vector<16xf32>
    %703 = vector.shape_cast %702 : vector<16xf32> to vector<16x1xf32>
    %cst_282 = arith.constant 3.200000e+01 : f32
    %704 = vector.broadcast %cst_282 : f32 to vector<16x1xf32>
    %705 = arith.divf %703, %704 : vector<16x1xf32>
    %cst_283 = arith.constant 9.99999974E-6 : f32
    %706 = vector.broadcast %cst_283 : f32 to vector<16x1xf32>
    %707 = arith.addf %705, %706 : vector<16x1xf32>
    %708 = math.rsqrt %707 : vector<16x1xf32>
    %709 = vector.broadcast %708 : vector<16x1xf32> to vector<16x32xf32>
    %710 = arith.mulf %700, %709 : vector<16x32xf32>
    %711 = vector.broadcast %467 : vector<1x32xf32> to vector<16x32xf32>
    %712 = arith.mulf %710, %711 : vector<16x32xf32>
    %713 = vector.broadcast %465 : vector<1x32xf32> to vector<16x32xf32>
    %714 = arith.addf %712, %713 : vector<16x32xf32>
    %cst_284 = arith.constant dense<0.000000e+00> : vector<16x64xf32>
    %715 = tpu.matmul %714, %455, %cst_284 {dimension_numbers = #tpu.dot_dimension_numbers<[1], [0], [0], [1], [0, 0, 1, 1], [], []>} : vector<16x32xf32>, vector<32x64xf32>, vector<16x64xf32> -> vector<16x64xf32>
    %716 = vector.broadcast %453 : vector<1x64xf32> to vector<16x64xf32>
    %717 = arith.addf %715, %716 : vector<16x64xf32>
    %cst_285 = arith.constant 0.000000e+00 : f32
    %718 = vector.broadcast %cst_285 : f32 to vector<16x64xf32>
    %719 = arith.maximumf %717, %718 : vector<16x64xf32>
    %cst_286 = arith.constant dense<0.000000e+00> : vector<16x32xf32>
    %720 = tpu.matmul %719, %459, %cst_286 {dimension_numbers = #tpu.dot_dimension_numbers<[1], [0], [0], [1], [0, 0, 1, 1], [], []>} : vector<16x64xf32>, vector<64x32xf32>, vector<16x32xf32> -> vector<16x32xf32>
    %721 = vector.broadcast %457 : vector<1x32xf32> to vector<16x32xf32>
    %722 = arith.addf %720, %721 : vector<16x32xf32>
    %723 = arith.addf %714, %722 : vector<16x32xf32>
    %cst_287 = arith.constant dense<0.000000e+00> : vector<16xf32>
    %724 = vector.multi_reduction <add>, %723, %cst_287 [1] : vector<16x32xf32> to vector<16xf32>
    %725 = vector.shape_cast %724 : vector<16xf32> to vector<16x1xf32>
    %cst_288 = arith.constant 3.200000e+01 : f32
    %726 = vector.broadcast %cst_288 : f32 to vector<16x1xf32>
    %727 = arith.divf %725, %726 : vector<16x1xf32>
    %728 = vector.broadcast %727 : vector<16x1xf32> to vector<16x32xf32>
    %729 = arith.subf %723, %728 : vector<16x32xf32>
    %730 = arith.mulf %729, %729 : vector<16x32xf32>
    %cst_289 = arith.constant dense<0.000000e+00> : vector<16xf32>
    %731 = vector.multi_reduction <add>, %730, %cst_289 [1] : vector<16x32xf32> to vector<16xf32>
    %732 = vector.shape_cast %731 : vector<16xf32> to vector<16x1xf32>
    %cst_290 = arith.constant 3.200000e+01 : f32
    %733 = vector.broadcast %cst_290 : f32 to vector<16x1xf32>
    %734 = arith.divf %732, %733 : vector<16x1xf32>
    %cst_291 = arith.constant 9.99999974E-6 : f32
    %735 = vector.broadcast %cst_291 : f32 to vector<16x1xf32>
    %736 = arith.addf %734, %735 : vector<16x1xf32>
    %737 = math.rsqrt %736 : vector<16x1xf32>
    %738 = vector.broadcast %737 : vector<16x1xf32> to vector<16x32xf32>
    %739 = arith.mulf %729, %738 : vector<16x32xf32>
    %740 = vector.broadcast %471 : vector<1x32xf32> to vector<16x32xf32>
    %741 = arith.mulf %739, %740 : vector<16x32xf32>
    %742 = vector.broadcast %469 : vector<1x32xf32> to vector<16x32xf32>
    %743 = arith.addf %741, %742 : vector<16x32xf32>
    %744 = vector.extract_strided_slice %0 {offsets = [1, 0, 0, 0], sizes = [1, 2, 1, 16], strides = [1, 1, 1, 1]} : vector<2x2x1x16xf32> to vector<1x2x1x16xf32>
    %745 = vector.shape_cast %744 : vector<1x2x1x16xf32> to vector<2x1x16xf32>
    %746 = vector.extract_strided_slice %1 {offsets = [1, 0, 0], sizes = [1, 1, 32], strides = [1, 1, 1]} : vector<2x1x32xf32> to vector<1x1x32xf32>
    %747 = vector.shape_cast %746 : vector<1x1x32xf32> to vector<1x32xf32>
    %748 = vector.extract_strided_slice %2 {offsets = [1, 0, 0, 0], sizes = [1, 2, 1, 16], strides = [1, 1, 1, 1]} : vector<2x2x1x16xf32> to vector<1x2x1x16xf32>
    %749 = vector.shape_cast %748 : vector<1x2x1x16xf32> to vector<2x1x16xf32>
    %750 = vector.extract_strided_slice %3 {offsets = [1, 0, 0, 0], sizes = [1, 2, 1, 16], strides = [1, 1, 1, 1]} : vector<2x2x1x16xf32> to vector<1x2x1x16xf32>
    %751 = vector.shape_cast %750 : vector<1x2x1x16xf32> to vector<2x1x16xf32>
    %752 = vector.extract_strided_slice %4 {offsets = [1, 0, 0, 0], sizes = [1, 2, 32, 16], strides = [1, 1, 1, 1]} : vector<2x2x32x16xf32> to vector<1x2x32x16xf32>
    %753 = vector.shape_cast %752 : vector<1x2x32x16xf32> to vector<2x32x16xf32>
    %754 = vector.extract_strided_slice %5 {offsets = [1, 0, 0, 0], sizes = [1, 2, 16, 32], strides = [1, 1, 1, 1]} : vector<2x2x16x32xf32> to vector<1x2x16x32xf32>
    %755 = vector.shape_cast %754 : vector<1x2x16x32xf32> to vector<2x16x32xf32>
    %756 = vector.extract_strided_slice %6 {offsets = [1, 0, 0, 0], sizes = [1, 2, 32, 16], strides = [1, 1, 1, 1]} : vector<2x2x32x16xf32> to vector<1x2x32x16xf32>
    %757 = vector.shape_cast %756 : vector<1x2x32x16xf32> to vector<2x32x16xf32>
    %758 = vector.extract_strided_slice %7 {offsets = [1, 0, 0, 0], sizes = [1, 2, 32, 16], strides = [1, 1, 1, 1]} : vector<2x2x32x16xf32> to vector<1x2x32x16xf32>
    %759 = vector.shape_cast %758 : vector<1x2x32x16xf32> to vector<2x32x16xf32>
    %760 = vector.extract_strided_slice %8 {offsets = [1, 0, 0], sizes = [1, 1, 64], strides = [1, 1, 1]} : vector<2x1x64xf32> to vector<1x1x64xf32>
    %761 = vector.shape_cast %760 : vector<1x1x64xf32> to vector<1x64xf32>
    %762 = vector.extract_strided_slice %9 {offsets = [1, 0, 0], sizes = [1, 32, 64], strides = [1, 1, 1]} : vector<2x32x64xf32> to vector<1x32x64xf32>
    %763 = vector.shape_cast %762 : vector<1x32x64xf32> to vector<32x64xf32>
    %764 = vector.extract_strided_slice %10 {offsets = [1, 0, 0], sizes = [1, 1, 32], strides = [1, 1, 1]} : vector<2x1x32xf32> to vector<1x1x32xf32>
    %765 = vector.shape_cast %764 : vector<1x1x32xf32> to vector<1x32xf32>
    %766 = vector.extract_strided_slice %11 {offsets = [1, 0, 0], sizes = [1, 64, 32], strides = [1, 1, 1]} : vector<2x64x32xf32> to vector<1x64x32xf32>
    %767 = vector.shape_cast %766 : vector<1x64x32xf32> to vector<64x32xf32>
    %768 = vector.extract_strided_slice %12 {offsets = [1, 0, 0], sizes = [1, 1, 32], strides = [1, 1, 1]} : vector<2x1x32xf32> to vector<1x1x32xf32>
    %769 = vector.shape_cast %768 : vector<1x1x32xf32> to vector<1x32xf32>
    %770 = vector.extract_strided_slice %13 {offsets = [1, 0, 0], sizes = [1, 1, 32], strides = [1, 1, 1]} : vector<2x1x32xf32> to vector<1x1x32xf32>
    %771 = vector.shape_cast %770 : vector<1x1x32xf32> to vector<1x32xf32>
    %772 = vector.extract_strided_slice %14 {offsets = [1, 0, 0], sizes = [1, 1, 32], strides = [1, 1, 1]} : vector<2x1x32xf32> to vector<1x1x32xf32>
    %773 = vector.shape_cast %772 : vector<1x1x32xf32> to vector<1x32xf32>
    %774 = vector.extract_strided_slice %15 {offsets = [1, 0, 0], sizes = [1, 1, 32], strides = [1, 1, 1]} : vector<2x1x32xf32> to vector<1x1x32xf32>
    %775 = vector.shape_cast %774 : vector<1x1x32xf32> to vector<1x32xf32>
    %776 = vector.extract_strided_slice %16 {offsets = [1, 0, 0], sizes = [1, 1, 32], strides = [1, 1, 1]} : vector<2x1x32xf32> to vector<1x1x32xf32>
    %777 = vector.shape_cast %776 : vector<1x1x32xf32> to vector<1x32xf32>
    %778 = vector.extract_strided_slice %17 {offsets = [1, 0, 0], sizes = [1, 1, 32], strides = [1, 1, 1]} : vector<2x1x32xf32> to vector<1x1x32xf32>
    %779 = vector.shape_cast %778 : vector<1x1x32xf32> to vector<1x32xf32>
    %780 = vector.extract_strided_slice %18 {offsets = [1, 0, 0, 0], sizes = [1, 2, 1, 16], strides = [1, 1, 1, 1]} : vector<2x2x1x16xf32> to vector<1x2x1x16xf32>
    %781 = vector.shape_cast %780 : vector<1x2x1x16xf32> to vector<2x1x16xf32>
    %782 = vector.extract_strided_slice %19 {offsets = [1, 0, 0], sizes = [1, 1, 32], strides = [1, 1, 1]} : vector<2x1x32xf32> to vector<1x1x32xf32>
    %783 = vector.shape_cast %782 : vector<1x1x32xf32> to vector<1x32xf32>
    %784 = vector.extract_strided_slice %20 {offsets = [1, 0, 0, 0], sizes = [1, 2, 1, 16], strides = [1, 1, 1, 1]} : vector<2x2x1x16xf32> to vector<1x2x1x16xf32>
    %785 = vector.shape_cast %784 : vector<1x2x1x16xf32> to vector<2x1x16xf32>
    %786 = vector.extract_strided_slice %21 {offsets = [1, 0, 0, 0], sizes = [1, 2, 1, 16], strides = [1, 1, 1, 1]} : vector<2x2x1x16xf32> to vector<1x2x1x16xf32>
    %787 = vector.shape_cast %786 : vector<1x2x1x16xf32> to vector<2x1x16xf32>
    %788 = vector.extract_strided_slice %22 {offsets = [1, 0, 0, 0], sizes = [1, 2, 32, 16], strides = [1, 1, 1, 1]} : vector<2x2x32x16xf32> to vector<1x2x32x16xf32>
    %789 = vector.shape_cast %788 : vector<1x2x32x16xf32> to vector<2x32x16xf32>
    %790 = vector.extract_strided_slice %23 {offsets = [1, 0, 0, 0], sizes = [1, 2, 16, 32], strides = [1, 1, 1, 1]} : vector<2x2x16x32xf32> to vector<1x2x16x32xf32>
    %791 = vector.shape_cast %790 : vector<1x2x16x32xf32> to vector<2x16x32xf32>
    %792 = vector.extract_strided_slice %24 {offsets = [1, 0, 0, 0], sizes = [1, 2, 32, 16], strides = [1, 1, 1, 1]} : vector<2x2x32x16xf32> to vector<1x2x32x16xf32>
    %793 = vector.shape_cast %792 : vector<1x2x32x16xf32> to vector<2x32x16xf32>
    %794 = vector.extract_strided_slice %25 {offsets = [1, 0, 0, 0], sizes = [1, 2, 32, 16], strides = [1, 1, 1, 1]} : vector<2x2x32x16xf32> to vector<1x2x32x16xf32>
    %795 = vector.shape_cast %794 : vector<1x2x32x16xf32> to vector<2x32x16xf32>
    %796 = vector.shape_cast %743 : vector<16x32xf32> to vector<2x8x32xf32>
    %797 = vector.shape_cast %743 : vector<16x32xf32> to vector<2x8x32xf32>
    %798 = vector.shape_cast %796 : vector<2x8x32xf32> to vector<16x32xf32>
    %799 = vector.shape_cast %797 : vector<2x8x32xf32> to vector<16x32xf32>
    %cst_292 = arith.constant 0.000000e+00 : f32
    %800 = vector.broadcast %cst_292 : f32 to vector<16x32xf32>
    %801 = vector.extract_strided_slice %793 {offsets = [0, 0, 0], sizes = [1, 32, 16], strides = [1, 1, 1]} : vector<2x32x16xf32> to vector<1x32x16xf32>
    %802 = vector.shape_cast %801 : vector<1x32x16xf32> to vector<32x16xf32>
    %cst_293 = arith.constant dense<0.000000e+00> : vector<16x16xf32>
    %803 = tpu.matmul %798, %802, %cst_293 {dimension_numbers = #tpu.dot_dimension_numbers<[1], [0], [0], [1], [0, 0, 1, 1], [], []>} : vector<16x32xf32>, vector<32x16xf32>, vector<16x16xf32> -> vector<16x16xf32>
    %804 = vector.extract_strided_slice %785 {offsets = [0, 0, 0], sizes = [1, 1, 16], strides = [1, 1, 1]} : vector<2x1x16xf32> to vector<1x1x16xf32>
    %805 = vector.shape_cast %804 : vector<1x1x16xf32> to vector<1x16xf32>
    %806 = vector.broadcast %805 : vector<1x16xf32> to vector<16x16xf32>
    %807 = arith.addf %803, %806 : vector<16x16xf32>
    %808 = vector.shape_cast %807 : vector<16x16xf32> to vector<2x8x16xf32>
    %809 = vector.extract_strided_slice %789 {offsets = [0, 0, 0], sizes = [1, 32, 16], strides = [1, 1, 1]} : vector<2x32x16xf32> to vector<1x32x16xf32>
    %810 = vector.shape_cast %809 : vector<1x32x16xf32> to vector<32x16xf32>
    %cst_294 = arith.constant dense<0.000000e+00> : vector<16x16xf32>
    %811 = tpu.matmul %799, %810, %cst_294 {dimension_numbers = #tpu.dot_dimension_numbers<[1], [0], [0], [1], [0, 0, 1, 1], [], []>} : vector<16x32xf32>, vector<32x16xf32>, vector<16x16xf32> -> vector<16x16xf32>
    %812 = vector.extract_strided_slice %781 {offsets = [0, 0, 0], sizes = [1, 1, 16], strides = [1, 1, 1]} : vector<2x1x16xf32> to vector<1x1x16xf32>
    %813 = vector.shape_cast %812 : vector<1x1x16xf32> to vector<1x16xf32>
    %814 = vector.broadcast %813 : vector<1x16xf32> to vector<16x16xf32>
    %815 = arith.addf %811, %814 : vector<16x16xf32>
    %816 = vector.shape_cast %815 : vector<16x16xf32> to vector<2x8x16xf32>
    %817 = vector.extract_strided_slice %795 {offsets = [0, 0, 0], sizes = [1, 32, 16], strides = [1, 1, 1]} : vector<2x32x16xf32> to vector<1x32x16xf32>
    %818 = vector.shape_cast %817 : vector<1x32x16xf32> to vector<32x16xf32>
    %cst_295 = arith.constant dense<0.000000e+00> : vector<16x16xf32>
    %819 = tpu.matmul %799, %818, %cst_295 {dimension_numbers = #tpu.dot_dimension_numbers<[1], [0], [0], [1], [0, 0, 1, 1], [], []>} : vector<16x32xf32>, vector<32x16xf32>, vector<16x16xf32> -> vector<16x16xf32>
    %820 = vector.extract_strided_slice %787 {offsets = [0, 0, 0], sizes = [1, 1, 16], strides = [1, 1, 1]} : vector<2x1x16xf32> to vector<1x1x16xf32>
    %821 = vector.shape_cast %820 : vector<1x1x16xf32> to vector<1x16xf32>
    %822 = vector.broadcast %821 : vector<1x16xf32> to vector<16x16xf32>
    %823 = arith.addf %819, %822 : vector<16x16xf32>
    %824 = vector.shape_cast %823 : vector<16x16xf32> to vector<2x8x16xf32>
    "tpu.trace_start"() <{level = 10 : i32, message = "bqd,bkd->bqk"}> : () -> ()
    %cst_296 = arith.constant dense<0.000000e+00> : vector<2x8x8xf32>
    %825 = tpu.matmul %808, %816, %cst_296 {dimension_numbers = #tpu.dot_dimension_numbers<[2], [2], [1], [1], [0, 0, 0, 1, 1, 1], [0], [0]>} : vector<2x8x16xf32>, vector<2x8x16xf32>, vector<2x8x8xf32> -> vector<2x8x8xf32>
    "tpu.trace_stop"() : () -> ()
    %cst_297 = arith.constant 2.500000e-01 : f32
    %826 = vector.broadcast %cst_297 : f32 to vector<2x8x8xf32>
    %827 = arith.mulf %825, %826 : vector<2x8x8xf32>
    %828 = vector.broadcast %58 : vector<1x8x8xf32> to vector<2x8x8xf32>
    %829 = arith.addf %827, %828 : vector<2x8x8xf32>
    %cst_298 = arith.constant dense<0xFF800000> : vector<2x8xf32>
    %830 = vector.multi_reduction <maximumf>, %829, %cst_298 [2] : vector<2x8x8xf32> to vector<2x8xf32>
    %831 = vector.shape_cast %830 : vector<2x8xf32> to vector<2x8x1xf32>
    %832 = vector.broadcast %831 : vector<2x8x1xf32> to vector<2x8x8xf32>
    %833 = arith.subf %829, %832 : vector<2x8x8xf32>
    %834 = math.exp %833 : vector<2x8x8xf32>
    %cst_299 = arith.constant dense<0.000000e+00> : vector<2x8xf32>
    %835 = vector.multi_reduction <add>, %834, %cst_299 [2] : vector<2x8x8xf32> to vector<2x8xf32>
    %836 = vector.shape_cast %835 : vector<2x8xf32> to vector<2x8x1xf32>
    %837 = vector.broadcast %836 : vector<2x8x1xf32> to vector<2x8x8xf32>
    %838 = arith.divf %834, %837 : vector<2x8x8xf32>
    "tpu.trace_start"() <{level = 10 : i32, message = "bqk,bkd->bqd"}> : () -> ()
    %cst_300 = arith.constant dense<0.000000e+00> : vector<2x8x16xf32>
    %839 = tpu.matmul %838, %824, %cst_300 {dimension_numbers = #tpu.dot_dimension_numbers<[2], [1], [1], [2], [0, 0, 0, 1, 1, 2], [0], [0]>} : vector<2x8x8xf32>, vector<2x8x16xf32>, vector<2x8x16xf32> -> vector<2x8x16xf32>
    "tpu.trace_stop"() : () -> ()
    %840 = vector.shape_cast %839 : vector<2x8x16xf32> to vector<16x16xf32>
    %841 = vector.extract_strided_slice %791 {offsets = [0, 0, 0], sizes = [1, 16, 32], strides = [1, 1, 1]} : vector<2x16x32xf32> to vector<1x16x32xf32>
    %842 = vector.shape_cast %841 : vector<1x16x32xf32> to vector<16x32xf32>
    %cst_301 = arith.constant dense<0.000000e+00> : vector<16x32xf32>
    %843 = tpu.matmul %840, %842, %cst_301 {dimension_numbers = #tpu.dot_dimension_numbers<[1], [0], [0], [1], [0, 0, 1, 1], [], []>} : vector<16x16xf32>, vector<16x32xf32>, vector<16x32xf32> -> vector<16x32xf32>
    %844 = arith.addf %800, %843 : vector<16x32xf32>
    %845 = vector.extract_strided_slice %793 {offsets = [1, 0, 0], sizes = [1, 32, 16], strides = [1, 1, 1]} : vector<2x32x16xf32> to vector<1x32x16xf32>
    %846 = vector.shape_cast %845 : vector<1x32x16xf32> to vector<32x16xf32>
    %cst_302 = arith.constant dense<0.000000e+00> : vector<16x16xf32>
    %847 = tpu.matmul %798, %846, %cst_302 {dimension_numbers = #tpu.dot_dimension_numbers<[1], [0], [0], [1], [0, 0, 1, 1], [], []>} : vector<16x32xf32>, vector<32x16xf32>, vector<16x16xf32> -> vector<16x16xf32>
    %848 = vector.extract_strided_slice %785 {offsets = [1, 0, 0], sizes = [1, 1, 16], strides = [1, 1, 1]} : vector<2x1x16xf32> to vector<1x1x16xf32>
    %849 = vector.shape_cast %848 : vector<1x1x16xf32> to vector<1x16xf32>
    %850 = vector.broadcast %849 : vector<1x16xf32> to vector<16x16xf32>
    %851 = arith.addf %847, %850 : vector<16x16xf32>
    %852 = vector.shape_cast %851 : vector<16x16xf32> to vector<2x8x16xf32>
    %853 = vector.extract_strided_slice %789 {offsets = [1, 0, 0], sizes = [1, 32, 16], strides = [1, 1, 1]} : vector<2x32x16xf32> to vector<1x32x16xf32>
    %854 = vector.shape_cast %853 : vector<1x32x16xf32> to vector<32x16xf32>
    %cst_303 = arith.constant dense<0.000000e+00> : vector<16x16xf32>
    %855 = tpu.matmul %799, %854, %cst_303 {dimension_numbers = #tpu.dot_dimension_numbers<[1], [0], [0], [1], [0, 0, 1, 1], [], []>} : vector<16x32xf32>, vector<32x16xf32>, vector<16x16xf32> -> vector<16x16xf32>
    %856 = vector.extract_strided_slice %781 {offsets = [1, 0, 0], sizes = [1, 1, 16], strides = [1, 1, 1]} : vector<2x1x16xf32> to vector<1x1x16xf32>
    %857 = vector.shape_cast %856 : vector<1x1x16xf32> to vector<1x16xf32>
    %858 = vector.broadcast %857 : vector<1x16xf32> to vector<16x16xf32>
    %859 = arith.addf %855, %858 : vector<16x16xf32>
    %860 = vector.shape_cast %859 : vector<16x16xf32> to vector<2x8x16xf32>
    %861 = vector.extract_strided_slice %795 {offsets = [1, 0, 0], sizes = [1, 32, 16], strides = [1, 1, 1]} : vector<2x32x16xf32> to vector<1x32x16xf32>
    %862 = vector.shape_cast %861 : vector<1x32x16xf32> to vector<32x16xf32>
    %cst_304 = arith.constant dense<0.000000e+00> : vector<16x16xf32>
    %863 = tpu.matmul %799, %862, %cst_304 {dimension_numbers = #tpu.dot_dimension_numbers<[1], [0], [0], [1], [0, 0, 1, 1], [], []>} : vector<16x32xf32>, vector<32x16xf32>, vector<16x16xf32> -> vector<16x16xf32>
    %864 = vector.extract_strided_slice %787 {offsets = [1, 0, 0], sizes = [1, 1, 16], strides = [1, 1, 1]} : vector<2x1x16xf32> to vector<1x1x16xf32>
    %865 = vector.shape_cast %864 : vector<1x1x16xf32> to vector<1x16xf32>
    %866 = vector.broadcast %865 : vector<1x16xf32> to vector<16x16xf32>
    %867 = arith.addf %863, %866 : vector<16x16xf32>
    %868 = vector.shape_cast %867 : vector<16x16xf32> to vector<2x8x16xf32>
    "tpu.trace_start"() <{level = 10 : i32, message = "bqd,bkd->bqk"}> : () -> ()
    %cst_305 = arith.constant dense<0.000000e+00> : vector<2x8x8xf32>
    %869 = tpu.matmul %852, %860, %cst_305 {dimension_numbers = #tpu.dot_dimension_numbers<[2], [2], [1], [1], [0, 0, 0, 1, 1, 1], [0], [0]>} : vector<2x8x16xf32>, vector<2x8x16xf32>, vector<2x8x8xf32> -> vector<2x8x8xf32>
    "tpu.trace_stop"() : () -> ()
    %cst_306 = arith.constant 2.500000e-01 : f32
    %870 = vector.broadcast %cst_306 : f32 to vector<2x8x8xf32>
    %871 = arith.mulf %869, %870 : vector<2x8x8xf32>
    %872 = vector.broadcast %58 : vector<1x8x8xf32> to vector<2x8x8xf32>
    %873 = arith.addf %871, %872 : vector<2x8x8xf32>
    %cst_307 = arith.constant dense<0xFF800000> : vector<2x8xf32>
    %874 = vector.multi_reduction <maximumf>, %873, %cst_307 [2] : vector<2x8x8xf32> to vector<2x8xf32>
    %875 = vector.shape_cast %874 : vector<2x8xf32> to vector<2x8x1xf32>
    %876 = vector.broadcast %875 : vector<2x8x1xf32> to vector<2x8x8xf32>
    %877 = arith.subf %873, %876 : vector<2x8x8xf32>
    %878 = math.exp %877 : vector<2x8x8xf32>
    %cst_308 = arith.constant dense<0.000000e+00> : vector<2x8xf32>
    %879 = vector.multi_reduction <add>, %878, %cst_308 [2] : vector<2x8x8xf32> to vector<2x8xf32>
    %880 = vector.shape_cast %879 : vector<2x8xf32> to vector<2x8x1xf32>
    %881 = vector.broadcast %880 : vector<2x8x1xf32> to vector<2x8x8xf32>
    %882 = arith.divf %878, %881 : vector<2x8x8xf32>
    "tpu.trace_start"() <{level = 10 : i32, message = "bqk,bkd->bqd"}> : () -> ()
    %cst_309 = arith.constant dense<0.000000e+00> : vector<2x8x16xf32>
    %883 = tpu.matmul %882, %868, %cst_309 {dimension_numbers = #tpu.dot_dimension_numbers<[2], [1], [1], [2], [0, 0, 0, 1, 1, 2], [0], [0]>} : vector<2x8x8xf32>, vector<2x8x16xf32>, vector<2x8x16xf32> -> vector<2x8x16xf32>
    "tpu.trace_stop"() : () -> ()
    %884 = vector.shape_cast %883 : vector<2x8x16xf32> to vector<16x16xf32>
    %885 = vector.extract_strided_slice %791 {offsets = [1, 0, 0], sizes = [1, 16, 32], strides = [1, 1, 1]} : vector<2x16x32xf32> to vector<1x16x32xf32>
    %886 = vector.shape_cast %885 : vector<1x16x32xf32> to vector<16x32xf32>
    %cst_310 = arith.constant dense<0.000000e+00> : vector<16x32xf32>
    %887 = tpu.matmul %884, %886, %cst_310 {dimension_numbers = #tpu.dot_dimension_numbers<[1], [0], [0], [1], [0, 0, 1, 1], [], []>} : vector<16x16xf32>, vector<16x32xf32>, vector<16x32xf32> -> vector<16x32xf32>
    %888 = arith.addf %844, %887 : vector<16x32xf32>
    %889 = vector.broadcast %783 : vector<1x32xf32> to vector<16x32xf32>
    %890 = arith.addf %888, %889 : vector<16x32xf32>
    %891 = arith.addf %743, %890 : vector<16x32xf32>
    %cst_311 = arith.constant dense<0.000000e+00> : vector<16xf32>
    %892 = vector.multi_reduction <add>, %891, %cst_311 [1] : vector<16x32xf32> to vector<16xf32>
    %893 = vector.shape_cast %892 : vector<16xf32> to vector<16x1xf32>
    %cst_312 = arith.constant 3.200000e+01 : f32
    %894 = vector.broadcast %cst_312 : f32 to vector<16x1xf32>
    %895 = arith.divf %893, %894 : vector<16x1xf32>
    %896 = vector.broadcast %895 : vector<16x1xf32> to vector<16x32xf32>
    %897 = arith.subf %891, %896 : vector<16x32xf32>
    %898 = arith.mulf %897, %897 : vector<16x32xf32>
    %cst_313 = arith.constant dense<0.000000e+00> : vector<16xf32>
    %899 = vector.multi_reduction <add>, %898, %cst_313 [1] : vector<16x32xf32> to vector<16xf32>
    %900 = vector.shape_cast %899 : vector<16xf32> to vector<16x1xf32>
    %cst_314 = arith.constant 3.200000e+01 : f32
    %901 = vector.broadcast %cst_314 : f32 to vector<16x1xf32>
    %902 = arith.divf %900, %901 : vector<16x1xf32>
    %cst_315 = arith.constant 9.99999974E-6 : f32
    %903 = vector.broadcast %cst_315 : f32 to vector<16x1xf32>
    %904 = arith.addf %902, %903 : vector<16x1xf32>
    %905 = math.rsqrt %904 : vector<16x1xf32>
    %906 = vector.broadcast %905 : vector<16x1xf32> to vector<16x32xf32>
    %907 = arith.mulf %897, %906 : vector<16x32xf32>
    %908 = vector.broadcast %771 : vector<1x32xf32> to vector<16x32xf32>
    %909 = arith.mulf %907, %908 : vector<16x32xf32>
    %910 = vector.broadcast %769 : vector<1x32xf32> to vector<16x32xf32>
    %911 = arith.addf %909, %910 : vector<16x32xf32>
    %912 = vector.shape_cast %911 : vector<16x32xf32> to vector<2x8x32xf32>
    %913 = vector.shape_cast %912 : vector<2x8x32xf32> to vector<16x32xf32>
    %914 = vector.shape_cast %434 : vector<2x8x32xf32> to vector<16x32xf32>
    %cst_316 = arith.constant 0.000000e+00 : f32
    %915 = vector.broadcast %cst_316 : f32 to vector<16x32xf32>
    %916 = vector.extract_strided_slice %757 {offsets = [0, 0, 0], sizes = [1, 32, 16], strides = [1, 1, 1]} : vector<2x32x16xf32> to vector<1x32x16xf32>
    %917 = vector.shape_cast %916 : vector<1x32x16xf32> to vector<32x16xf32>
    %cst_317 = arith.constant dense<0.000000e+00> : vector<16x16xf32>
    %918 = tpu.matmul %913, %917, %cst_317 {dimension_numbers = #tpu.dot_dimension_numbers<[1], [0], [0], [1], [0, 0, 1, 1], [], []>} : vector<16x32xf32>, vector<32x16xf32>, vector<16x16xf32> -> vector<16x16xf32>
    %919 = vector.extract_strided_slice %749 {offsets = [0, 0, 0], sizes = [1, 1, 16], strides = [1, 1, 1]} : vector<2x1x16xf32> to vector<1x1x16xf32>
    %920 = vector.shape_cast %919 : vector<1x1x16xf32> to vector<1x16xf32>
    %921 = vector.broadcast %920 : vector<1x16xf32> to vector<16x16xf32>
    %922 = arith.addf %918, %921 : vector<16x16xf32>
    %923 = vector.shape_cast %922 : vector<16x16xf32> to vector<2x8x16xf32>
    %924 = vector.extract_strided_slice %753 {offsets = [0, 0, 0], sizes = [1, 32, 16], strides = [1, 1, 1]} : vector<2x32x16xf32> to vector<1x32x16xf32>
    %925 = vector.shape_cast %924 : vector<1x32x16xf32> to vector<32x16xf32>
    %cst_318 = arith.constant dense<0.000000e+00> : vector<16x16xf32>
    %926 = tpu.matmul %914, %925, %cst_318 {dimension_numbers = #tpu.dot_dimension_numbers<[1], [0], [0], [1], [0, 0, 1, 1], [], []>} : vector<16x32xf32>, vector<32x16xf32>, vector<16x16xf32> -> vector<16x16xf32>
    %927 = vector.extract_strided_slice %745 {offsets = [0, 0, 0], sizes = [1, 1, 16], strides = [1, 1, 1]} : vector<2x1x16xf32> to vector<1x1x16xf32>
    %928 = vector.shape_cast %927 : vector<1x1x16xf32> to vector<1x16xf32>
    %929 = vector.broadcast %928 : vector<1x16xf32> to vector<16x16xf32>
    %930 = arith.addf %926, %929 : vector<16x16xf32>
    %931 = vector.shape_cast %930 : vector<16x16xf32> to vector<2x8x16xf32>
    %932 = vector.extract_strided_slice %759 {offsets = [0, 0, 0], sizes = [1, 32, 16], strides = [1, 1, 1]} : vector<2x32x16xf32> to vector<1x32x16xf32>
    %933 = vector.shape_cast %932 : vector<1x32x16xf32> to vector<32x16xf32>
    %cst_319 = arith.constant dense<0.000000e+00> : vector<16x16xf32>
    %934 = tpu.matmul %914, %933, %cst_319 {dimension_numbers = #tpu.dot_dimension_numbers<[1], [0], [0], [1], [0, 0, 1, 1], [], []>} : vector<16x32xf32>, vector<32x16xf32>, vector<16x16xf32> -> vector<16x16xf32>
    %935 = vector.extract_strided_slice %751 {offsets = [0, 0, 0], sizes = [1, 1, 16], strides = [1, 1, 1]} : vector<2x1x16xf32> to vector<1x1x16xf32>
    %936 = vector.shape_cast %935 : vector<1x1x16xf32> to vector<1x16xf32>
    %937 = vector.broadcast %936 : vector<1x16xf32> to vector<16x16xf32>
    %938 = arith.addf %934, %937 : vector<16x16xf32>
    %939 = vector.shape_cast %938 : vector<16x16xf32> to vector<2x8x16xf32>
    "tpu.trace_start"() <{level = 10 : i32, message = "bqd,bkd->bqk"}> : () -> ()
    %cst_320 = arith.constant dense<0.000000e+00> : vector<2x8x8xf32>
    %940 = tpu.matmul %923, %931, %cst_320 {dimension_numbers = #tpu.dot_dimension_numbers<[2], [2], [1], [1], [0, 0, 0, 1, 1, 1], [0], [0]>} : vector<2x8x16xf32>, vector<2x8x16xf32>, vector<2x8x8xf32> -> vector<2x8x8xf32>
    "tpu.trace_stop"() : () -> ()
    %cst_321 = arith.constant 2.500000e-01 : f32
    %941 = vector.broadcast %cst_321 : f32 to vector<2x8x8xf32>
    %942 = arith.mulf %940, %941 : vector<2x8x8xf32>
    %cst_322 = arith.constant dense<0xFF800000> : vector<2x8xf32>
    %943 = vector.multi_reduction <maximumf>, %942, %cst_322 [2] : vector<2x8x8xf32> to vector<2x8xf32>
    %944 = vector.shape_cast %943 : vector<2x8xf32> to vector<2x8x1xf32>
    %945 = vector.broadcast %944 : vector<2x8x1xf32> to vector<2x8x8xf32>
    %946 = arith.subf %942, %945 : vector<2x8x8xf32>
    %947 = math.exp %946 : vector<2x8x8xf32>
    %cst_323 = arith.constant dense<0.000000e+00> : vector<2x8xf32>
    %948 = vector.multi_reduction <add>, %947, %cst_323 [2] : vector<2x8x8xf32> to vector<2x8xf32>
    %949 = vector.shape_cast %948 : vector<2x8xf32> to vector<2x8x1xf32>
    %950 = vector.broadcast %949 : vector<2x8x1xf32> to vector<2x8x8xf32>
    %951 = arith.divf %947, %950 : vector<2x8x8xf32>
    "tpu.trace_start"() <{level = 10 : i32, message = "bqk,bkd->bqd"}> : () -> ()
    %cst_324 = arith.constant dense<0.000000e+00> : vector<2x8x16xf32>
    %952 = tpu.matmul %951, %939, %cst_324 {dimension_numbers = #tpu.dot_dimension_numbers<[2], [1], [1], [2], [0, 0, 0, 1, 1, 2], [0], [0]>} : vector<2x8x8xf32>, vector<2x8x16xf32>, vector<2x8x16xf32> -> vector<2x8x16xf32>
    "tpu.trace_stop"() : () -> ()
    %953 = vector.shape_cast %952 : vector<2x8x16xf32> to vector<16x16xf32>
    %954 = vector.extract_strided_slice %755 {offsets = [0, 0, 0], sizes = [1, 16, 32], strides = [1, 1, 1]} : vector<2x16x32xf32> to vector<1x16x32xf32>
    %955 = vector.shape_cast %954 : vector<1x16x32xf32> to vector<16x32xf32>
    %cst_325 = arith.constant dense<0.000000e+00> : vector<16x32xf32>
    %956 = tpu.matmul %953, %955, %cst_325 {dimension_numbers = #tpu.dot_dimension_numbers<[1], [0], [0], [1], [0, 0, 1, 1], [], []>} : vector<16x16xf32>, vector<16x32xf32>, vector<16x32xf32> -> vector<16x32xf32>
    %957 = arith.addf %915, %956 : vector<16x32xf32>
    %958 = vector.extract_strided_slice %757 {offsets = [1, 0, 0], sizes = [1, 32, 16], strides = [1, 1, 1]} : vector<2x32x16xf32> to vector<1x32x16xf32>
    %959 = vector.shape_cast %958 : vector<1x32x16xf32> to vector<32x16xf32>
    %cst_326 = arith.constant dense<0.000000e+00> : vector<16x16xf32>
    %960 = tpu.matmul %913, %959, %cst_326 {dimension_numbers = #tpu.dot_dimension_numbers<[1], [0], [0], [1], [0, 0, 1, 1], [], []>} : vector<16x32xf32>, vector<32x16xf32>, vector<16x16xf32> -> vector<16x16xf32>
    %961 = vector.extract_strided_slice %749 {offsets = [1, 0, 0], sizes = [1, 1, 16], strides = [1, 1, 1]} : vector<2x1x16xf32> to vector<1x1x16xf32>
    %962 = vector.shape_cast %961 : vector<1x1x16xf32> to vector<1x16xf32>
    %963 = vector.broadcast %962 : vector<1x16xf32> to vector<16x16xf32>
    %964 = arith.addf %960, %963 : vector<16x16xf32>
    %965 = vector.shape_cast %964 : vector<16x16xf32> to vector<2x8x16xf32>
    %966 = vector.extract_strided_slice %753 {offsets = [1, 0, 0], sizes = [1, 32, 16], strides = [1, 1, 1]} : vector<2x32x16xf32> to vector<1x32x16xf32>
    %967 = vector.shape_cast %966 : vector<1x32x16xf32> to vector<32x16xf32>
    %cst_327 = arith.constant dense<0.000000e+00> : vector<16x16xf32>
    %968 = tpu.matmul %914, %967, %cst_327 {dimension_numbers = #tpu.dot_dimension_numbers<[1], [0], [0], [1], [0, 0, 1, 1], [], []>} : vector<16x32xf32>, vector<32x16xf32>, vector<16x16xf32> -> vector<16x16xf32>
    %969 = vector.extract_strided_slice %745 {offsets = [1, 0, 0], sizes = [1, 1, 16], strides = [1, 1, 1]} : vector<2x1x16xf32> to vector<1x1x16xf32>
    %970 = vector.shape_cast %969 : vector<1x1x16xf32> to vector<1x16xf32>
    %971 = vector.broadcast %970 : vector<1x16xf32> to vector<16x16xf32>
    %972 = arith.addf %968, %971 : vector<16x16xf32>
    %973 = vector.shape_cast %972 : vector<16x16xf32> to vector<2x8x16xf32>
    %974 = vector.extract_strided_slice %759 {offsets = [1, 0, 0], sizes = [1, 32, 16], strides = [1, 1, 1]} : vector<2x32x16xf32> to vector<1x32x16xf32>
    %975 = vector.shape_cast %974 : vector<1x32x16xf32> to vector<32x16xf32>
    %cst_328 = arith.constant dense<0.000000e+00> : vector<16x16xf32>
    %976 = tpu.matmul %914, %975, %cst_328 {dimension_numbers = #tpu.dot_dimension_numbers<[1], [0], [0], [1], [0, 0, 1, 1], [], []>} : vector<16x32xf32>, vector<32x16xf32>, vector<16x16xf32> -> vector<16x16xf32>
    %977 = vector.extract_strided_slice %751 {offsets = [1, 0, 0], sizes = [1, 1, 16], strides = [1, 1, 1]} : vector<2x1x16xf32> to vector<1x1x16xf32>
    %978 = vector.shape_cast %977 : vector<1x1x16xf32> to vector<1x16xf32>
    %979 = vector.broadcast %978 : vector<1x16xf32> to vector<16x16xf32>
    %980 = arith.addf %976, %979 : vector<16x16xf32>
    %981 = vector.shape_cast %980 : vector<16x16xf32> to vector<2x8x16xf32>
    "tpu.trace_start"() <{level = 10 : i32, message = "bqd,bkd->bqk"}> : () -> ()
    %cst_329 = arith.constant dense<0.000000e+00> : vector<2x8x8xf32>
    %982 = tpu.matmul %965, %973, %cst_329 {dimension_numbers = #tpu.dot_dimension_numbers<[2], [2], [1], [1], [0, 0, 0, 1, 1, 1], [0], [0]>} : vector<2x8x16xf32>, vector<2x8x16xf32>, vector<2x8x8xf32> -> vector<2x8x8xf32>
    "tpu.trace_stop"() : () -> ()
    %cst_330 = arith.constant 2.500000e-01 : f32
    %983 = vector.broadcast %cst_330 : f32 to vector<2x8x8xf32>
    %984 = arith.mulf %982, %983 : vector<2x8x8xf32>
    %cst_331 = arith.constant dense<0xFF800000> : vector<2x8xf32>
    %985 = vector.multi_reduction <maximumf>, %984, %cst_331 [2] : vector<2x8x8xf32> to vector<2x8xf32>
    %986 = vector.shape_cast %985 : vector<2x8xf32> to vector<2x8x1xf32>
    %987 = vector.broadcast %986 : vector<2x8x1xf32> to vector<2x8x8xf32>
    %988 = arith.subf %984, %987 : vector<2x8x8xf32>
    %989 = math.exp %988 : vector<2x8x8xf32>
    %cst_332 = arith.constant dense<0.000000e+00> : vector<2x8xf32>
    %990 = vector.multi_reduction <add>, %989, %cst_332 [2] : vector<2x8x8xf32> to vector<2x8xf32>
    %991 = vector.shape_cast %990 : vector<2x8xf32> to vector<2x8x1xf32>
    %992 = vector.broadcast %991 : vector<2x8x1xf32> to vector<2x8x8xf32>
    %993 = arith.divf %989, %992 : vector<2x8x8xf32>
    "tpu.trace_start"() <{level = 10 : i32, message = "bqk,bkd->bqd"}> : () -> ()
    %cst_333 = arith.constant dense<0.000000e+00> : vector<2x8x16xf32>
    %994 = tpu.matmul %993, %981, %cst_333 {dimension_numbers = #tpu.dot_dimension_numbers<[2], [1], [1], [2], [0, 0, 0, 1, 1, 2], [0], [0]>} : vector<2x8x8xf32>, vector<2x8x16xf32>, vector<2x8x16xf32> -> vector<2x8x16xf32>
    "tpu.trace_stop"() : () -> ()
    %995 = vector.shape_cast %994 : vector<2x8x16xf32> to vector<16x16xf32>
    %996 = vector.extract_strided_slice %755 {offsets = [1, 0, 0], sizes = [1, 16, 32], strides = [1, 1, 1]} : vector<2x16x32xf32> to vector<1x16x32xf32>
    %997 = vector.shape_cast %996 : vector<1x16x32xf32> to vector<16x32xf32>
    %cst_334 = arith.constant dense<0.000000e+00> : vector<16x32xf32>
    %998 = tpu.matmul %995, %997, %cst_334 {dimension_numbers = #tpu.dot_dimension_numbers<[1], [0], [0], [1], [0, 0, 1, 1], [], []>} : vector<16x16xf32>, vector<16x32xf32>, vector<16x32xf32> -> vector<16x32xf32>
    %999 = arith.addf %957, %998 : vector<16x32xf32>
    %1000 = vector.broadcast %747 : vector<1x32xf32> to vector<16x32xf32>
    %1001 = arith.addf %999, %1000 : vector<16x32xf32>
    %1002 = arith.addf %911, %1001 : vector<16x32xf32>
    %cst_335 = arith.constant dense<0.000000e+00> : vector<16xf32>
    %1003 = vector.multi_reduction <add>, %1002, %cst_335 [1] : vector<16x32xf32> to vector<16xf32>
    %1004 = vector.shape_cast %1003 : vector<16xf32> to vector<16x1xf32>
    %cst_336 = arith.constant 3.200000e+01 : f32
    %1005 = vector.broadcast %cst_336 : f32 to vector<16x1xf32>
    %1006 = arith.divf %1004, %1005 : vector<16x1xf32>
    %1007 = vector.broadcast %1006 : vector<16x1xf32> to vector<16x32xf32>
    %1008 = arith.subf %1002, %1007 : vector<16x32xf32>
    %1009 = arith.mulf %1008, %1008 : vector<16x32xf32>
    %cst_337 = arith.constant dense<0.000000e+00> : vector<16xf32>
    %1010 = vector.multi_reduction <add>, %1009, %cst_337 [1] : vector<16x32xf32> to vector<16xf32>
    %1011 = vector.shape_cast %1010 : vector<16xf32> to vector<16x1xf32>
    %cst_338 = arith.constant 3.200000e+01 : f32
    %1012 = vector.broadcast %cst_338 : f32 to vector<16x1xf32>
    %1013 = arith.divf %1011, %1012 : vector<16x1xf32>
    %cst_339 = arith.constant 9.99999974E-6 : f32
    %1014 = vector.broadcast %cst_339 : f32 to vector<16x1xf32>
    %1015 = arith.addf %1013, %1014 : vector<16x1xf32>
    %1016 = math.rsqrt %1015 : vector<16x1xf32>
    %1017 = vector.broadcast %1016 : vector<16x1xf32> to vector<16x32xf32>
    %1018 = arith.mulf %1008, %1017 : vector<16x32xf32>
    %1019 = vector.broadcast %775 : vector<1x32xf32> to vector<16x32xf32>
    %1020 = arith.mulf %1018, %1019 : vector<16x32xf32>
    %1021 = vector.broadcast %773 : vector<1x32xf32> to vector<16x32xf32>
    %1022 = arith.addf %1020, %1021 : vector<16x32xf32>
    %cst_340 = arith.constant dense<0.000000e+00> : vector<16x64xf32>
    %1023 = tpu.matmul %1022, %763, %cst_340 {dimension_numbers = #tpu.dot_dimension_numbers<[1], [0], [0], [1], [0, 0, 1, 1], [], []>} : vector<16x32xf32>, vector<32x64xf32>, vector<16x64xf32> -> vector<16x64xf32>
    %1024 = vector.broadcast %761 : vector<1x64xf32> to vector<16x64xf32>
    %1025 = arith.addf %1023, %1024 : vector<16x64xf32>
    %cst_341 = arith.constant 0.000000e+00 : f32
    %1026 = vector.broadcast %cst_341 : f32 to vector<16x64xf32>
    %1027 = arith.maximumf %1025, %1026 : vector<16x64xf32>
    %cst_342 = arith.constant dense<0.000000e+00> : vector<16x32xf32>
    %1028 = tpu.matmul %1027, %767, %cst_342 {dimension_numbers = #tpu.dot_dimension_numbers<[1], [0], [0], [1], [0, 0, 1, 1], [], []>} : vector<16x64xf32>, vector<64x32xf32>, vector<16x32xf32> -> vector<16x32xf32>
    %1029 = vector.broadcast %765 : vector<1x32xf32> to vector<16x32xf32>
    %1030 = arith.addf %1028, %1029 : vector<16x32xf32>
    %1031 = arith.addf %1022, %1030 : vector<16x32xf32>
    %cst_343 = arith.constant dense<0.000000e+00> : vector<16xf32>
    %1032 = vector.multi_reduction <add>, %1031, %cst_343 [1] : vector<16x32xf32> to vector<16xf32>
    %1033 = vector.shape_cast %1032 : vector<16xf32> to vector<16x1xf32>
    %cst_344 = arith.constant 3.200000e+01 : f32
    %1034 = vector.broadcast %cst_344 : f32 to vector<16x1xf32>
    %1035 = arith.divf %1033, %1034 : vector<16x1xf32>
    %1036 = vector.broadcast %1035 : vector<16x1xf32> to vector<16x32xf32>
    %1037 = arith.subf %1031, %1036 : vector<16x32xf32>
    %1038 = arith.mulf %1037, %1037 : vector<16x32xf32>
    %cst_345 = arith.constant dense<0.000000e+00> : vector<16xf32>
    %1039 = vector.multi_reduction <add>, %1038, %cst_345 [1] : vector<16x32xf32> to vector<16xf32>
    %1040 = vector.shape_cast %1039 : vector<16xf32> to vector<16x1xf32>
    %cst_346 = arith.constant 3.200000e+01 : f32
    %1041 = vector.broadcast %cst_346 : f32 to vector<16x1xf32>
    %1042 = arith.divf %1040, %1041 : vector<16x1xf32>
    %cst_347 = arith.constant 9.99999974E-6 : f32
    %1043 = vector.broadcast %cst_347 : f32 to vector<16x1xf32>
    %1044 = arith.addf %1042, %1043 : vector<16x1xf32>
    %1045 = math.rsqrt %1044 : vector<16x1xf32>
    %1046 = vector.broadcast %1045 : vector<16x1xf32> to vector<16x32xf32>
    %1047 = arith.mulf %1037, %1046 : vector<16x32xf32>
    %1048 = vector.broadcast %779 : vector<1x32xf32> to vector<16x32xf32>
    %1049 = arith.mulf %1047, %1048 : vector<16x32xf32>
    %1050 = vector.broadcast %777 : vector<1x32xf32> to vector<16x32xf32>
    %1051 = arith.addf %1049, %1050 : vector<16x32xf32>
    %cst_348 = arith.constant dense<0.000000e+00> : vector<16xf32>
    %1052 = vector.multi_reduction <add>, %1051, %cst_348 [1] : vector<16x32xf32> to vector<16xf32>
    %1053 = vector.shape_cast %1052 : vector<16xf32> to vector<16x1xf32>
    %cst_349 = arith.constant 3.200000e+01 : f32
    %1054 = vector.broadcast %cst_349 : f32 to vector<16x1xf32>
    %1055 = arith.divf %1053, %1054 : vector<16x1xf32>
    %1056 = vector.broadcast %1055 : vector<16x1xf32> to vector<16x32xf32>
    %1057 = arith.subf %1051, %1056 : vector<16x32xf32>
    %1058 = arith.mulf %1057, %1057 : vector<16x32xf32>
    %cst_350 = arith.constant dense<0.000000e+00> : vector<16xf32>
    %1059 = vector.multi_reduction <add>, %1058, %cst_350 [1] : vector<16x32xf32> to vector<16xf32>
    %1060 = vector.shape_cast %1059 : vector<16xf32> to vector<16x1xf32>
    %cst_351 = arith.constant 3.200000e+01 : f32
    %1061 = vector.broadcast %cst_351 : f32 to vector<16x1xf32>
    %1062 = arith.divf %1060, %1061 : vector<16x1xf32>
    %cst_352 = arith.constant 9.99999974E-6 : f32
    %1063 = vector.broadcast %cst_352 : f32 to vector<16x1xf32>
    %1064 = arith.addf %1062, %1063 : vector<16x1xf32>
    %1065 = math.rsqrt %1064 : vector<16x1xf32>
    %1066 = vector.broadcast %1065 : vector<16x1xf32> to vector<16x32xf32>
    %1067 = arith.mulf %1057, %1066 : vector<16x32xf32>
    %1068 = vector.broadcast %27 : vector<1x32xf32> to vector<16x32xf32>
    %1069 = arith.mulf %1067, %1068 : vector<16x32xf32>
    %1070 = vector.broadcast %26 : vector<1x32xf32> to vector<16x32xf32>
    %1071 = arith.addf %1069, %1070 : vector<16x32xf32>
    %cst_353 = arith.constant dense<0.000000e+00> : vector<16x128xf32>
    %1072 = tpu.matmul %1071, %47, %cst_353 {dimension_numbers = #tpu.dot_dimension_numbers<[1], [0], [0], [1], [0, 0, 1, 1], [], []>} : vector<16x32xf32>, vector<32x128xf32>, vector<16x128xf32> -> vector<16x128xf32>
    %1073 = vector.broadcast %46 : vector<1x128xf32> to vector<16x128xf32>
    %1074 = arith.addf %1072, %1073 : vector<16x128xf32>
    %c0_354 = arith.constant 0 : index
    %c0_355 = arith.constant 0 : index
    %1075 = vector.load %arg51[%c0_354, %c0_355] : memref<16x128xf32, #tpu.memory_space<vmem>>, vector<16x128xf32>
    tpu.vector_store %arg51[%c0_354, %c0_355], %1074 {strides = array<i32>} : memref<16x128xf32, #tpu.memory_space<vmem>>, vector<16x128xf32>,
    return
  }
}

</mosaic_0001>

<bundles_post_ra>
// kernel: envi_transformer_forward.1
= control target key start
LH: loop header
LB: loop body
LE: loop exit
PB: predicated region body
PF: predicated region fallthrough
CT: control target
= control target key end

     0   :  { %s11561_s6 = smov 1   ;;  %s11562_s10 = smov 2   ;;  %s12801_s0 = inlined_call_operand.smem [shape: u32[52], index: -1, kind: input, shape index: {}] }
   0x1   :  { %s11624_s5 = sld [smem:[%s12801_s0]]   ;;  %s11563_s14 = smov 3  }
   0x2   :  { %s11629_s9 = sld [smem:[%s12801_s0 + %s11561_s6]]   ;;  %s11564_s18 = smov 4  }
   0x3   :  { %s11634_s13 = sld [smem:[%s12801_s0 + %s11562_s10]]   ;;  %s11565_s22 = smov 5  }
   0x4   :  { %s11639_s17 = sld [smem:[%s12801_s0 + %s11563_s14]]   ;;  %s11566_s26 = smov 6  }
   0x5   :  { %s11644_s21 = sld [smem:[%s12801_s0 + %s11564_s18]]   ;;  %s11567_s30 = smov 7  }
   0x6   :  { %s11649_s25 = sld [smem:[%s12801_s0 + %s11565_s22]]   ;;  %s11568_s4 = smov 8  }
   0x7   :  { %s11654_s29 = sld [smem:[%s12801_s0 + %s11566_s26]]   ;;  %s11569_s10 = smov 9  }
   0x8   :  { %12833 = sst [smem:[#allocation5_spill]] %s11629_s9  ;;  %s11570_s15 = smov 10  }
   0x9   :  { %s11659_s3 = sld [smem:[%s12801_s0 + %s11567_s30]]   ;;  %s11571_s20 = smov 11  }
   0xa   :  { %12834 = sst [smem:[#allocation6_spill]] %s11639_s17  ;;  %s11572_s26 = smov 12  }
   0xb   :  { %12835 = sst [smem:[#allocation7_spill]] %s11644_s21  ;;  %s11573_s1 = smov 13  }
   0xc   :  { %12836 = sst [smem:[#allocation8_spill]] %s11649_s25  ;;  %s11574_s7 = smov 14  }
   0xd   :  { %12837 = sst [smem:[#allocation9_spill]] %s11654_s29  ;;  %s11576_s22 = smov 16  }
   0xe   :  { %s11664_s8 = sld [smem:[%s12801_s0 + %s11568_s4]]   ;;  %s11577_s28 = smov 17  }
   0xf   :  { %12838 = sst [smem:[#allocation10_spill]] %s11659_s3  ;;  %s11611_s16 = smov 51  }
  0x10   :  { %s11669_s14 = sld [smem:[%s12801_s0 + %s11569_s10]]   ;;  %s11610_s10 = smov 50  }
  0x11   :  { %s11674_s19 = sld [smem:[%s12801_s0 + %s11570_s15]]   ;;  %s11575_s15 = smov 15  }
  0x12   :  { %s11679_s24 = sld [smem:[%s12801_s0 + %s11571_s20]]  }
  0x13   :  { %s11684_s30 = sld [smem:[%s12801_s0 + %s11572_s26]]  }
  0x14   :  { %12839 = sst [smem:[#allocation11_spill]] %s11664_s8 }
  0x15   :  { %s11689_s6 = sld [smem:[%s12801_s0 + %s11573_s1]]  }
  0x16   :  { %12840 = sst [smem:[#allocation12_spill]] %s11669_s14 }
  0x17   :  { %12841 = sst [smem:[#allocation13_spill]] %s11674_s19 }
  0x18   :  { %12842 = sst [smem:[#allocation14_spill]] %s11679_s24 }
  0x19   :  { %12843 = sst [smem:[#allocation15_spill]] %s11684_s30 }
  0x1a   :  { %s11694_s12 = sld [smem:[%s12801_s0 + %s11574_s7]]   ;;  %s11578_s7 = smov 18  }
  0x1b   :  { %12844 = sst [smem:[#allocation16_spill]] %s11689_s6 }
  0x1c   :  { %s11699_s20 = sld [smem:[%s12801_s0 + %s11575_s15]]   ;;  %s11579_s15 = smov 19  }
  0x1d   :  { %s11704_s27 = sld [smem:[%s12801_s0 + %s11576_s22]]   ;;  %s11580_s22 = smov 20  }
  0x1e   :  { %s11709_s4 = sld [smem:[%s12801_s0 + %s11577_s28]]   ;;  %s11581_s28 = smov 21  }
  0x1f   :  { %s11714_s6 = sld [smem:[%s12801_s0 + %s11578_s7]]   ;;  %s11582_s7 = smov 22  }
  0x20   :  { %12845 = sst [smem:[#allocation17_spill]] %s11694_s12 }
  0x21   :  { %s11719_s24 = sld [smem:[%s12801_s0 + %s11579_s15]]   ;;  %s11583_s15 = smov 23  }
  0x22   :  { %12846 = sst [smem:[#allocation18_spill]] %s11699_s20 }
  0x23   :  { %12847 = sst [smem:[#allocation19_spill]] %s11704_s27 }
  0x24   :  { %12848 = sst [smem:[#allocation20_spill]] %s11709_s4 }
  0x25   :  { %12849 = sst [smem:[#allocation21_spill]] %s11714_s6 }
  0x26   :  { %s11724_s12 = sld [smem:[%s12801_s0 + %s11580_s22]]   ;;  %s11584_s22 = smov 24  }
  0x27   :  { %12850 = sst [smem:[#allocation22_spill]] %s11719_s24 }
  0x28   :  { %s11729_s4 = sld [smem:[%s12801_s0 + %s11581_s28]]   ;;  %s11585_s28 = smov 25  }
  0x29   :  { %s11734_s6 = sld [smem:[%s12801_s0 + %s11582_s7]]   ;;  %s11586_s7 = smov 26  }
  0x2a   :  { %s11739_s24 = sld [smem:[%s12801_s0 + %s11583_s15]]   ;;  %s11587_s15 = smov 27  }
  0x2b   :  { %s11749_s30 = sld [smem:[%s12801_s0 + %s11585_s28]]   ;;  %s11589_s28 = smov 29  }
  0x2c   :  { %12851 = sst [smem:[#allocation23_spill]] %s11724_s12 }
  0x2d   :  { %s11744_s12 = sld [smem:[%s12801_s0 + %s11584_s22]]   ;;  %s11588_s22 = smov 28  }
  0x2e   :  { %12852 = sst [smem:[#allocation24_spill]] %s11729_s4 }
  0x2f   :  { %12853 = sst [smem:[#allocation25_spill]] %s11734_s6 }
  0x30   :  { %12854 = sst [smem:[#allocation26_spill]] %s11739_s24 }
  0x31   :  { %12856 = sst [smem:[#allocation28_spill]] %s11749_s30 }
  0x32   :  { %s11754_s21 = sld [smem:[%s12801_s0 + %s11586_s7]]   ;;  %s11590_s7 = smov 30  }
  0x33   :  { %12855 = sst [smem:[#allocation27_spill]] %s11744_s12 }
  0x34   :  { %s11759_s8 = sld [smem:[%s12801_s0 + %s11587_s15]]   ;;  %s11591_s15 = smov 31  }
  0x35   :  { %s11764_s29 = sld [smem:[%s12801_s0 + %s11588_s22]]   ;;  %s11592_s22 = smov 32  }
  0x36   :  { %s11769_s25 = sld [smem:[%s12801_s0 + %s11589_s28]]   ;;  %s11593_s28 = smov 33  }
  0x37   :  { %s11774_s17 = sld [smem:[%s12801_s0 + %s11590_s7]]   ;;  %s11594_s7 = smov 34  }
  0x38   :  { %12857 = sst [smem:[#allocation29_spill]] %s11754_s21 }
  0x39   :  { %s11779_s20 = sld [smem:[%s12801_s0 + %s11591_s15]]   ;;  %s11595_s15 = smov 35  }
  0x3a   :  { %12858 = sst [smem:[#allocation30_spill]] %s11759_s8 }
  0x3b   :  { %12859 = sst [smem:[#allocation31_spill]] %s11764_s29 }
  0x3c   :  { %12860 = sst [smem:[#allocation32_spill]] %s11769_s25 }
  0x3d   :  { %12861 = sst [smem:[#allocation33_spill]] %s11774_s17 }
  0x3e   :  { %s11784_s27 = sld [smem:[%s12801_s0 + %s11592_s22]]   ;;  %s11596_s22 = smov 36  }
  0x3f   :  { %12862 = sst [smem:[#allocation34_spill]] %s11779_s20 }
  0x40   :  { %s11789_s25 = sld [smem:[%s12801_s0 + %s11593_s28]]   ;;  %s11597_s28 = smov 37  }
  0x41   :  { %s11794_s17 = sld [smem:[%s12801_s0 + %s11594_s7]]   ;;  %s11598_s7 = smov 38  }
  0x42   :  { %s11799_s19 = sld [smem:[%s12801_s0 + %s11595_s15]]   ;;  %s11599_s15 = smov 39  }
  0x43   :  { %s11804_s14 = sld [smem:[%s12801_s0 + %s11596_s22]]   ;;  %s11600_s22 = smov 40  }
  0x44   :  { %s11809_s3 = sld [smem:[%s12801_s0 + %s11597_s28]]   ;;  %s11601_s28 = smov 41  }
  0x45   :  { %s11814_s6 = sld [smem:[%s12801_s0 + %s11598_s7]]   ;;  %s11602_s7 = smov 42  }
  0x46   :  { %12863 = sst [smem:[#allocation35_spill]] %s11789_s25 }
  0x47   :  { %s11819_s21 = sld [smem:[%s12801_s0 + %s11599_s15]]   ;;  %s11603_s15 = smov 43  }
  0x48   :  { %s11824_s12 = sld [smem:[%s12801_s0 + %s11600_s22]]   ;;  %s11604_s22 = smov 44  }
  0x49   :  { %s11829_s24 = sld [smem:[%s12801_s0 + %s11601_s28]]   ;;  %s11605_s28 = smov 45  }
  0x4a   :  { %12864 = sst [smem:[#allocation36_spill]] %s11809_s3 }
  0x4b   :  { %12865 = sst [smem:[#allocation37_spill]] %s11814_s6 }
  0x4c   :  { %s11834_s4 = sld [smem:[%s12801_s0 + %s11602_s7]]   ;;  %s11606_s7 = smov 46  }
  0x4d   :  { %s11839_s29 = sld [smem:[%s12801_s0 + %s11603_s15]]   ;;  %s11607_s15 = smov 47  }
  0x4e   :  { %s11844_s30 = sld [smem:[%s12801_s0 + %s11604_s22]]   ;;  %s11608_s22 = smov 48  }
  0x4f   :  { %s11849_s9 = sld [smem:[%s12801_s0 + %s11605_s28]]   ;;  %s11609_s28 = smov 49  }
  0x50   :  { %s11854_s8 = sld [smem:[%s12801_s0 + %s11606_s7]]  }
  0x51   :  { %s11859_s3 = sld [smem:[%s12801_s0 + %s11607_s15]]  }
  0x52   :  { %s11864_s6 = sld [smem:[%s12801_s0 + %s11608_s22]]  }
  0x53   :  { %s9794_s25 = sld [smem:[%s12801_s0 + %s11609_s28]]  }
  0x54   :  { %s11872_s20 = sld [smem:[%s12801_s0 + %s11610_s10]]  }
  0x57   :  { %12866 = sst [smem:[#allocation38_spill]] %s11859_s3 }
  0x58   :  { %s11877_s3 = sld [smem:[%s12801_s0 + %s11611_s16]]  }
  0x59   :  { %108 = vsyncpa [#allocation3], 0  ;;  %s11612_s22 = smov [#allocation2]  }
  0x5a   :  { %s213_s23 = sshll.u32 %s11612_s22, 4  ;;  %s214_s23 = int_to_ptr.vmem [resolvable:$true] %s213_s23 }
  0x5b   :  { %s11547_s26 = scalar_lea.vmem %s214_s23, 16  ;;  %s11551_s1 = scalar_lea.vmem %s214_s23, 32 }
  0x5c   :  { %p11548_p0 = scmp.ne.s32.totalorder %s214_s23, %s11547_s26  ;;  %p11552_p1 = scmp.lt.s32.totalorder %s214_s23, %s214_s23 }
  0x5d   :  { %p11553_p2 = scmp.lt.s32.totalorder %s11551_s1, %s11547_s26 }
  0x5f   :  { %p11554_p3 = por %p11553_p2, %p11552_p1 }
  0x61   :  { %p11555_p4 = pnand %p11554_p3, %p11548_p0 }
  0x63   :  { %11558 = shalt.err (!%p11555_p4)
}
  0x64   :  { %216 = dma.hbm_to_vmem [thread:$0]  %s9794_s25, 16, %s214_s23, [#allocation3]  }
  0x65   :  { %11559 = dma.done.wait [#allocation3], 16  }
  0x66   :  { %11560 = vsyncadd [#allocation3], 4294967280  ;;  %v457_v0 = vld [vmem:[%s11839_s29 + $0x18] sm:$0xff]  ;;  %v456_v2 = vld [vmem:[%s11839_s29 + $0x10] sm:$0xff]  ;;  %vm557_vm0 = vcmask 261120   ;;  %v11613_v10 = vmov 0.0   ;;  %v534_v27 = vlaneseq }
  0x67   :  { %v481_v1 = vld [vmem:[%s11849_s9 + $0x18] sm:$0xff]  ;;  %10500 = vmatprep.subr.mxu1 %v457_v0  ;;  %v480_v3 = vld [vmem:[%s11849_s9 + $0x10] sm:$0xff]  ;;  %v455_v4 = vld [vmem:[%s11839_s29 + $0x8] sm:$0xff]  ;;  %vm11614_vm1 = vmmov 0   ;;  %vm801_vm2 = vcmask 130048   ;;  %vm968_vm3 = vcmask 64512  }
  0x68   :  { %10489 = vmatprep.subr.mxu0 %v481_v1  ;;  %10501 = vmatpush3.msra.mxu1 %v457_v0  ;;  %v479_v5 = vld [vmem:[%s11849_s9 + $0x8] sm:$0xff]  ;;  %v454_v6 = vld [vmem:[%s11839_s29] sm:$0xff]  ;;  %v497_v21 = vld [vmem:[%s11854_s8 + $0x18] sm:$0xff]  ;;  %v11615_v25 = vmov 1966171168   ;;  %v11928_v29 = vshrl.u32 %v534_v27, 7 }
  0x69   :  { %10490 = vmatpush3.msra.mxu0 %v481_v1  ;;  %10502 = vmatprep.subr.mxu1 %v456_v2  ;;  %v478_v7 = vld [vmem:[%s11849_s9] sm:$0xff]  ;;  %v11891_v9 = vld [vmem:[%s11624_s5 + $0x8] sm:$0xff]  ;;  %v496_v22 = vld [vmem:[%s11854_s8 + $0x10] sm:$0xff]  ;;  %v532_v26 = vunpack.c.l.s4 %v11615_v25  ;;  %s12867_s0 = sld [smem:[#allocation34_spill]]  ;;  %vm2014_vm4 = vcmask 523264  }
  0x6a   :  { %10491 = vmatprep.subr.mxu0 %v480_v3  ;;  %10503 = vmatpush3.msra.mxu1 %v456_v2  ;;  %v11888_v8 = vld [vmem:[%s11624_s5] sm:$0xff]  ;;  %v495_v23 = vld [vmem:[%s11854_s8 + $0x8] sm:$0xff]  ;;  %v958_v35 = vsub.s32 0, %v11928_v29  ;;  %v461_v61 = vld [vmem:[%s11839_s29 + $0x38] sm:$0xff]  ;;  %s12868_s5 = sld [smem:[#allocation35_spill]] }
  0x6b   :  { %10492 = vmatpush3.msra.mxu0 %v480_v3  ;;  %10504 = vmatprep.subr.mxu1 %v455_v4  ;;  %v9801_v13 = vld [vmem:[%s11819_s21] ss:$0 sm:$0xff]  ;;  %v533_v28 = vunpack.c.0.s8 %v532_v26  ;;  %v485_v0 = vld [vmem:[%s11849_s9 + $0x38] sm:$0xff]  ;;  %v9813_v25 = vld [vmem:[%s11829_s24 + $0x1] ss:$0 sm:$0xff]  ;;  %s12870_s25 = sld [smem:[#allocation36_spill]] }
  0x6c   :  { %10493 = vmatprep.subr.mxu0 %v479_v5  ;;  %10505 = vmatpush3.msra.mxu1 %v455_v4  ;;  %v9798_v15 = vld [vmem:[%s11829_s24] ss:$0 sm:$0xff]  ;;  %s12883_s28 = sld [smem:[#allocation13_spill]] }
  0x6d   :  { %10494 = vmatpush3.msra.mxu0 %v479_v5  ;;  %10506 = vmatprep.subr.mxu1 %v454_v6  ;;  %v494_v24 = vld [vmem:[%s11854_s8] sm:$0xff]  ;;  %v536_v32 = vsub.s32 %v533_v28, %v11928_v29  ;;  %v460_v5 = vld [vmem:[%s11839_s29 + $0x30] sm:$0xff]  ;;  %s12885_s2 = sld [smem:[#allocation18_spill]] }
  0x6e   :  { %10495 = vmatprep.subr.mxu0 %v478_v7  ;;  %10507 = vmatpush3.msra.mxu1 %v454_v6  ;;  %v9797_v30 = vld.sshfl [vmem:[%s11634_s13] sm:$0x11 pattern:$0x75316420]  ;;  %s12869_s13 = sld [smem:[#allocation37_spill]] }
  0x6f   :  { %10508 = vmatprep.mubr.msk.f32.mxu1 %vm557_vm0, %v11888_v8  ;;  %10496 = vmatpush3.msra.mxu0 %v478_v7  ;;  %v530_v31 = vcombine.high %v9797_v30, %v9797_v30  ;;  %v537_v36 = vrot.slane %v9797_v30, %v536_v32  ;;  %v9804_v59 = vld [vmem:[%s11834_s4] ss:$0 sm:$0xff]  ;;  %v459_v7 = vld [vmem:[%s11839_s29 + $0x28] sm:$0xff]  ;;  %s12886_s10 = sld [smem:[#allocation6_spill]] }
  0x70   :  { %10497 = vmatprep.mubr.msk.f32.mxu0 %vm557_vm0, %v11888_v8  ;;  %10509 = vmatmul.mubr.msk.f32.vlgmr.msra.gmra.mxu1 %vm557_vm0, %v11891_v9  ;;  %s12887_s7 = sld [smem:[#allocation8_spill]] }
  0x71   :  { %10498 = vmatmul.mubr.msk.f32.vlgmr.msra.gmra.mxu0 %vm557_vm0, %v11891_v9  ;;  %10522 = vmatprep.subr.mxu1 %v11613_v10  ;;  %v544_v33 = vrot.slane %v530_v31, %v536_v32  ;;  %v11935_v42 = vrot.slane %v537_v36, %v958_v35  ;;  %v501_v32 = vld [vmem:[%s11854_s8 + $0x38] sm:$0xff]  ;;  %s12888_s11 = sld [smem:[#allocation9_spill]] }
  0x72   :  { %10519 = vmatprep.mubr.msk.f32.mxu0 %vm557_vm0, %v11888_v8  ;;  %10524 = vmatprep.mubr.msk.f32.mxu1 %vm11614_vm1, %v11613_v10  ;;  %s12889_s16 = sld [smem:[#allocation11_spill]] }
  0x73   :  { %10511 = vmatprep.subr.mxu0 %v497_v21  ;;  %v11933_v38 = vrot.slane %v544_v33, %v958_v35  ;;  %v500_v33 = vld [vmem:[%s11854_s8 + $0x30] sm:$0xff]  ;;  %v498_v35 = vld [vmem:[%s11854_s8 + $0x20] sm:$0xff]  ;;  %s12890_s15 = sld [smem:[#allocation7_spill]] }
  0x74   :  { %10512 = vmatpush3.msra.mxu0 %v497_v21  ;;  %v9816_v21 = vld [vmem:[%s11819_s21 + $0x1] ss:$0 sm:$0xff]  ;;  %s12891_s18 = sld [smem:[#allocation15_spill]] }
  0x75   :  { %10513 = vmatprep.subr.mxu0 %v496_v22  ;;  %s12892_s22 = sld [smem:[#allocation17_spill]] }
  0x76   :  { %10514 = vmatpush3.msra.mxu0 %v496_v22  ;;  %s12893_s23 = sld [smem:[#allocation21_spill]] }
  0x77   :  { %10515 = vmatprep.subr.mxu0 %v495_v23  ;;  %s12894_s26 = sld [smem:[#allocation20_spill]] }
  0x78   :  { %10516 = vmatpush3.msra.mxu0 %v495_v23  ;;  %s12895_s1 = sld [smem:[#allocation14_spill]] }
  0x79   :  { %10517 = vmatprep.subr.mxu0 %v494_v24 }
  0x7a   :  { %10518 = vmatpush3.msra.mxu0 %v494_v24 }
  0x7b   :  { %10520 = vmatmul.mubr.msk.f32.vlgmr.msra.gmra.mxu0 %vm557_vm0, %v11891_v9  ;;  %10532 = vmatprep.subr.mxu0 %v11613_v10 }
  0x7c   :  { %10534 = vmatprep.mubr.msk.f32.mxu0 %vm11614_vm1, %v11613_v10 }
 0x130   :  { %v10510_v11 = vpop.f32.mrf.mxu1 }
 0x131   :  { %v10499_v12 = vpop.f32.mrf.mxu0  ;;  %v717_v19 = vadd.f32 %v10510_v11, %v9801_v13 }
 0x132   :  { %v711_v14 = vpop.f32.mrf.mxu1  ;;  %v636_v20 = vadd.f32 %v10499_v12, %v9798_v15  ;;  %v484_v12 = vld [vmem:[%s11849_s9 + $0x30] sm:$0xff] }
 0x133   :  { %v712_v16 = vadd.f32 %v9801_v13, %v711_v14  ;;  %v630_v17 = vpop.f32.mrf.mxu0  ;;  %v458_v13 = vld [vmem:[%s11839_s29 + $0x20] sm:$0xff]  ;;  %v483_v14 = vld [vmem:[%s11849_s9 + $0x28] sm:$0xff] }
 0x134   :  { %v631_v18 = vadd.f32 %v9798_v15, %v630_v17  ;;  %v482_v15 = vld [vmem:[%s11849_s9 + $0x20] sm:$0xff] }
 0x135   :  { %10523 = vmatpush3.xpose.msk.msra.mxu1 %vm801_vm2, %v712_v16 }
 0x136   :  { %10527 = vmatprep.subr.mxu1 %v11613_v10 }
 0x138   :  { %10525 = vmatmul.mubr.msk.f32.vlgmr.msra.gmra.mxu1 %vm801_vm2, %v631_v18 }
 0x139   :  { %10528 = vmatpush3.xpose.msk.msra.mxu1 %vm801_vm2, %v717_v19  ;;  %10529 = vmatprep.mubr.msk.f32.mxu1 %vm11614_vm1, %v11613_v10 }
 0x13a   :  { %10537 = vmatprep.subr.mxu1 %v11613_v10 }
 0x13b   :  { %v10521_v58 = vpop.f32.mrf.mxu0 }
 0x13c   :  { %10530 = vmatmul.mubr.msk.f32.vlgmr.msra.gmra.mxu1 %vm801_vm2, %v636_v20  ;;  %v798_v60 = vadd.f32 %v10521_v58, %v9804_v59 }
 0x13d   :  { %10539 = vmatprep.mubr.msk.f32.mxu1 %vm11614_vm1, %v11613_v10  ;;  %v792_v62 = vpop.f32.mrf.mxu0 }
 0x13e   :  { %v793_v63 = vadd.f32 %v9804_v59, %v792_v62  ;;  %10538 = vmatpush3.msra.mxu1 %v798_v60  ;;  %v9819_v59 = vld [vmem:[%s11834_s4 + $0x1] ss:$0 sm:$0xff] }
 0x13f   :  { %10553 = vmatprep.subr.mxu1 %v461_v61 }
 0x140   :  { %10533 = vmatpush3.msra.mxu0 %v793_v63  ;;  %v471_v63 = vld [vmem:[%s11844_s30 + $0x8] sm:$0xff] }
 0x141   :  { %10542 = vmatprep.subr.mxu0 %v485_v0 }
 0x1f8   :  { %v874_v34 = vpop.f32.mrf.mxu1 }
 0x1f9   :  { %v954_v40 = vmul.f32 0.25, %v874_v34  ;;  %v499_v34 = vld [vmem:[%s11854_s8 + $0x28] sm:$0xff] }
 0x1fa   :  { %v10526_v37 = vpop.f32.mrf.mxu1 }
 0x1fb   :  { %v966_v46 = vadd.f32 %v11935_v42, %v954_v40 }
 0x1fc   :  { %v950_v39 = vpop.f32.mrf.mxu1 }
 0x1fd   :  { %v955_v41 = vmul.f32 0.25, %v950_v39  ;;  %v969_v47 = vsel %vm968_vm3, %v966_v46, -inf }
 0x1fe   :  { %v10531_v43 = vpop.f32.mrf.mxu1 }
 0x1ff   :  { %v967_v44 = vadd.f32 %v11933_v38, %v955_v41 }
 0x201   :  { %v972_v45 = vsel %vm968_vm3, %v967_v44, -inf }
 0x202   :  { %973 = vmax.xlane.f32.xlu0 %v972_v45 }
 0x206   :  { %970 = vmax.xlane.f32.xlu0 %v969_v47 }
 0x28b   :  { %v974_v48 = vpop.xlane.xlu0 %973 }
 0x28c   :  { %v976_v49 = vsub.f32 %v967_v44, %v974_v48 }
 0x28e   :  { %v979_v50 = vmul.f32 1.442695, %v976_v49 }
 0x28f   :  { %v971_v51 = vpop.xlane.xlu0 %970 }
 0x290   :  { %11395 = vpow2.f32 %v979_v50  ;;  %v975_v52 = vsub.f32 %v966_v46, %v971_v51 }
 0x292   :  { %v977_v53 = vmul.f32 1.442695, %v975_v52 }
 0x294   :  { %11397 = vpow2.f32 %v977_v53 }
 0x29d   :  { %v11396_v54 = vpop.eup %11395 }
 0x29e   :  { %v984_v55 = vsel %vm968_vm3, %v11396_v54, 0.0 }
 0x29f   :  { %985 = vadd.xlane.f32.xlu1 %v984_v55 }
 0x2a1   :  { %v11398_v56 = vpop.eup %11397 }
 0x2a2   :  { %v981_v57 = vsel %vm968_vm3, %v11398_v56, 0.0 }
 0x2a3   :  { %982 = vadd.xlane.f32.xlu1 %v981_v57 }
 0x328   :  { %v986_v1 = vpop.xlane.xlu1 %985 }
 0x329   :  { %11399 = vrcp.f32 %v986_v1 }
 0x32c   :  { %v983_v2 = vpop.xlane.xlu1 %982 }
 0x32d   :  { %11401 = vrcp.f32 %v983_v2 }
 0x336   :  { %v11400_v3 = vpop.eup %11399 }
 0x337   :  { %v990_v4 = vmul.f32 %v11400_v3, %v11396_v54 }
 0x339   :  { %10540 = vmatmul.mubr.msk.f32.vlgmr.msra.gmra.mxu1 %vm968_vm3, %v990_v4 }
 0x33a   :  { %v11402_v6 = vpop.eup %11401  ;;  %10554 = vmatpush3.msra.mxu1 %v461_v61  ;;  %10561 = vmatprep.mubr.msk.f32.mxu1 %vm557_vm0, %v11888_v8 }
 0x33b   :  { %10555 = vmatprep.subr.mxu1 %v460_v5  ;;  %v988_v11 = vmul.f32 %v11402_v6, %v11398_v56  ;;  %v470_v6 = vld [vmem:[%s11844_s30] sm:$0xff] }
 0x33c   :  { %10556 = vmatpush3.msra.mxu1 %v460_v5 }
 0x33d   :  { %10557 = vmatprep.subr.mxu1 %v459_v7  ;;  %10535 = vmatmul.mubr.msk.f32.vlgmr.msra.gmra.mxu0 %vm968_vm3, %v988_v11  ;;  %v472_v11 = vld [vmem:[%s11844_s30 + $0x10] sm:$0xff] }
 0x33e   :  { %10543 = vmatpush3.msra.mxu0 %v485_v0  ;;  %10558 = vmatpush3.msra.mxu1 %v459_v7  ;;  %v473_v7 = vld [vmem:[%s11844_s30 + $0x18] sm:$0xff] }
 0x33f   :  { %10544 = vmatprep.subr.mxu0 %v484_v12  ;;  %10559 = vmatprep.subr.mxu1 %v458_v13 }
 0x340   :  { %10545 = vmatpush3.msra.mxu0 %v484_v12  ;;  %10560 = vmatpush3.msra.mxu1 %v458_v13 }
 0x341   :  { %10546 = vmatprep.subr.mxu0 %v483_v14  ;;  %10562 = vmatmul.mubr.msk.f32.vlgmr.msra.gmra.mxu1 %vm557_vm0, %v11891_v9 }
 0x342   :  { %10547 = vmatpush3.msra.mxu0 %v483_v14  ;;  %10550 = vmatprep.mubr.msk.f32.mxu0 %vm557_vm0, %v11888_v8 }
 0x343   :  { %10548 = vmatprep.subr.mxu0 %v482_v15  ;;  %10575 = vmatprep.subr.mxu1 %v11613_v10 }
 0x344   :  { %10549 = vmatpush3.msra.mxu0 %v482_v15  ;;  %10577 = vmatprep.mubr.msk.f32.mxu1 %vm11614_vm1, %v11613_v10 }
 0x345   :  { %10551 = vmatmul.mubr.msk.f32.vlgmr.msra.gmra.mxu0 %vm557_vm0, %v11891_v9  ;;  %10564 = vmatprep.subr.mxu0 %v501_v32 }
 0x346   :  { %10572 = vmatprep.mubr.msk.f32.mxu0 %vm557_vm0, %v11888_v8  ;;  %10565 = vmatpush3.msra.mxu0 %v501_v32 }
 0x347   :  { %10566 = vmatprep.subr.mxu0 %v500_v33 }
 0x348   :  { %10567 = vmatpush3.msra.mxu0 %v500_v33 }
 0x349   :  { %10568 = vmatprep.subr.mxu0 %v499_v34 }
 0x34a   :  { %10569 = vmatpush3.msra.mxu0 %v499_v34 }
 0x34b   :  { %10570 = vmatprep.subr.mxu0 %v498_v35 }
 0x34c   :  { %10571 = vmatpush3.msra.mxu0 %v498_v35 }
 0x34d   :  { %10573 = vmatmul.mubr.msk.f32.vlgmr.msra.gmra.mxu0 %vm557_vm0, %v11891_v9  ;;  %10585 = vmatprep.subr.mxu0 %v11613_v10 }
 0x34e   :  { %10587 = vmatprep.mubr.msk.f32.mxu0 %vm11614_vm1, %v11613_v10 }
 0x3f9   :  { %v11967_v16 = vpop.f32.mrf.mxu1 }
 0x3fb   :  { %v10541_v17 = vpop.f32.mrf.mxu1 }
 0x3fd   :  { %v11969_v18 = vpop.f32.mrf.mxu0 }
 0x3ff   :  { %v10536_v19 = vpop.f32.mrf.mxu0 }
 0x401   :  { %v10563_v20 = vpop.f32.mrf.mxu1 }
 0x402   :  { %v1296_v30 = vadd.f32 %v10563_v20, %v9816_v21 }
 0x403   :  { %v1290_v22 = vpop.f32.mrf.mxu1 }
 0x404   :  { %v1291_v23 = vadd.f32 %v9816_v21, %v1290_v22 }
 0x405   :  { %v10552_v24 = vpop.f32.mrf.mxu0 }
 0x406   :  { %10576 = vmatpush3.xpose.msk.msra.mxu1 %vm801_vm2, %v1291_v23  ;;  %v1215_v31 = vadd.f32 %v10552_v24, %v9813_v25 }
 0x407   :  { %v1209_v26 = vpop.f32.mrf.mxu0  ;;  %10580 = vmatprep.subr.mxu1 %v11613_v10 }
 0x408   :  { %v1210_v28 = vadd.f32 %v9813_v25, %v1209_v26 }
 0x40a   :  { %10578 = vmatmul.mubr.msk.f32.vlgmr.msra.gmra.mxu1 %vm801_vm2, %v1210_v28 }
 0x40b   :  { %10581 = vmatpush3.xpose.msk.msra.mxu1 %vm801_vm2, %v1296_v30  ;;  %10582 = vmatprep.mubr.msk.f32.mxu1 %vm11614_vm1, %v11613_v10 }
 0x40c   :  { %10590 = vmatprep.subr.mxu1 %v11613_v10 }
 0x40d   :  { %v10574_v58 = vpop.f32.mrf.mxu0 }
 0x40e   :  { %10583 = vmatmul.mubr.msk.f32.vlgmr.msra.gmra.mxu1 %vm801_vm2, %v1215_v31  ;;  %v1377_v60 = vadd.f32 %v10574_v58, %v9819_v59 }
 0x40f   :  { %10592 = vmatprep.mubr.msk.f32.mxu1 %vm11614_vm1, %v11613_v10  ;;  %v1371_v61 = vpop.f32.mrf.mxu0 }
 0x410   :  { %v1372_v62 = vadd.f32 %v9819_v59, %v1371_v61  ;;  %10591 = vmatpush3.msra.mxu1 %v1377_v60  ;;  %v9834_v61 = vld [vmem:[%s11799_s19] ss:$0 sm:$0xff] }
 0x411   :  { %10602 = vmatprep.subr.mxu1 %v471_v63 }
 0x412   :  { %10586 = vmatpush3.msra.mxu0 %v1372_v62 }
 0x413   :  { %10595 = vmatprep.subr.mxu0 %v473_v7 }
 0x4ca   :  { %v1452_v36 = vpop.f32.mrf.mxu1 }
 0x4cb   :  { %v1532_v37 = vmul.f32 0.25, %v1452_v36 }
 0x4cc   :  { %v10579_v39 = vpop.f32.mrf.mxu1 }
 0x4cd   :  { %v1534_v40 = vadd.f32 %v1532_v37, %v11935_v42 }
 0x4ce   :  { %v1528_v41 = vpop.f32.mrf.mxu1 }
 0x4cf   :  { %v1533_v43 = vmul.f32 0.25, %v1528_v41  ;;  %v1536_v44 = vsel %vm968_vm3, %v1534_v40, -inf  ;;  %v408_v41 = vld [vmem:[%s11784_s27 + $0x10] sm:$0xff] }
 0x4d0   :  { %1537 = vmax.xlane.f32.xlu0 %v1536_v44  ;;  %v10584_v45 = vpop.f32.mrf.mxu1  ;;  %v406_v44 = vld [vmem:[%s11784_s27] sm:$0xff] }
 0x4d1   :  { %v1535_v46 = vadd.f32 %v1533_v43, %v11933_v38  ;;  %v407_v43 = vld [vmem:[%s11784_s27 + $0x8] sm:$0xff]  ;;  %v423_v45 = vld [vmem:[%s11794_s17 + $0x38] sm:$0xff] }
 0x4d3   :  { %v1539_v47 = vsel %vm968_vm3, %v1535_v46, -inf }
 0x4d4   :  { %1540 = vmax.xlane.f32.xlu1 %v1539_v47  ;;  %v421_v47 = vld [vmem:[%s11794_s17 + $0x28] sm:$0xff] }
 0x559   :  { %v1538_v48 = vpop.xlane.xlu0 %1537 }
 0x55a   :  { %v1542_v49 = vsub.f32 %v1534_v40, %v1538_v48  ;;  %v409_v40 = vld [vmem:[%s11784_s27 + $0x18] sm:$0xff]  ;;  %v420_v48 = vld [vmem:[%s11794_s17 + $0x20] sm:$0xff] }
 0x55c   :  { %v1544_v50 = vmul.f32 1.442695, %v1542_v49 }
 0x55d   :  { %v1541_v51 = vpop.xlane.xlu1 %1540 }
 0x55e   :  { %11403 = vpow2.f32 %v1544_v50  ;;  %v1543_v52 = vsub.f32 %v1535_v46, %v1541_v51  ;;  %v422_v46 = vld [vmem:[%s11794_s17 + $0x30] sm:$0xff] }
 0x560   :  { %v1546_v53 = vmul.f32 1.442695, %v1543_v52 }
 0x562   :  { %11405 = vpow2.f32 %v1546_v53 }
 0x56b   :  { %v11404_v54 = vpop.eup %11403 }
 0x56c   :  { %v1548_v55 = vsel %vm968_vm3, %v11404_v54, 0.0 }
 0x56d   :  { %1549 = vadd.xlane.f32.xlu0 %v1548_v55 }
 0x56f   :  { %v11406_v56 = vpop.eup %11405 }
 0x570   :  { %v1551_v57 = vsel %vm968_vm3, %v11406_v56, 0.0 }
 0x571   :  { %1552 = vadd.xlane.f32.xlu1 %v1551_v57 }
 0x5f6   :  { %v1550_v0 = vpop.xlane.xlu0 %1549 }
 0x5f7   :  { %11407 = vrcp.f32 %v1550_v0 }
 0x5fa   :  { %v1553_v1 = vpop.xlane.xlu1 %1552 }
 0x5fb   :  { %11409 = vrcp.f32 %v1553_v1  ;;  %v419_v1 = vld [vmem:[%s11794_s17 + $0x18] sm:$0xff] }
 0x604   :  { %v11408_v2 = vpop.eup %11407 }
 0x605   :  { %v1555_v3 = vmul.f32 %v11408_v2, %v11404_v54  ;;  %v418_v2 = vld [vmem:[%s11794_s17 + $0x10] sm:$0xff] }
 0x607   :  { %10588 = vmatmul.mubr.msk.f32.vlgmr.msra.gmra.mxu0 %vm968_vm3, %v1555_v3  ;;  %v417_v3 = vld [vmem:[%s11794_s17 + $0x8] sm:$0xff] }
 0x608   :  { %v11410_v4 = vpop.eup %11409  ;;  %10596 = vmatpush3.msra.mxu0 %v473_v7 }
 0x609   :  { %v1557_v5 = vmul.f32 %v11410_v4, %v11406_v56  ;;  %10597 = vmatprep.subr.mxu0 %v472_v11  ;;  %v9833_v56 = vld [vmem:[%s11804_s14] ss:$0 sm:$0xff] }
 0x60a   :  { %10598 = vmatpush3.msra.mxu0 %v472_v11  ;;  %v416_v4 = vld [vmem:[%s11794_s17] sm:$0xff] }
 0x60b   :  { %10593 = vmatmul.mubr.msk.f32.vlgmr.msra.gmra.mxu1 %vm968_vm3, %v1557_v5  ;;  %10609 = vmatprep.subr.mxu0 %v409_v40  ;;  %v9835_v5 = vld [vmem:[%s12867_s0] ss:$0 sm:$0xff] }
 0x60c   :  { %10603 = vmatpush3.msra.mxu1 %v471_v63  ;;  %10606 = vmatprep.mubr.msk.f32.mxu1 %vm801_vm2, %v11969_v18  ;;  %v9832_v18 = vld [vmem:[%s11824_s12] ss:$0 sm:$0xff] }
 0x60d   :  { %10604 = vmatprep.subr.mxu1 %v470_v6 }
 0x60e   :  { %10605 = vmatpush3.msra.mxu1 %v470_v6 }
 0x60f   :  { %10607 = vmatmul.mubr.msk.f32.vlgmr.msra.gmra.mxu1 %vm801_vm2, %v11967_v16  ;;  %10620 = vmatprep.subr.mxu1 %v423_v45 }
 0x610   :  { %10621 = vmatpush3.msra.mxu1 %v423_v45 }
 0x611   :  { %10622 = vmatprep.subr.mxu1 %v422_v46 }
 0x612   :  { %10623 = vmatpush3.msra.mxu1 %v422_v46 }
 0x613   :  { %10624 = vmatprep.subr.mxu1 %v421_v47 }
 0x614   :  { %10625 = vmatpush3.msra.mxu1 %v421_v47 }
 0x615   :  { %10626 = vmatprep.subr.mxu1 %v420_v48 }
 0x616   :  { %10627 = vmatpush3.msra.mxu1 %v420_v48 }
 0x617   :  { %10628 = vmatprep.subr.mxu1 %v419_v1 }
 0x618   :  { %10629 = vmatpush3.msra.mxu1 %v419_v1 }
 0x619   :  { %10630 = vmatprep.subr.mxu1 %v418_v2 }
 0x61a   :  { %10631 = vmatpush3.msra.mxu1 %v418_v2  ;;  %v9846_v2 = vld [vmem:[%s11819_s21 + $0x2] ss:$0 sm:$0xff] }
 0x61b   :  { %10632 = vmatprep.subr.mxu1 %v417_v3 }
 0x61c   :  { %10633 = vmatpush3.msra.mxu1 %v417_v3 }
 0x61d   :  { %10634 = vmatprep.subr.mxu1 %v416_v4 }
 0x61e   :  { %10635 = vmatpush3.msra.mxu1 %v416_v4 }
 0x6c7   :  { %v1627_v12 = vpop.f32.mrf.mxu0 }
 0x6c8   :  { %10599 = vmatprep.mubr.msk.f32.mxu0 %vm801_vm2, %v1627_v12 }
 0x6c9   :  { %v10589_v13 = vpop.f32.mrf.mxu0 }
 0x6cb   :  { %v1700_v14 = vpop.f32.mrf.mxu1 }
 0x6cc   :  { %10600 = vmatmul.mubr.msk.f32.vlgmr.msra.gmra.mxu0 %vm801_vm2, %v1700_v14 }
 0x6cd   :  { %v10594_v15 = vpop.f32.mrf.mxu1  ;;  %10610 = vmatpush3.msra.mxu0 %v409_v40  ;;  %v503_v40 = vld [vmem:[%s11854_s8 + $0x48] sm:$0xff] }
 0x6ce   :  { %10611 = vmatprep.subr.mxu0 %v408_v41  ;;  %v9838_v15 = vld [vmem:[%s12868_s5] ss:$0 sm:$0xff] }
 0x6cf   :  { %v10608_v17 = vpop.f32.mrf.mxu1  ;;  %10612 = vmatpush3.msra.mxu0 %v408_v41  ;;  %v486_v41 = vld [vmem:[%s11849_s9 + $0x40] sm:$0xff] }
 0x6d0   :  { %10613 = vmatprep.subr.mxu0 %v407_v43 }
 0x6d1   :  { %v1857_v21 = vpop.f32.mrf.mxu1  ;;  %10614 = vmatpush3.msra.mxu0 %v407_v43  ;;  %v502_v43 = vld [vmem:[%s11854_s8 + $0x40] sm:$0xff] }
 0x6d2   :  { %10615 = vmatprep.subr.mxu0 %v406_v44 }
 0x6d3   :  { %10616 = vmatpush3.msra.mxu0 %v406_v44  ;;  %v465_v44 = vld [vmem:[%s11839_s29 + $0x58] sm:$0xff] }
 0x78c   :  { %v10601_v19 = vpop.f32.mrf.mxu0 }
 0x78d   :  { %v1863_v20 = vadd.f32 %v10608_v17, %v10601_v19 }
 0x78e   :  { %v1776_v16 = vpop.f32.mrf.mxu0 }
 0x78f   :  { %v1873_v22 = vadd.f32 %v9832_v18, %v1863_v20  ;;  %v1858_v23 = vadd.f32 %v1857_v21, %v1776_v16 }
 0x791   :  { %v1872_v24 = vadd.f32 %v9832_v18, %v1858_v23  ;;  %v1875_v25 = vadd.f32 %v1873_v22, %v11891_v9 }
 0x793   :  { %v1879_v26 = vsel %vm557_vm0, %v1875_v25, 0.0  ;;  %v1874_v28 = vadd.f32 %v1872_v24, %v11888_v8 }
 0x794   :  { %1880 = vadd.xlane.f32.xlu1 %v1879_v26 }
 0x795   :  { %v1876_v30 = vsel %vm557_vm0, %v1874_v28, 0.0 }
 0x796   :  { %1877 = vadd.xlane.f32.xlu0 %v1876_v30 }
 0x81d   :  { %v1881_v31 = vpop.xlane.xlu1 %1880 }
 0x81e   :  { %v1884_v32 = vmul.f32 0.03125, %v1881_v31 }
 0x81f   :  { %v1878_v33 = vpop.xlane.xlu0 %1877 }
 0x820   :  { %v1886_v34 = vsub.f32 %v1875_v25, %v1884_v32  ;;  %v1883_v35 = vmul.f32 0.03125, %v1878_v33 }
 0x822   :  { %v1885_v36 = vsub.f32 %v1874_v28, %v1883_v35  ;;  %v1888_v37 = vmul.f32 %v1886_v34, %v1886_v34 }
 0x824   :  { %v1892_v9 = vsel %vm557_vm0, %v1888_v37, 0.0  ;;  %v1887_v39 = vmul.f32 %v1885_v36, %v1885_v36  ;;  %v505_v37 = vld [vmem:[%s11854_s8 + $0x58] sm:$0xff] }
 0x825   :  { %1893 = vadd.xlane.f32.xlu1 %v1892_v9  ;;  %10661 = vmatprep.subr.mxu1 %v505_v37  ;;  %v488_v9 = vld [vmem:[%s11849_s9 + $0x50] sm:$0xff] }
 0x826   :  { %v1889_v8 = vsel %vm557_vm0, %v1887_v39, 0.0  ;;  %v504_v39 = vld [vmem:[%s11854_s8 + $0x50] sm:$0xff] }
 0x827   :  { %1890 = vadd.xlane.f32.xlu0 %v1889_v8  ;;  %v487_v8 = vld [vmem:[%s11849_s9 + $0x48] sm:$0xff] }
 0x8ae   :  { %v1894_v49 = vpop.xlane.xlu1 %1893 }
 0x8af   :  { %v1896_v50 = vmul.f32 0.03125, %v1894_v49 }
 0x8b0   :  { %v1891_v51 = vpop.xlane.xlu0 %1890 }
 0x8b1   :  { %v1898_v52 = vadd.f32 1e-05, %v1896_v50  ;;  %v1895_v53 = vmul.f32 0.03125, %v1891_v51 }
 0x8b3   :  { %11411 = vrsqrt.f32 %v1898_v52  ;;  %v1897_v54 = vadd.f32 1e-05, %v1895_v53  ;;  %v9841_v52 = vld [vmem:[%s12869_s13] ss:$0 sm:$0xff] }
 0x8b5   :  { %11413 = vrsqrt.f32 %v1897_v54 }
 0x8c0   :  { %v11412_v55 = vpop.eup %11411 }
 0x8c1   :  { %v1902_v57 = vmul.f32 %v11412_v55, %v1886_v34 }
 0x8c2   :  { %v11414_v58 = vpop.eup %11413 }
 0x8c3   :  { %v1901_v59 = vmul.f32 %v11414_v58, %v1885_v36  ;;  %v1910_v60 = vmul.f32 %v9833_v56, %v1902_v57  ;;  %v489_v36 = vld [vmem:[%s11849_s9 + $0x58] sm:$0xff]  ;;  %v9842_v57 = vld [vmem:[%s12870_s25] ss:$0 sm:$0xff] }
 0x8c4   :  { %10639 = vmatprep.subr.mxu0 %v489_v36 }
 0x8c5   :  { %v1909_v62 = vmul.f32 %v9833_v56, %v1901_v59  ;;  %v1918_v0 = vadd.f32 %v9834_v61, %v1910_v60 }
 0x8c7   :  { %v1917_v63 = vadd.f32 %v9834_v61, %v1909_v62  ;;  %v464_v61 = vld [vmem:[%s11839_s29 + $0x50] sm:$0xff]  ;;  %v463_v62 = vld [vmem:[%s11839_s29 + $0x48] sm:$0xff] }
 0x8c9   :  { %10617 = vmatprep.mubr.msk.f32.mxu0 %vm557_vm0, %v1917_v63 }
 0x8ca   :  { %10618 = vmatmul.mubr.msk.f32.vlgmr.msra.gmra.mxu0 %vm557_vm0, %v1918_v0 }
 0x8cb   :  { %10640 = vmatpush3.msra.mxu0 %v489_v36 }
 0x8cc   :  { %10641 = vmatprep.subr.mxu0 %v488_v9 }
 0x8cd   :  { %10642 = vmatpush3.msra.mxu0 %v488_v9 }
 0x8ce   :  { %10643 = vmatprep.subr.mxu0 %v487_v8 }
 0x8cf   :  { %10644 = vmatpush3.msra.mxu0 %v487_v8  ;;  %v469_v8 = vld [vmem:[%s11839_s29 + $0x78] sm:$0xff] }
 0x8d0   :  { %10645 = vmatprep.subr.mxu0 %v486_v41 }
 0x8d1   :  { %10646 = vmatpush3.msra.mxu0 %v486_v41 }
 0x8d2   :  { %10650 = vmatprep.subr.mxu0 %v465_v44 }
 0x98a   :  { %v10619_v6 = vpop.f32.mrf.mxu0 }
 0x98b   :  { %v2003_v7 = vadd.f32 %v10619_v6, %v9835_v5 }
 0x98c   :  { %v1997_v11 = vpop.f32.mrf.mxu0 }
 0x98d   :  { %v1998_v12 = vadd.f32 %v9835_v5, %v1997_v11  ;;  %v2007_v14 = vmax.f32 %v2003_v7, 0.0  ;;  %v9843_v5 = vld [vmem:[%s11829_s24 + $0x2] ss:$0 sm:$0xff] }
 0x98e   :  { %v9849_v7 = vld [vmem:[%s11834_s4 + $0x2] ss:$0 sm:$0xff] }
 0x98f   :  { %v2006_v13 = vmax.f32 %v1998_v12, 0.0 }
 0x991   :  { %10636 = vmatprep.mubr.msk.f32.mxu1 %vm2014_vm4, %v2006_v13 }
 0x992   :  { %10637 = vmatmul.mubr.msk.f32.vlgmr.msra.gmra.mxu1 %vm2014_vm4, %v2007_v14 }
 0x993   :  { %10662 = vmatpush3.msra.mxu1 %v505_v37 }
 0x994   :  { %10663 = vmatprep.subr.mxu1 %v504_v39 }
 0x995   :  { %10664 = vmatpush3.msra.mxu1 %v504_v39 }
 0x996   :  { %10665 = vmatprep.subr.mxu1 %v503_v40 }
 0x997   :  { %10666 = vmatpush3.msra.mxu1 %v503_v40  ;;  %v493_v40 = vld [vmem:[%s11849_s9 + $0x78] sm:$0xff] }
 0x998   :  { %10667 = vmatprep.subr.mxu1 %v502_v43 }
 0x999   :  { %10668 = vmatpush3.msra.mxu1 %v502_v43 }
 0x99a   :  { %10677 = vmatprep.subr.mxu1 %v11613_v10 }
 0xa52   :  { %v10638_v17 = vpop.f32.mrf.mxu1 }
 0xa53   :  { %v2093_v18 = vadd.f32 %v10638_v17, %v9838_v15 }
 0xa54   :  { %v2087_v19 = vpop.f32.mrf.mxu1 }
 0xa55   :  { %v2088_v20 = vadd.f32 %v9838_v15, %v2087_v19  ;;  %v2097_v21 = vadd.f32 %v2093_v18, %v1918_v0 }
 0xa57   :  { %v2101_v16 = vsel %vm557_vm0, %v2097_v21, 0.0  ;;  %v2096_v22 = vadd.f32 %v2088_v20, %v1917_v63  ;;  %v462_v63 = vld [vmem:[%s11839_s29 + $0x40] sm:$0xff] }
 0xa58   :  { %2102 = vadd.xlane.f32.xlu1 %v2101_v16 }
 0xa59   :  { %v2098_v23 = vsel %vm557_vm0, %v2096_v22, 0.0 }
 0xa5a   :  { %2099 = vadd.xlane.f32.xlu0 %v2098_v23 }
 0xae1   :  { %v2103_v24 = vpop.xlane.xlu1 %2102 }
 0xae2   :  { %v2105_v25 = vmul.f32 0.03125, %v2103_v24 }
 0xae3   :  { %v2100_v26 = vpop.xlane.xlu0 %2099 }
 0xae4   :  { %v2107_v28 = vsub.f32 %v2097_v21, %v2105_v25  ;;  %v2104_v30 = vmul.f32 0.03125, %v2100_v26 }
 0xae6   :  { %v2106_v31 = vsub.f32 %v2096_v22, %v2104_v30  ;;  %v2109_v32 = vmul.f32 %v2107_v28, %v2107_v28 }
 0xae8   :  { %v2113_v33 = vsel %vm557_vm0, %v2109_v32, 0.0  ;;  %v2108_v34 = vmul.f32 %v2106_v31, %v2106_v31 }
 0xae9   :  { %2114 = vadd.xlane.f32.xlu1 %v2113_v33 }
 0xaea   :  { %v2110_v35 = vsel %vm557_vm0, %v2108_v34, 0.0 }
 0xaeb   :  { %2111 = vadd.xlane.f32.xlu0 %v2110_v35 }
 0xb72   :  { %v2115_v45 = vpop.xlane.xlu1 %2114 }
 0xb73   :  { %v2117_v46 = vmul.f32 0.03125, %v2115_v45 }
 0xb74   :  { %v2112_v47 = vpop.xlane.xlu0 %2111 }
 0xb75   :  { %v2119_v48 = vadd.f32 1e-05, %v2117_v46  ;;  %v2116_v49 = vmul.f32 0.03125, %v2112_v47  ;;  %v468_v47 = vld [vmem:[%s11839_s29 + $0x70] sm:$0xff] }
 0xb77   :  { %11415 = vrsqrt.f32 %v2119_v48  ;;  %v2118_v50 = vadd.f32 1e-05, %v2116_v49  ;;  %v492_v49 = vld [vmem:[%s11849_s9 + $0x70] sm:$0xff] }
 0xb79   :  { %11417 = vrsqrt.f32 %v2118_v50  ;;  %v467_v50 = vld [vmem:[%s11839_s29 + $0x68] sm:$0xff] }
 0xb84   :  { %v11416_v51 = vpop.eup %11415 }
 0xb85   :  { %v2123_v53 = vmul.f32 %v11416_v51, %v2107_v28  ;;  %v491_v51 = vld [vmem:[%s11849_s9 + $0x68] sm:$0xff] }
 0xb86   :  { %v11418_v54 = vpop.eup %11417 }
 0xb87   :  { %v2122_v55 = vmul.f32 %v11418_v54, %v2106_v31  ;;  %v2131_v56 = vmul.f32 %v9841_v52, %v2123_v53  ;;  %v490_v53 = vld [vmem:[%s11849_s9 + $0x60] sm:$0xff]  ;;  %v509_v54 = vld [vmem:[%s11854_s8 + $0x78] sm:$0xff]  ;;  %s12871_s9 = sld [smem:[#allocation30_spill]] }
 0xb89   :  { %v2130_v58 = vmul.f32 %v9841_v52, %v2122_v55  ;;  %v12056_v60 = vadd.f32 %v9842_v57, %v2131_v56  ;;  %v466_v52 = vld [vmem:[%s11839_s29 + $0x60] sm:$0xff]  ;;  %v508_v55 = vld [vmem:[%s11854_s8 + $0x70] sm:$0xff]  ;;  %v507_v56 = vld [vmem:[%s11854_s8 + $0x68] sm:$0xff]  ;;  %s12873_s29 = sld [smem:[#allocation28_spill]] }
 0xb8b   :  { %v12054_v59 = vadd.f32 %v9842_v57, %v2130_v58  ;;  %v506_v57 = vld [vmem:[%s11854_s8 + $0x60] sm:$0xff]  ;;  %s12874_s8 = sld [smem:[#allocation31_spill]] }
 0xb8d   :  { %10647 = vmatprep.mubr.msk.f32.mxu0 %vm557_vm0, %v12054_v59  ;;  %10669 = vmatprep.mubr.msk.f32.mxu1 %vm557_vm0, %v12054_v59 }
 0xb8e   :  { %10648 = vmatmul.mubr.msk.f32.vlgmr.msra.gmra.mxu0 %vm557_vm0, %v12056_v60  ;;  %10670 = vmatmul.mubr.msk.f32.vlgmr.msra.gmra.mxu1 %vm557_vm0, %v12056_v60 }
 0xb8f   :  { %10651 = vmatpush3.msra.mxu0 %v465_v44  ;;  %10658 = vmatprep.mubr.msk.f32.mxu0 %vm557_vm0, %v12054_v59 }
 0xb90   :  { %10652 = vmatprep.subr.mxu0 %v464_v61  ;;  %10679 = vmatprep.mubr.msk.f32.mxu1 %vm11614_vm1, %v11613_v10 }
 0xb91   :  { %10653 = vmatpush3.msra.mxu0 %v464_v61 }
 0xb92   :  { %10654 = vmatprep.subr.mxu0 %v463_v62 }
 0xb93   :  { %10655 = vmatpush3.msra.mxu0 %v463_v62 }
 0xb94   :  { %10656 = vmatprep.subr.mxu0 %v462_v63 }
 0xb95   :  { %10657 = vmatpush3.msra.mxu0 %v462_v63 }
 0xb96   :  { %10659 = vmatmul.mubr.msk.f32.vlgmr.msra.gmra.mxu0 %vm557_vm0, %v12056_v60  ;;  %10672 = vmatprep.subr.mxu0 %v11613_v10 }
 0xb97   :  { %10674 = vmatprep.mubr.msk.f32.mxu0 %vm11614_vm1, %v11613_v10 }
 0xc4e   :  { %v10649_v0 = vpop.f32.mrf.mxu0  ;;  %v10671_v3 = vpop.f32.mrf.mxu1 }
 0xc4f   :  { %v2224_v13 = vadd.f32 %v10649_v0, %v9843_v5  ;;  %v2386_v15 = vadd.f32 %v10671_v3, %v9849_v7 }
 0xc50   :  { %v2218_v1 = vpop.f32.mrf.mxu0  ;;  %v2380_v14 = vpop.f32.mrf.mxu1 }
 0xc51   :  { %v2219_v17 = vadd.f32 %v9843_v5, %v2218_v1  ;;  %v2381_v18 = vadd.f32 %v9849_v7, %v2380_v14 }
 0xc56   :  { %v10660_v4 = vpop.f32.mrf.mxu0 }
 0xc57   :  { %v2305_v6 = vadd.f32 %v10660_v4, %v9846_v2  ;;  %v9858_v4 = vld [vmem:[%s11829_s24 + $0x3] ss:$0 sm:$0xff]  ;;  %s12878_s24 = sld [smem:[#allocation29_spill]] }
 0xc58   :  { %v2299_v11 = vpop.f32.mrf.mxu0 }
 0xc59   :  { %v2300_v12 = vadd.f32 %v9846_v2, %v2299_v11  ;;  %10678 = vmatpush3.xpose.msk.msra.mxu1 %vm801_vm2, %v2305_v6  ;;  %v9861_v2 = vld [vmem:[%s11819_s21 + $0x3] ss:$0 sm:$0xff]  ;;  %s12872_s21 = sld [smem:[#allocation5_spill]] }
 0xc5a   :  { %10687 = vmatprep.subr.mxu1 %v11613_v10 }
 0xc5b   :  { %10673 = vmatpush3.xpose.msk.msra.mxu0 %vm801_vm2, %v2300_v12  ;;  %v9864_v12 = vld [vmem:[%s11834_s4 + $0x3] ss:$0 sm:$0xff]  ;;  %s12882_s4 = sld [smem:[#allocation38_spill]] }
 0xc5c   :  { %10680 = vmatmul.mubr.msk.f32.vlgmr.msra.gmra.mxu1 %vm801_vm2, %v2224_v13  ;;  %10682 = vmatprep.subr.mxu0 %v11613_v10 }
 0xc5d   :  { %10688 = vmatpush3.msra.mxu1 %v2386_v15  ;;  %10689 = vmatprep.mubr.msk.f32.mxu1 %vm11614_vm1, %v11613_v10 }
 0xc5e   :  { %10675 = vmatmul.mubr.msk.f32.vlgmr.msra.gmra.mxu0 %vm801_vm2, %v2219_v17  ;;  %10703 = vmatprep.subr.mxu1 %v469_v8 }
 0xc5f   :  { %10683 = vmatpush3.msra.mxu0 %v2381_v18  ;;  %10684 = vmatprep.mubr.msk.f32.mxu0 %vm11614_vm1, %v11613_v10 }
 0xc60   :  { %10692 = vmatprep.subr.mxu0 %v493_v40 }
 0xd1c   :  { %v2537_v19 = vpop.f32.mrf.mxu1 }
 0xd1d   :  { %v2542_v20 = vmul.f32 0.25, %v2537_v19 }
 0xd1e   :  { %v2461_v21 = vpop.f32.mrf.mxu0  ;;  %v10681_v16 = vpop.f32.mrf.mxu1 }
 0xd1f   :  { %v2541_v22 = vmul.f32 0.25, %v2461_v21  ;;  %v2544_v23 = vadd.f32 %v2542_v20, %v11933_v38 }
 0xd20   :  { %v10676_v24 = vpop.f32.mrf.mxu0 }
 0xd21   :  { %v2548_v25 = vsel %vm968_vm3, %v2544_v23, -inf  ;;  %v2543_v26 = vadd.f32 %v2541_v22, %v11935_v42 }
 0xd22   :  { %2549 = vmax.xlane.f32.xlu0 %v2548_v25 }
 0xd23   :  { %v2545_v28 = vsel %vm968_vm3, %v2543_v26, -inf }
 0xd24   :  { %2546 = vmax.xlane.f32.xlu1 %v2545_v28 }
 0xdab   :  { %v2550_v30 = vpop.xlane.xlu0 %2549 }
 0xdac   :  { %v2552_v31 = vsub.f32 %v2544_v23, %v2550_v30 }
 0xdad   :  { %v2547_v32 = vpop.xlane.xlu1 %2546 }
 0xdae   :  { %v2555_v33 = vmul.f32 1.442695, %v2552_v31  ;;  %v2551_v34 = vsub.f32 %v2543_v26, %v2547_v32 }
 0xdb0   :  { %11419 = vpow2.f32 %v2555_v33  ;;  %v2553_v35 = vmul.f32 1.442695, %v2551_v34 }
 0xdb2   :  { %11421 = vpow2.f32 %v2553_v35 }
 0xdbd   :  { %v11420_v36 = vpop.eup %11419 }
 0xdbe   :  { %v2560_v37 = vsel %vm968_vm3, %v11420_v36, 0.0 }
 0xdbf   :  { %v11422_v9 = vpop.eup %11421  ;;  %2561 = vadd.xlane.f32.xlu0 %v2560_v37 }
 0xdc0   :  { %v2557_v39 = vsel %vm968_vm3, %v11422_v9, 0.0 }
 0xdc1   :  { %2558 = vadd.xlane.f32.xlu1 %v2557_v39 }
 0xe48   :  { %v2562_v41 = vpop.xlane.xlu0 %2561 }
 0xe49   :  { %11423 = vrcp.f32 %v2562_v41 }
 0xe4a   :  { %v2559_v43 = vpop.xlane.xlu1 %2558 }
 0xe4b   :  { %11425 = vrcp.f32 %v2559_v43 }
 0xe56   :  { %v11424_v44 = vpop.eup %11423 }
 0xe57   :  { %v2566_v45 = vmul.f32 %v11424_v44, %v11420_v36 }
 0xe58   :  { %v11426_v46 = vpop.eup %11425 }
 0xe59   :  { %10690 = vmatmul.mubr.msk.f32.vlgmr.msra.gmra.mxu1 %vm968_vm3, %v2566_v45  ;;  %v2564_v48 = vmul.f32 %v11426_v46, %v11422_v9  ;;  %v475_v9 = vld [vmem:[%s11844_s30 + $0x28] sm:$0xff]  ;;  %v474_v45 = vld [vmem:[%s11844_s30 + $0x20] sm:$0xff]  ;;  %v477_v46 = vld [vmem:[%s11844_s30 + $0x38] sm:$0xff] }
 0xe5a   :  { %10704 = vmatpush3.msra.mxu1 %v469_v8  ;;  %10711 = vmatprep.mubr.msk.f32.mxu1 %vm557_vm0, %v12054_v59 }
 0xe5b   :  { %10705 = vmatprep.subr.mxu1 %v468_v47  ;;  %10685 = vmatmul.mubr.msk.f32.vlgmr.msra.gmra.mxu0 %vm968_vm3, %v2564_v48 }
 0xe5c   :  { %10693 = vmatpush3.msra.mxu0 %v493_v40  ;;  %10706 = vmatpush3.msra.mxu1 %v468_v47  ;;  %v476_v47 = vld [vmem:[%s11844_s30 + $0x30] sm:$0xff]  ;;  %s12879_s30 = sld [smem:[#allocation25_spill]] }
 0xe5d   :  { %10694 = vmatprep.subr.mxu0 %v492_v49  ;;  %10700 = vmatprep.mubr.msk.f32.mxu0 %vm557_vm0, %v12054_v59 }
 0xe5e   :  { %10707 = vmatprep.subr.mxu1 %v467_v50  ;;  %10695 = vmatpush3.msra.mxu0 %v492_v49 }
 0xe5f   :  { %10708 = vmatpush3.msra.mxu1 %v467_v50  ;;  %10696 = vmatprep.subr.mxu0 %v491_v51 }
 0xe60   :  { %10709 = vmatprep.subr.mxu1 %v466_v52  ;;  %10697 = vmatpush3.msra.mxu0 %v491_v51 }
 0xe61   :  { %10710 = vmatpush3.msra.mxu1 %v466_v52  ;;  %10698 = vmatprep.subr.mxu0 %v490_v53 }
 0xe62   :  { %10712 = vmatmul.mubr.msk.f32.vlgmr.msra.gmra.mxu1 %vm557_vm0, %v12056_v60  ;;  %10699 = vmatpush3.msra.mxu0 %v490_v53  ;;  %v9877_v53 = vld [vmem:[%s11824_s12 + $0x1] ss:$0 sm:$0xff]  ;;  %s12880_s12 = sld [smem:[#allocation10_spill]] }
 0xe63   :  { %10701 = vmatmul.mubr.msk.f32.vlgmr.msra.gmra.mxu0 %vm557_vm0, %v12056_v60  ;;  %10714 = vmatprep.subr.mxu0 %v509_v54 }
 0xe64   :  { %10715 = vmatpush3.msra.mxu0 %v509_v54  ;;  %10722 = vmatprep.mubr.msk.f32.mxu0 %vm557_vm0, %v12054_v59 }
 0xe65   :  { %10716 = vmatprep.subr.mxu0 %v508_v55  ;;  %10725 = vmatprep.subr.mxu1 %v11613_v10 }
 0xe66   :  { %10717 = vmatpush3.msra.mxu0 %v508_v55  ;;  %10727 = vmatprep.mubr.msk.f32.mxu1 %vm11614_vm1, %v11613_v10 }
 0xe67   :  { %10718 = vmatprep.subr.mxu0 %v507_v56 }
 0xe68   :  { %10719 = vmatpush3.msra.mxu0 %v507_v56 }
 0xe69   :  { %10720 = vmatprep.subr.mxu0 %v506_v57 }
 0xe6a   :  { %10721 = vmatpush3.msra.mxu0 %v506_v57 }
 0xe6b   :  { %10723 = vmatmul.mubr.msk.f32.vlgmr.msra.gmra.mxu0 %vm557_vm0, %v12056_v60  ;;  %10735 = vmatprep.subr.mxu0 %v11613_v10 }
 0xe6c   :  { %10737 = vmatprep.mubr.msk.f32.mxu0 %vm11614_vm1, %v11613_v10 }
 0xf19   :  { %v12129_v58 = vpop.f32.mrf.mxu1 }
 0xf1b   :  { %v12131_v61 = vpop.f32.mrf.mxu0  ;;  %v10691_v62 = vpop.f32.mrf.mxu1 }
 0xf1d   :  { %v10686_v63 = vpop.f32.mrf.mxu0 }
 0xf22   :  { %v10713_v0 = vpop.f32.mrf.mxu1 }
 0xf23   :  { %v10702_v1 = vpop.f32.mrf.mxu0  ;;  %v2872_v11 = vadd.f32 %v10713_v0, %v9861_v2 }
 0xf24   :  { %v2866_v3 = vpop.f32.mrf.mxu1  ;;  %v2791_v14 = vadd.f32 %v10702_v1, %v9858_v4 }
 0xf25   :  { %v2867_v5 = vadd.f32 %v9861_v2, %v2866_v3  ;;  %v2785_v6 = vpop.f32.mrf.mxu0 }
 0xf26   :  { %v2786_v7 = vadd.f32 %v9858_v4, %v2785_v6 }
 0xf27   :  { %10726 = vmatpush3.xpose.msk.msra.mxu1 %vm801_vm2, %v2867_v5 }
 0xf28   :  { %10730 = vmatprep.subr.mxu1 %v11613_v10 }
 0xf2a   :  { %10728 = vmatmul.mubr.msk.f32.vlgmr.msra.gmra.mxu1 %vm801_vm2, %v2786_v7 }
 0xf2b   :  { %10731 = vmatpush3.xpose.msk.msra.mxu1 %vm801_vm2, %v2872_v11  ;;  %v10724_v13 = vpop.f32.mrf.mxu0  ;;  %10732 = vmatprep.mubr.msk.f32.mxu1 %vm11614_vm1, %v11613_v10 }
 0xf2c   :  { %v2953_v15 = vadd.f32 %v10724_v13, %v9864_v12  ;;  %10740 = vmatprep.subr.mxu1 %v11613_v10 }
 0xf2d   :  { %v2947_v17 = vpop.f32.mrf.mxu0 }
 0xf2e   :  { %v2948_v18 = vadd.f32 %v9864_v12, %v2947_v17  ;;  %10733 = vmatmul.mubr.msk.f32.vlgmr.msra.gmra.mxu1 %vm801_vm2, %v2791_v14  ;;  %v413_v14 = vld [vmem:[%s11784_s27 + $0x38] sm:$0xff]  ;;  %v411_v17 = vld [vmem:[%s11784_s27 + $0x28] sm:$0xff] }
 0xf2f   :  { %10741 = vmatpush3.msra.mxu1 %v2953_v15  ;;  %10742 = vmatprep.mubr.msk.f32.mxu1 %vm11614_vm1, %v11613_v10  ;;  %v412_v15 = vld [vmem:[%s11784_s27 + $0x30] sm:$0xff] }
 0xf30   :  { %10736 = vmatpush3.msra.mxu0 %v2948_v18  ;;  %10752 = vmatprep.subr.mxu1 %v475_v9  ;;  %v410_v18 = vld [vmem:[%s11784_s27 + $0x20] sm:$0xff]  ;;  %s12881_s27 = sld [smem:[#allocation12_spill]] }
 0xf31   :  { %10745 = vmatprep.subr.mxu0 %v477_v46 }
 0xfea   :  { %v3028_v19 = vpop.f32.mrf.mxu1 }
 0xfeb   :  { %v3108_v20 = vmul.f32 0.25, %v3028_v19  ;;  %v373_v19 = vld [vmem:[%s12871_s9 + $0x18] sm:$0xff] }
 0xfec   :  { %v10729_v21 = vpop.f32.mrf.mxu1 }
 0xfed   :  { %v3110_v16 = vadd.f32 %v3108_v20, %v11935_v42  ;;  %v431_v20 = vld [vmem:[%s11794_s17 + $0x78] sm:$0xff]  ;;  %v430_v21 = vld [vmem:[%s11794_s17 + $0x70] sm:$0xff] }
 0xfee   :  { %v3104_v22 = vpop.f32.mrf.mxu1 }
 0xfef   :  { %v3109_v23 = vmul.f32 0.25, %v3104_v22  ;;  %v3112_v24 = vsel %vm968_vm3, %v3110_v16, -inf  ;;  %v428_v22 = vld [vmem:[%s11794_s17 + $0x60] sm:$0xff] }
 0xff0   :  { %3113 = vmax.xlane.f32.xlu0 %v3112_v24  ;;  %v10734_v25 = vpop.f32.mrf.mxu1 }
 0xff1   :  { %v3111_v26 = vadd.f32 %v3109_v23, %v11933_v38  ;;  %v427_v23 = vld [vmem:[%s11794_s17 + $0x58] sm:$0xff] }
 0xff3   :  { %v3115_v28 = vsel %vm968_vm3, %v3111_v26, -inf }
 0xff4   :  { %3116 = vmax.xlane.f32.xlu1 %v3115_v28 }
0x1079   :  { %v3114_v30 = vpop.xlane.xlu0 %3113 }
0x107a   :  { %v3118_v31 = vsub.f32 %v3110_v16, %v3114_v30  ;;  %v429_v16 = vld [vmem:[%s11794_s17 + $0x68] sm:$0xff] }
0x107c   :  { %v3120_v32 = vmul.f32 1.442695, %v3118_v31 }
0x107d   :  { %v3117_v33 = vpop.xlane.xlu1 %3116 }
0x107e   :  { %11427 = vpow2.f32 %v3120_v32  ;;  %v3119_v34 = vsub.f32 %v3111_v26, %v3117_v33  ;;  %v9878_v33 = vld [vmem:[%s11804_s14 + $0x1] ss:$0 sm:$0xff]  ;;  %s12875_s14 = sld [smem:[#allocation24_spill]] }
0x1080   :  { %v3122_v35 = vmul.f32 1.442695, %v3119_v34 }
0x1082   :  { %11429 = vpow2.f32 %v3122_v35 }
0x108b   :  { %v11428_v42 = vpop.eup %11427 }
0x108c   :  { %v3124_v36 = vsel %vm968_vm3, %v11428_v42, 0.0 }
0x108d   :  { %3125 = vadd.xlane.f32.xlu0 %v3124_v36 }
0x108f   :  { %v11430_v37 = vpop.eup %11429 }
0x1090   :  { %v3127_v38 = vsel %vm968_vm3, %v11430_v37, 0.0 }
0x1091   :  { %3128 = vadd.xlane.f32.xlu1 %v3127_v38 }
0x1116   :  { %v3126_v39 = vpop.xlane.xlu0 %3125 }
0x1117   :  { %11431 = vrcp.f32 %v3126_v39 }
0x111a   :  { %v3129_v8 = vpop.xlane.xlu1 %3128 }
0x111b   :  { %11433 = vrcp.f32 %v3129_v8  ;;  %v12188_v8 = vld [vmem:[%s12872_s21] sm:$0xff] }
0x1124   :  { %v11432_v40 = vpop.eup %11431 }
0x1125   :  { %v3131_v41 = vmul.f32 %v11432_v40, %v11428_v42  ;;  %v372_v40 = vld [vmem:[%s12871_s9 + $0x10] sm:$0xff] }
0x1127   :  { %10738 = vmatmul.mubr.msk.f32.vlgmr.msra.gmra.mxu0 %vm968_vm3, %v3131_v41  ;;  %v371_v41 = vld [vmem:[%s12871_s9 + $0x8] sm:$0xff] }
0x1128   :  { %v11434_v43 = vpop.eup %11433  ;;  %10746 = vmatpush3.msra.mxu0 %v477_v46  ;;  %v348_v46 = vld [vmem:[%s12873_s29 + $0x10] sm:$0xff] }
0x1129   :  { %v3133_v44 = vmul.f32 %v11434_v43, %v11430_v37  ;;  %10747 = vmatprep.subr.mxu0 %v476_v47  ;;  %v9879_v37 = vld [vmem:[%s11799_s19 + $0x1] ss:$0 sm:$0xff]  ;;  %s12877_s19 = sld [smem:[#allocation27_spill]] }
0x112a   :  { %10748 = vmatpush3.msra.mxu0 %v476_v47  ;;  %v370_v43 = vld [vmem:[%s12871_s9] sm:$0xff]  ;;  %v347_v47 = vld [vmem:[%s12873_s29 + $0x8] sm:$0xff] }
0x112b   :  { %10743 = vmatmul.mubr.msk.f32.vlgmr.msra.gmra.mxu1 %vm968_vm3, %v3133_v44  ;;  %10759 = vmatprep.subr.mxu0 %v413_v14  ;;  %v12200_v44 = vld [vmem:[%s12872_s21 + $0x8] sm:$0xff] }
0x112c   :  { %10753 = vmatpush3.msra.mxu1 %v475_v9  ;;  %10756 = vmatprep.mubr.msk.f32.mxu1 %vm801_vm2, %v12131_v61 }
0x112d   :  { %10754 = vmatprep.subr.mxu1 %v474_v45 }
0x112e   :  { %10755 = vmatpush3.msra.mxu1 %v474_v45  ;;  %v349_v45 = vld [vmem:[%s12873_s29 + $0x18] sm:$0xff] }
0x112f   :  { %10757 = vmatmul.mubr.msk.f32.vlgmr.msra.gmra.mxu1 %vm801_vm2, %v12129_v58  ;;  %10770 = vmatprep.subr.mxu1 %v431_v20 }
0x1130   :  { %10771 = vmatpush3.msra.mxu1 %v431_v20 }
0x1131   :  { %10772 = vmatprep.subr.mxu1 %v430_v21 }
0x1132   :  { %10773 = vmatpush3.msra.mxu1 %v430_v21 }
0x1133   :  { %10774 = vmatprep.subr.mxu1 %v429_v16 }
0x1134   :  { %10775 = vmatpush3.msra.mxu1 %v429_v16 }
0x1135   :  { %10776 = vmatprep.subr.mxu1 %v428_v22 }
0x1136   :  { %10777 = vmatpush3.msra.mxu1 %v428_v22 }
0x1137   :  { %10778 = vmatprep.subr.mxu1 %v427_v23 }
0x1138   :  { %10779 = vmatpush3.msra.mxu1 %v427_v23 }
0x11e7   :  { %v3203_v48 = vpop.f32.mrf.mxu0 }
0x11e8   :  { %10749 = vmatprep.mubr.msk.f32.mxu0 %vm801_vm2, %v3203_v48  ;;  %v346_v48 = vld [vmem:[%s12873_s29] sm:$0xff] }
0x11e9   :  { %v10739_v49 = vpop.f32.mrf.mxu0 }
0x11ea   :  { %v426_v49 = vld [vmem:[%s11794_s17 + $0x50] sm:$0xff] }
0x11eb   :  { %v3276_v50 = vpop.f32.mrf.mxu1  ;;  %10780 = vmatprep.subr.mxu1 %v426_v49 }
0x11ec   :  { %10750 = vmatmul.mubr.msk.f32.vlgmr.msra.gmra.mxu0 %vm801_vm2, %v3276_v50  ;;  %10781 = vmatpush3.msra.mxu1 %v426_v49  ;;  %v425_v50 = vld [vmem:[%s11794_s17 + $0x48] sm:$0xff] }
0x11ed   :  { %v10744_v51 = vpop.f32.mrf.mxu1  ;;  %10760 = vmatpush3.msra.mxu0 %v413_v14  ;;  %10782 = vmatprep.subr.mxu1 %v425_v50  ;;  %v9896_v14 = vld [vmem:[%s12877_s19] ss:$0 sm:$0xff] }
0x11ee   :  { %10761 = vmatprep.subr.mxu0 %v412_v15  ;;  %10783 = vmatpush3.msra.mxu1 %v425_v50  ;;  %v424_v51 = vld [vmem:[%s11794_s17 + $0x40] sm:$0xff]  ;;  %s12876_s17 = sld [smem:[#allocation26_spill]]  ;;  %v352_v50 = vld [vmem:[%s12873_s29 + $0x30] sm:$0xff] }
0x11ef   :  { %v10758_v52 = vpop.f32.mrf.mxu1  ;;  %10762 = vmatpush3.msra.mxu0 %v412_v15  ;;  %10784 = vmatprep.subr.mxu1 %v424_v51  ;;  %v548_v15 = vand.u32 127, %v534_v27 }
0x11f0   :  { %10763 = vmatprep.subr.mxu0 %v411_v17  ;;  %10785 = vmatpush3.msra.mxu1 %v424_v51 }
0x11f1   :  { %v3433_v56 = vpop.f32.mrf.mxu1  ;;  %10764 = vmatpush3.msra.mxu0 %v411_v17  ;;  %vm549_vm5 = vcmp.gt.s32.totalorder %v548_v15, %v11928_v29  ;;  %v390_v15 = vld [vmem:[%s12874_s8 + $0x20] sm:$0xff] }
0x11f2   :  { %10765 = vmatprep.subr.mxu0 %v410_v18  ;;  %v12252_v16 = vsel %vm549_vm5, -1e+30, %v11613_v10 }
0x11f3   :  { %10766 = vmatpush3.msra.mxu0 %v410_v18 }
0x11f4   :  { %10789 = vmatprep.subr.mxu0 %v373_v19 }
0x12ac   :  { %v10751_v54 = vpop.f32.mrf.mxu0 }
0x12ad   :  { %v3439_v55 = vadd.f32 %v10758_v52, %v10751_v54  ;;  %v389_v52 = vld [vmem:[%s12874_s8 + $0x18] sm:$0xff] }
0x12ae   :  { %v3352_v57 = vpop.f32.mrf.mxu0  ;;  %10811 = vmatprep.subr.mxu1 %v389_v52 }
0x12af   :  { %v3449_v58 = vadd.f32 %v9877_v53, %v3439_v55  ;;  %v3434_v61 = vadd.f32 %v3433_v56, %v3352_v57 }
0x12b1   :  { %v3448_v62 = vadd.f32 %v9877_v53, %v3434_v61  ;;  %v3451_v63 = vadd.f32 %v3449_v58, %v12056_v60  ;;  %v9880_v53 = vld [vmem:[%s12867_s0 + $0x1] ss:$0 sm:$0xff]  ;;  %s12896_s0 = sld [smem:[#allocation16_spill]] }
0x12b3   :  { %v3455_v0 = vsel %vm557_vm0, %v3451_v63, 0.0  ;;  %v3450_v1 = vadd.f32 %v3448_v62, %v12054_v59  ;;  %v388_v62 = vld [vmem:[%s12874_s8 + $0x10] sm:$0xff] }
0x12b4   :  { %3456 = vadd.xlane.f32.xlu1 %v3455_v0 }
0x12b5   :  { %v3452_v2 = vsel %vm557_vm0, %v3450_v1, 0.0 }
0x12b6   :  { %3453 = vadd.xlane.f32.xlu0 %v3452_v2 }
0x133d   :  { %v3457_v3 = vpop.xlane.xlu1 %3456 }
0x133e   :  { %v3459_v4 = vmul.f32 0.03125, %v3457_v3  ;;  %v9893_v3 = vld [vmem:[%s12875_s14] ss:$0 sm:$0xff] }
0x133f   :  { %v3454_v5 = vpop.xlane.xlu0 %3453 }
0x1340   :  { %v3461_v6 = vsub.f32 %v3451_v63, %v3459_v4  ;;  %v3458_v7 = vmul.f32 0.03125, %v3454_v5  ;;  %v387_v63 = vld [vmem:[%s12874_s8 + $0x8] sm:$0xff]  ;;  %v9890_v5 = vld [vmem:[%s12876_s17] ss:$0 sm:$0xff] }
0x1342   :  { %v3460_v11 = vsub.f32 %v3450_v1, %v3458_v7  ;;  %v3463_v12 = vmul.f32 %v3461_v6, %v3461_v6  ;;  %v386_v1 = vld [vmem:[%s12874_s8] sm:$0xff] }
0x1344   :  { %v3467_v60 = vsel %vm557_vm0, %v3463_v12, 0.0  ;;  %v3462_v13 = vmul.f32 %v3460_v11, %v3460_v11 }
0x1345   :  { %3468 = vadd.xlane.f32.xlu1 %v3467_v60 }
0x1346   :  { %v3464_v59 = vsel %vm557_vm0, %v3462_v13, 0.0 }
0x1347   :  { %3465 = vadd.xlane.f32.xlu0 %v3464_v59 }
0x13ce   :  { %v3469_v24 = vpop.xlane.xlu1 %3468 }
0x13cf   :  { %v3471_v25 = vmul.f32 0.03125, %v3469_v24 }
0x13d0   :  { %v3466_v26 = vpop.xlane.xlu0 %3465 }
0x13d1   :  { %v3473_v28 = vadd.f32 1e-05, %v3471_v25  ;;  %v3470_v30 = vmul.f32 0.03125, %v3466_v26 }
0x13d3   :  { %11435 = vrsqrt.f32 %v3473_v28  ;;  %v3472_v31 = vadd.f32 1e-05, %v3470_v30 }
0x13d5   :  { %11437 = vrsqrt.f32 %v3472_v31 }
0x13e0   :  { %v11436_v32 = vpop.eup %11435 }
0x13e1   :  { %v3477_v34 = vmul.f32 %v11436_v32, %v3461_v6 }
0x13e2   :  { %v11438_v35 = vpop.eup %11437 }
0x13e3   :  { %v3476_v42 = vmul.f32 %v11438_v35, %v3460_v11  ;;  %v3485_v36 = vmul.f32 %v9878_v33, %v3477_v34 }
0x13e5   :  { %v3484_v38 = vmul.f32 %v9878_v33, %v3476_v42  ;;  %v12185_v39 = vadd.f32 %v9879_v37, %v3485_v36 }
0x13e7   :  { %v12183_v9 = vadd.f32 %v9879_v37, %v3484_v38 }
0x13e9   :  { %10767 = vmatprep.mubr.msk.f32.mxu0 %vm557_vm0, %v12183_v9 }
0x13ea   :  { %10768 = vmatmul.mubr.msk.f32.vlgmr.msra.gmra.mxu0 %vm557_vm0, %v12185_v39 }
0x13eb   :  { %10790 = vmatpush3.msra.mxu0 %v373_v19  ;;  %10797 = vmatprep.mubr.msk.f32.mxu0 %vm557_vm0, %v12188_v8 }
0x13ec   :  { %10791 = vmatprep.subr.mxu0 %v372_v40 }
0x13ed   :  { %10792 = vmatpush3.msra.mxu0 %v372_v40 }
0x13ee   :  { %10793 = vmatprep.subr.mxu0 %v371_v41 }
0x13ef   :  { %10794 = vmatpush3.msra.mxu0 %v371_v41  ;;  %v353_v41 = vld [vmem:[%s12873_s29 + $0x38] sm:$0xff] }
0x13f0   :  { %10795 = vmatprep.subr.mxu0 %v370_v43 }
0x13f1   :  { %10796 = vmatpush3.msra.mxu0 %v370_v43  ;;  %v377_v43 = vld [vmem:[%s12871_s9 + $0x38] sm:$0xff] }
0x13f2   :  { %10798 = vmatmul.mubr.msk.f32.vlgmr.msra.gmra.mxu0 %vm557_vm0, %v12200_v44  ;;  %10800 = vmatprep.subr.mxu0 %v349_v45 }
0x13f3   :  { %10801 = vmatpush3.msra.mxu0 %v349_v45  ;;  %10808 = vmatprep.mubr.msk.f32.mxu0 %vm557_vm0, %v12188_v8 }
0x13f4   :  { %10802 = vmatprep.subr.mxu0 %v348_v46 }
0x13f5   :  { %10803 = vmatpush3.msra.mxu0 %v348_v46 }
0x13f6   :  { %10804 = vmatprep.subr.mxu0 %v347_v47 }
0x13f7   :  { %10805 = vmatpush3.msra.mxu0 %v347_v47 }
0x13f8   :  { %10806 = vmatprep.subr.mxu0 %v346_v48 }
0x13f9   :  { %10807 = vmatpush3.msra.mxu0 %v346_v48 }
0x13fa   :  { %10809 = vmatmul.mubr.msk.f32.vlgmr.msra.gmra.mxu0 %vm557_vm0, %v12200_v44  ;;  %10822 = vmatprep.subr.mxu0 %v11613_v10 }
0x13fb   :  { %10824 = vmatprep.mubr.msk.f32.mxu0 %vm11614_vm1, %v11613_v10 }
0x14aa   :  { %v10769_v54 = vpop.f32.mrf.mxu0 }
0x14ab   :  { %v3578_v55 = vadd.f32 %v10769_v54, %v9880_v53  ;;  %v375_v54 = vld [vmem:[%s12871_s9 + $0x28] sm:$0xff] }
0x14ac   :  { %v3572_v56 = vpop.f32.mrf.mxu0 }
0x14ad   :  { %v3573_v57 = vadd.f32 %v9880_v53, %v3572_v56  ;;  %v3582_v61 = vmax.f32 %v3578_v55, 0.0  ;;  %v351_v53 = vld [vmem:[%s12873_s29 + $0x28] sm:$0xff]  ;;  %v350_v55 = vld [vmem:[%s12873_s29 + $0x20] sm:$0xff] }
0x14ae   :  { %v374_v56 = vld [vmem:[%s12871_s9 + $0x20] sm:$0xff] }
0x14af   :  { %v3581_v58 = vmax.f32 %v3573_v57, 0.0 }
0x14b1   :  { %10786 = vmatprep.mubr.msk.f32.mxu1 %vm2014_vm4, %v3581_v58 }
0x14b2   :  { %10787 = vmatmul.mubr.msk.f32.vlgmr.msra.gmra.mxu1 %vm2014_vm4, %v3582_v61  ;;  %v10799_v0 = vpop.f32.mrf.mxu0 }
0x14b3   :  { %10812 = vmatpush3.msra.mxu1 %v389_v52  ;;  %10819 = vmatprep.mubr.msk.f32.mxu1 %vm557_vm0, %v12188_v8  ;;  %v3840_v12 = vadd.f32 %v10799_v0, %v9890_v5  ;;  %v376_v52 = vld [vmem:[%s12871_s9 + $0x30] sm:$0xff]  ;;  %v9908_v0 = vld [vmem:[%s12875_s14 + $0x1] ss:$0 sm:$0xff] }
0x14b4   :  { %10813 = vmatprep.subr.mxu1 %v388_v62  ;;  %v3834_v2 = vpop.f32.mrf.mxu0 }
0x14b5   :  { %10814 = vmatpush3.msra.mxu1 %v388_v62  ;;  %v3835_v60 = vadd.f32 %v9890_v5, %v3834_v2  ;;  %v9905_v2 = vld [vmem:[%s12876_s17 + $0x1] ss:$0 sm:$0xff] }
0x14b6   :  { %10815 = vmatprep.subr.mxu1 %v387_v63 }
0x14b7   :  { %10816 = vmatpush3.msra.mxu1 %v387_v63 }
0x14b8   :  { %10817 = vmatprep.subr.mxu1 %v386_v1 }
0x14b9   :  { %10818 = vmatpush3.msra.mxu1 %v386_v1 }
0x14ba   :  { %v10810_v4 = vpop.f32.mrf.mxu0  ;;  %10820 = vmatmul.mubr.msk.f32.vlgmr.msra.gmra.mxu1 %vm557_vm0, %v12200_v44  ;;  %10827 = vmatprep.subr.mxu1 %v11613_v10 }
0x14bb   :  { %v3921_v6 = vadd.f32 %v10810_v4, %v9893_v3  ;;  %10829 = vmatprep.mubr.msk.f32.mxu1 %vm11614_vm1, %v11613_v10 }
0x14bc   :  { %v3915_v7 = vpop.f32.mrf.mxu0 }
0x14bd   :  { %v3916_v11 = vadd.f32 %v9893_v3, %v3915_v7  ;;  %10828 = vmatpush3.xpose.msk.msra.mxu1 %vm801_vm2, %v3921_v6 }
0x14be   :  { %10837 = vmatprep.subr.mxu1 %v11613_v10 }
0x14bf   :  { %10823 = vmatpush3.xpose.msk.msra.mxu0 %vm801_vm2, %v3916_v11 }
0x14c0   :  { %10830 = vmatmul.mubr.msk.f32.vlgmr.msra.gmra.mxu1 %vm801_vm2, %v3840_v12  ;;  %10832 = vmatprep.subr.mxu0 %v11613_v10  ;;  %v393_v12 = vld [vmem:[%s12874_s8 + $0x38] sm:$0xff] }
0x14c1   :  { %10839 = vmatprep.mubr.msk.f32.mxu1 %vm11614_vm1, %v11613_v10 }
0x14c2   :  { %10825 = vmatmul.mubr.msk.f32.vlgmr.msra.gmra.mxu0 %vm801_vm2, %v3835_v60  ;;  %v392_v60 = vld [vmem:[%s12874_s8 + $0x30] sm:$0xff] }
0x14c3   :  { %10834 = vmatprep.mubr.msk.f32.mxu0 %vm11614_vm1, %v11613_v10 }
0x1572   :  { %v12244_v13 = vpop.f32.mrf.mxu1 }
0x1574   :  { %v12246_v59 = vpop.f32.mrf.mxu1 }
0x157a   :  { %v10821_v17 = vpop.f32.mrf.mxu1 }
0x157b   :  { %v4002_v18 = vadd.f32 %v10821_v17, %v9896_v14 }
0x157c   :  { %v3996_v19 = vpop.f32.mrf.mxu1 }
0x157d   :  { %v3997_v20 = vadd.f32 %v9896_v14, %v3996_v19  ;;  %10838 = vmatpush3.msra.mxu1 %v4002_v18  ;;  %v391_v14 = vld [vmem:[%s12874_s8 + $0x28] sm:$0xff] }
0x157e   :  { %10853 = vmatprep.subr.mxu1 %v353_v41 }
0x157f   :  { %10833 = vmatpush3.msra.mxu0 %v3997_v20 }
0x1580   :  { %v4153_v21 = vpop.f32.mrf.mxu1  ;;  %10842 = vmatprep.subr.mxu0 %v377_v43 }
0x1581   :  { %v4158_v22 = vmul.f32 0.25, %v4153_v21 }
0x1582   :  { %v4077_v23 = vpop.f32.mrf.mxu0  ;;  %v10831_v24 = vpop.f32.mrf.mxu1 }
0x1583   :  { %v4157_v25 = vmul.f32 0.25, %v4077_v23  ;;  %v4160_v26 = vadd.f32 %v4158_v22, %v12252_v16 }
0x1584   :  { %v10826_v28 = vpop.f32.mrf.mxu0 }
0x1585   :  { %v4164_v27 = vsel %vm968_vm3, %v4160_v26, -inf  ;;  %v4159_v30 = vadd.f32 %v4157_v25, %v12252_v16 }
0x1586   :  { %4165 = vmax.xlane.f32.xlu0 %v4164_v27 }
0x1587   :  { %v4161_v31 = vsel %vm968_vm3, %v4159_v30, -inf }
0x1588   :  { %4162 = vmax.xlane.f32.xlu1 %v4161_v31 }
0x160f   :  { %v4166_v29 = vpop.xlane.xlu0 %4165 }
0x1610   :  { %v4168_v32 = vsub.f32 %v4160_v26, %v4166_v29 }
0x1611   :  { %v4163_v33 = vpop.xlane.xlu1 %4162 }
0x1612   :  { %v4171_v34 = vmul.f32 1.442695, %v4168_v32  ;;  %v4167_v35 = vsub.f32 %v4159_v30, %v4163_v33  ;;  %v9883_v33 = vld [vmem:[%s12868_s5 + $0x1] ss:$0 sm:$0xff]  ;;  %s12897_s5 = sld [smem:[#allocation23_spill]] }
0x1614   :  { %11439 = vpow2.f32 %v4171_v34  ;;  %v4169_v42 = vmul.f32 1.442695, %v4167_v35  ;;  %v3662_v34 = vadd.f32 %v9883_v33, %v12246_v59 }
0x1616   :  { %11441 = vpow2.f32 %v4169_v42  ;;  %v3667_v42 = vadd.f32 %v12244_v13, %v9883_v33  ;;  %v9911_v13 = vld [vmem:[%s12877_s19 + $0x1] ss:$0 sm:$0xff] }
0x1621   :  { %v11440_v36 = vpop.eup %11439 }
0x1622   :  { %v4176_v37 = vsel %vm968_vm3, %v11440_v36, 0.0 }
0x1623   :  { %v11442_v38 = vpop.eup %11441  ;;  %4177 = vadd.xlane.f32.xlu0 %v4176_v37  ;;  %v3670_v37 = vadd.f32 %v3662_v34, %v12183_v9  ;;  %v363_v9 = vld [vmem:[%s12878_s24 + $0x8] sm:$0xff] }
0x1624   :  { %v4173_v40 = vsel %vm968_vm3, %v11442_v38, 0.0 }
0x1625   :  { %4174 = vadd.xlane.f32.xlu1 %v4173_v40  ;;  %v3672_v40 = vsel %vm557_vm0, %v3670_v37, 0.0 }
0x16ac   :  { %v4178_v45 = vpop.xlane.xlu0 %4177 }
0x16ad   :  { %11443 = vrcp.f32 %v4178_v45 }
0x16ae   :  { %v4175_v46 = vpop.xlane.xlu1 %4174 }
0x16af   :  { %11445 = vrcp.f32 %v4175_v46 }
0x16ba   :  { %v11444_v47 = vpop.eup %11443 }
0x16bb   :  { %v4182_v48 = vmul.f32 %v11444_v47, %v11440_v36 }
0x16bc   :  { %v11446_v49 = vpop.eup %11445 }
0x16bd   :  { %10840 = vmatmul.mubr.msk.f32.vlgmr.msra.gmra.mxu1 %vm968_vm3, %v4182_v48  ;;  %v4180_v51 = vmul.f32 %v11446_v49, %v11442_v38 }
0x16be   :  { %10854 = vmatpush3.msra.mxu1 %v353_v41  ;;  %10861 = vmatprep.mubr.msk.f32.mxu1 %vm557_vm0, %v12188_v8 }
0x16bf   :  { %10855 = vmatprep.subr.mxu1 %v352_v50  ;;  %10835 = vmatmul.mubr.msk.f32.vlgmr.msra.gmra.mxu0 %vm968_vm3, %v4180_v51 }
0x16c0   :  { %10843 = vmatpush3.msra.mxu0 %v377_v43  ;;  %10856 = vmatpush3.msra.mxu1 %v352_v50  ;;  %v3671_v43 = vadd.f32 %v3667_v42, %v12185_v39 }
0x16c1   :  { %10844 = vmatprep.subr.mxu0 %v376_v52  ;;  %10857 = vmatprep.subr.mxu1 %v351_v53 }
0x16c2   :  { %10845 = vmatpush3.msra.mxu0 %v376_v52  ;;  %10858 = vmatpush3.msra.mxu1 %v351_v53  ;;  %v3675_v59 = vsel %vm557_vm0, %v3671_v43, 0.0 }
0x16c3   :  { %10846 = vmatprep.subr.mxu0 %v375_v54  ;;  %10859 = vmatprep.subr.mxu1 %v350_v55 }
0x16c4   :  { %10847 = vmatpush3.msra.mxu0 %v375_v54  ;;  %10860 = vmatpush3.msra.mxu1 %v350_v55 }
0x16c5   :  { %10848 = vmatprep.subr.mxu0 %v374_v56  ;;  %10862 = vmatmul.mubr.msk.f32.vlgmr.msra.gmra.mxu1 %vm557_vm0, %v12200_v44 }
0x16c6   :  { %10849 = vmatpush3.msra.mxu0 %v374_v56  ;;  %10850 = vmatprep.mubr.msk.f32.mxu0 %vm557_vm0, %v12188_v8 }
0x16c7   :  { %10851 = vmatmul.mubr.msk.f32.vlgmr.msra.gmra.mxu0 %vm557_vm0, %v12200_v44  ;;  %10875 = vmatprep.subr.mxu1 %v11613_v10 }
0x16c8   :  { %10877 = vmatprep.mubr.msk.f32.mxu1 %vm11614_vm1, %v11613_v10  ;;  %10872 = vmatprep.mubr.msk.f32.mxu0 %vm557_vm0, %v12188_v8 }
0x16c9   :  { %10864 = vmatprep.subr.mxu0 %v393_v12 }
0x16ca   :  { %10865 = vmatpush3.msra.mxu0 %v393_v12 }
0x16cb   :  { %10866 = vmatprep.subr.mxu0 %v392_v60 }
0x16cc   :  { %10867 = vmatpush3.msra.mxu0 %v392_v60 }
0x16cd   :  { %10868 = vmatprep.subr.mxu0 %v391_v14 }
0x16ce   :  { %10869 = vmatpush3.msra.mxu0 %v391_v14 }
0x16cf   :  { %10870 = vmatprep.subr.mxu0 %v390_v15 }
0x16d0   :  { %10871 = vmatpush3.msra.mxu0 %v390_v15 }
0x16d1   :  { %10873 = vmatmul.mubr.msk.f32.vlgmr.msra.gmra.mxu0 %vm557_vm0, %v12200_v44  ;;  %10885 = vmatprep.subr.mxu0 %v11613_v10 }
0x16d2   :  { %10887 = vmatprep.mubr.msk.f32.mxu0 %vm11614_vm1, %v11613_v10 }
0x177d   :  { %v12283_v57 = vpop.f32.mrf.mxu1 }
0x177f   :  { %v12285_v58 = vpop.f32.mrf.mxu0  ;;  %v10841_v61 = vpop.f32.mrf.mxu1 }
0x1781   :  { %v10836_v62 = vpop.f32.mrf.mxu0 }
0x1785   :  { %v10863_v63 = vpop.f32.mrf.mxu1 }
0x1786   :  { %v4488_v7 = vadd.f32 %v10863_v63, %v9908_v0 }
0x1787   :  { %v10852_v1 = vpop.f32.mrf.mxu0  ;;  %v4482_v3 = vpop.f32.mrf.mxu1 }
0x1788   :  { %v4483_v4 = vadd.f32 %v9908_v0, %v4482_v3  ;;  %v4407_v11 = vadd.f32 %v10852_v1, %v9905_v2 }
0x1789   :  { %v4401_v5 = vpop.f32.mrf.mxu0 }
0x178a   :  { %v4402_v6 = vadd.f32 %v9905_v2, %v4401_v5  ;;  %10876 = vmatpush3.xpose.msk.msra.mxu1 %vm801_vm2, %v4483_v4  ;;  %v362_v4 = vld [vmem:[%s12878_s24] sm:$0xff]  ;;  %v365_v5 = vld [vmem:[%s12878_s24 + $0x18] sm:$0xff] }
0x178b   :  { %10880 = vmatprep.subr.mxu1 %v11613_v10 }
0x178d   :  { %10878 = vmatmul.mubr.msk.f32.vlgmr.msra.gmra.mxu1 %vm801_vm2, %v4402_v6  ;;  %v364_v6 = vld [vmem:[%s12878_s24 + $0x10] sm:$0xff] }
0x178e   :  { %10881 = vmatpush3.xpose.msk.msra.mxu1 %vm801_vm2, %v4488_v7  ;;  %10882 = vmatprep.mubr.msk.f32.mxu1 %vm11614_vm1, %v11613_v10 }
0x178f   :  { %10890 = vmatprep.subr.mxu1 %v11613_v10 }
0x1791   :  { %10883 = vmatmul.mubr.msk.f32.vlgmr.msra.gmra.mxu1 %vm801_vm2, %v4407_v11  ;;  %v10874_v45 = vpop.f32.mrf.mxu0 }
0x1792   :  { %10892 = vmatprep.mubr.msk.f32.mxu1 %vm11614_vm1, %v11613_v10  ;;  %v4569_v46 = vadd.f32 %v10874_v45, %v9911_v13 }
0x1793   :  { %v4563_v47 = vpop.f32.mrf.mxu0 }
0x1794   :  { %v4564_v48 = vadd.f32 %v9911_v13, %v4563_v47  ;;  %10891 = vmatpush3.msra.mxu1 %v4569_v46 }
0x1795   :  { %10902 = vmatprep.subr.mxu1 %v363_v9 }
0x1796   :  { %10886 = vmatpush3.msra.mxu0 %v4564_v48 }
0x1797   :  { %10895 = vmatprep.subr.mxu0 %v365_v5 }
0x184d   :  { %v4644_v17 = vpop.f32.mrf.mxu1 }
0x184e   :  { %v4724_v18 = vmul.f32 0.25, %v4644_v17  ;;  %v9886_v17 = vld [vmem:[%s12869_s13 + $0x1] ss:$0 sm:$0xff]  ;;  %s12898_s13 = sld [smem:[#allocation22_spill]] }
0x184f   :  { %v10879_v19 = vpop.f32.mrf.mxu1 }
0x1850   :  { %v4726_v20 = vadd.f32 %v4724_v18, %v12252_v16 }
0x1851   :  { %v4720_v21 = vpop.f32.mrf.mxu1 }
0x1852   :  { %v4725_v22 = vmul.f32 0.25, %v4720_v21  ;;  %v4728_v23 = vsel %vm968_vm3, %v4726_v20, -inf }
0x1853   :  { %4729 = vmax.xlane.f32.xlu0 %v4728_v23  ;;  %v10884_v24 = vpop.f32.mrf.mxu1 }
0x1854   :  { %v4727_v25 = vadd.f32 %v4725_v22, %v12252_v16 }
0x1856   :  { %v4731_v26 = vsel %vm968_vm3, %v4727_v25, -inf }
0x1857   :  { %4732 = vmax.xlane.f32.xlu1 %v4731_v26 }
0x18dc   :  { %v4730_v28 = vpop.xlane.xlu0 %4729 }
0x18dd   :  { %v4734_v27 = vsub.f32 %v4726_v20, %v4730_v28 }
0x18df   :  { %v4736_v30 = vmul.f32 1.442695, %v4734_v27 }
0x18e0   :  { %v4733_v31 = vpop.xlane.xlu1 %4732 }
0x18e1   :  { %11447 = vpow2.f32 %v4736_v30  ;;  %v4735_v29 = vsub.f32 %v4727_v25, %v4733_v31 }
0x18e3   :  { %v4738_v32 = vmul.f32 1.442695, %v4735_v29 }
0x18e5   :  { %11449 = vpow2.f32 %v4738_v32 }
0x18ee   :  { %v11448_v35 = vpop.eup %11447 }
0x18ef   :  { %v4740_v36 = vsel %vm968_vm3, %v11448_v35, 0.0 }
0x18f0   :  { %4741 = vadd.xlane.f32.xlu0 %v4740_v36 }
0x18f2   :  { %v11450_v38 = vpop.eup %11449 }
0x18f3   :  { %v4743_v41 = vsel %vm968_vm3, %v11450_v38, 0.0 }
0x18f4   :  { %3673 = vadd.xlane.f32.xlu0 %v3672_v40  ;;  %4744 = vadd.xlane.f32.xlu1 %v4743_v41 }
0x18f8   :  { %3676 = vadd.xlane.f32.xlu1 %v3675_v59 }
0x1979   :  { %v4742_v49 = vpop.xlane.xlu0 %4741 }
0x197a   :  { %11451 = vrcp.f32 %v4742_v49 }
0x197d   :  { %v3674_v50 = vpop.xlane.xlu0 %3673  ;;  %v4745_v51 = vpop.xlane.xlu1 %4744 }
0x197e   :  { %v3678_v52 = vmul.f32 0.03125, %v3674_v50  ;;  %11453 = vrcp.f32 %v4745_v51 }
0x1980   :  { %v3680_v39 = vsub.f32 %v3670_v37, %v3678_v52 }
0x1981   :  { %v3677_v53 = vpop.xlane.xlu1 %3676 }
0x1982   :  { %v3679_v54 = vmul.f32 0.03125, %v3677_v53  ;;  %v3682_v55 = vmul.f32 %v3680_v39, %v3680_v39  ;;  %v236_v53 = vld [vmem:[%s12880_s12] sm:$0xff] }
0x1984   :  { %v3681_v56 = vsub.f32 %v3671_v43, %v3679_v54  ;;  %v3684_v61 = vsel %vm557_vm0, %v3682_v55, 0.0 }
0x1985   :  { %3685 = vadd.xlane.f32.xlu0 %v3684_v61 }
0x1986   :  { %v3683_v62 = vmul.f32 %v3681_v56, %v3681_v56 }
0x1987   :  { %v11452_v63 = vpop.eup %11451 }
0x1988   :  { %v3687_v0 = vsel %vm557_vm0, %v3683_v62, 0.0  ;;  %v4747_v1 = vmul.f32 %v11452_v63, %v11448_v35  ;;  %v9924_v35 = vld [vmem:[%s12879_s30] ss:$0 sm:$0xff] }
0x1989   :  { %3688 = vadd.xlane.f32.xlu1 %v3687_v0 }
0x198a   :  { %10888 = vmatmul.mubr.msk.f32.vlgmr.msra.gmra.mxu0 %vm968_vm3, %v4747_v1 }
0x198b   :  { %v11454_v2 = vpop.eup %11453  ;;  %10896 = vmatpush3.msra.mxu0 %v365_v5 }
0x198c   :  { %v4749_v3 = vmul.f32 %v11454_v2, %v11450_v38  ;;  %10897 = vmatprep.subr.mxu0 %v364_v6 }
0x198d   :  { %10898 = vmatpush3.msra.mxu0 %v364_v6 }
0x198e   :  { %10893 = vmatmul.mubr.msk.f32.vlgmr.msra.gmra.mxu1 %vm968_vm3, %v4749_v3 }
0x198f   :  { %10903 = vmatpush3.msra.mxu1 %v363_v9  ;;  %10906 = vmatprep.mubr.msk.f32.mxu1 %vm801_vm2, %v12285_v58 }
0x1990   :  { %10904 = vmatprep.subr.mxu1 %v362_v4 }
0x1991   :  { %10905 = vmatpush3.msra.mxu1 %v362_v4 }
0x1992   :  { %10907 = vmatmul.mubr.msk.f32.vlgmr.msra.gmra.mxu1 %vm801_vm2, %v12283_v57  ;;  %v9887_v57 = vld [vmem:[%s12870_s25 + $0x1] ss:$0 sm:$0xff]  ;;  %s12899_s25 = sld [smem:[#allocation33_spill]] }
0x1a0e   :  { %v3686_v7 = vpop.xlane.xlu0 %3685 }
0x1a0f   :  { %v3690_v11 = vmul.f32 0.03125, %v3686_v7 }
0x1a11   :  { %v3692_v12 = vadd.f32 1e-05, %v3690_v11 }
0x1a12   :  { %v3689_v60 = vpop.xlane.xlu1 %3688 }
0x1a13   :  { %11455 = vrsqrt.f32 %v3692_v12  ;;  %v3691_v14 = vmul.f32 0.03125, %v3689_v60 }
0x1a15   :  { %v3693_v58 = vadd.f32 1e-05, %v3691_v14  ;;  %v9888_v14 = vld [vmem:[%s11864_s6] ss:$0 sm:$0xff]  ;;  %s12884_s6 = sld [smem:[#allocation19_spill]] }
0x1a17   :  { %11457 = vrsqrt.f32 %v3693_v58 }
0x1a20   :  { %v11456_v15 = vpop.eup %11455 }
0x1a21   :  { %v3696_v18 = vmul.f32 %v11456_v15, %v3680_v39  ;;  %v239_v39 = vld [vmem:[%s12880_s12 + $0x18] sm:$0xff] }
0x1a22   :  { %10920 = vmatprep.subr.mxu1 %v239_v39 }
0x1a23   :  { %v3704_v19 = vmul.f32 %v9886_v17, %v3696_v18  ;;  %10921 = vmatpush3.msra.mxu1 %v239_v39  ;;  %v262_v18 = vld [vmem:[%s12881_s27 + $0x10] sm:$0xff] }
0x1a24   :  { %v11458_v20 = vpop.eup %11457 }
0x1a25   :  { %v3712_v21 = vadd.f32 %v9887_v57, %v3704_v19  ;;  %v3697_v22 = vmul.f32 %v11458_v20, %v3681_v56  ;;  %v261_v20 = vld [vmem:[%s12881_s27 + $0x8] sm:$0xff] }
0x1a27   :  { %v3714_v23 = vsel %vm557_vm0, %v3712_v21, 0.0  ;;  %v3705_v24 = vmul.f32 %v9886_v17, %v3697_v22  ;;  %v263_v17 = vld [vmem:[%s12881_s27 + $0x18] sm:$0xff] }
0x1a28   :  { %3715 = vadd.xlane.f32.xlu0 %v3714_v23  ;;  %10909 = vmatprep.subr.mxu0 %v263_v17  ;;  %v260_v23 = vld [vmem:[%s12881_s27] sm:$0xff] }
0x1a29   :  { %v3713_v25 = vadd.f32 %v9887_v57, %v3705_v24 }
0x1a2b   :  { %v3717_v26 = vsel %vm557_vm0, %v3713_v25, 0.0 }
0x1a2c   :  { %3718 = vadd.xlane.f32.xlu1 %v3717_v26  ;;  %v279_v26 = vld [vmem:[%s12883_s28 + $0x18] sm:$0xff] }
0x1a4a   :  { %v4819_v28 = vpop.f32.mrf.mxu0 }
0x1a4b   :  { %10899 = vmatprep.mubr.msk.f32.mxu0 %vm801_vm2, %v4819_v28 }
0x1a4c   :  { %v10889_v27 = vpop.f32.mrf.mxu0 }
0x1a4e   :  { %v4892_v30 = vpop.f32.mrf.mxu1 }
0x1a4f   :  { %10900 = vmatmul.mubr.msk.f32.vlgmr.msra.gmra.mxu0 %vm801_vm2, %v4892_v30 }
0x1a50   :  { %v10894_v31 = vpop.f32.mrf.mxu1  ;;  %10910 = vmatpush3.msra.mxu0 %v263_v17 }
0x1a51   :  { %10911 = vmatprep.subr.mxu0 %v262_v18 }
0x1a52   :  { %v10908_v32 = vpop.f32.mrf.mxu1  ;;  %10912 = vmatpush3.msra.mxu0 %v262_v18  ;;  %v267_v18 = vld [vmem:[%s12881_s27 + $0x38] sm:$0xff] }
0x1a53   :  { %10913 = vmatprep.subr.mxu0 %v261_v20 }
0x1a54   :  { %v5049_v38 = vpop.f32.mrf.mxu1  ;;  %10914 = vmatpush3.msra.mxu0 %v261_v20 }
0x1a55   :  { %10915 = vmatprep.subr.mxu0 %v260_v23 }
0x1a56   :  { %10916 = vmatpush3.msra.mxu0 %v260_v23  ;;  %v266_v23 = vld [vmem:[%s12881_s27 + $0x30] sm:$0xff] }
0x1a57   :  { %10931 = vmatprep.subr.mxu0 %v279_v26 }
0x1ab1   :  { %v3716_v33 = vpop.xlane.xlu0 %3715 }
0x1ab2   :  { %v3720_v36 = vmul.f32 0.03125, %v3716_v33 }
0x1ab4   :  { %v3722_v45 = vsub.f32 %v3712_v21, %v3720_v36  ;;  %v9889_v21 = vld [vmem:[%s12882_s4] ss:$0 sm:$0xff] }
0x1ab5   :  { %v3719_v29 = vpop.xlane.xlu1 %3718 }
0x1ab6   :  { %v3721_v34 = vmul.f32 0.03125, %v3719_v29  ;;  %v3724_v50 = vmul.f32 %v3722_v45, %v3722_v45 }
0x1ab8   :  { %v3723_v41 = vsub.f32 %v3713_v25, %v3721_v34  ;;  %v3726_v52 = vsel %vm557_vm0, %v3724_v50, 0.0  ;;  %v9925_v34 = vld [vmem:[%s12884_s6] ss:$0 sm:$0xff] }
0x1aba   :  { %v3725_v9 = vmul.f32 %v3723_v41, %v3723_v41 }
0x1abc   :  { %v3729_v51 = vsel %vm557_vm0, %v3725_v9, 0.0 }
0x1b0f   :  { %v10901_v42 = vpop.f32.mrf.mxu0 }
0x1b10   :  { %v5055_v37 = vadd.f32 %v10908_v32, %v10901_v42 }
0x1b11   :  { %v4968_v40 = vpop.f32.mrf.mxu0 }
0x1b12   :  { %v5065_v43 = vadd.f32 %v9924_v35, %v5055_v37  ;;  %v5050_v59 = vadd.f32 %v5049_v38, %v4968_v40  ;;  %v9926_v38 = vld [vmem:[%s12885_s2] ss:$0 sm:$0xff] }
0x1b14   :  { %v5064_v13 = vadd.f32 %v9924_v35, %v5050_v59  ;;  %v5067_v46 = vadd.f32 %v5065_v43, %v12200_v44  ;;  %v238_v44 = vld [vmem:[%s12880_s12 + $0x10] sm:$0xff] }
0x1b15   :  { %10922 = vmatprep.subr.mxu1 %v238_v44  ;;  %v278_v59 = vld [vmem:[%s12883_s28 + $0x10] sm:$0xff] }
0x1b16   :  { %v5071_v47 = vsel %vm557_vm0, %v5067_v46, 0.0  ;;  %v5066_v48 = vadd.f32 %v5064_v13, %v12188_v8  ;;  %10923 = vmatpush3.msra.mxu1 %v238_v44  ;;  %v237_v8 = vld [vmem:[%s12880_s12 + $0x8] sm:$0xff]  ;;  %v276_v13 = vld [vmem:[%s12883_s28] sm:$0xff] }
0x1b17   :  { %5072 = vadd.xlane.f32.xlu1 %v5071_v47  ;;  %10924 = vmatprep.subr.mxu1 %v237_v8  ;;  %v9933_v44 = vld [vmem:[%s12888_s11] ss:$0 sm:$0xff] }
0x1b18   :  { %v5068_v49 = vsel %vm557_vm0, %v5066_v48, 0.0  ;;  %10925 = vmatpush3.msra.mxu1 %v237_v8 }
0x1b19   :  { %5069 = vadd.xlane.f32.xlu0 %v5068_v49  ;;  %10926 = vmatprep.subr.mxu1 %v236_v53 }
0x1b1a   :  { %10927 = vmatpush3.msra.mxu1 %v236_v53 }
0x1b1b   :  { %3730 = vadd.xlane.f32.xlu1 %v3729_v51  ;;  %10942 = vmatprep.subr.mxu1 %v11613_v10  ;;  %v9927_v51 = vld [vmem:[%s12887_s7] ss:$0 sm:$0xff] }
0x1b1d   :  { %3727 = vadd.xlane.f32.xlu0 %v3726_v52 }
0x1ba0   :  { %v5073_v54 = vpop.xlane.xlu1 %5072 }
0x1ba1   :  { %v5075_v55 = vmul.f32 0.03125, %v5073_v54 }
0x1ba2   :  { %v5070_v56 = vpop.xlane.xlu0 %5069 }
0x1ba3   :  { %v5077_v61 = vsub.f32 %v5067_v46, %v5075_v55  ;;  %v5074_v62 = vmul.f32 0.03125, %v5070_v56  ;;  %v9930_v46 = vld [vmem:[%s12886_s10] ss:$0 sm:$0xff] }
0x1ba4   :  { %v3731_v63 = vpop.xlane.xlu1 %3730 }
0x1ba5   :  { %v5076_v0 = vsub.f32 %v5066_v48, %v5074_v62  ;;  %v3733_v1 = vmul.f32 0.03125, %v3731_v63  ;;  %v5079_v2 = vmul.f32 %v5077_v61, %v5077_v61 }
0x1ba6   :  { %v3728_v3 = vpop.xlane.xlu0 %3727 }
0x1ba7   :  { %v3735_v4 = vadd.f32 1e-05, %v3733_v1  ;;  %v3732_v5 = vmul.f32 0.03125, %v3728_v3  ;;  %v5083_v6 = vsel %vm557_vm0, %v5079_v2, 0.0  ;;  %v5078_v7 = vmul.f32 %v5076_v0, %v5076_v0 }
0x1ba8   :  { %5084 = vadd.xlane.f32.xlu1 %v5083_v6 }
0x1ba9   :  { %11459 = vrsqrt.f32 %v3735_v4  ;;  %v3734_v11 = vadd.f32 1e-05, %v3732_v5  ;;  %v5080_v12 = vsel %vm557_vm0, %v5078_v7, 0.0 }
0x1baa   :  { %5081 = vadd.xlane.f32.xlu0 %v5080_v12 }
0x1bab   :  { %11461 = vrsqrt.f32 %v3734_v11 }
0x1bb6   :  { %v11460_v60 = vpop.eup %11459 }
0x1bb7   :  { %v3739_v58 = vmul.f32 %v11460_v60, %v3723_v41 }
0x1bb8   :  { %v11462_v15 = vpop.eup %11461 }
0x1bb9   :  { %v3738_v57 = vmul.f32 %v11462_v15, %v3722_v45  ;;  %v3747_v19 = vmul.f32 %v9888_v14, %v3739_v58  ;;  %v277_v45 = vld [vmem:[%s12883_s28 + $0x8] sm:$0xff] }
0x1bbb   :  { %v3746_v22 = vmul.f32 %v9888_v14, %v3738_v57  ;;  %v12362_v25 = vadd.f32 %v9889_v21, %v3747_v19  ;;  %v243_v57 = vld [vmem:[%s12880_s12 + $0x38] sm:$0xff] }
0x1bbd   :  { %v12360_v24 = vadd.f32 %v9889_v21, %v3746_v22 }
0x1bbf   :  { %10928 = vmatprep.mubr.msk.f32.mxu1 %vm557_vm0, %v12360_v24 }
0x1bc0   :  { %10929 = vmatmul.mubr.msk.f32.vlgmr.msra.gmra.mxu1 %vm557_vm0, %v12362_v25 }
0x1bc1   :  { %10944 = vmatprep.mubr.msk.f32.mxu1 %vm11614_vm1, %v11613_v10 }
0x1c31   :  { %v5085_v28 = vpop.xlane.xlu1 %5084 }
0x1c32   :  { %v5087_v27 = vmul.f32 0.03125, %v5085_v28  ;;  %v265_v28 = vld [vmem:[%s12881_s27 + $0x28] sm:$0xff] }
0x1c33   :  { %v5082_v30 = vpop.xlane.xlu0 %5081 }
0x1c34   :  { %v5089_v31 = vadd.f32 1e-05, %v5087_v27  ;;  %v5086_v29 = vmul.f32 0.03125, %v5082_v30  ;;  %v264_v30 = vld [vmem:[%s12881_s27 + $0x20] sm:$0xff] }
0x1c36   :  { %11463 = vrsqrt.f32 %v5089_v31  ;;  %v5088_v32 = vadd.f32 1e-05, %v5086_v29  ;;  %v242_v31 = vld [vmem:[%s12880_s12 + $0x30] sm:$0xff]  ;;  %v241_v29 = vld [vmem:[%s12880_s12 + $0x28] sm:$0xff] }
0x1c38   :  { %11465 = vrsqrt.f32 %v5088_v32  ;;  %v283_v32 = vld [vmem:[%s12883_s28 + $0x38] sm:$0xff] }
0x1c43   :  { %v11464_v33 = vpop.eup %11463 }
0x1c44   :  { %v5093_v35 = vmul.f32 %v11464_v33, %v5077_v61  ;;  %v240_v33 = vld [vmem:[%s12880_s12 + $0x20] sm:$0xff] }
0x1c45   :  { %v11466_v42 = vpop.eup %11465 }
0x1c46   :  { %v5092_v36 = vmul.f32 %v11466_v42, %v5076_v0  ;;  %v5101_v37 = vmul.f32 %v9925_v34, %v5093_v35  ;;  %v281_v35 = vld [vmem:[%s12883_s28 + $0x28] sm:$0xff]  ;;  %v280_v42 = vld [vmem:[%s12883_s28 + $0x20] sm:$0xff] }
0x1c48   :  { %v5100_v40 = vmul.f32 %v9925_v34, %v5092_v36  ;;  %v12375_v43 = vadd.f32 %v9926_v38, %v5101_v37  ;;  %v282_v34 = vld [vmem:[%s12883_s28 + $0x30] sm:$0xff] }
0x1c4a   :  { %v12373_v41 = vadd.f32 %v9926_v38, %v5100_v40 }
0x1c4c   :  { %10917 = vmatprep.mubr.msk.f32.mxu0 %vm557_vm0, %v12373_v41 }
0x1c4d   :  { %10918 = vmatmul.mubr.msk.f32.vlgmr.msra.gmra.mxu0 %vm557_vm0, %v12375_v43 }
0x1c4e   :  { %10932 = vmatpush3.msra.mxu0 %v279_v26  ;;  %10939 = vmatprep.mubr.msk.f32.mxu0 %vm557_vm0, %v12360_v24 }
0x1c4f   :  { %10933 = vmatprep.subr.mxu0 %v278_v59 }
0x1c50   :  { %10934 = vmatpush3.msra.mxu0 %v278_v59 }
0x1c51   :  { %10935 = vmatprep.subr.mxu0 %v277_v45 }
0x1c52   :  { %10936 = vmatpush3.msra.mxu0 %v277_v45 }
0x1c53   :  { %10937 = vmatprep.subr.mxu0 %v276_v13 }
0x1c54   :  { %10938 = vmatpush3.msra.mxu0 %v276_v13  ;;  %v9945_v13 = vld [vmem:[%s12886_s10 + $0x1] ss:$0 sm:$0xff] }
0x1c55   :  { %10940 = vmatmul.mubr.msk.f32.vlgmr.msra.gmra.mxu0 %vm557_vm0, %v12362_v25  ;;  %10952 = vmatprep.subr.mxu0 %v11613_v10 }
0x1c56   :  { %10954 = vmatprep.mubr.msk.f32.mxu0 %vm11614_vm1, %v11613_v10 }
0x1c80   :  { %v10930_v47 = vpop.f32.mrf.mxu1 }
0x1c81   :  { %v5281_v48 = vadd.f32 %v10930_v47, %v9930_v46 }
0x1c82   :  { %v5275_v9 = vpop.f32.mrf.mxu1 }
0x1c83   :  { %v5276_v49 = vadd.f32 %v9930_v46, %v5275_v9  ;;  %v9942_v9 = vld [vmem:[%s12887_s7 + $0x1] ss:$0 sm:$0xff] }
0x1c85   :  { %10943 = vmatpush3.xpose.msk.msra.mxu1 %vm801_vm2, %v5276_v49 }
0x1c86   :  { %10947 = vmatprep.subr.mxu1 %v11613_v10 }
0x1d0d   :  { %v10919_v50 = vpop.f32.mrf.mxu0 }
0x1d0e   :  { %v5194_v8 = vadd.f32 %v10919_v50, %v9927_v51 }
0x1d0f   :  { %v5188_v52 = vpop.f32.mrf.mxu0 }
0x1d10   :  { %v5189_v39 = vadd.f32 %v9927_v51, %v5188_v52  ;;  %v9948_v52 = vld [vmem:[%s12888_s11 + $0x1] ss:$0 sm:$0xff] }
0x1d12   :  { %10945 = vmatmul.mubr.msk.f32.vlgmr.msra.gmra.mxu1 %vm801_vm2, %v5189_v39 }
0x1d13   :  { %10948 = vmatpush3.xpose.msk.msra.mxu1 %vm801_vm2, %v5281_v48  ;;  %10949 = vmatprep.mubr.msk.f32.mxu1 %vm11614_vm1, %v11613_v10 }
0x1d14   :  { %10957 = vmatprep.subr.mxu1 %v11613_v10 }
0x1d15   :  { %v10941_v53 = vpop.f32.mrf.mxu0 }
0x1d16   :  { %v5362_v54 = vadd.f32 %v10941_v53, %v9933_v44  ;;  %10950 = vmatmul.mubr.msk.f32.vlgmr.msra.gmra.mxu1 %vm801_vm2, %v5194_v8 }
0x1d17   :  { %v5356_v55 = vpop.f32.mrf.mxu0  ;;  %10959 = vmatprep.mubr.msk.f32.mxu1 %vm11614_vm1, %v11613_v10 }
0x1d18   :  { %v5357_v56 = vadd.f32 %v9933_v44, %v5356_v55  ;;  %10958 = vmatpush3.msra.mxu1 %v5362_v54 }
0x1d19   :  { %10973 = vmatprep.subr.mxu1 %v243_v57 }
0x1d1a   :  { %10953 = vmatpush3.msra.mxu0 %v5357_v56 }
0x1d1b   :  { %10962 = vmatprep.subr.mxu0 %v267_v18 }
0x1dd2   :  { %v5437_v61 = vpop.f32.mrf.mxu1 }
0x1dd3   :  { %v5517_v62 = vmul.f32 0.25, %v5437_v61 }
0x1dd4   :  { %v10946_v63 = vpop.f32.mrf.mxu1 }
0x1dd5   :  { %v5519_v0 = vsel %vm968_vm3, %v5517_v62, -inf }
0x1dd6   :  { %5520 = vmax.xlane.f32.xlu1 %v5519_v0  ;;  %v5513_v1 = vpop.f32.mrf.mxu1 }
0x1dd7   :  { %v5518_v2 = vmul.f32 0.25, %v5513_v1 }
0x1dd8   :  { %v10951_v3 = vpop.f32.mrf.mxu1 }
0x1dd9   :  { %v5522_v4 = vsel %vm968_vm3, %v5518_v2, -inf }
0x1dda   :  { %5523 = vmax.xlane.f32.xlu0 %v5522_v4 }
0x1e5f   :  { %v5521_v5 = vpop.xlane.xlu1 %5520 }
0x1e60   :  { %v5525_v6 = vsub.f32 %v5517_v62, %v5521_v5 }
0x1e62   :  { %v5527_v7 = vmul.f32 1.442695, %v5525_v6 }
0x1e63   :  { %v5524_v11 = vpop.xlane.xlu0 %5523 }
0x1e64   :  { %11467 = vpow2.f32 %v5527_v7  ;;  %v5526_v12 = vsub.f32 %v5518_v2, %v5524_v11 }
0x1e66   :  { %v5529_v60 = vmul.f32 1.442695, %v5526_v12 }
0x1e68   :  { %11469 = vpow2.f32 %v5529_v60 }
0x1e71   :  { %v11468_v14 = vpop.eup %11467 }
0x1e72   :  { %v5531_v58 = vsel %vm968_vm3, %v11468_v14, 0.0 }
0x1e73   :  { %5532 = vadd.xlane.f32.xlu1 %v5531_v58  ;;  %v253_v58 = vld [vmem:[%s12889_s16 + $0x8] sm:$0xff] }
0x1e75   :  { %v11470_v15 = vpop.eup %11469 }
0x1e76   :  { %v5534_v17 = vsel %vm968_vm3, %v11470_v15, 0.0 }
0x1e77   :  { %5535 = vadd.xlane.f32.xlu0 %v5534_v17 }
0x1efc   :  { %v5533_v19 = vpop.xlane.xlu1 %5532 }
0x1efd   :  { %11471 = vrcp.f32 %v5533_v19 }
0x1f00   :  { %v5536_v20 = vpop.xlane.xlu0 %5535 }
0x1f01   :  { %11473 = vrcp.f32 %v5536_v20 }
0x1f0a   :  { %v11472_v21 = vpop.eup %11471 }
0x1f0b   :  { %v5538_v22 = vmul.f32 %v11472_v21, %v11468_v14  ;;  %v252_v21 = vld [vmem:[%s12889_s16] sm:$0xff] }
0x1f0d   :  { %10955 = vmatmul.mubr.msk.f32.vlgmr.msra.gmra.mxu0 %vm968_vm3, %v5538_v22  ;;  %v255_v22 = vld [vmem:[%s12889_s16 + $0x18] sm:$0xff] }
0x1f0e   :  { %v11474_v26 = vpop.eup %11473  ;;  %10963 = vmatpush3.msra.mxu0 %v267_v18  ;;  %10970 = vmatprep.mubr.msk.f32.mxu0 %vm557_vm0, %v12373_v41 }
0x1f0f   :  { %10964 = vmatprep.subr.mxu0 %v266_v23  ;;  %v5540_v27 = vmul.f32 %v11474_v26, %v11470_v15 }
0x1f10   :  { %10965 = vmatpush3.msra.mxu0 %v266_v23  ;;  %v254_v23 = vld [vmem:[%s12889_s16 + $0x10] sm:$0xff] }
0x1f11   :  { %10966 = vmatprep.subr.mxu0 %v265_v28  ;;  %10960 = vmatmul.mubr.msk.f32.vlgmr.msra.gmra.mxu1 %vm968_vm3, %v5540_v27 }
0x1f12   :  { %10967 = vmatpush3.msra.mxu0 %v265_v28  ;;  %10974 = vmatpush3.msra.mxu1 %v243_v57 }
0x1f13   :  { %10968 = vmatprep.subr.mxu0 %v264_v30  ;;  %10975 = vmatprep.subr.mxu1 %v242_v31 }
0x1f14   :  { %10981 = vmatprep.mubr.msk.f32.mxu1 %vm557_vm0, %v12360_v24  ;;  %10969 = vmatpush3.msra.mxu0 %v264_v30 }
0x1f15   :  { %10976 = vmatpush3.msra.mxu1 %v242_v31  ;;  %10971 = vmatmul.mubr.msk.f32.vlgmr.msra.gmra.mxu0 %vm557_vm0, %v12375_v43 }
0x1f16   :  { %10977 = vmatprep.subr.mxu1 %v241_v29  ;;  %10984 = vmatprep.subr.mxu0 %v283_v32 }
0x1f17   :  { %10978 = vmatpush3.msra.mxu1 %v241_v29  ;;  %10985 = vmatpush3.msra.mxu0 %v283_v32  ;;  %v9961_v29 = vld [vmem:[%s12890_s15] ss:$0 sm:$0xff] }
0x1f18   :  { %10992 = vmatprep.mubr.msk.f32.mxu0 %vm557_vm0, %v12360_v24  ;;  %10979 = vmatprep.subr.mxu1 %v240_v33 }
0x1f19   :  { %10986 = vmatprep.subr.mxu0 %v282_v34  ;;  %10980 = vmatpush3.msra.mxu1 %v240_v33 }
0x1f1a   :  { %10987 = vmatpush3.msra.mxu0 %v282_v34  ;;  %10982 = vmatmul.mubr.msk.f32.vlgmr.msra.gmra.mxu1 %vm557_vm0, %v12362_v25 }
0x1f1b   :  { %10988 = vmatprep.subr.mxu0 %v281_v35  ;;  %10995 = vmatprep.subr.mxu1 %v11613_v10 }
0x1f1c   :  { %10989 = vmatpush3.msra.mxu0 %v281_v35  ;;  %10997 = vmatprep.mubr.msk.f32.mxu1 %vm11614_vm1, %v11613_v10 }
0x1f1d   :  { %10990 = vmatprep.subr.mxu0 %v280_v42 }
0x1f1e   :  { %10991 = vmatpush3.msra.mxu0 %v280_v42 }
0x1f1f   :  { %10993 = vmatmul.mubr.msk.f32.vlgmr.msra.gmra.mxu0 %vm557_vm0, %v12362_v25  ;;  %11005 = vmatprep.subr.mxu0 %v11613_v10 }
0x1f20   :  { %11007 = vmatprep.mubr.msk.f32.mxu0 %vm11614_vm1, %v11613_v10 }
0x1fcd   :  { %v12440_v36 = vpop.f32.mrf.mxu0 }
0x1fcf   :  { %v10956_v37 = vpop.f32.mrf.mxu0 }
0x1fd1   :  { %v12442_v38 = vpop.f32.mrf.mxu1 }
0x1fd3   :  { %v10961_v40 = vpop.f32.mrf.mxu1 }
0x1fd5   :  { %v10972_v59 = vpop.f32.mrf.mxu0 }
0x1fd6   :  { %v5765_v8 = vadd.f32 %v10972_v59, %v9942_v9 }
0x1fd7   :  { %v5759_v47 = vpop.f32.mrf.mxu0 }
0x1fd8   :  { %v5760_v50 = vadd.f32 %v9942_v9, %v5759_v47 }
0x1fda   :  { %v10983_v45 = vpop.f32.mrf.mxu1 }
0x1fdb   :  { %v5846_v51 = vadd.f32 %v10983_v45, %v9945_v13 }
0x1fdc   :  { %v5840_v46 = vpop.f32.mrf.mxu1 }
0x1fdd   :  { %v5841_v48 = vadd.f32 %v9945_v13, %v5840_v46 }
0x1fdf   :  { %v10994_v49 = vpop.f32.mrf.mxu0  ;;  %10996 = vmatpush3.xpose.msk.msra.mxu1 %vm801_vm2, %v5841_v48 }
0x1fe0   :  { %11000 = vmatprep.subr.mxu1 %v11613_v10  ;;  %v5927_v53 = vadd.f32 %v10994_v49, %v9948_v52 }
0x1fe1   :  { %v5921_v39 = vpop.f32.mrf.mxu0 }
0x1fe2   :  { %v5922_v44 = vadd.f32 %v9948_v52, %v5921_v39  ;;  %10998 = vmatmul.mubr.msk.f32.vlgmr.msra.gmra.mxu1 %vm801_vm2, %v5760_v50  ;;  %v297_v52 = vld [vmem:[%s12891_s18 + $0x18] sm:$0xff]  ;;  %v296_v39 = vld [vmem:[%s12891_s18 + $0x10] sm:$0xff] }
0x1fe3   :  { %11001 = vmatpush3.xpose.msk.msra.mxu1 %vm801_vm2, %v5846_v51  ;;  %11002 = vmatprep.mubr.msk.f32.mxu1 %vm11614_vm1, %v11613_v10 }
0x1fe4   :  { %11006 = vmatpush3.msra.mxu0 %v5922_v44  ;;  %11010 = vmatprep.subr.mxu1 %v11613_v10  ;;  %v295_v44 = vld [vmem:[%s12891_s18 + $0x8] sm:$0xff] }
0x1fe5   :  { %11015 = vmatprep.subr.mxu0 %v255_v22 }
0x1fe6   :  { %11003 = vmatmul.mubr.msk.f32.vlgmr.msra.gmra.mxu1 %vm801_vm2, %v5765_v8  ;;  %v294_v8 = vld [vmem:[%s12891_s18] sm:$0xff] }
0x1fe7   :  { %11011 = vmatpush3.msra.mxu1 %v5927_v53  ;;  %11012 = vmatprep.mubr.msk.f32.mxu1 %vm11614_vm1, %v11613_v10  ;;  %v311_v53 = vld [vmem:[%s12892_s22 + $0x38] sm:$0xff] }
0x1fe8   :  { %11022 = vmatprep.subr.mxu1 %v253_v58 }
0x20a2   :  { %v6002_v54 = vpop.f32.mrf.mxu1 }
0x20a3   :  { %v6082_v55 = vmul.f32 0.25, %v6002_v54  ;;  %v310_v54 = vld [vmem:[%s12892_s22 + $0x30] sm:$0xff] }
0x20a4   :  { %v10999_v56 = vpop.f32.mrf.mxu1 }
0x20a5   :  { %v6084_v61 = vsel %vm968_vm3, %v6082_v55, -inf  ;;  %v308_v56 = vld [vmem:[%s12892_s22 + $0x20] sm:$0xff] }
0x20a6   :  { %6085 = vmax.xlane.f32.xlu0 %v6084_v61  ;;  %v6078_v62 = vpop.f32.mrf.mxu1 }
0x20a7   :  { %v6083_v63 = vmul.f32 0.25, %v6078_v62 }
0x20a8   :  { %v11004_v0 = vpop.f32.mrf.mxu1 }
0x20a9   :  { %v6087_v1 = vsel %vm968_vm3, %v6083_v63, -inf }
0x20aa   :  { %6088 = vmax.xlane.f32.xlu1 %v6087_v1 }
0x212f   :  { %v6086_v2 = vpop.xlane.xlu0 %6085 }
0x2130   :  { %v6090_v3 = vsub.f32 %v6082_v55, %v6086_v2  ;;  %v309_v55 = vld [vmem:[%s12892_s22 + $0x28] sm:$0xff] }
0x2132   :  { %v6092_v4 = vmul.f32 1.442695, %v6090_v3 }
0x2133   :  { %v6089_v5 = vpop.xlane.xlu1 %6088 }
0x2134   :  { %11475 = vpow2.f32 %v6092_v4  ;;  %v6091_v6 = vsub.f32 %v6083_v63, %v6089_v5  ;;  %v9962_v4 = vld [vmem:[%s12893_s23] ss:$0 sm:$0xff] }
0x2136   :  { %v6094_v7 = vmul.f32 1.442695, %v6091_v6 }
0x2138   :  { %11477 = vpow2.f32 %v6094_v7 }
0x2141   :  { %v11476_v11 = vpop.eup %11475 }
0x2142   :  { %v6096_v12 = vsel %vm968_vm3, %v11476_v11, 0.0 }
0x2143   :  { %6097 = vadd.xlane.f32.xlu0 %v6096_v12  ;;  %v9963_v12 = vld [vmem:[%s12894_s26] ss:$0 sm:$0xff] }
0x2145   :  { %v11478_v60 = vpop.eup %11477 }
0x2146   :  { %v6099_v14 = vsel %vm968_vm3, %v11478_v60, 0.0 }
0x2147   :  { %6100 = vadd.xlane.f32.xlu1 %v6099_v14 }
0x21cc   :  { %v6098_v15 = vpop.xlane.xlu0 %6097 }
0x21cd   :  { %11479 = vrcp.f32 %v6098_v15  ;;  %v307_v15 = vld [vmem:[%s12892_s22 + $0x18] sm:$0xff] }
0x21d0   :  { %v6101_v17 = vpop.xlane.xlu1 %6100 }
0x21d1   :  { %11481 = vrcp.f32 %v6101_v17  ;;  %v306_v17 = vld [vmem:[%s12892_s22 + $0x10] sm:$0xff] }
0x21da   :  { %v11480_v18 = vpop.eup %11479 }
0x21db   :  { %v6103_v57 = vmul.f32 %v11480_v18, %v11476_v11  ;;  %v305_v18 = vld [vmem:[%s12892_s22 + $0x8] sm:$0xff] }
0x21dd   :  { %11008 = vmatmul.mubr.msk.f32.vlgmr.msra.gmra.mxu0 %vm968_vm3, %v6103_v57  ;;  %v304_v57 = vld [vmem:[%s12892_s22] sm:$0xff] }
0x21de   :  { %v11482_v19 = vpop.eup %11481  ;;  %11016 = vmatpush3.msra.mxu0 %v255_v22 }
0x21df   :  { %v6105_v20 = vmul.f32 %v11482_v19, %v11478_v60  ;;  %11017 = vmatprep.subr.mxu0 %v254_v23  ;;  %v9964_v19 = vld [vmem:[%s12895_s1] ss:$0 sm:$0xff] }
0x21e0   :  { %11018 = vmatpush3.msra.mxu0 %v254_v23 }
0x21e1   :  { %11013 = vmatmul.mubr.msk.f32.vlgmr.msra.gmra.mxu1 %vm968_vm3, %v6105_v20  ;;  %11029 = vmatprep.subr.mxu0 %v297_v52 }
0x21e2   :  { %11023 = vmatpush3.msra.mxu1 %v253_v58  ;;  %11026 = vmatprep.mubr.msk.f32.mxu1 %vm801_vm2, %v12440_v36 }
0x21e3   :  { %11024 = vmatprep.subr.mxu1 %v252_v21 }
0x21e4   :  { %11025 = vmatpush3.msra.mxu1 %v252_v21 }
0x21e5   :  { %11027 = vmatmul.mubr.msk.f32.vlgmr.msra.gmra.mxu1 %vm801_vm2, %v12442_v38  ;;  %11040 = vmatprep.subr.mxu1 %v311_v53 }
0x21e6   :  { %11041 = vmatpush3.msra.mxu1 %v311_v53 }
0x21e7   :  { %11042 = vmatprep.subr.mxu1 %v310_v54 }
0x21e8   :  { %11043 = vmatpush3.msra.mxu1 %v310_v54 }
0x21e9   :  { %11044 = vmatprep.subr.mxu1 %v309_v55 }
0x21ea   :  { %11045 = vmatpush3.msra.mxu1 %v309_v55 }
0x21eb   :  { %11046 = vmatprep.subr.mxu1 %v308_v56 }
0x21ec   :  { %11047 = vmatpush3.msra.mxu1 %v308_v56 }
0x21ed   :  { %11048 = vmatprep.subr.mxu1 %v307_v15 }
0x21ee   :  { %11049 = vmatpush3.msra.mxu1 %v307_v15  ;;  %v9975_v15 = vld [vmem:[%s12875_s14 + $0x2] ss:$0 sm:$0xff] }
0x21ef   :  { %11050 = vmatprep.subr.mxu1 %v306_v17 }
0x21f0   :  { %11051 = vmatpush3.msra.mxu1 %v306_v17 }
0x21f1   :  { %11052 = vmatprep.subr.mxu1 %v305_v18 }
0x21f2   :  { %11053 = vmatpush3.msra.mxu1 %v305_v18 }
0x21f3   :  { %11054 = vmatprep.subr.mxu1 %v304_v57 }
0x21f4   :  { %11055 = vmatpush3.msra.mxu1 %v304_v57  ;;  %v9972_v57 = vld [vmem:[%s12876_s17 + $0x2] ss:$0 sm:$0xff] }
0x229d   :  { %v6175_v26 = vpop.f32.mrf.mxu0 }
0x229e   :  { %11019 = vmatprep.mubr.msk.f32.mxu0 %vm801_vm2, %v6175_v26 }
0x229f   :  { %v11009_v28 = vpop.f32.mrf.mxu0 }
0x22a1   :  { %v6248_v27 = vpop.f32.mrf.mxu1 }
0x22a2   :  { %11020 = vmatmul.mubr.msk.f32.vlgmr.msra.gmra.mxu0 %vm801_vm2, %v6248_v27  ;;  %v9967_v27 = vld [vmem:[%s12896_s0] ss:$0 sm:$0xff] }
0x22a3   :  { %v11014_v30 = vpop.f32.mrf.mxu1  ;;  %11030 = vmatpush3.msra.mxu0 %v297_v52  ;;  %v378_v52 = vld [vmem:[%s12871_s9 + $0x40] sm:$0xff] }
0x22a4   :  { %11031 = vmatprep.subr.mxu0 %v296_v39 }
0x22a5   :  { %v11028_v31 = vpop.f32.mrf.mxu1  ;;  %11032 = vmatpush3.msra.mxu0 %v296_v39  ;;  %v394_v39 = vld [vmem:[%s12874_s8 + $0x40] sm:$0xff] }
0x22a6   :  { %11033 = vmatprep.subr.mxu0 %v295_v44 }
0x22a7   :  { %v6405_v34 = vpop.f32.mrf.mxu1  ;;  %11034 = vmatpush3.msra.mxu0 %v295_v44  ;;  %v357_v44 = vld [vmem:[%s12873_s29 + $0x58] sm:$0xff] }
0x22a8   :  { %11035 = vmatprep.subr.mxu0 %v294_v8 }
0x22a9   :  { %11036 = vmatpush3.msra.mxu0 %v294_v8 }
0x2362   :  { %v11021_v32 = vpop.f32.mrf.mxu0 }
0x2363   :  { %v6411_v33 = vadd.f32 %v11028_v31, %v11021_v32 }
0x2364   :  { %v6324_v35 = vpop.f32.mrf.mxu0 }
0x2365   :  { %v6421_v42 = vadd.f32 %v9961_v29, %v6411_v33  ;;  %v6406_v36 = vadd.f32 %v6405_v34, %v6324_v35 }
0x2367   :  { %v6420_v37 = vadd.f32 %v9961_v29, %v6406_v36  ;;  %v6423_v38 = vadd.f32 %v6421_v42, %v12375_v43 }
0x2369   :  { %v6427_v40 = vsel %vm557_vm0, %v6423_v38, 0.0  ;;  %v6422_v59 = vadd.f32 %v6420_v37, %v12373_v41 }
0x236a   :  { %6428 = vadd.xlane.f32.xlu1 %v6427_v40 }
0x236b   :  { %v6424_v45 = vsel %vm557_vm0, %v6422_v59, 0.0 }
0x236c   :  { %6425 = vadd.xlane.f32.xlu0 %v6424_v45 }
0x23f3   :  { %v6429_v13 = vpop.xlane.xlu1 %6428 }
0x23f4   :  { %v6431_v46 = vmul.f32 0.03125, %v6429_v13 }
0x23f5   :  { %v6426_v47 = vpop.xlane.xlu0 %6425 }
0x23f6   :  { %v6433_v48 = vsub.f32 %v6423_v38, %v6431_v46  ;;  %v6430_v9 = vmul.f32 0.03125, %v6426_v47 }
0x23f8   :  { %v6432_v49 = vsub.f32 %v6422_v59, %v6430_v9  ;;  %v6435_v50 = vmul.f32 %v6433_v48, %v6433_v48  ;;  %v381_v9 = vld [vmem:[%s12871_s9 + $0x58] sm:$0xff] }
0x23f9   :  { %11059 = vmatprep.subr.mxu0 %v381_v9 }
0x23fa   :  { %v6439_v43 = vsel %vm557_vm0, %v6435_v50, 0.0  ;;  %v6434_v51 = vmul.f32 %v6432_v49, %v6432_v49  ;;  %v380_v50 = vld [vmem:[%s12871_s9 + $0x50] sm:$0xff] }
0x23fb   :  { %6440 = vadd.xlane.f32.xlu1 %v6439_v43  ;;  %v396_v43 = vld [vmem:[%s12874_s8 + $0x50] sm:$0xff] }
0x23fc   :  { %v6436_v41 = vsel %vm557_vm0, %v6434_v51, 0.0  ;;  %v379_v51 = vld [vmem:[%s12871_s9 + $0x48] sm:$0xff] }
0x23fd   :  { %6437 = vadd.xlane.f32.xlu0 %v6436_v41  ;;  %v395_v41 = vld [vmem:[%s12874_s8 + $0x48] sm:$0xff] }
0x2484   :  { %v6441_v61 = vpop.xlane.xlu1 %6440 }
0x2485   :  { %v6443_v62 = vmul.f32 0.03125, %v6441_v61 }
0x2486   :  { %v6438_v63 = vpop.xlane.xlu0 %6437 }
0x2487   :  { %v6445_v0 = vadd.f32 1e-05, %v6443_v62  ;;  %v6442_v1 = vmul.f32 0.03125, %v6438_v63  ;;  %v9970_v63 = vld [vmem:[%s12897_s5] ss:$0 sm:$0xff] }
0x2489   :  { %11483 = vrsqrt.f32 %v6445_v0  ;;  %v6444_v2 = vadd.f32 1e-05, %v6442_v1 }
0x248b   :  { %11485 = vrsqrt.f32 %v6444_v2 }
0x2496   :  { %v11484_v3 = vpop.eup %11483 }
0x2497   :  { %v6449_v5 = vmul.f32 %v11484_v3, %v6433_v48 }
0x2498   :  { %v11486_v6 = vpop.eup %11485 }
0x2499   :  { %v6448_v7 = vmul.f32 %v11486_v6, %v6432_v49  ;;  %v6457_v11 = vmul.f32 %v9962_v4, %v6449_v5  ;;  %v397_v49 = vld [vmem:[%s12874_s8 + $0x58] sm:$0xff] }
0x249a   :  { %11081 = vmatprep.subr.mxu1 %v397_v49 }
0x249b   :  { %v6456_v60 = vmul.f32 %v9962_v4, %v6448_v7  ;;  %v6465_v58 = vadd.f32 %v9963_v12, %v6457_v11  ;;  %v9971_v4 = vld [vmem:[%s12898_s13] ss:$0 sm:$0xff]  ;;  %v356_v11 = vld [vmem:[%s12873_s29 + $0x50] sm:$0xff] }
0x249d   :  { %v6464_v14 = vadd.f32 %v9963_v12, %v6456_v60  ;;  %v355_v12 = vld [vmem:[%s12873_s29 + $0x48] sm:$0xff]  ;;  %v354_v60 = vld [vmem:[%s12873_s29 + $0x40] sm:$0xff] }
0x249f   :  { %11037 = vmatprep.mubr.msk.f32.mxu0 %vm557_vm0, %v6464_v14 }
0x24a0   :  { %11038 = vmatmul.mubr.msk.f32.vlgmr.msra.gmra.mxu0 %vm557_vm0, %v6465_v58 }
0x24a1   :  { %11060 = vmatpush3.msra.mxu0 %v381_v9 }
0x24a2   :  { %11061 = vmatprep.subr.mxu0 %v380_v50 }
0x24a3   :  { %11062 = vmatpush3.msra.mxu0 %v380_v50 }
0x24a4   :  { %11063 = vmatprep.subr.mxu0 %v379_v51 }
0x24a5   :  { %11064 = vmatpush3.msra.mxu0 %v379_v51  ;;  %v385_v51 = vld [vmem:[%s12871_s9 + $0x78] sm:$0xff] }
0x24a6   :  { %11065 = vmatprep.subr.mxu0 %v378_v52 }
0x24a7   :  { %11066 = vmatpush3.msra.mxu0 %v378_v52 }
0x24a8   :  { %11070 = vmatprep.subr.mxu0 %v357_v44 }
0x2560   :  { %v11039_v20 = vpop.f32.mrf.mxu0 }
0x2561   :  { %v6550_v21 = vadd.f32 %v11039_v20, %v9964_v19  ;;  %v9978_v20 = vld [vmem:[%s12877_s19 + $0x2] ss:$0 sm:$0xff] }
0x2562   :  { %v6544_v22 = vpop.f32.mrf.mxu0 }
0x2563   :  { %v6545_v23 = vadd.f32 %v9964_v19, %v6544_v22  ;;  %v6554_v28 = vmax.f32 %v6550_v21, 0.0 }
0x2565   :  { %v6553_v26 = vmax.f32 %v6545_v23, 0.0 }
0x2567   :  { %11056 = vmatprep.mubr.msk.f32.mxu1 %vm2014_vm4, %v6553_v26 }
0x2568   :  { %11057 = vmatmul.mubr.msk.f32.vlgmr.msra.gmra.mxu1 %vm2014_vm4, %v6554_v28 }
0x2569   :  { %11082 = vmatpush3.msra.mxu1 %v397_v49 }
0x256a   :  { %11083 = vmatprep.subr.mxu1 %v396_v43 }
0x256b   :  { %11084 = vmatpush3.msra.mxu1 %v396_v43  ;;  %v361_v43 = vld [vmem:[%s12873_s29 + $0x78] sm:$0xff] }
0x256c   :  { %11085 = vmatprep.subr.mxu1 %v395_v41 }
0x256d   :  { %11086 = vmatpush3.msra.mxu1 %v395_v41 }
0x256e   :  { %11087 = vmatprep.subr.mxu1 %v394_v39 }
0x256f   :  { %11088 = vmatpush3.msra.mxu1 %v394_v39 }
0x2570   :  { %11097 = vmatprep.subr.mxu1 %v11613_v10 }
0x2628   :  { %v11058_v30 = vpop.f32.mrf.mxu1 }
0x2629   :  { %v6639_v31 = vadd.f32 %v11058_v30, %v9967_v27 }
0x262a   :  { %v6633_v29 = vpop.f32.mrf.mxu1 }
0x262b   :  { %v6634_v32 = vadd.f32 %v9967_v27, %v6633_v29  ;;  %v6643_v33 = vadd.f32 %v6639_v31, %v6465_v58 }
0x262d   :  { %v6647_v34 = vsel %vm557_vm0, %v6643_v33, 0.0  ;;  %v6642_v35 = vadd.f32 %v6634_v32, %v6464_v14 }
0x262e   :  { %6648 = vadd.xlane.f32.xlu1 %v6647_v34 }
0x262f   :  { %v6644_v42 = vsel %vm557_vm0, %v6642_v35, 0.0 }
0x2630   :  { %6645 = vadd.xlane.f32.xlu0 %v6644_v42 }
0x26b7   :  { %v6649_v36 = vpop.xlane.xlu1 %6648 }
0x26b8   :  { %v6651_v37 = vmul.f32 0.03125, %v6649_v36 }
0x26b9   :  { %v6646_v38 = vpop.xlane.xlu0 %6645 }
0x26ba   :  { %v6653_v40 = vsub.f32 %v6643_v33, %v6651_v37  ;;  %v6650_v59 = vmul.f32 0.03125, %v6646_v38 }
0x26bc   :  { %v6652_v45 = vsub.f32 %v6642_v35, %v6650_v59  ;;  %v6655_v13 = vmul.f32 %v6653_v40, %v6653_v40 }
0x26be   :  { %v6659_v46 = vsel %vm557_vm0, %v6655_v13, 0.0  ;;  %v6654_v47 = vmul.f32 %v6652_v45, %v6652_v45 }
0x26bf   :  { %6660 = vadd.xlane.f32.xlu1 %v6659_v46 }
0x26c0   :  { %v6656_v48 = vsel %vm557_vm0, %v6654_v47, 0.0 }
0x26c1   :  { %6657 = vadd.xlane.f32.xlu0 %v6656_v48 }
0x2748   :  { %v6661_v8 = vpop.xlane.xlu1 %6660 }
0x2749   :  { %v6663_v53 = vmul.f32 0.03125, %v6661_v8 }
0x274a   :  { %v6658_v54 = vpop.xlane.xlu0 %6657 }
0x274b   :  { %v6665_v55 = vadd.f32 1e-05, %v6663_v53  ;;  %v6662_v56 = vmul.f32 0.03125, %v6658_v54  ;;  %v360_v53 = vld [vmem:[%s12873_s29 + $0x70] sm:$0xff] }
0x274d   :  { %11487 = vrsqrt.f32 %v6665_v55  ;;  %v6664_v61 = vadd.f32 1e-05, %v6662_v56  ;;  %v384_v55 = vld [vmem:[%s12871_s9 + $0x70] sm:$0xff]  ;;  %v359_v56 = vld [vmem:[%s12873_s29 + $0x68] sm:$0xff] }
0x274f   :  { %11489 = vrsqrt.f32 %v6664_v61  ;;  %v383_v61 = vld [vmem:[%s12871_s9 + $0x68] sm:$0xff] }
0x275a   :  { %v11488_v62 = vpop.eup %11487 }
0x275b   :  { %v6669_v0 = vmul.f32 %v11488_v62, %v6653_v40  ;;  %v358_v62 = vld [vmem:[%s12873_s29 + $0x60] sm:$0xff] }
0x275c   :  { %v11490_v1 = vpop.eup %11489 }
0x275d   :  { %v6668_v2 = vmul.f32 %v11490_v1, %v6652_v45  ;;  %v6677_v3 = vmul.f32 %v9970_v63, %v6669_v0  ;;  %v401_v0 = vld [vmem:[%s12874_s8 + $0x78] sm:$0xff]  ;;  %v400_v1 = vld [vmem:[%s12874_s8 + $0x70] sm:$0xff] }
0x275f   :  { %v6676_v5 = vmul.f32 %v9970_v63, %v6668_v2  ;;  %v12518_v7 = vadd.f32 %v9971_v4, %v6677_v3  ;;  %v382_v63 = vld [vmem:[%s12871_s9 + $0x60] sm:$0xff]  ;;  %v399_v2 = vld [vmem:[%s12874_s8 + $0x68] sm:$0xff]  ;;  %s12900_s9 = sld [smem:[#allocation32_spill]] }
0x2760   :  { %v398_v3 = vld [vmem:[%s12874_s8 + $0x60] sm:$0xff] }
0x2761   :  { %v12516_v6 = vadd.f32 %v9971_v4, %v6676_v5 }
0x2763   :  { %11067 = vmatprep.mubr.msk.f32.mxu0 %vm557_vm0, %v12516_v6  ;;  %11089 = vmatprep.mubr.msk.f32.mxu1 %vm557_vm0, %v12516_v6 }
0x2764   :  { %11068 = vmatmul.mubr.msk.f32.vlgmr.msra.gmra.mxu0 %vm557_vm0, %v12518_v7  ;;  %11090 = vmatmul.mubr.msk.f32.vlgmr.msra.gmra.mxu1 %vm557_vm0, %v12518_v7 }
0x2765   :  { %11071 = vmatpush3.msra.mxu0 %v357_v44  ;;  %11078 = vmatprep.mubr.msk.f32.mxu0 %vm557_vm0, %v12516_v6 }
0x2766   :  { %11072 = vmatprep.subr.mxu0 %v356_v11  ;;  %11099 = vmatprep.mubr.msk.f32.mxu1 %vm11614_vm1, %v11613_v10 }
0x2767   :  { %11073 = vmatpush3.msra.mxu0 %v356_v11 }
0x2768   :  { %11074 = vmatprep.subr.mxu0 %v355_v12 }
0x2769   :  { %11075 = vmatpush3.msra.mxu0 %v355_v12 }
0x276a   :  { %11076 = vmatprep.subr.mxu0 %v354_v60 }
0x276b   :  { %11077 = vmatpush3.msra.mxu0 %v354_v60 }
0x276c   :  { %11079 = vmatmul.mubr.msk.f32.vlgmr.msra.gmra.mxu0 %vm557_vm0, %v12518_v7  ;;  %11092 = vmatprep.subr.mxu0 %v11613_v10 }
0x276d   :  { %11094 = vmatprep.mubr.msk.f32.mxu0 %vm11614_vm1, %v11613_v10 }
0x2824   :  { %v11069_v14 = vpop.f32.mrf.mxu0  ;;  %v11091_v17 = vpop.f32.mrf.mxu1 }
0x2825   :  { %v6770_v23 = vadd.f32 %v11069_v14, %v9972_v57  ;;  %v6932_v28 = vadd.f32 %v11091_v17, %v9978_v20  ;;  %v9987_v17 = vld [vmem:[%s12876_s17 + $0x3] ss:$0 sm:$0xff] }
0x2826   :  { %v6764_v58 = vpop.f32.mrf.mxu0  ;;  %v6926_v26 = vpop.f32.mrf.mxu1 }
0x2827   :  { %v6765_v27 = vadd.f32 %v9972_v57, %v6764_v58  ;;  %v6927_v30 = vadd.f32 %v9978_v20, %v6926_v26  ;;  %v9990_v58 = vld [vmem:[%s12875_s14 + $0x3] ss:$0 sm:$0xff] }
0x282c   :  { %v11080_v18 = vpop.f32.mrf.mxu0 }
0x282d   :  { %v6851_v19 = vadd.f32 %v11080_v18, %v9975_v15 }
0x282e   :  { %v6845_v21 = vpop.f32.mrf.mxu0 }
0x282f   :  { %v6846_v22 = vadd.f32 %v9975_v15, %v6845_v21  ;;  %11098 = vmatpush3.xpose.msk.msra.mxu1 %vm801_vm2, %v6851_v19  ;;  %v9993_v21 = vld [vmem:[%s12877_s19 + $0x3] ss:$0 sm:$0xff] }
0x2830   :  { %11107 = vmatprep.subr.mxu1 %v11613_v10 }
0x2831   :  { %11093 = vmatpush3.xpose.msk.msra.mxu0 %vm801_vm2, %v6846_v22 }
0x2832   :  { %11100 = vmatmul.mubr.msk.f32.vlgmr.msra.gmra.mxu1 %vm801_vm2, %v6770_v23  ;;  %11102 = vmatprep.subr.mxu0 %v11613_v10 }
0x2833   :  { %11108 = vmatpush3.msra.mxu1 %v6932_v28  ;;  %11109 = vmatprep.mubr.msk.f32.mxu1 %vm11614_vm1, %v11613_v10 }
0x2834   :  { %11095 = vmatmul.mubr.msk.f32.vlgmr.msra.gmra.mxu0 %vm801_vm2, %v6765_v27  ;;  %11123 = vmatprep.subr.mxu1 %v361_v43 }
0x2835   :  { %11103 = vmatpush3.msra.mxu0 %v6927_v30  ;;  %11104 = vmatprep.mubr.msk.f32.mxu0 %vm11614_vm1, %v11613_v10 }
0x2836   :  { %11112 = vmatprep.subr.mxu0 %v385_v51 }
0x28f2   :  { %v7083_v31 = vpop.f32.mrf.mxu1 }
0x28f3   :  { %v7088_v29 = vmul.f32 0.25, %v7083_v31 }
0x28f4   :  { %v7007_v32 = vpop.f32.mrf.mxu0  ;;  %v11101_v33 = vpop.f32.mrf.mxu1 }
0x28f5   :  { %v7087_v34 = vmul.f32 0.25, %v7007_v32  ;;  %v7090_v35 = vadd.f32 %v7088_v29, %v12252_v16 }
0x28f6   :  { %v11096_v42 = vpop.f32.mrf.mxu0 }
0x28f7   :  { %v7094_v36 = vsel %vm968_vm3, %v7090_v35, -inf  ;;  %v7089_v37 = vadd.f32 %v7087_v34, %v12252_v16 }
0x28f8   :  { %7095 = vmax.xlane.f32.xlu0 %v7094_v36 }
0x28f9   :  { %v7091_v38 = vsel %vm968_vm3, %v7089_v37, -inf }
0x28fa   :  { %7092 = vmax.xlane.f32.xlu1 %v7091_v38 }
0x2981   :  { %v7096_v40 = vpop.xlane.xlu0 %7095 }
0x2982   :  { %v7098_v59 = vsub.f32 %v7090_v35, %v7096_v40 }
0x2983   :  { %v7093_v45 = vpop.xlane.xlu1 %7092 }
0x2984   :  { %v7101_v13 = vmul.f32 1.442695, %v7098_v59  ;;  %v7097_v46 = vsub.f32 %v7089_v37, %v7093_v45 }
0x2986   :  { %11491 = vpow2.f32 %v7101_v13  ;;  %v7099_v47 = vmul.f32 1.442695, %v7097_v46 }
0x2988   :  { %11493 = vpow2.f32 %v7099_v47 }
0x2993   :  { %v11492_v48 = vpop.eup %11491 }
0x2994   :  { %v7106_v9 = vsel %vm968_vm3, %v11492_v48, 0.0 }
0x2995   :  { %v11494_v49 = vpop.eup %11493  ;;  %7107 = vadd.xlane.f32.xlu0 %v7106_v9 }
0x2996   :  { %v7103_v50 = vsel %vm968_vm3, %v11494_v49, 0.0 }
0x2997   :  { %7104 = vadd.xlane.f32.xlu1 %v7103_v50 }
0x2a1e   :  { %v7108_v41 = vpop.xlane.xlu0 %7107 }
0x2a1f   :  { %11495 = vrcp.f32 %v7108_v41 }
0x2a20   :  { %v7105_v52 = vpop.xlane.xlu1 %7104 }
0x2a21   :  { %11497 = vrcp.f32 %v7105_v52 }
0x2a2c   :  { %v11496_v39 = vpop.eup %11495 }
0x2a2d   :  { %v7112_v44 = vmul.f32 %v11496_v39, %v11492_v48 }
0x2a2e   :  { %v11498_v8 = vpop.eup %11497 }
0x2a2f   :  { %11110 = vmatmul.mubr.msk.f32.vlgmr.msra.gmra.mxu1 %vm968_vm3, %v7112_v44  ;;  %v7110_v54 = vmul.f32 %v11498_v8, %v11494_v49  ;;  %v367_v49 = vld [vmem:[%s12878_s24 + $0x28] sm:$0xff]  ;;  %v366_v44 = vld [vmem:[%s12878_s24 + $0x20] sm:$0xff]  ;;  %v247_v8 = vld [vmem:[%s12880_s12 + $0x58] sm:$0xff] }
0x2a30   :  { %11124 = vmatpush3.msra.mxu1 %v361_v43  ;;  %11131 = vmatprep.mubr.msk.f32.mxu1 %vm557_vm0, %v12516_v6 }
0x2a31   :  { %11125 = vmatprep.subr.mxu1 %v360_v53  ;;  %11105 = vmatmul.mubr.msk.f32.vlgmr.msra.gmra.mxu0 %vm968_vm3, %v7110_v54  ;;  %v245_v54 = vld [vmem:[%s12880_s12 + $0x48] sm:$0xff] }
0x2a32   :  { %11113 = vmatpush3.msra.mxu0 %v385_v51  ;;  %11126 = vmatpush3.msra.mxu1 %v360_v53  ;;  %v246_v53 = vld [vmem:[%s12880_s12 + $0x50] sm:$0xff] }
0x2a33   :  { %11114 = vmatprep.subr.mxu0 %v384_v55  ;;  %11120 = vmatprep.mubr.msk.f32.mxu0 %vm557_vm0, %v12516_v6 }
0x2a34   :  { %11127 = vmatprep.subr.mxu1 %v359_v56  ;;  %11115 = vmatpush3.msra.mxu0 %v384_v55  ;;  %v244_v55 = vld [vmem:[%s12880_s12 + $0x40] sm:$0xff] }
0x2a35   :  { %11128 = vmatpush3.msra.mxu1 %v359_v56  ;;  %11116 = vmatprep.subr.mxu0 %v383_v61  ;;  %v369_v56 = vld [vmem:[%s12878_s24 + $0x38] sm:$0xff] }
0x2a36   :  { %11129 = vmatprep.subr.mxu1 %v358_v62  ;;  %11117 = vmatpush3.msra.mxu0 %v383_v61  ;;  %v368_v61 = vld [vmem:[%s12878_s24 + $0x30] sm:$0xff] }
0x2a37   :  { %11130 = vmatpush3.msra.mxu1 %v358_v62  ;;  %11118 = vmatprep.subr.mxu0 %v382_v63 }
0x2a38   :  { %11132 = vmatmul.mubr.msk.f32.vlgmr.msra.gmra.mxu1 %vm557_vm0, %v12518_v7  ;;  %11119 = vmatpush3.msra.mxu0 %v382_v63 }
0x2a39   :  { %11121 = vmatmul.mubr.msk.f32.vlgmr.msra.gmra.mxu0 %vm557_vm0, %v12518_v7  ;;  %11134 = vmatprep.subr.mxu0 %v401_v0 }
0x2a3a   :  { %11135 = vmatpush3.msra.mxu0 %v401_v0  ;;  %11142 = vmatprep.mubr.msk.f32.mxu0 %vm557_vm0, %v12516_v6 }
0x2a3b   :  { %11136 = vmatprep.subr.mxu0 %v400_v1  ;;  %11145 = vmatprep.subr.mxu1 %v11613_v10 }
0x2a3c   :  { %11137 = vmatpush3.msra.mxu0 %v400_v1  ;;  %11147 = vmatprep.mubr.msk.f32.mxu1 %vm11614_vm1, %v11613_v10 }
0x2a3d   :  { %11138 = vmatprep.subr.mxu0 %v399_v2 }
0x2a3e   :  { %11139 = vmatpush3.msra.mxu0 %v399_v2 }
0x2a3f   :  { %11140 = vmatprep.subr.mxu0 %v398_v3 }
0x2a40   :  { %11141 = vmatpush3.msra.mxu0 %v398_v3 }
0x2a41   :  { %11143 = vmatmul.mubr.msk.f32.vlgmr.msra.gmra.mxu0 %vm557_vm0, %v12518_v7  ;;  %11155 = vmatprep.subr.mxu0 %v11613_v10 }
0x2a42   :  { %11157 = vmatprep.mubr.msk.f32.mxu0 %vm11614_vm1, %v11613_v10 }
0x2aef   :  { %v12591_v4 = vpop.f32.mrf.mxu1 }
0x2af1   :  { %v12593_v5 = vpop.f32.mrf.mxu0  ;;  %v11111_v11 = vpop.f32.mrf.mxu1 }
0x2af3   :  { %v11106_v12 = vpop.f32.mrf.mxu0 }
0x2af8   :  { %v11133_v60 = vpop.f32.mrf.mxu1 }
0x2af9   :  { %v11122_v14 = vpop.f32.mrf.mxu0  ;;  %v7418_v20 = vadd.f32 %v11133_v60, %v9990_v58 }
0x2afa   :  { %v7412_v15 = vpop.f32.mrf.mxu1  ;;  %v7337_v23 = vadd.f32 %v11122_v14, %v9987_v17  ;;  %v10006_v14 = vld [vmem:[%s12879_s30 + $0x1] ss:$0 sm:$0xff] }
0x2afb   :  { %v7413_v18 = vadd.f32 %v9990_v58, %v7412_v15  ;;  %v7331_v57 = vpop.f32.mrf.mxu0 }
0x2afc   :  { %v7332_v19 = vadd.f32 %v9987_v17, %v7331_v57 }
0x2afd   :  { %11146 = vmatpush3.xpose.msk.msra.mxu1 %vm801_vm2, %v7413_v18 }
0x2afe   :  { %11150 = vmatprep.subr.mxu1 %v11613_v10 }
0x2b00   :  { %11148 = vmatmul.mubr.msk.f32.vlgmr.msra.gmra.mxu1 %vm801_vm2, %v7332_v19 }
0x2b01   :  { %11151 = vmatpush3.xpose.msk.msra.mxu1 %vm801_vm2, %v7418_v20  ;;  %v11144_v22 = vpop.f32.mrf.mxu0  ;;  %11152 = vmatprep.mubr.msk.f32.mxu1 %vm11614_vm1, %v11613_v10 }
0x2b02   :  { %v7499_v26 = vadd.f32 %v11144_v22, %v9993_v21  ;;  %11160 = vmatprep.subr.mxu1 %v11613_v10 }
0x2b03   :  { %v7493_v28 = vpop.f32.mrf.mxu0 }
0x2b04   :  { %v7494_v27 = vadd.f32 %v9993_v21, %v7493_v28  ;;  %11153 = vmatmul.mubr.msk.f32.vlgmr.msra.gmra.mxu1 %vm801_vm2, %v7337_v23 }
0x2b05   :  { %11161 = vmatpush3.msra.mxu1 %v7499_v26  ;;  %11162 = vmatprep.mubr.msk.f32.mxu1 %vm11614_vm1, %v11613_v10 }
0x2b06   :  { %11156 = vmatpush3.msra.mxu0 %v7494_v27  ;;  %11172 = vmatprep.subr.mxu1 %v367_v49 }
0x2b07   :  { %11165 = vmatprep.subr.mxu0 %v369_v56 }
0x2bc0   :  { %v7574_v30 = vpop.f32.mrf.mxu1 }
0x2bc1   :  { %v7654_v31 = vmul.f32 0.25, %v7574_v30 }
0x2bc2   :  { %v11149_v29 = vpop.f32.mrf.mxu1 }
0x2bc3   :  { %v7656_v32 = vadd.f32 %v7654_v31, %v12252_v16 }
0x2bc4   :  { %v7650_v33 = vpop.f32.mrf.mxu1 }
0x2bc5   :  { %v7655_v34 = vmul.f32 0.25, %v7650_v33  ;;  %v7658_v35 = vsel %vm968_vm3, %v7656_v32, -inf }
0x2bc6   :  { %7659 = vmax.xlane.f32.xlu0 %v7658_v35  ;;  %v11154_v42 = vpop.f32.mrf.mxu1  ;;  %v270_v35 = vld [vmem:[%s12881_s27 + $0x50] sm:$0xff] }
0x2bc7   :  { %v7657_v36 = vadd.f32 %v7655_v34, %v12252_v16  ;;  %v271_v34 = vld [vmem:[%s12881_s27 + $0x58] sm:$0xff]  ;;  %v269_v42 = vld [vmem:[%s12881_s27 + $0x48] sm:$0xff] }
0x2bc9   :  { %v7661_v37 = vsel %vm968_vm3, %v7657_v36, -inf }
0x2bca   :  { %7662 = vmax.xlane.f32.xlu1 %v7661_v37  ;;  %v287_v37 = vld [vmem:[%s12883_s28 + $0x58] sm:$0xff] }
0x2c4f   :  { %v7660_v38 = vpop.xlane.xlu0 %7659 }
0x2c50   :  { %v7664_v40 = vsub.f32 %v7656_v32, %v7660_v38 }
0x2c52   :  { %v7666_v59 = vmul.f32 1.442695, %v7664_v40 }
0x2c53   :  { %v7663_v45 = vpop.xlane.xlu1 %7662 }
0x2c54   :  { %11499 = vpow2.f32 %v7666_v59  ;;  %v7665_v13 = vsub.f32 %v7657_v36, %v7663_v45  ;;  %v268_v36 = vld [vmem:[%s12881_s27 + $0x40] sm:$0xff] }
0x2c56   :  { %v7668_v46 = vmul.f32 1.442695, %v7665_v13 }
0x2c58   :  { %11501 = vpow2.f32 %v7668_v46 }
0x2c61   :  { %v11500_v47 = vpop.eup %11499 }
0x2c62   :  { %v7670_v48 = vsel %vm968_vm3, %v11500_v47, 0.0 }
0x2c63   :  { %7671 = vadd.xlane.f32.xlu0 %v7670_v48  ;;  %v10007_v48 = vld [vmem:[%s12884_s6 + $0x1] ss:$0 sm:$0xff] }
0x2c65   :  { %v11502_v9 = vpop.eup %11501 }
0x2c66   :  { %v7673_v16 = vsel %vm968_vm3, %v11502_v9, 0.0 }
0x2c67   :  { %7674 = vadd.xlane.f32.xlu1 %v7673_v16 }
0x2cec   :  { %v7672_v50 = vpop.xlane.xlu0 %7671 }
0x2ced   :  { %11503 = vrcp.f32 %v7672_v50 }
0x2cf0   :  { %v7675_v43 = vpop.xlane.xlu1 %7674 }
0x2cf1   :  { %11505 = vrcp.f32 %v7675_v43  ;;  %v10008_v43 = vld [vmem:[%s12885_s2 + $0x1] ss:$0 sm:$0xff] }
0x2cfa   :  { %v11504_v51 = vpop.eup %11503 }
0x2cfb   :  { %v7677_v41 = vmul.f32 %v11504_v51, %v11500_v47 }
0x2cfd   :  { %11158 = vmatmul.mubr.msk.f32.vlgmr.msra.gmra.mxu0 %vm968_vm3, %v7677_v41 }
0x2cfe   :  { %v11506_v52 = vpop.eup %11505  ;;  %11166 = vmatpush3.msra.mxu0 %v369_v56 }
0x2cff   :  { %v7679_v39 = vmul.f32 %v11506_v52, %v11502_v9  ;;  %11167 = vmatprep.subr.mxu0 %v368_v61 }
0x2d00   :  { %11168 = vmatpush3.msra.mxu0 %v368_v61  ;;  %v10015_v61 = vld [vmem:[%s12888_s11 + $0x2] ss:$0 sm:$0xff] }
0x2d01   :  { %11163 = vmatmul.mubr.msk.f32.vlgmr.msra.gmra.mxu1 %vm968_vm3, %v7679_v39  ;;  %11179 = vmatprep.subr.mxu0 %v271_v34  ;;  %v286_v39 = vld [vmem:[%s12883_s28 + $0x50] sm:$0xff] }
0x2d02   :  { %11173 = vmatpush3.msra.mxu1 %v367_v49  ;;  %11176 = vmatprep.mubr.msk.f32.mxu1 %vm801_vm2, %v12593_v5 }
0x2d03   :  { %11174 = vmatprep.subr.mxu1 %v366_v44 }
0x2d04   :  { %11175 = vmatpush3.msra.mxu1 %v366_v44  ;;  %v285_v44 = vld [vmem:[%s12883_s28 + $0x48] sm:$0xff] }
0x2d05   :  { %11190 = vmatprep.subr.mxu1 %v247_v8  ;;  %11177 = vmatmul.mubr.msk.f32.vlgmr.msra.gmra.mxu1 %vm801_vm2, %v12591_v4  ;;  %v10012_v4 = vld [vmem:[%s12886_s10 + $0x2] ss:$0 sm:$0xff] }
0x2d06   :  { %11191 = vmatpush3.msra.mxu1 %v247_v8  ;;  %11198 = vmatprep.mubr.msk.f32.mxu1 %vm557_vm0, %v12360_v24  ;;  %v284_v8 = vld [vmem:[%s12883_s28 + $0x40] sm:$0xff] }
0x2d07   :  { %11192 = vmatprep.subr.mxu1 %v246_v53 }
0x2d08   :  { %11193 = vmatpush3.msra.mxu1 %v246_v53 }
0x2d09   :  { %11194 = vmatprep.subr.mxu1 %v245_v54 }
0x2d0a   :  { %11195 = vmatpush3.msra.mxu1 %v245_v54  ;;  %v10009_v54 = vld [vmem:[%s12887_s7 + $0x2] ss:$0 sm:$0xff] }
0x2d0b   :  { %11196 = vmatprep.subr.mxu1 %v244_v55 }
0x2d0c   :  { %11197 = vmatpush3.msra.mxu1 %v244_v55 }
0x2d0d   :  { %11199 = vmatmul.mubr.msk.f32.vlgmr.msra.gmra.mxu1 %vm557_vm0, %v12362_v25  ;;  %11212 = vmatprep.subr.mxu1 %v11613_v10 }
0x2d0e   :  { %11214 = vmatprep.mubr.msk.f32.mxu1 %vm11614_vm1, %v11613_v10 }
0x2dbd   :  { %v7749_v62 = vpop.f32.mrf.mxu0 }
0x2dbe   :  { %11169 = vmatprep.mubr.msk.f32.mxu0 %vm801_vm2, %v7749_v62 }
0x2dbf   :  { %v11159_v63 = vpop.f32.mrf.mxu0 }
0x2dc1   :  { %v7822_v0 = vpop.f32.mrf.mxu1 }
0x2dc2   :  { %11170 = vmatmul.mubr.msk.f32.vlgmr.msra.gmra.mxu0 %vm801_vm2, %v7822_v0 }
0x2dc3   :  { %v11164_v1 = vpop.f32.mrf.mxu1  ;;  %11180 = vmatpush3.msra.mxu0 %v271_v34 }
0x2dc4   :  { %11181 = vmatprep.subr.mxu0 %v270_v35 }
0x2dc5   :  { %v11178_v2 = vpop.f32.mrf.mxu1  ;;  %11182 = vmatpush3.msra.mxu0 %v270_v35  ;;  %v272_v35 = vld [vmem:[%s12881_s27 + $0x60] sm:$0xff] }
0x2dc6   :  { %11183 = vmatprep.subr.mxu0 %v269_v42 }
0x2dc7   :  { %v7979_v3 = vpop.f32.mrf.mxu1  ;;  %11184 = vmatpush3.msra.mxu0 %v269_v42  ;;  %v250_v42 = vld [vmem:[%s12880_s12 + $0x70] sm:$0xff] }
0x2dc8   :  { %11185 = vmatprep.subr.mxu0 %v268_v36 }
0x2dc9   :  { %11186 = vmatpush3.msra.mxu0 %v268_v36  ;;  %v249_v36 = vld [vmem:[%s12880_s12 + $0x68] sm:$0xff] }
0x2dca   :  { %11201 = vmatprep.subr.mxu0 %v287_v37 }
0x2dcd   :  { %v11200_v5 = vpop.f32.mrf.mxu1 }
0x2dce   :  { %v12638_v11 = vadd.f32 %v11200_v5, %v10012_v4 }
0x2dcf   :  { %v8199_v12 = vpop.f32.mrf.mxu1 }
0x2dd0   :  { %v8200_v60 = vadd.f32 %v10012_v4, %v8199_v12 }
0x2dd2   :  { %11213 = vmatpush3.xpose.msk.msra.mxu1 %vm801_vm2, %v8200_v60 }
0x2dd3   :  { %11217 = vmatprep.subr.mxu1 %v11613_v10 }
0x2e82   :  { %v11171_v58 = vpop.f32.mrf.mxu0 }
0x2e83   :  { %v7985_v15 = vadd.f32 %v11178_v2, %v11171_v58 }
0x2e84   :  { %v7898_v17 = vpop.f32.mrf.mxu0 }
0x2e85   :  { %v7995_v18 = vadd.f32 %v10006_v14, %v7985_v15  ;;  %v7980_v57 = vadd.f32 %v7979_v3, %v7898_v17 }
0x2e87   :  { %v7994_v19 = vadd.f32 %v10006_v14, %v7980_v57  ;;  %v7997_v20 = vadd.f32 %v7995_v18, %v12518_v7 }
0x2e89   :  { %v8001_v21 = vsel %vm557_vm0, %v7997_v20, 0.0  ;;  %v7996_v22 = vadd.f32 %v7994_v19, %v12516_v6 }
0x2e8a   :  { %8002 = vadd.xlane.f32.xlu1 %v8001_v21 }
0x2e8b   :  { %v7998_v23 = vsel %vm557_vm0, %v7996_v22, 0.0 }
0x2e8c   :  { %7999 = vadd.xlane.f32.xlu0 %v7998_v23 }
0x2f13   :  { %v8003_v26 = vpop.xlane.xlu1 %8002 }
0x2f14   :  { %v8005_v28 = vmul.f32 0.03125, %v8003_v26 }
0x2f15   :  { %v8000_v27 = vpop.xlane.xlu0 %7999 }
0x2f16   :  { %v8007_v30 = vsub.f32 %v7997_v20, %v8005_v28  ;;  %v8004_v31 = vmul.f32 0.03125, %v8000_v27  ;;  %v275_v28 = vld [vmem:[%s12881_s27 + $0x78] sm:$0xff] }
0x2f17   :  { %v251_v27 = vld [vmem:[%s12880_s12 + $0x78] sm:$0xff] }
0x2f18   :  { %v8006_v29 = vsub.f32 %v7996_v22, %v8004_v31  ;;  %v8009_v32 = vmul.f32 %v8007_v30, %v8007_v30 }
0x2f1a   :  { %v8013_v7 = vsel %vm557_vm0, %v8009_v32, 0.0  ;;  %v8008_v33 = vmul.f32 %v8006_v29, %v8006_v29 }
0x2f1b   :  { %8014 = vadd.xlane.f32.xlu1 %v8013_v7  ;;  %v274_v7 = vld [vmem:[%s12881_s27 + $0x70] sm:$0xff] }
0x2f1c   :  { %v8010_v6 = vsel %vm557_vm0, %v8008_v33, 0.0 }
0x2f1d   :  { %8011 = vadd.xlane.f32.xlu0 %v8010_v6  ;;  %v273_v6 = vld [vmem:[%s12881_s27 + $0x68] sm:$0xff] }
0x2fa4   :  { %v8015_v38 = vpop.xlane.xlu1 %8014 }
0x2fa5   :  { %v8017_v40 = vmul.f32 0.03125, %v8015_v38  ;;  %v248_v38 = vld [vmem:[%s12880_s12 + $0x60] sm:$0xff] }
0x2fa6   :  { %v8012_v59 = vpop.xlane.xlu0 %8011 }
0x2fa7   :  { %v8019_v45 = vadd.f32 1e-05, %v8017_v40  ;;  %v8016_v13 = vmul.f32 0.03125, %v8012_v59  ;;  %v290_v40 = vld [vmem:[%s12883_s28 + $0x70] sm:$0xff]  ;;  %v289_v59 = vld [vmem:[%s12883_s28 + $0x68] sm:$0xff] }
0x2fa9   :  { %11507 = vrsqrt.f32 %v8019_v45  ;;  %v8018_v46 = vadd.f32 1e-05, %v8016_v13  ;;  %v288_v45 = vld [vmem:[%s12883_s28 + $0x60] sm:$0xff] }
0x2fab   :  { %11509 = vrsqrt.f32 %v8018_v46 }
0x2fb6   :  { %v11508_v47 = vpop.eup %11507 }
0x2fb7   :  { %v8023_v9 = vmul.f32 %v11508_v47, %v8007_v30 }
0x2fb8   :  { %v11510_v16 = vpop.eup %11509 }
0x2fb9   :  { %v8022_v49 = vmul.f32 %v11510_v16, %v8006_v29  ;;  %v8031_v50 = vmul.f32 %v10007_v48, %v8023_v9  ;;  %v10027_v16 = vld [vmem:[%s12886_s10 + $0x3] ss:$0 sm:$0xff] }
0x2fbb   :  { %v8030_v51 = vmul.f32 %v10007_v48, %v8022_v49  ;;  %v12658_v52 = vadd.f32 %v10008_v43, %v8031_v50 }
0x2fbd   :  { %v12656_v41 = vadd.f32 %v10008_v43, %v8030_v51  ;;  %v10024_v51 = vld [vmem:[%s12887_s7 + $0x3] ss:$0 sm:$0xff] }
0x2fbf   :  { %11187 = vmatprep.mubr.msk.f32.mxu0 %vm557_vm0, %v12656_v41 }
0x2fc0   :  { %11188 = vmatmul.mubr.msk.f32.vlgmr.msra.gmra.mxu0 %vm557_vm0, %v12658_v52 }
0x2fc1   :  { %11202 = vmatpush3.msra.mxu0 %v287_v37  ;;  %11209 = vmatprep.mubr.msk.f32.mxu0 %vm557_vm0, %v12360_v24  ;;  %v291_v37 = vld [vmem:[%s12883_s28 + $0x78] sm:$0xff] }
0x2fc2   :  { %11203 = vmatprep.subr.mxu0 %v286_v39 }
0x2fc3   :  { %11204 = vmatpush3.msra.mxu0 %v286_v39 }
0x2fc4   :  { %11205 = vmatprep.subr.mxu0 %v285_v44 }
0x2fc5   :  { %11206 = vmatpush3.msra.mxu0 %v285_v44 }
0x2fc6   :  { %11207 = vmatprep.subr.mxu0 %v284_v8 }
0x2fc7   :  { %11208 = vmatpush3.msra.mxu0 %v284_v8  ;;  %v10030_v8 = vld [vmem:[%s12888_s11 + $0x3] ss:$0 sm:$0xff] }
0x2fc8   :  { %11210 = vmatmul.mubr.msk.f32.vlgmr.msra.gmra.mxu0 %vm557_vm0, %v12362_v25  ;;  %11222 = vmatprep.subr.mxu0 %v11613_v10 }
0x2fc9   :  { %11224 = vmatprep.mubr.msk.f32.mxu0 %vm11614_vm1, %v11613_v10 }
0x3080   :  { %v11189_v53 = vpop.f32.mrf.mxu0 }
0x3081   :  { %v8124_v62 = vadd.f32 %v11189_v53, %v10009_v54 }
0x3082   :  { %v8118_v55 = vpop.f32.mrf.mxu0 }
0x3083   :  { %v8119_v56 = vadd.f32 %v10009_v54, %v8118_v55 }
0x3085   :  { %11215 = vmatmul.mubr.msk.f32.vlgmr.msra.gmra.mxu1 %vm801_vm2, %v8119_v56 }
0x3086   :  { %11218 = vmatpush3.xpose.msk.msra.mxu1 %vm801_vm2, %v12638_v11  ;;  %11219 = vmatprep.mubr.msk.f32.mxu1 %vm11614_vm1, %v11613_v10 }
0x3087   :  { %11227 = vmatprep.subr.mxu1 %v11613_v10 }
0x3088   :  { %v11211_v63 = vpop.f32.mrf.mxu0 }
0x3089   :  { %v8286_v0 = vadd.f32 %v11211_v63, %v10015_v61  ;;  %11220 = vmatmul.mubr.msk.f32.vlgmr.msra.gmra.mxu1 %vm801_vm2, %v8124_v62 }
0x308a   :  { %v8280_v1 = vpop.f32.mrf.mxu0  ;;  %11229 = vmatprep.mubr.msk.f32.mxu1 %vm11614_vm1, %v11613_v10 }
0x308b   :  { %v8281_v2 = vadd.f32 %v10015_v61, %v8280_v1  ;;  %11228 = vmatpush3.msra.mxu1 %v8286_v0 }
0x308c   :  { %11243 = vmatprep.subr.mxu1 %v251_v27 }
0x308d   :  { %11223 = vmatpush3.msra.mxu0 %v8281_v2 }
0x308e   :  { %11232 = vmatprep.subr.mxu0 %v275_v28 }
0x3145   :  { %v8361_v3 = vpop.f32.mrf.mxu1 }
0x3146   :  { %v8441_v4 = vmul.f32 0.25, %v8361_v3 }
0x3147   :  { %v11216_v5 = vpop.f32.mrf.mxu1 }
0x3148   :  { %v8443_v11 = vsel %vm968_vm3, %v8441_v4, -inf }
0x3149   :  { %8444 = vmax.xlane.f32.xlu1 %v8443_v11  ;;  %v8437_v12 = vpop.f32.mrf.mxu1 }
0x314a   :  { %v8442_v60 = vmul.f32 0.25, %v8437_v12 }
0x314b   :  { %v11221_v14 = vpop.f32.mrf.mxu1 }
0x314c   :  { %v8446_v58 = vsel %vm968_vm3, %v8442_v60, -inf }
0x314d   :  { %8447 = vmax.xlane.f32.xlu0 %v8446_v58 }
0x31d2   :  { %v8445_v15 = vpop.xlane.xlu1 %8444 }
0x31d3   :  { %v8449_v17 = vsub.f32 %v8441_v4, %v8445_v15 }
0x31d5   :  { %v8451_v18 = vmul.f32 1.442695, %v8449_v17 }
0x31d6   :  { %v8448_v57 = vpop.xlane.xlu0 %8447 }
0x31d7   :  { %11511 = vpow2.f32 %v8451_v18  ;;  %v8450_v19 = vsub.f32 %v8442_v60, %v8448_v57  ;;  %v257_v57 = vld [vmem:[%s12889_s16 + $0x28] sm:$0xff] }
0x31d9   :  { %v8453_v20 = vmul.f32 1.442695, %v8450_v19 }
0x31db   :  { %11513 = vpow2.f32 %v8453_v20 }
0x31e4   :  { %v11512_v21 = vpop.eup %11511 }
0x31e5   :  { %v8455_v22 = vsel %vm968_vm3, %v11512_v21, 0.0 }
0x31e6   :  { %8456 = vadd.xlane.f32.xlu1 %v8455_v22 }
0x31e8   :  { %v11514_v23 = vpop.eup %11513 }
0x31e9   :  { %v8458_v26 = vsel %vm968_vm3, %v11514_v23, 0.0 }
0x31ea   :  { %8459 = vadd.xlane.f32.xlu0 %v8458_v26 }
0x326f   :  { %v8457_v30 = vpop.xlane.xlu1 %8456 }
0x3270   :  { %11515 = vrcp.f32 %v8457_v30  ;;  %v258_v30 = vld [vmem:[%s12889_s16 + $0x30] sm:$0xff] }
0x3273   :  { %v8460_v31 = vpop.xlane.xlu0 %8459 }
0x3274   :  { %11517 = vrcp.f32 %v8460_v31 }
0x327d   :  { %v11516_v29 = vpop.eup %11515 }
0x327e   :  { %v8462_v32 = vmul.f32 %v11516_v29, %v11512_v21 }
0x3280   :  { %11225 = vmatmul.mubr.msk.f32.vlgmr.msra.gmra.mxu0 %vm968_vm3, %v8462_v32 }
0x3281   :  { %v11518_v33 = vpop.eup %11517  ;;  %11233 = vmatpush3.msra.mxu0 %v275_v28  ;;  %11240 = vmatprep.mubr.msk.f32.mxu0 %vm557_vm0, %v12656_v41  ;;  %v256_v28 = vld [vmem:[%s12889_s16 + $0x20] sm:$0xff] }
0x3282   :  { %11234 = vmatprep.subr.mxu0 %v274_v7  ;;  %v8464_v34 = vmul.f32 %v11518_v33, %v11514_v23 }
0x3283   :  { %11235 = vmatpush3.msra.mxu0 %v274_v7 }
0x3284   :  { %11236 = vmatprep.subr.mxu0 %v273_v6  ;;  %11230 = vmatmul.mubr.msk.f32.vlgmr.msra.gmra.mxu1 %vm968_vm3, %v8464_v34 }
0x3285   :  { %11237 = vmatpush3.msra.mxu0 %v273_v6  ;;  %11244 = vmatpush3.msra.mxu1 %v251_v27  ;;  %v259_v27 = vld [vmem:[%s12889_s16 + $0x38] sm:$0xff]  ;;  %v10043_v6 = vld [vmem:[%s12890_s15 + $0x1] ss:$0 sm:$0xff] }
0x3286   :  { %11238 = vmatprep.subr.mxu0 %v272_v35  ;;  %11245 = vmatprep.subr.mxu1 %v250_v42 }
0x3287   :  { %11251 = vmatprep.mubr.msk.f32.mxu1 %vm557_vm0, %v12360_v24  ;;  %11239 = vmatpush3.msra.mxu0 %v272_v35 }
0x3288   :  { %11246 = vmatpush3.msra.mxu1 %v250_v42  ;;  %11241 = vmatmul.mubr.msk.f32.vlgmr.msra.gmra.mxu0 %vm557_vm0, %v12658_v52 }
0x3289   :  { %11247 = vmatprep.subr.mxu1 %v249_v36  ;;  %11254 = vmatprep.subr.mxu0 %v291_v37 }
0x328a   :  { %11248 = vmatpush3.msra.mxu1 %v249_v36  ;;  %11255 = vmatpush3.msra.mxu0 %v291_v37 }
0x328b   :  { %11262 = vmatprep.mubr.msk.f32.mxu0 %vm557_vm0, %v12360_v24  ;;  %11249 = vmatprep.subr.mxu1 %v248_v38 }
0x328c   :  { %11256 = vmatprep.subr.mxu0 %v290_v40  ;;  %11250 = vmatpush3.msra.mxu1 %v248_v38 }
0x328d   :  { %11257 = vmatpush3.msra.mxu0 %v290_v40  ;;  %11252 = vmatmul.mubr.msk.f32.vlgmr.msra.gmra.mxu1 %vm557_vm0, %v12362_v25 }
0x328e   :  { %11258 = vmatprep.subr.mxu0 %v289_v59  ;;  %11265 = vmatprep.subr.mxu1 %v11613_v10 }
0x328f   :  { %11259 = vmatpush3.msra.mxu0 %v289_v59  ;;  %11267 = vmatprep.mubr.msk.f32.mxu1 %vm11614_vm1, %v11613_v10 }
0x3290   :  { %11260 = vmatprep.subr.mxu0 %v288_v45 }
0x3291   :  { %11261 = vmatpush3.msra.mxu0 %v288_v45 }
0x3292   :  { %11263 = vmatmul.mubr.msk.f32.vlgmr.msra.gmra.mxu0 %vm557_vm0, %v12362_v25  ;;  %11275 = vmatprep.subr.mxu0 %v11613_v10 }
0x3293   :  { %11277 = vmatprep.mubr.msk.f32.mxu0 %vm11614_vm1, %v11613_v10 }
0x3340   :  { %v12721_v24 = vpop.f32.mrf.mxu0 }
0x3342   :  { %v11226_v13 = vpop.f32.mrf.mxu0 }
0x3344   :  { %v12723_v46 = vpop.f32.mrf.mxu1 }
0x3346   :  { %v11231_v47 = vpop.f32.mrf.mxu1 }
0x3348   :  { %v11242_v48 = vpop.f32.mrf.mxu0 }
0x3349   :  { %v8689_v55 = vadd.f32 %v11242_v48, %v10024_v51 }
0x334a   :  { %v8683_v50 = vpop.f32.mrf.mxu0 }
0x334b   :  { %v8684_v39 = vadd.f32 %v10024_v51, %v8683_v50  ;;  %v301_v51 = vld [vmem:[%s12891_s18 + $0x38] sm:$0xff] }
0x334d   :  { %v11253_v9 = vpop.f32.mrf.mxu1 }
0x334e   :  { %v8770_v44 = vadd.f32 %v11253_v9, %v10027_v16 }
0x334f   :  { %v8764_v49 = vpop.f32.mrf.mxu1 }
0x3350   :  { %v8765_v43 = vadd.f32 %v10027_v16, %v8764_v49 }
0x3352   :  { %v11264_v25 = vpop.f32.mrf.mxu0  ;;  %11266 = vmatpush3.xpose.msk.msra.mxu1 %vm801_vm2, %v8765_v43 }
0x3353   :  { %11270 = vmatprep.subr.mxu1 %v11613_v10  ;;  %v8851_v56 = vadd.f32 %v11264_v25, %v10030_v8  ;;  %v300_v25 = vld [vmem:[%s12891_s18 + $0x30] sm:$0xff] }
0x3354   :  { %v8845_v53 = vpop.f32.mrf.mxu0 }
0x3355   :  { %v8846_v54 = vadd.f32 %v10030_v8, %v8845_v53  ;;  %11268 = vmatmul.mubr.msk.f32.vlgmr.msra.gmra.mxu1 %vm801_vm2, %v8684_v39  ;;  %v299_v39 = vld [vmem:[%s12891_s18 + $0x28] sm:$0xff]  ;;  %v319_v8 = vld [vmem:[%s12892_s22 + $0x78] sm:$0xff]  ;;  %v318_v53 = vld [vmem:[%s12892_s22 + $0x70] sm:$0xff] }
0x3356   :  { %11271 = vmatpush3.xpose.msk.msra.mxu1 %vm801_vm2, %v8770_v44  ;;  %11272 = vmatprep.mubr.msk.f32.mxu1 %vm11614_vm1, %v11613_v10  ;;  %v298_v44 = vld [vmem:[%s12891_s18 + $0x20] sm:$0xff] }
0x3357   :  { %11276 = vmatpush3.msra.mxu0 %v8846_v54  ;;  %11280 = vmatprep.subr.mxu1 %v11613_v10  ;;  %v317_v54 = vld [vmem:[%s12892_s22 + $0x68] sm:$0xff] }
0x3358   :  { %11285 = vmatprep.subr.mxu0 %v259_v27 }
0x3359   :  { %11273 = vmatmul.mubr.msk.f32.vlgmr.msra.gmra.mxu1 %vm801_vm2, %v8689_v55  ;;  %v316_v55 = vld [vmem:[%s12892_s22 + $0x60] sm:$0xff] }
0x335a   :  { %11281 = vmatpush3.msra.mxu1 %v8851_v56  ;;  %11282 = vmatprep.mubr.msk.f32.mxu1 %vm11614_vm1, %v11613_v10 }
0x335b   :  { %11292 = vmatprep.subr.mxu1 %v257_v57 }
0x3415   :  { %v8926_v61 = vpop.f32.mrf.mxu1 }
0x3416   :  { %v9006_v62 = vmul.f32 0.25, %v8926_v61 }
0x3417   :  { %v11269_v63 = vpop.f32.mrf.mxu1 }
0x3418   :  { %v9008_v0 = vsel %vm968_vm3, %v9006_v62, -inf }
0x3419   :  { %9009 = vmax.xlane.f32.xlu0 %v9008_v0  ;;  %v9002_v1 = vpop.f32.mrf.mxu1 }
0x341a   :  { %v9007_v2 = vmul.f32 0.25, %v9002_v1 }
0x341b   :  { %v11274_v3 = vpop.f32.mrf.mxu1 }
0x341c   :  { %v9011_v4 = vsel %vm968_vm3, %v9007_v2, -inf  ;;  %v10044_v3 = vld [vmem:[%s12893_s23 + $0x1] ss:$0 sm:$0xff] }
0x341d   :  { %9012 = vmax.xlane.f32.xlu1 %v9011_v4 }
0x34a2   :  { %v9010_v5 = vpop.xlane.xlu0 %9009 }
0x34a3   :  { %v9014_v11 = vsub.f32 %v9006_v62, %v9010_v5 }
0x34a5   :  { %v9016_v12 = vmul.f32 1.442695, %v9014_v11 }
0x34a6   :  { %v9013_v60 = vpop.xlane.xlu1 %9012 }
0x34a7   :  { %11519 = vpow2.f32 %v9016_v12  ;;  %v9015_v14 = vsub.f32 %v9007_v2, %v9013_v60  ;;  %v10045_v60 = vld [vmem:[%s12894_s26 + $0x1] ss:$0 sm:$0xff] }
0x34a9   :  { %v9018_v10 = vmul.f32 1.442695, %v9015_v14 }
0x34ab   :  { %11521 = vpow2.f32 %v9018_v10 }
0x34b4   :  { %v11520_v58 = vpop.eup %11519 }
0x34b5   :  { %v9020_v15 = vsel %vm968_vm3, %v11520_v58, 0.0 }
0x34b6   :  { %9021 = vadd.xlane.f32.xlu0 %v9020_v15  ;;  %v315_v15 = vld [vmem:[%s12892_s22 + $0x58] sm:$0xff] }
0x34b8   :  { %v11522_v17 = vpop.eup %11521 }
0x34b9   :  { %v9023_v18 = vsel %vm968_vm3, %v11522_v17, 0.0 }
0x34ba   :  { %9024 = vadd.xlane.f32.xlu1 %v9023_v18  ;;  %v313_v18 = vld [vmem:[%s12892_s22 + $0x48] sm:$0xff] }
0x353f   :  { %v9022_v19 = vpop.xlane.xlu0 %9021 }
0x3540   :  { %11523 = vrcp.f32 %v9022_v19  ;;  %v10046_v19 = vld [vmem:[%s12895_s1 + $0x1] ss:$0 sm:$0xff] }
0x3543   :  { %v9025_v20 = vpop.xlane.xlu1 %9024 }
0x3544   :  { %11525 = vrcp.f32 %v9025_v20 }
0x354d   :  { %v11524_v21 = vpop.eup %11523 }
0x354e   :  { %v9027_v22 = vmul.f32 %v11524_v21, %v11520_v58 }
0x3550   :  { %11278 = vmatmul.mubr.msk.f32.vlgmr.msra.gmra.mxu0 %vm968_vm3, %v9027_v22 }
0x3551   :  { %v11526_v23 = vpop.eup %11525  ;;  %11286 = vmatpush3.msra.mxu0 %v259_v27  ;;  %v10049_v27 = vld [vmem:[%s12896_s0 + $0x1] ss:$0 sm:$0xff] }
0x3552   :  { %v9029_v26 = vmul.f32 %v11526_v23, %v11522_v17  ;;  %11287 = vmatprep.subr.mxu0 %v258_v30  ;;  %v314_v17 = vld [vmem:[%s12892_s22 + $0x50] sm:$0xff] }
0x3553   :  { %11288 = vmatpush3.msra.mxu0 %v258_v30 }
0x3554   :  { %11283 = vmatmul.mubr.msk.f32.vlgmr.msra.gmra.mxu1 %vm968_vm3, %v9029_v26  ;;  %11299 = vmatprep.subr.mxu0 %v301_v51 }
0x3555   :  { %11293 = vmatpush3.msra.mxu1 %v257_v57  ;;  %11296 = vmatprep.mubr.msk.f32.mxu1 %vm801_vm2, %v12721_v24  ;;  %v312_v57 = vld [vmem:[%s12892_s22 + $0x40] sm:$0xff] }
0x3556   :  { %11294 = vmatprep.subr.mxu1 %v256_v28 }
0x3557   :  { %11295 = vmatpush3.msra.mxu1 %v256_v28 }
0x3558   :  { %11297 = vmatmul.mubr.msk.f32.vlgmr.msra.gmra.mxu1 %vm801_vm2, %v12723_v46  ;;  %11310 = vmatprep.subr.mxu1 %v319_v8 }
0x3559   :  { %11311 = vmatpush3.msra.mxu1 %v319_v8 }
0x355a   :  { %11312 = vmatprep.subr.mxu1 %v318_v53 }
0x355b   :  { %11313 = vmatpush3.msra.mxu1 %v318_v53 }
0x355c   :  { %11314 = vmatprep.subr.mxu1 %v317_v54 }
0x355d   :  { %11315 = vmatpush3.msra.mxu1 %v317_v54 }
0x355e   :  { %11316 = vmatprep.subr.mxu1 %v316_v55 }
0x355f   :  { %11317 = vmatpush3.msra.mxu1 %v316_v55 }
0x3560   :  { %11318 = vmatprep.subr.mxu1 %v315_v15 }
0x3561   :  { %11319 = vmatpush3.msra.mxu1 %v315_v15 }
0x3562   :  { %11320 = vmatprep.subr.mxu1 %v314_v17 }
0x3563   :  { %11321 = vmatpush3.msra.mxu1 %v314_v17 }
0x3564   :  { %11322 = vmatprep.subr.mxu1 %v313_v18 }
0x3565   :  { %11323 = vmatpush3.msra.mxu1 %v313_v18 }
0x3566   :  { %11324 = vmatprep.subr.mxu1 %v312_v57 }
0x3567   :  { %11325 = vmatpush3.msra.mxu1 %v312_v57 }
0x3610   :  { %v9099_v31 = vpop.f32.mrf.mxu0 }
0x3611   :  { %11289 = vmatprep.mubr.msk.f32.mxu0 %vm801_vm2, %v9099_v31 }
0x3612   :  { %v11279_v29 = vpop.f32.mrf.mxu0 }
0x3614   :  { %v9172_v32 = vpop.f32.mrf.mxu1 }
0x3615   :  { %11290 = vmatmul.mubr.msk.f32.vlgmr.msra.gmra.mxu0 %vm801_vm2, %v9172_v32 }
0x3616   :  { %v11284_v7 = vpop.f32.mrf.mxu1  ;;  %11300 = vmatpush3.msra.mxu0 %v301_v51  ;;  %v10053_v51 = vld [vmem:[%s12898_s13 + $0x1] ss:$0 sm:$0xff] }
0x3617   :  { %11301 = vmatprep.subr.mxu0 %v300_v25 }
0x3618   :  { %v11298_v33 = vpop.f32.mrf.mxu1  ;;  %11302 = vmatpush3.msra.mxu0 %v300_v25 }
0x3619   :  { %11303 = vmatprep.subr.mxu0 %v299_v39 }
0x361a   :  { %v9329_v42 = vpop.f32.mrf.mxu1  ;;  %11304 = vmatpush3.msra.mxu0 %v299_v39 }
0x361b   :  { %11305 = vmatprep.subr.mxu0 %v298_v44 }
0x361c   :  { %11306 = vmatpush3.msra.mxu0 %v298_v44 }
0x36d5   :  { %v11291_v34 = vpop.f32.mrf.mxu0 }
0x36d6   :  { %v9335_v35 = vadd.f32 %v11298_v33, %v11291_v34 }
0x36d7   :  { %v9248_v36 = vpop.f32.mrf.mxu0 }
0x36d8   :  { %v9345_v37 = vadd.f32 %v10043_v6, %v9335_v35  ;;  %v9330_v38 = vadd.f32 %v9329_v42, %v9248_v36 }
0x36da   :  { %v9344_v40 = vadd.f32 %v10043_v6, %v9330_v38  ;;  %v9347_v59 = vadd.f32 %v9345_v37, %v12658_v52 }
0x36dc   :  { %v9351_v45 = vsel %vm557_vm0, %v9347_v59, 0.0  ;;  %v9346_v24 = vadd.f32 %v9344_v40, %v12656_v41 }
0x36dd   :  { %9352 = vadd.xlane.f32.xlu1 %v9351_v45 }
0x36de   :  { %v9348_v13 = vsel %vm557_vm0, %v9346_v24, 0.0 }
0x36df   :  { %9349 = vadd.xlane.f32.xlu0 %v9348_v13 }
0x3766   :  { %v9353_v46 = vpop.xlane.xlu1 %9352 }
0x3767   :  { %v9355_v47 = vmul.f32 0.03125, %v9353_v46 }
0x3768   :  { %v9350_v48 = vpop.xlane.xlu0 %9349 }
0x3769   :  { %v9357_v9 = vsub.f32 %v9347_v59, %v9355_v47  ;;  %v9354_v16 = vmul.f32 0.03125, %v9350_v48 }
0x376b   :  { %v9356_v49 = vsub.f32 %v9346_v24, %v9354_v16  ;;  %v9359_v50 = vmul.f32 %v9357_v9, %v9357_v9 }
0x376d   :  { %v9363_v52 = vsel %vm557_vm0, %v9359_v50, 0.0  ;;  %v9358_v43 = vmul.f32 %v9356_v49, %v9356_v49 }
0x376e   :  { %9364 = vadd.xlane.f32.xlu1 %v9363_v52  ;;  %v10052_v52 = vld [vmem:[%s12897_s5 + $0x1] ss:$0 sm:$0xff] }
0x376f   :  { %v9360_v41 = vsel %vm557_vm0, %v9358_v43, 0.0 }
0x3770   :  { %9361 = vadd.xlane.f32.xlu0 %v9360_v41 }
0x37f7   :  { %v9365_v56 = vpop.xlane.xlu1 %9364 }
0x37f8   :  { %v9367_v61 = vmul.f32 0.03125, %v9365_v56 }
0x37f9   :  { %v9362_v62 = vpop.xlane.xlu0 %9361 }
0x37fa   :  { %v9369_v63 = vadd.f32 1e-05, %v9367_v61  ;;  %v9366_v0 = vmul.f32 0.03125, %v9362_v62 }
0x37fc   :  { %11527 = vrsqrt.f32 %v9369_v63  ;;  %v9368_v1 = vadd.f32 1e-05, %v9366_v0 }
0x37fe   :  { %11529 = vrsqrt.f32 %v9368_v1 }
0x3809   :  { %v11528_v2 = vpop.eup %11527 }
0x380a   :  { %v9373_v4 = vmul.f32 %v11528_v2, %v9357_v9 }
0x380b   :  { %v11530_v5 = vpop.eup %11529 }
0x380c   :  { %v9372_v11 = vmul.f32 %v11530_v5, %v9356_v49  ;;  %v9381_v12 = vmul.f32 %v10044_v3, %v9373_v4 }
0x380e   :  { %v9380_v14 = vmul.f32 %v10044_v3, %v9372_v11  ;;  %v9389_v58 = vadd.f32 %v10045_v60, %v9381_v12  ;;  %v516_v11 = vld [vmem:[%s11872_s20 + $0x18] sm:$0xff]  ;;  %v515_v12 = vld [vmem:[%s11872_s20 + $0x10] sm:$0xff] }
0x380f   :  { %11329 = vmatprep.subr.mxu0 %v516_v11 }
0x3810   :  { %v9388_v10 = vadd.f32 %v10045_v60, %v9380_v14  ;;  %v514_v60 = vld [vmem:[%s11872_s20 + $0x8] sm:$0xff]  ;;  %v513_v14 = vld [vmem:[%s11872_s20] sm:$0xff] }
0x3812   :  { %11307 = vmatprep.mubr.msk.f32.mxu0 %vm557_vm0, %v9388_v10 }
0x3813   :  { %11308 = vmatmul.mubr.msk.f32.vlgmr.msra.gmra.mxu0 %vm557_vm0, %v9389_v58 }
0x3814   :  { %11330 = vmatpush3.msra.mxu0 %v516_v11 }
0x3815   :  { %11331 = vmatprep.subr.mxu0 %v515_v12 }
0x3816   :  { %11332 = vmatpush3.msra.mxu0 %v515_v12 }
0x3817   :  { %11333 = vmatprep.subr.mxu0 %v514_v60 }
0x3818   :  { %11334 = vmatpush3.msra.mxu0 %v514_v60 }
0x3819   :  { %11335 = vmatprep.subr.mxu0 %v513_v14 }
0x381a   :  { %11336 = vmatpush3.msra.mxu0 %v513_v14 }
0x38d3   :  { %v11309_v20 = vpop.f32.mrf.mxu0 }
0x38d4   :  { %v9474_v21 = vadd.f32 %v11309_v20, %v10046_v19  ;;  %v10054_v20 = vld [vmem:[%s12899_s25] ss:$0 sm:$0xff] }
0x38d5   :  { %v9468_v22 = vpop.f32.mrf.mxu0 }
0x38d6   :  { %v9469_v23 = vadd.f32 %v10046_v19, %v9468_v22  ;;  %v9478_v28 = vmax.f32 %v9474_v21, 0.0 }
0x38d8   :  { %v9477_v26 = vmax.f32 %v9469_v23, 0.0 }
0x38da   :  { %11326 = vmatprep.mubr.msk.f32.mxu1 %vm2014_vm4, %v9477_v26 }
0x38db   :  { %11327 = vmatmul.mubr.msk.f32.vlgmr.msra.gmra.mxu1 %vm2014_vm4, %v9478_v28  ;;  %v10055_v28 = vld [vmem:[%s12900_s9] ss:$0 sm:$0xff] }
0x399b   :  { %v11328_v30 = vpop.f32.mrf.mxu1 }
0x399c   :  { %v9563_v31 = vadd.f32 %v11328_v30, %v10049_v27 }
0x399d   :  { %v9557_v29 = vpop.f32.mrf.mxu1 }
0x399e   :  { %v9558_v32 = vadd.f32 %v10049_v27, %v9557_v29  ;;  %v9567_v7 = vadd.f32 %v9563_v31, %v9389_v58  ;;  %v10056_v29 = vld [vmem:[#allocation2] ss:$0 sm:$0xff] }
0x39a0   :  { %v9571_v33 = vsel %vm557_vm0, %v9567_v7, 0.0  ;;  %v9566_v6 = vadd.f32 %v9558_v32, %v9388_v10 }
0x39a1   :  { %9572 = vadd.xlane.f32.xlu1 %v9571_v33 }
0x39a2   :  { %v9568_v34 = vsel %vm557_vm0, %v9566_v6, 0.0 }
0x39a3   :  { %9569 = vadd.xlane.f32.xlu0 %v9568_v34 }
0x3a2a   :  { %v9573_v35 = vpop.xlane.xlu1 %9572 }
0x3a2b   :  { %v9575_v42 = vmul.f32 0.03125, %v9573_v35 }
0x3a2c   :  { %v9570_v36 = vpop.xlane.xlu0 %9569 }
0x3a2d   :  { %v9577_v37 = vsub.f32 %v9567_v7, %v9575_v42  ;;  %v9574_v38 = vmul.f32 0.03125, %v9570_v36 }
0x3a2f   :  { %v9576_v40 = vsub.f32 %v9566_v6, %v9574_v38  ;;  %v9579_v59 = vmul.f32 %v9577_v37, %v9577_v37 }
0x3a31   :  { %v9583_v45 = vsel %vm557_vm0, %v9579_v59, 0.0  ;;  %v9578_v24 = vmul.f32 %v9576_v40, %v9576_v40 }
0x3a32   :  { %9584 = vadd.xlane.f32.xlu1 %v9583_v45 }
0x3a33   :  { %v9580_v13 = vsel %vm557_vm0, %v9578_v24, 0.0 }
0x3a34   :  { %9581 = vadd.xlane.f32.xlu0 %v9580_v13 }
0x3abb   :  { %v9585_v46 = vpop.xlane.xlu1 %9584 }
0x3abc   :  { %v9587_v47 = vmul.f32 0.03125, %v9585_v46 }
0x3abd   :  { %v9582_v48 = vpop.xlane.xlu0 %9581 }
0x3abe   :  { %v9589_v9 = vadd.f32 1e-05, %v9587_v47  ;;  %v9586_v16 = vmul.f32 0.03125, %v9582_v48 }
0x3ac0   :  { %11531 = vrsqrt.f32 %v9589_v9  ;;  %v9588_v49 = vadd.f32 1e-05, %v9586_v16 }
0x3ac2   :  { %11533 = vrsqrt.f32 %v9588_v49 }
0x3acd   :  { %v11532_v50 = vpop.eup %11531 }
0x3ace   :  { %v9593_v43 = vmul.f32 %v11532_v50, %v9577_v37 }
0x3acf   :  { %v11534_v41 = vpop.eup %11533 }
0x3ad0   :  { %v9601_v25 = vmul.f32 %v10052_v52, %v9593_v43  ;;  %v9592_v39 = vmul.f32 %v11534_v41, %v9576_v40 }
0x3ad2   :  { %v9609_v44 = vadd.f32 %v10053_v51, %v9601_v25  ;;  %v9600_v8 = vmul.f32 %v10052_v52, %v9592_v39 }
0x3ad4   :  { %v9613_v53 = vsel %vm557_vm0, %v9609_v44, 0.0  ;;  %v9608_v54 = vadd.f32 %v10053_v51, %v9600_v8 }
0x3ad5   :  { %9614 = vadd.xlane.f32.xlu1 %v9613_v53 }
0x3ad6   :  { %v9610_v55 = vsel %vm557_vm0, %v9608_v54, 0.0 }
0x3ad7   :  { %9611 = vadd.xlane.f32.xlu0 %v9610_v55 }
0x3b5e   :  { %v9615_v56 = vpop.xlane.xlu1 %9614 }
0x3b5f   :  { %v9617_v61 = vmul.f32 0.03125, %v9615_v56 }
0x3b60   :  { %v9612_v62 = vpop.xlane.xlu0 %9611 }
0x3b61   :  { %v9619_v63 = vsub.f32 %v9609_v44, %v9617_v61  ;;  %v9616_v0 = vmul.f32 0.03125, %v9612_v62 }
0x3b63   :  { %v9618_v1 = vsub.f32 %v9608_v54, %v9616_v0  ;;  %v9621_v2 = vmul.f32 %v9619_v63, %v9619_v63 }
0x3b65   :  { %v9625_v3 = vsel %vm557_vm0, %v9621_v2, 0.0  ;;  %v9620_v4 = vmul.f32 %v9618_v1, %v9618_v1 }
0x3b66   :  { %9626 = vadd.xlane.f32.xlu1 %v9625_v3 }
0x3b67   :  { %v9622_v5 = vsel %vm557_vm0, %v9620_v4, 0.0 }
0x3b68   :  { %9623 = vadd.xlane.f32.xlu0 %v9622_v5 }
0x3bef   :  { %v9627_v10 = vpop.xlane.xlu1 %9626 }
0x3bf0   :  { %v9629_v58 = vmul.f32 0.03125, %v9627_v10 }
0x3bf1   :  { %v9624_v15 = vpop.xlane.xlu0 %9623 }
0x3bf2   :  { %v9631_v17 = vadd.f32 1e-05, %v9629_v58  ;;  %v9628_v18 = vmul.f32 0.03125, %v9624_v15 }
0x3bf4   :  { %11535 = vrsqrt.f32 %v9631_v17  ;;  %v9630_v57 = vadd.f32 1e-05, %v9628_v18 }
0x3bf6   :  { %11537 = vrsqrt.f32 %v9630_v57 }
0x3c01   :  { %v11536_v19 = vpop.eup %11535 }
0x3c02   :  { %v9635_v21 = vmul.f32 %v11536_v19, %v9619_v63 }
0x3c03   :  { %v11538_v22 = vpop.eup %11537 }
0x3c04   :  { %v9634_v23 = vmul.f32 %v11538_v22, %v9618_v1  ;;  %v9643_v26 = vmul.f32 %v10054_v20, %v9635_v21 }
0x3c06   :  { %v9642_v27 = vmul.f32 %v10054_v20, %v9634_v23  ;;  %v9651_v31 = vadd.f32 %v10055_v28, %v9643_v26 }
0x3c08   :  { %v9650_v30 = vadd.f32 %v10055_v28, %v9642_v27 }
0x3c0a   :  { %11337 = vmatprep.mubr.msk.f32.mxu0 %vm557_vm0, %v9650_v30 }
0x3c0b   :  { %11338 = vmatmul.mubr.msk.f32.vlgmr.msra.gmra.mxu0 %vm557_vm0, %v9651_v31 }
0x3ccb   :  { %v11339_v32 = vpop.f32.mrf.mxu0 }
0x3ccc   :  { %v9736_v7 = vadd.f32 %v11339_v32, %v10056_v29 }
0x3ccd   :  { %v9730_v33 = vpop.f32.mrf.mxu0 }
0x3cce   :  { %9740 = vst [vmem:[%s11877_s3 + $0x8] sm:$0xff] %v9736_v7  ;;  %v9731_v6 = vadd.f32 %v10056_v29, %v9730_v33 }
0x3cd0   :  { %9739 = vst [vmem:[%s11877_s3] sm:$0xff] %v9731_v6 }
0x3cd1   :  { %9745 = vsyncpa [#allocation3], 1 }

</bundles_post_ra>
